<compile_context>
chip_gen: v7x
topology: tpu7x:2x2x1
jax: 0.10.0
libtpu: 0.0.40
codegen_flags: <defaults>
</compile_context>

<pallas_src>
import jax
import jax.numpy as jnp
import numpy as np
from jax.experimental import pallas as pl
from jax.experimental.pallas import tpu as pltpu

_BT = 8  # batch tile per grid step (multiple of 8 -> sublane aligned)


# ------------------------------ fused kernel -------------------------------

def _fused_cnn_kernel(x_ref, wt_ref, bc_ref, w1_ref, b1_ref, w2_ref, b2_ref,
                      o_ref):
    """conv1(5x5) + ReLU + 2x2 maxpool + fc1 + ReLU + fc2, fully fused.

    x_ref : (28, Bt, 28)      image rows, batch on sublanes, width on lanes
    wt_ref: (5, 28, 768)      Toeplitz conv weights, col = par*384 + owh*32 + c
    bc_ref: (1, 128)          conv bias tiled 4x along channels
    w1_ref: (12, 3, 128, 512) bf16 fc1 weights blocked as (oh_half, grp, feat, out)
    b1_ref: (1, 512)
    w2_ref: (512, 128)        fc2 weights, outputs padded 10 -> 128 lanes
    b2_ref: (1, 128)
    o_ref : (Bt, 128)         logits (cols >= 10 are zero padding)
    """
    bt = x_ref.shape[1]
    rows = 24 * bt                                  # conv output rows = (oh, b)

    h = jnp.zeros((bt, 512), jnp.float32)           # fc1 accumulator (f32)
    for g in range(3):                              # 128-wide conv column groups
        a_even = jnp.zeros((rows, 128), jnp.float32)   # ow = 2*owh   columns
        a_odd = jnp.zeros((rows, 128), jnp.float32)    # ow = 2*owh+1 columns
        for kh in range(5):                         # conv = 5 Toeplitz matmuls
            xk = x_ref[kh:kh + 24, :, :].reshape(rows, 28)
            a_even = a_even + jnp.dot(
                xk, wt_ref[kh, :, 128 * g:128 * (g + 1)],
                preferred_element_type=jnp.float32)
            a_odd = a_odd + jnp.dot(
                xk, wt_ref[kh, :, 384 + 128 * g:384 + 128 * (g + 1)],
                preferred_element_type=jnp.float32)
        # bias + ReLU + pool over output-width pairs (ReLU / max commute).
        yw = jnp.maximum(jnp.maximum(a_even, a_odd) + bc_ref[...], 0.0)
        # pool over output-height pairs, contract straight into fc1 (bf16 MXU).
        for q in range(12):
            blk = jnp.maximum(yw[(2 * q) * bt:(2 * q + 1) * bt, :],
                              yw[(2 * q + 1) * bt:(2 * q + 2) * bt, :])
            h = h + jnp.dot(blk.astype(jnp.bfloat16), w1_ref[q, g],
                            preferred_element_type=jnp.float32)

    h = jnp.maximum(h + b1_ref[...], 0.0)
    o_ref[...] = jnp.dot(h, w2_ref[...],
                         preferred_element_type=jnp.float32) + b2_ref[...]


# ------------------------------ forward wrapper -----------------------------

def cnn_forward(x, prep):
    """x: (B, 1, 28, 28) float32 -> logits (B, 10)."""
    wt, bc_row, w1b, b1_row, w2p, b2_row = prep
    B = x.shape[0]
    bpad = ((B + _BT - 1) // _BT) * _BT

    xs = x[:, 0]                                    # (B, 28, 28)
    if bpad != B:
        xs = jnp.pad(xs, ((0, bpad - B), (0, 0), (0, 0)))
    xt = jnp.transpose(xs, (1, 0, 2))               # (28, bpad, 28)

    out = pl.pallas_call(
        _fused_cnn_kernel,
        out_shape=jax.ShapeDtypeStruct((bpad, 128), jnp.float32),
        grid_spec=pltpu.PrefetchScalarGridSpec(
            num_scalar_prefetch=0,
            grid=(bpad // _BT,),
            in_specs=[
                pl.BlockSpec((28, _BT, 28), lambda i: (0, i, 0)),
                pl.BlockSpec((5, 28, 768), lambda i: (0, 0, 0)),
                pl.BlockSpec((1, 128), lambda i: (0, 0)),
                pl.BlockSpec((12, 3, 128, 512), lambda i: (0, 0, 0, 0)),
                pl.BlockSpec((1, 512), lambda i: (0, 0)),
                pl.BlockSpec((512, 128), lambda i: (0, 0)),
                pl.BlockSpec((1, 128), lambda i: (0, 0)),
            ],
            out_specs=pl.BlockSpec((_BT, 128), lambda i: (i, 0)),
        ),
        compiler_params=pltpu.CompilerParams(
            dimension_semantics=("parallel",),
            vmem_limit_bytes=32 << 20,
        ),
    )(xt, wt, bc_row, w1b, b1_row, w2p, b2_row)
    return out[:B, :10]


# ------------------------- one-time parameter repack ------------------------

def prepare_params(params):
    """Fold all layout work (im2col weights, pool parity order, NCHW flatten
    permutation, transposes, lane padding, bf16 cast) into the weights once,
    outside the hot path."""
    wc, bc, w1, b1, w2, b2 = params
    wc_np = np.asarray(wc, np.float32).reshape(32, 5, 5)   # (c, kh, kw)
    bc_np = np.asarray(bc, np.float32)
    w1_np = np.asarray(w1, np.float32)                     # (512, 4608) torch order
    b1_np = np.asarray(b1, np.float32)
    w2_np = np.asarray(w2, np.float32)                     # (10, 512)
    b2_np = np.asarray(b2, np.float32)

    # Toeplitz conv weight: wt[kh, iw, par*384 + owh*32 + c] = wc[c, kh, iw-ow]
    # with ow = 2*owh + par and 0 <= iw - ow < 5.
    wt = np.zeros((5, 28, 2, 12, 32), np.float32)
    for kh in range(5):
        for ow in range(24):
            par, owh = ow % 2, ow // 2
            for kw in range(5):
                wt[kh, ow + kw, par, owh, :] = wc_np[:, kh, kw]
    wt = wt.reshape(5, 28, 768)

    bc_row = np.tile(bc_np, 4).reshape(1, 128)

    # fc1 weights: torch feature index c*144 + i*12 + j maps to block
    # (q=i, g=j//4, (j%4)*32 + c).
    w1_r = w1_np.reshape(512, 32, 12, 12)                  # (out, c, i, j)
    w1_b = np.transpose(w1_r, (2, 3, 1, 0)).reshape(12, 3, 128, 512)
    b1_row = b1_np.reshape(1, 512)

    # fc2: transpose + pad outputs 10 -> 128 so the final store is lane-dense.
    w2p = np.zeros((512, 128), np.float32)
    w2p[:, :10] = w2_np.T
    b2p = np.zeros((1, 128), np.float32)
    b2p[0, :10] = b2_np

    return (jnp.asarray(wt), jnp.asarray(bc_row),
            jnp.asarray(w1_b, dtype=jnp.bfloat16), jnp.asarray(b1_row),
            jnp.asarray(w2p), jnp.asarray(b2p))


# -------------------------- params / pure-JAX ref ---------------------------

def init_params(key):
    """Deterministic params with torch-default-like uniform init."""
    ks = jax.random.split(key, 6)

    def u(k, shape, fan_in):
        bound = 1.0 / np.sqrt(fan_in)
        return jax.random.uniform(k, shape, jnp.float32, -bound, bound)

    wc = u(ks[0], (32, 1, 5, 5), 25)                       # conv1.weight (OIHW)
    bc = u(ks[1], (32,), 25)                               # conv1.bias
    w1 = u(ks[2], (512, 12 * 12 * 32), 12 * 12 * 32)       # fc1.weight
    b1 = u(ks[3], (512,), 12 * 12 * 32)                    # fc1.bias
    w2 = u(ks[4], (10, 512), 512)                          # fc2.weight
    b2 = u(ks[5], (10,), 512)                              # fc2.bias
    return (wc, bc, w1, b1, w2, b2)


def cnn_reference(x, params):
    """Pure-JAX reference mirroring the PyTorch forward."""
    wc, bc, w1, b1, w2, b2 = params
    hi = jax.lax.Precision.HIGHEST
    y = jax.lax.conv_general_dilated(
        x, wc, (1, 1), 'VALID',
        dimension_numbers=('NCHW', 'OIHW', 'NCHW'), precision=hi)
    y = jax.nn.relu(y + bc.reshape(1, 32, 1, 1))
    y = jax.lax.reduce_window(y, -jnp.inf, jax.lax.max,
                              (1, 1, 2, 2), (1, 1, 2, 2), 'VALID')
    flat = y.reshape(x.shape[0], -1)                       # NCHW flatten
    h = jax.nn.relu(jnp.dot(flat, w1.T, precision=hi) + b1)
    return jnp.dot(h, w2.T, precision=hi) + b2


# ----------------------------------- main -----------------------------------

if __name__ == "__main__":
    key = jax.random.PRNGKey(0)
    kx, kp = jax.random.split(key)

    # MNIST-shaped input (spatial size fixed by the 12*12*32 flatten).
    x = jax.random.normal(kx, (2, 1, 28, 28), jnp.float32)
    params = init_params(kp)
    prep = prepare_params(params)

    out = jax.jit(cnn_forward)(x, prep)
    out = jax.block_until_ready(out)
    assert out.shape == (2, 10), out.shape

    ref = cnn_reference(x, params)
    np.testing.assert_allclose(np.asarray(out), np.asarray(ref),
                               rtol=2e-2, atol=2e-2)
    print("KERNEL_OK")
</pallas_src>

<mosaic_0001>
module attributes {stable_mosaic.version = 11 : i64} {
  func.func @_fused_cnn_kernel(%arg0: i32, %arg1: memref<28x8x28xf32, #tpu.memory_space<vmem>>, %arg2: memref<5x28x768xf32, #tpu.memory_space<vmem>>, %arg3: memref<1x128xf32, #tpu.memory_space<vmem>>, %arg4: memref<12x3x128x512xbf16, #tpu.memory_space<vmem>>, %arg5: memref<1x512xf32, #tpu.memory_space<vmem>>, %arg6: memref<512x128xf32, #tpu.memory_space<vmem>>, %arg7: memref<1x128xf32, #tpu.memory_space<vmem>>, %arg8: memref<8x128xf32, #tpu.memory_space<vmem>>) attributes {dimension_semantics = [#tpu.dimension_semantics<parallel>], iteration_bounds = array<i64: 1>, scalar_prefetch = 0 : i64, scratch_operands = 0 : i64, tpu.core_type = #tpu.core_type<tc>, window_params = [{transform_indices = @transform_0, window_bounds = array<i64: 28, 8, 28>}, {pipeline_mode = #tpu.pipeline_mode<synchronous>, transform_indices = @transform_1, window_bounds = array<i64: 5, 28, 768>}, {pipeline_mode = #tpu.pipeline_mode<synchronous>, transform_indices = @transform_2, window_bounds = array<i64: 1, 128>}, {pipeline_mode = #tpu.pipeline_mode<synchronous>, transform_indices = @transform_3, window_bounds = array<i64: 12, 3, 128, 512>}, {pipeline_mode = #tpu.pipeline_mode<synchronous>, transform_indices = @transform_4, window_bounds = array<i64: 1, 512>}, {pipeline_mode = #tpu.pipeline_mode<synchronous>, transform_indices = @transform_5, window_bounds = array<i64: 512, 128>}, {pipeline_mode = #tpu.pipeline_mode<synchronous>, transform_indices = @transform_6, window_bounds = array<i64: 1, 128>}, {transform_indices = @transform_7, window_bounds = array<i64: 8, 128>}]} {
    %cst = arith.constant 0.000000e+00 : f32
    %0 = vector.broadcast %cst : f32 to vector<8x512xf32>
    %cst_0 = arith.constant 0.000000e+00 : f32
    %1 = vector.broadcast %cst_0 : f32 to vector<192x128xf32>
    %cst_1 = arith.constant 0.000000e+00 : f32
    %2 = vector.broadcast %cst_1 : f32 to vector<192x128xf32>
    %c0 = arith.constant 0 : index
    %c0_2 = arith.constant 0 : index
    %c0_3 = arith.constant 0 : index
    %3 = vector.load %arg1[%c0, %c0_2, %c0_3] : memref<28x8x28xf32, #tpu.memory_space<vmem>>, vector<24x8x28xf32>
    %4 = vector.shape_cast %3 : vector<24x8x28xf32> to vector<192x28xf32>
    %c0_4 = arith.constant 0 : index
    %c0_5 = arith.constant 0 : index
    %c0_6 = arith.constant 0 : index
    %5 = vector.load %arg2[%c0_4, %c0_5, %c0_6] : memref<5x28x768xf32, #tpu.memory_space<vmem>>, vector<1x28x128xf32>
    %6 = vector.shape_cast %5 : vector<1x28x128xf32> to vector<28x128xf32>
    %cst_7 = arith.constant dense<0.000000e+00> : vector<192x128xf32>
    %7 = tpu.matmul %4, %6, %cst_7 {dimension_numbers = #tpu.dot_dimension_numbers<[1], [0], [0], [1], [0, 0, 1, 1], [], []>} : vector<192x28xf32>, vector<28x128xf32>, vector<192x128xf32> -> vector<192x128xf32>
    %8 = arith.addf %1, %7 : vector<192x128xf32>
    %c0_8 = arith.constant 0 : index
    %c0_9 = arith.constant 0 : index
    %c384 = arith.constant 384 : index
    %9 = vector.load %arg2[%c0_8, %c0_9, %c384] : memref<5x28x768xf32, #tpu.memory_space<vmem>>, vector<1x28x128xf32>
    %10 = vector.shape_cast %9 : vector<1x28x128xf32> to vector<28x128xf32>
    %cst_10 = arith.constant dense<0.000000e+00> : vector<192x128xf32>
    %11 = tpu.matmul %4, %10, %cst_10 {dimension_numbers = #tpu.dot_dimension_numbers<[1], [0], [0], [1], [0, 0, 1, 1], [], []>} : vector<192x28xf32>, vector<28x128xf32>, vector<192x128xf32> -> vector<192x128xf32>
    %12 = arith.addf %2, %11 : vector<192x128xf32>
    %c1 = arith.constant 1 : index
    %c0_11 = arith.constant 0 : index
    %c0_12 = arith.constant 0 : index
    %13 = vector.load %arg1[%c1, %c0_11, %c0_12] : memref<28x8x28xf32, #tpu.memory_space<vmem>>, vector<24x8x28xf32>
    %14 = vector.shape_cast %13 : vector<24x8x28xf32> to vector<192x28xf32>
    %c1_13 = arith.constant 1 : index
    %c0_14 = arith.constant 0 : index
    %c0_15 = arith.constant 0 : index
    %15 = vector.load %arg2[%c1_13, %c0_14, %c0_15] : memref<5x28x768xf32, #tpu.memory_space<vmem>>, vector<1x28x128xf32>
    %16 = vector.shape_cast %15 : vector<1x28x128xf32> to vector<28x128xf32>
    %cst_16 = arith.constant dense<0.000000e+00> : vector<192x128xf32>
    %17 = tpu.matmul %14, %16, %cst_16 {dimension_numbers = #tpu.dot_dimension_numbers<[1], [0], [0], [1], [0, 0, 1, 1], [], []>} : vector<192x28xf32>, vector<28x128xf32>, vector<192x128xf32> -> vector<192x128xf32>
    %18 = arith.addf %8, %17 : vector<192x128xf32>
    %c1_17 = arith.constant 1 : index
    %c0_18 = arith.constant 0 : index
    %c384_19 = arith.constant 384 : index
    %19 = vector.load %arg2[%c1_17, %c0_18, %c384_19] : memref<5x28x768xf32, #tpu.memory_space<vmem>>, vector<1x28x128xf32>
    %20 = vector.shape_cast %19 : vector<1x28x128xf32> to vector<28x128xf32>
    %cst_20 = arith.constant dense<0.000000e+00> : vector<192x128xf32>
    %21 = tpu.matmul %14, %20, %cst_20 {dimension_numbers = #tpu.dot_dimension_numbers<[1], [0], [0], [1], [0, 0, 1, 1], [], []>} : vector<192x28xf32>, vector<28x128xf32>, vector<192x128xf32> -> vector<192x128xf32>
    %22 = arith.addf %12, %21 : vector<192x128xf32>
    %c2 = arith.constant 2 : index
    %c0_21 = arith.constant 0 : index
    %c0_22 = arith.constant 0 : index
    %23 = vector.load %arg1[%c2, %c0_21, %c0_22] : memref<28x8x28xf32, #tpu.memory_space<vmem>>, vector<24x8x28xf32>
    %24 = vector.shape_cast %23 : vector<24x8x28xf32> to vector<192x28xf32>
    %c2_23 = arith.constant 2 : index
    %c0_24 = arith.constant 0 : index
    %c0_25 = arith.constant 0 : index
    %25 = vector.load %arg2[%c2_23, %c0_24, %c0_25] : memref<5x28x768xf32, #tpu.memory_space<vmem>>, vector<1x28x128xf32>
    %26 = vector.shape_cast %25 : vector<1x28x128xf32> to vector<28x128xf32>
    %cst_26 = arith.constant dense<0.000000e+00> : vector<192x128xf32>
    %27 = tpu.matmul %24, %26, %cst_26 {dimension_numbers = #tpu.dot_dimension_numbers<[1], [0], [0], [1], [0, 0, 1, 1], [], []>} : vector<192x28xf32>, vector<28x128xf32>, vector<192x128xf32> -> vector<192x128xf32>
    %28 = arith.addf %18, %27 : vector<192x128xf32>
    %c2_27 = arith.constant 2 : index
    %c0_28 = arith.constant 0 : index
    %c384_29 = arith.constant 384 : index
    %29 = vector.load %arg2[%c2_27, %c0_28, %c384_29] : memref<5x28x768xf32, #tpu.memory_space<vmem>>, vector<1x28x128xf32>
    %30 = vector.shape_cast %29 : vector<1x28x128xf32> to vector<28x128xf32>
    %cst_30 = arith.constant dense<0.000000e+00> : vector<192x128xf32>
    %31 = tpu.matmul %24, %30, %cst_30 {dimension_numbers = #tpu.dot_dimension_numbers<[1], [0], [0], [1], [0, 0, 1, 1], [], []>} : vector<192x28xf32>, vector<28x128xf32>, vector<192x128xf32> -> vector<192x128xf32>
    %32 = arith.addf %22, %31 : vector<192x128xf32>
    %c3 = arith.constant 3 : index
    %c0_31 = arith.constant 0 : index
    %c0_32 = arith.constant 0 : index
    %33 = vector.load %arg1[%c3, %c0_31, %c0_32] : memref<28x8x28xf32, #tpu.memory_space<vmem>>, vector<24x8x28xf32>
    %34 = vector.shape_cast %33 : vector<24x8x28xf32> to vector<192x28xf32>
    %c3_33 = arith.constant 3 : index
    %c0_34 = arith.constant 0 : index
    %c0_35 = arith.constant 0 : index
    %35 = vector.load %arg2[%c3_33, %c0_34, %c0_35] : memref<5x28x768xf32, #tpu.memory_space<vmem>>, vector<1x28x128xf32>
    %36 = vector.shape_cast %35 : vector<1x28x128xf32> to vector<28x128xf32>
    %cst_36 = arith.constant dense<0.000000e+00> : vector<192x128xf32>
    %37 = tpu.matmul %34, %36, %cst_36 {dimension_numbers = #tpu.dot_dimension_numbers<[1], [0], [0], [1], [0, 0, 1, 1], [], []>} : vector<192x28xf32>, vector<28x128xf32>, vector<192x128xf32> -> vector<192x128xf32>
    %38 = arith.addf %28, %37 : vector<192x128xf32>
    %c3_37 = arith.constant 3 : index
    %c0_38 = arith.constant 0 : index
    %c384_39 = arith.constant 384 : index
    %39 = vector.load %arg2[%c3_37, %c0_38, %c384_39] : memref<5x28x768xf32, #tpu.memory_space<vmem>>, vector<1x28x128xf32>
    %40 = vector.shape_cast %39 : vector<1x28x128xf32> to vector<28x128xf32>
    %cst_40 = arith.constant dense<0.000000e+00> : vector<192x128xf32>
    %41 = tpu.matmul %34, %40, %cst_40 {dimension_numbers = #tpu.dot_dimension_numbers<[1], [0], [0], [1], [0, 0, 1, 1], [], []>} : vector<192x28xf32>, vector<28x128xf32>, vector<192x128xf32> -> vector<192x128xf32>
    %42 = arith.addf %32, %41 : vector<192x128xf32>
    %c4 = arith.constant 4 : index
    %c0_41 = arith.constant 0 : index
    %c0_42 = arith.constant 0 : index
    %43 = vector.load %arg1[%c4, %c0_41, %c0_42] : memref<28x8x28xf32, #tpu.memory_space<vmem>>, vector<24x8x28xf32>
    %44 = vector.shape_cast %43 : vector<24x8x28xf32> to vector<192x28xf32>
    %c4_43 = arith.constant 4 : index
    %c0_44 = arith.constant 0 : index
    %c0_45 = arith.constant 0 : index
    %45 = vector.load %arg2[%c4_43, %c0_44, %c0_45] : memref<5x28x768xf32, #tpu.memory_space<vmem>>, vector<1x28x128xf32>
    %46 = vector.shape_cast %45 : vector<1x28x128xf32> to vector<28x128xf32>
    %cst_46 = arith.constant dense<0.000000e+00> : vector<192x128xf32>
    %47 = tpu.matmul %44, %46, %cst_46 {dimension_numbers = #tpu.dot_dimension_numbers<[1], [0], [0], [1], [0, 0, 1, 1], [], []>} : vector<192x28xf32>, vector<28x128xf32>, vector<192x128xf32> -> vector<192x128xf32>
    %48 = arith.addf %38, %47 : vector<192x128xf32>
    %c4_47 = arith.constant 4 : index
    %c0_48 = arith.constant 0 : index
    %c384_49 = arith.constant 384 : index
    %49 = vector.load %arg2[%c4_47, %c0_48, %c384_49] : memref<5x28x768xf32, #tpu.memory_space<vmem>>, vector<1x28x128xf32>
    %50 = vector.shape_cast %49 : vector<1x28x128xf32> to vector<28x128xf32>
    %cst_50 = arith.constant dense<0.000000e+00> : vector<192x128xf32>
    %51 = tpu.matmul %44, %50, %cst_50 {dimension_numbers = #tpu.dot_dimension_numbers<[1], [0], [0], [1], [0, 0, 1, 1], [], []>} : vector<192x28xf32>, vector<28x128xf32>, vector<192x128xf32> -> vector<192x128xf32>
    %52 = arith.addf %42, %51 : vector<192x128xf32>
    %53 = arith.maximumf %48, %52 : vector<192x128xf32>
    %c0_51 = arith.constant 0 : index
    %c0_52 = arith.constant 0 : index
    %54 = vector.load %arg3[%c0_51, %c0_52] : memref<1x128xf32, #tpu.memory_space<vmem>>, vector<1x128xf32>
    %55 = vector.broadcast %54 : vector<1x128xf32> to vector<192x128xf32>
    %56 = arith.addf %53, %55 : vector<192x128xf32>
    %cst_53 = arith.constant 0.000000e+00 : f32
    %57 = vector.broadcast %cst_53 : f32 to vector<192x128xf32>
    %58 = arith.maximumf %56, %57 : vector<192x128xf32>
    %59 = vector.extract_strided_slice %58 {offsets = [0, 0], sizes = [8, 128], strides = [1, 1]} : vector<192x128xf32> to vector<8x128xf32>
    %60 = vector.extract_strided_slice %58 {offsets = [8, 0], sizes = [8, 128], strides = [1, 1]} : vector<192x128xf32> to vector<8x128xf32>
    %61 = arith.maximumf %59, %60 : vector<8x128xf32>
    %62 = arith.truncf %61 : vector<8x128xf32> to vector<8x128xbf16>
    %c0_54 = arith.constant 0 : index
    %c0_55 = arith.constant 0 : index
    %c0_56 = arith.constant 0 : index
    %c0_57 = arith.constant 0 : index
    %63 = vector.load %arg4[%c0_54, %c0_55, %c0_56, %c0_57] : memref<12x3x128x512xbf16, #tpu.memory_space<vmem>>, vector<1x1x128x512xbf16>
    %64 = vector.shape_cast %63 : vector<1x1x128x512xbf16> to vector<128x512xbf16>
    %cst_58 = arith.constant dense<0.000000e+00> : vector<8x512xf32>
    %65 = tpu.matmul %62, %64, %cst_58 {dimension_numbers = #tpu.dot_dimension_numbers<[1], [0], [0], [1], [0, 0, 1, 1], [], []>} : vector<8x128xbf16>, vector<128x512xbf16>, vector<8x512xf32> -> vector<8x512xf32>
    %66 = arith.addf %0, %65 : vector<8x512xf32>
    %67 = vector.extract_strided_slice %58 {offsets = [16, 0], sizes = [8, 128], strides = [1, 1]} : vector<192x128xf32> to vector<8x128xf32>
    %68 = vector.extract_strided_slice %58 {offsets = [24, 0], sizes = [8, 128], strides = [1, 1]} : vector<192x128xf32> to vector<8x128xf32>
    %69 = arith.maximumf %67, %68 : vector<8x128xf32>
    %70 = arith.truncf %69 : vector<8x128xf32> to vector<8x128xbf16>
    %c1_59 = arith.constant 1 : index
    %c0_60 = arith.constant 0 : index
    %c0_61 = arith.constant 0 : index
    %c0_62 = arith.constant 0 : index
    %71 = vector.load %arg4[%c1_59, %c0_60, %c0_61, %c0_62] : memref<12x3x128x512xbf16, #tpu.memory_space<vmem>>, vector<1x1x128x512xbf16>
    %72 = vector.shape_cast %71 : vector<1x1x128x512xbf16> to vector<128x512xbf16>
    %cst_63 = arith.constant dense<0.000000e+00> : vector<8x512xf32>
    %73 = tpu.matmul %70, %72, %cst_63 {dimension_numbers = #tpu.dot_dimension_numbers<[1], [0], [0], [1], [0, 0, 1, 1], [], []>} : vector<8x128xbf16>, vector<128x512xbf16>, vector<8x512xf32> -> vector<8x512xf32>
    %74 = arith.addf %66, %73 : vector<8x512xf32>
    %75 = vector.extract_strided_slice %58 {offsets = [32, 0], sizes = [8, 128], strides = [1, 1]} : vector<192x128xf32> to vector<8x128xf32>
    %76 = vector.extract_strided_slice %58 {offsets = [40, 0], sizes = [8, 128], strides = [1, 1]} : vector<192x128xf32> to vector<8x128xf32>
    %77 = arith.maximumf %75, %76 : vector<8x128xf32>
    %78 = arith.truncf %77 : vector<8x128xf32> to vector<8x128xbf16>
    %c2_64 = arith.constant 2 : index
    %c0_65 = arith.constant 0 : index
    %c0_66 = arith.constant 0 : index
    %c0_67 = arith.constant 0 : index
    %79 = vector.load %arg4[%c2_64, %c0_65, %c0_66, %c0_67] : memref<12x3x128x512xbf16, #tpu.memory_space<vmem>>, vector<1x1x128x512xbf16>
    %80 = vector.shape_cast %79 : vector<1x1x128x512xbf16> to vector<128x512xbf16>
    %cst_68 = arith.constant dense<0.000000e+00> : vector<8x512xf32>
    %81 = tpu.matmul %78, %80, %cst_68 {dimension_numbers = #tpu.dot_dimension_numbers<[1], [0], [0], [1], [0, 0, 1, 1], [], []>} : vector<8x128xbf16>, vector<128x512xbf16>, vector<8x512xf32> -> vector<8x512xf32>
    %82 = arith.addf %74, %81 : vector<8x512xf32>
    %83 = vector.extract_strided_slice %58 {offsets = [48, 0], sizes = [8, 128], strides = [1, 1]} : vector<192x128xf32> to vector<8x128xf32>
    %84 = vector.extract_strided_slice %58 {offsets = [56, 0], sizes = [8, 128], strides = [1, 1]} : vector<192x128xf32> to vector<8x128xf32>
    %85 = arith.maximumf %83, %84 : vector<8x128xf32>
    %86 = arith.truncf %85 : vector<8x128xf32> to vector<8x128xbf16>
    %c3_69 = arith.constant 3 : index
    %c0_70 = arith.constant 0 : index
    %c0_71 = arith.constant 0 : index
    %c0_72 = arith.constant 0 : index
    %87 = vector.load %arg4[%c3_69, %c0_70, %c0_71, %c0_72] : memref<12x3x128x512xbf16, #tpu.memory_space<vmem>>, vector<1x1x128x512xbf16>
    %88 = vector.shape_cast %87 : vector<1x1x128x512xbf16> to vector<128x512xbf16>
    %cst_73 = arith.constant dense<0.000000e+00> : vector<8x512xf32>
    %89 = tpu.matmul %86, %88, %cst_73 {dimension_numbers = #tpu.dot_dimension_numbers<[1], [0], [0], [1], [0, 0, 1, 1], [], []>} : vector<8x128xbf16>, vector<128x512xbf16>, vector<8x512xf32> -> vector<8x512xf32>
    %90 = arith.addf %82, %89 : vector<8x512xf32>
    %91 = vector.extract_strided_slice %58 {offsets = [64, 0], sizes = [8, 128], strides = [1, 1]} : vector<192x128xf32> to vector<8x128xf32>
    %92 = vector.extract_strided_slice %58 {offsets = [72, 0], sizes = [8, 128], strides = [1, 1]} : vector<192x128xf32> to vector<8x128xf32>
    %93 = arith.maximumf %91, %92 : vector<8x128xf32>
    %94 = arith.truncf %93 : vector<8x128xf32> to vector<8x128xbf16>
    %c4_74 = arith.constant 4 : index
    %c0_75 = arith.constant 0 : index
    %c0_76 = arith.constant 0 : index
    %c0_77 = arith.constant 0 : index
    %95 = vector.load %arg4[%c4_74, %c0_75, %c0_76, %c0_77] : memref<12x3x128x512xbf16, #tpu.memory_space<vmem>>, vector<1x1x128x512xbf16>
    %96 = vector.shape_cast %95 : vector<1x1x128x512xbf16> to vector<128x512xbf16>
    %cst_78 = arith.constant dense<0.000000e+00> : vector<8x512xf32>
    %97 = tpu.matmul %94, %96, %cst_78 {dimension_numbers = #tpu.dot_dimension_numbers<[1], [0], [0], [1], [0, 0, 1, 1], [], []>} : vector<8x128xbf16>, vector<128x512xbf16>, vector<8x512xf32> -> vector<8x512xf32>
    %98 = arith.addf %90, %97 : vector<8x512xf32>
    %99 = vector.extract_strided_slice %58 {offsets = [80, 0], sizes = [8, 128], strides = [1, 1]} : vector<192x128xf32> to vector<8x128xf32>
    %100 = vector.extract_strided_slice %58 {offsets = [88, 0], sizes = [8, 128], strides = [1, 1]} : vector<192x128xf32> to vector<8x128xf32>
    %101 = arith.maximumf %99, %100 : vector<8x128xf32>
    %102 = arith.truncf %101 : vector<8x128xf32> to vector<8x128xbf16>
    %c5 = arith.constant 5 : index
    %c0_79 = arith.constant 0 : index
    %c0_80 = arith.constant 0 : index
    %c0_81 = arith.constant 0 : index
    %103 = vector.load %arg4[%c5, %c0_79, %c0_80, %c0_81] : memref<12x3x128x512xbf16, #tpu.memory_space<vmem>>, vector<1x1x128x512xbf16>
    %104 = vector.shape_cast %103 : vector<1x1x128x512xbf16> to vector<128x512xbf16>
    %cst_82 = arith.constant dense<0.000000e+00> : vector<8x512xf32>
    %105 = tpu.matmul %102, %104, %cst_82 {dimension_numbers = #tpu.dot_dimension_numbers<[1], [0], [0], [1], [0, 0, 1, 1], [], []>} : vector<8x128xbf16>, vector<128x512xbf16>, vector<8x512xf32> -> vector<8x512xf32>
    %106 = arith.addf %98, %105 : vector<8x512xf32>
    %107 = vector.extract_strided_slice %58 {offsets = [96, 0], sizes = [8, 128], strides = [1, 1]} : vector<192x128xf32> to vector<8x128xf32>
    %108 = vector.extract_strided_slice %58 {offsets = [104, 0], sizes = [8, 128], strides = [1, 1]} : vector<192x128xf32> to vector<8x128xf32>
    %109 = arith.maximumf %107, %108 : vector<8x128xf32>
    %110 = arith.truncf %109 : vector<8x128xf32> to vector<8x128xbf16>
    %c6 = arith.constant 6 : index
    %c0_83 = arith.constant 0 : index
    %c0_84 = arith.constant 0 : index
    %c0_85 = arith.constant 0 : index
    %111 = vector.load %arg4[%c6, %c0_83, %c0_84, %c0_85] : memref<12x3x128x512xbf16, #tpu.memory_space<vmem>>, vector<1x1x128x512xbf16>
    %112 = vector.shape_cast %111 : vector<1x1x128x512xbf16> to vector<128x512xbf16>
    %cst_86 = arith.constant dense<0.000000e+00> : vector<8x512xf32>
    %113 = tpu.matmul %110, %112, %cst_86 {dimension_numbers = #tpu.dot_dimension_numbers<[1], [0], [0], [1], [0, 0, 1, 1], [], []>} : vector<8x128xbf16>, vector<128x512xbf16>, vector<8x512xf32> -> vector<8x512xf32>
    %114 = arith.addf %106, %113 : vector<8x512xf32>
    %115 = vector.extract_strided_slice %58 {offsets = [112, 0], sizes = [8, 128], strides = [1, 1]} : vector<192x128xf32> to vector<8x128xf32>
    %116 = vector.extract_strided_slice %58 {offsets = [120, 0], sizes = [8, 128], strides = [1, 1]} : vector<192x128xf32> to vector<8x128xf32>
    %117 = arith.maximumf %115, %116 : vector<8x128xf32>
    %118 = arith.truncf %117 : vector<8x128xf32> to vector<8x128xbf16>
    %c7 = arith.constant 7 : index
    %c0_87 = arith.constant 0 : index
    %c0_88 = arith.constant 0 : index
    %c0_89 = arith.constant 0 : index
    %119 = vector.load %arg4[%c7, %c0_87, %c0_88, %c0_89] : memref<12x3x128x512xbf16, #tpu.memory_space<vmem>>, vector<1x1x128x512xbf16>
    %120 = vector.shape_cast %119 : vector<1x1x128x512xbf16> to vector<128x512xbf16>
    %cst_90 = arith.constant dense<0.000000e+00> : vector<8x512xf32>
    %121 = tpu.matmul %118, %120, %cst_90 {dimension_numbers = #tpu.dot_dimension_numbers<[1], [0], [0], [1], [0, 0, 1, 1], [], []>} : vector<8x128xbf16>, vector<128x512xbf16>, vector<8x512xf32> -> vector<8x512xf32>
    %122 = arith.addf %114, %121 : vector<8x512xf32>
    %123 = vector.extract_strided_slice %58 {offsets = [128, 0], sizes = [8, 128], strides = [1, 1]} : vector<192x128xf32> to vector<8x128xf32>
    %124 = vector.extract_strided_slice %58 {offsets = [136, 0], sizes = [8, 128], strides = [1, 1]} : vector<192x128xf32> to vector<8x128xf32>
    %125 = arith.maximumf %123, %124 : vector<8x128xf32>
    %126 = arith.truncf %125 : vector<8x128xf32> to vector<8x128xbf16>
    %c8 = arith.constant 8 : index
    %c0_91 = arith.constant 0 : index
    %c0_92 = arith.constant 0 : index
    %c0_93 = arith.constant 0 : index
    %127 = vector.load %arg4[%c8, %c0_91, %c0_92, %c0_93] : memref<12x3x128x512xbf16, #tpu.memory_space<vmem>>, vector<1x1x128x512xbf16>
    %128 = vector.shape_cast %127 : vector<1x1x128x512xbf16> to vector<128x512xbf16>
    %cst_94 = arith.constant dense<0.000000e+00> : vector<8x512xf32>
    %129 = tpu.matmul %126, %128, %cst_94 {dimension_numbers = #tpu.dot_dimension_numbers<[1], [0], [0], [1], [0, 0, 1, 1], [], []>} : vector<8x128xbf16>, vector<128x512xbf16>, vector<8x512xf32> -> vector<8x512xf32>
    %130 = arith.addf %122, %129 : vector<8x512xf32>
    %131 = vector.extract_strided_slice %58 {offsets = [144, 0], sizes = [8, 128], strides = [1, 1]} : vector<192x128xf32> to vector<8x128xf32>
    %132 = vector.extract_strided_slice %58 {offsets = [152, 0], sizes = [8, 128], strides = [1, 1]} : vector<192x128xf32> to vector<8x128xf32>
    %133 = arith.maximumf %131, %132 : vector<8x128xf32>
    %134 = arith.truncf %133 : vector<8x128xf32> to vector<8x128xbf16>
    %c9 = arith.constant 9 : index
    %c0_95 = arith.constant 0 : index
    %c0_96 = arith.constant 0 : index
    %c0_97 = arith.constant 0 : index
    %135 = vector.load %arg4[%c9, %c0_95, %c0_96, %c0_97] : memref<12x3x128x512xbf16, #tpu.memory_space<vmem>>, vector<1x1x128x512xbf16>
    %136 = vector.shape_cast %135 : vector<1x1x128x512xbf16> to vector<128x512xbf16>
    %cst_98 = arith.constant dense<0.000000e+00> : vector<8x512xf32>
    %137 = tpu.matmul %134, %136, %cst_98 {dimension_numbers = #tpu.dot_dimension_numbers<[1], [0], [0], [1], [0, 0, 1, 1], [], []>} : vector<8x128xbf16>, vector<128x512xbf16>, vector<8x512xf32> -> vector<8x512xf32>
    %138 = arith.addf %130, %137 : vector<8x512xf32>
    %139 = vector.extract_strided_slice %58 {offsets = [160, 0], sizes = [8, 128], strides = [1, 1]} : vector<192x128xf32> to vector<8x128xf32>
    %140 = vector.extract_strided_slice %58 {offsets = [168, 0], sizes = [8, 128], strides = [1, 1]} : vector<192x128xf32> to vector<8x128xf32>
    %141 = arith.maximumf %139, %140 : vector<8x128xf32>
    %142 = arith.truncf %141 : vector<8x128xf32> to vector<8x128xbf16>
    %c10 = arith.constant 10 : index
    %c0_99 = arith.constant 0 : index
    %c0_100 = arith.constant 0 : index
    %c0_101 = arith.constant 0 : index
    %143 = vector.load %arg4[%c10, %c0_99, %c0_100, %c0_101] : memref<12x3x128x512xbf16, #tpu.memory_space<vmem>>, vector<1x1x128x512xbf16>
    %144 = vector.shape_cast %143 : vector<1x1x128x512xbf16> to vector<128x512xbf16>
    %cst_102 = arith.constant dense<0.000000e+00> : vector<8x512xf32>
    %145 = tpu.matmul %142, %144, %cst_102 {dimension_numbers = #tpu.dot_dimension_numbers<[1], [0], [0], [1], [0, 0, 1, 1], [], []>} : vector<8x128xbf16>, vector<128x512xbf16>, vector<8x512xf32> -> vector<8x512xf32>
    %146 = arith.addf %138, %145 : vector<8x512xf32>
    %147 = vector.extract_strided_slice %58 {offsets = [176, 0], sizes = [8, 128], strides = [1, 1]} : vector<192x128xf32> to vector<8x128xf32>
    %148 = vector.extract_strided_slice %58 {offsets = [184, 0], sizes = [8, 128], strides = [1, 1]} : vector<192x128xf32> to vector<8x128xf32>
    %149 = arith.maximumf %147, %148 : vector<8x128xf32>
    %150 = arith.truncf %149 : vector<8x128xf32> to vector<8x128xbf16>
    %c11 = arith.constant 11 : index
    %c0_103 = arith.constant 0 : index
    %c0_104 = arith.constant 0 : index
    %c0_105 = arith.constant 0 : index
    %151 = vector.load %arg4[%c11, %c0_103, %c0_104, %c0_105] : memref<12x3x128x512xbf16, #tpu.memory_space<vmem>>, vector<1x1x128x512xbf16>
    %152 = vector.shape_cast %151 : vector<1x1x128x512xbf16> to vector<128x512xbf16>
    %cst_106 = arith.constant dense<0.000000e+00> : vector<8x512xf32>
    %153 = tpu.matmul %150, %152, %cst_106 {dimension_numbers = #tpu.dot_dimension_numbers<[1], [0], [0], [1], [0, 0, 1, 1], [], []>} : vector<8x128xbf16>, vector<128x512xbf16>, vector<8x512xf32> -> vector<8x512xf32>
    %154 = arith.addf %146, %153 : vector<8x512xf32>
    %cst_107 = arith.constant 0.000000e+00 : f32
    %155 = vector.broadcast %cst_107 : f32 to vector<192x128xf32>
    %cst_108 = arith.constant 0.000000e+00 : f32
    %156 = vector.broadcast %cst_108 : f32 to vector<192x128xf32>
    %c0_109 = arith.constant 0 : index
    %c0_110 = arith.constant 0 : index
    %c0_111 = arith.constant 0 : index
    %157 = vector.load %arg1[%c0_109, %c0_110, %c0_111] : memref<28x8x28xf32, #tpu.memory_space<vmem>>, vector<24x8x28xf32>
    %158 = vector.shape_cast %157 : vector<24x8x28xf32> to vector<192x28xf32>
    %c0_112 = arith.constant 0 : index
    %c0_113 = arith.constant 0 : index
    %c128 = arith.constant 128 : index
    %159 = vector.load %arg2[%c0_112, %c0_113, %c128] : memref<5x28x768xf32, #tpu.memory_space<vmem>>, vector<1x28x128xf32>
    %160 = vector.shape_cast %159 : vector<1x28x128xf32> to vector<28x128xf32>
    %cst_114 = arith.constant dense<0.000000e+00> : vector<192x128xf32>
    %161 = tpu.matmul %158, %160, %cst_114 {dimension_numbers = #tpu.dot_dimension_numbers<[1], [0], [0], [1], [0, 0, 1, 1], [], []>} : vector<192x28xf32>, vector<28x128xf32>, vector<192x128xf32> -> vector<192x128xf32>
    %162 = arith.addf %155, %161 : vector<192x128xf32>
    %c0_115 = arith.constant 0 : index
    %c0_116 = arith.constant 0 : index
    %c512 = arith.constant 512 : index
    %163 = vector.load %arg2[%c0_115, %c0_116, %c512] : memref<5x28x768xf32, #tpu.memory_space<vmem>>, vector<1x28x128xf32>
    %164 = vector.shape_cast %163 : vector<1x28x128xf32> to vector<28x128xf32>
    %cst_117 = arith.constant dense<0.000000e+00> : vector<192x128xf32>
    %165 = tpu.matmul %158, %164, %cst_117 {dimension_numbers = #tpu.dot_dimension_numbers<[1], [0], [0], [1], [0, 0, 1, 1], [], []>} : vector<192x28xf32>, vector<28x128xf32>, vector<192x128xf32> -> vector<192x128xf32>
    %166 = arith.addf %156, %165 : vector<192x128xf32>
    %c1_118 = arith.constant 1 : index
    %c0_119 = arith.constant 0 : index
    %c0_120 = arith.constant 0 : index
    %167 = vector.load %arg1[%c1_118, %c0_119, %c0_120] : memref<28x8x28xf32, #tpu.memory_space<vmem>>, vector<24x8x28xf32>
    %168 = vector.shape_cast %167 : vector<24x8x28xf32> to vector<192x28xf32>
    %c1_121 = arith.constant 1 : index
    %c0_122 = arith.constant 0 : index
    %c128_123 = arith.constant 128 : index
    %169 = vector.load %arg2[%c1_121, %c0_122, %c128_123] : memref<5x28x768xf32, #tpu.memory_space<vmem>>, vector<1x28x128xf32>
    %170 = vector.shape_cast %169 : vector<1x28x128xf32> to vector<28x128xf32>
    %cst_124 = arith.constant dense<0.000000e+00> : vector<192x128xf32>
    %171 = tpu.matmul %168, %170, %cst_124 {dimension_numbers = #tpu.dot_dimension_numbers<[1], [0], [0], [1], [0, 0, 1, 1], [], []>} : vector<192x28xf32>, vector<28x128xf32>, vector<192x128xf32> -> vector<192x128xf32>
    %172 = arith.addf %162, %171 : vector<192x128xf32>
    %c1_125 = arith.constant 1 : index
    %c0_126 = arith.constant 0 : index
    %c512_127 = arith.constant 512 : index
    %173 = vector.load %arg2[%c1_125, %c0_126, %c512_127] : memref<5x28x768xf32, #tpu.memory_space<vmem>>, vector<1x28x128xf32>
    %174 = vector.shape_cast %173 : vector<1x28x128xf32> to vector<28x128xf32>
    %cst_128 = arith.constant dense<0.000000e+00> : vector<192x128xf32>
    %175 = tpu.matmul %168, %174, %cst_128 {dimension_numbers = #tpu.dot_dimension_numbers<[1], [0], [0], [1], [0, 0, 1, 1], [], []>} : vector<192x28xf32>, vector<28x128xf32>, vector<192x128xf32> -> vector<192x128xf32>
    %176 = arith.addf %166, %175 : vector<192x128xf32>
    %c2_129 = arith.constant 2 : index
    %c0_130 = arith.constant 0 : index
    %c0_131 = arith.constant 0 : index
    %177 = vector.load %arg1[%c2_129, %c0_130, %c0_131] : memref<28x8x28xf32, #tpu.memory_space<vmem>>, vector<24x8x28xf32>
    %178 = vector.shape_cast %177 : vector<24x8x28xf32> to vector<192x28xf32>
    %c2_132 = arith.constant 2 : index
    %c0_133 = arith.constant 0 : index
    %c128_134 = arith.constant 128 : index
    %179 = vector.load %arg2[%c2_132, %c0_133, %c128_134] : memref<5x28x768xf32, #tpu.memory_space<vmem>>, vector<1x28x128xf32>
    %180 = vector.shape_cast %179 : vector<1x28x128xf32> to vector<28x128xf32>
    %cst_135 = arith.constant dense<0.000000e+00> : vector<192x128xf32>
    %181 = tpu.matmul %178, %180, %cst_135 {dimension_numbers = #tpu.dot_dimension_numbers<[1], [0], [0], [1], [0, 0, 1, 1], [], []>} : vector<192x28xf32>, vector<28x128xf32>, vector<192x128xf32> -> vector<192x128xf32>
    %182 = arith.addf %172, %181 : vector<192x128xf32>
    %c2_136 = arith.constant 2 : index
    %c0_137 = arith.constant 0 : index
    %c512_138 = arith.constant 512 : index
    %183 = vector.load %arg2[%c2_136, %c0_137, %c512_138] : memref<5x28x768xf32, #tpu.memory_space<vmem>>, vector<1x28x128xf32>
    %184 = vector.shape_cast %183 : vector<1x28x128xf32> to vector<28x128xf32>
    %cst_139 = arith.constant dense<0.000000e+00> : vector<192x128xf32>
    %185 = tpu.matmul %178, %184, %cst_139 {dimension_numbers = #tpu.dot_dimension_numbers<[1], [0], [0], [1], [0, 0, 1, 1], [], []>} : vector<192x28xf32>, vector<28x128xf32>, vector<192x128xf32> -> vector<192x128xf32>
    %186 = arith.addf %176, %185 : vector<192x128xf32>
    %c3_140 = arith.constant 3 : index
    %c0_141 = arith.constant 0 : index
    %c0_142 = arith.constant 0 : index
    %187 = vector.load %arg1[%c3_140, %c0_141, %c0_142] : memref<28x8x28xf32, #tpu.memory_space<vmem>>, vector<24x8x28xf32>
    %188 = vector.shape_cast %187 : vector<24x8x28xf32> to vector<192x28xf32>
    %c3_143 = arith.constant 3 : index
    %c0_144 = arith.constant 0 : index
    %c128_145 = arith.constant 128 : index
    %189 = vector.load %arg2[%c3_143, %c0_144, %c128_145] : memref<5x28x768xf32, #tpu.memory_space<vmem>>, vector<1x28x128xf32>
    %190 = vector.shape_cast %189 : vector<1x28x128xf32> to vector<28x128xf32>
    %cst_146 = arith.constant dense<0.000000e+00> : vector<192x128xf32>
    %191 = tpu.matmul %188, %190, %cst_146 {dimension_numbers = #tpu.dot_dimension_numbers<[1], [0], [0], [1], [0, 0, 1, 1], [], []>} : vector<192x28xf32>, vector<28x128xf32>, vector<192x128xf32> -> vector<192x128xf32>
    %192 = arith.addf %182, %191 : vector<192x128xf32>
    %c3_147 = arith.constant 3 : index
    %c0_148 = arith.constant 0 : index
    %c512_149 = arith.constant 512 : index
    %193 = vector.load %arg2[%c3_147, %c0_148, %c512_149] : memref<5x28x768xf32, #tpu.memory_space<vmem>>, vector<1x28x128xf32>
    %194 = vector.shape_cast %193 : vector<1x28x128xf32> to vector<28x128xf32>
    %cst_150 = arith.constant dense<0.000000e+00> : vector<192x128xf32>
    %195 = tpu.matmul %188, %194, %cst_150 {dimension_numbers = #tpu.dot_dimension_numbers<[1], [0], [0], [1], [0, 0, 1, 1], [], []>} : vector<192x28xf32>, vector<28x128xf32>, vector<192x128xf32> -> vector<192x128xf32>
    %196 = arith.addf %186, %195 : vector<192x128xf32>
    %c4_151 = arith.constant 4 : index
    %c0_152 = arith.constant 0 : index
    %c0_153 = arith.constant 0 : index
    %197 = vector.load %arg1[%c4_151, %c0_152, %c0_153] : memref<28x8x28xf32, #tpu.memory_space<vmem>>, vector<24x8x28xf32>
    %198 = vector.shape_cast %197 : vector<24x8x28xf32> to vector<192x28xf32>
    %c4_154 = arith.constant 4 : index
    %c0_155 = arith.constant 0 : index
    %c128_156 = arith.constant 128 : index
    %199 = vector.load %arg2[%c4_154, %c0_155, %c128_156] : memref<5x28x768xf32, #tpu.memory_space<vmem>>, vector<1x28x128xf32>
    %200 = vector.shape_cast %199 : vector<1x28x128xf32> to vector<28x128xf32>
    %cst_157 = arith.constant dense<0.000000e+00> : vector<192x128xf32>
    %201 = tpu.matmul %198, %200, %cst_157 {dimension_numbers = #tpu.dot_dimension_numbers<[1], [0], [0], [1], [0, 0, 1, 1], [], []>} : vector<192x28xf32>, vector<28x128xf32>, vector<192x128xf32> -> vector<192x128xf32>
    %202 = arith.addf %192, %201 : vector<192x128xf32>
    %c4_158 = arith.constant 4 : index
    %c0_159 = arith.constant 0 : index
    %c512_160 = arith.constant 512 : index
    %203 = vector.load %arg2[%c4_158, %c0_159, %c512_160] : memref<5x28x768xf32, #tpu.memory_space<vmem>>, vector<1x28x128xf32>
    %204 = vector.shape_cast %203 : vector<1x28x128xf32> to vector<28x128xf32>
    %cst_161 = arith.constant dense<0.000000e+00> : vector<192x128xf32>
    %205 = tpu.matmul %198, %204, %cst_161 {dimension_numbers = #tpu.dot_dimension_numbers<[1], [0], [0], [1], [0, 0, 1, 1], [], []>} : vector<192x28xf32>, vector<28x128xf32>, vector<192x128xf32> -> vector<192x128xf32>
    %206 = arith.addf %196, %205 : vector<192x128xf32>
    %207 = arith.maximumf %202, %206 : vector<192x128xf32>
    %c0_162 = arith.constant 0 : index
    %c0_163 = arith.constant 0 : index
    %208 = vector.load %arg3[%c0_162, %c0_163] : memref<1x128xf32, #tpu.memory_space<vmem>>, vector<1x128xf32>
    %209 = vector.broadcast %208 : vector<1x128xf32> to vector<192x128xf32>
    %210 = arith.addf %207, %209 : vector<192x128xf32>
    %cst_164 = arith.constant 0.000000e+00 : f32
    %211 = vector.broadcast %cst_164 : f32 to vector<192x128xf32>
    %212 = arith.maximumf %210, %211 : vector<192x128xf32>
    %213 = vector.extract_strided_slice %212 {offsets = [0, 0], sizes = [8, 128], strides = [1, 1]} : vector<192x128xf32> to vector<8x128xf32>
    %214 = vector.extract_strided_slice %212 {offsets = [8, 0], sizes = [8, 128], strides = [1, 1]} : vector<192x128xf32> to vector<8x128xf32>
    %215 = arith.maximumf %213, %214 : vector<8x128xf32>
    %216 = arith.truncf %215 : vector<8x128xf32> to vector<8x128xbf16>
    %c0_165 = arith.constant 0 : index
    %c1_166 = arith.constant 1 : index
    %c0_167 = arith.constant 0 : index
    %c0_168 = arith.constant 0 : index
    %217 = vector.load %arg4[%c0_165, %c1_166, %c0_167, %c0_168] : memref<12x3x128x512xbf16, #tpu.memory_space<vmem>>, vector<1x1x128x512xbf16>
    %218 = vector.shape_cast %217 : vector<1x1x128x512xbf16> to vector<128x512xbf16>
    %cst_169 = arith.constant dense<0.000000e+00> : vector<8x512xf32>
    %219 = tpu.matmul %216, %218, %cst_169 {dimension_numbers = #tpu.dot_dimension_numbers<[1], [0], [0], [1], [0, 0, 1, 1], [], []>} : vector<8x128xbf16>, vector<128x512xbf16>, vector<8x512xf32> -> vector<8x512xf32>
    %220 = arith.addf %154, %219 : vector<8x512xf32>
    %221 = vector.extract_strided_slice %212 {offsets = [16, 0], sizes = [8, 128], strides = [1, 1]} : vector<192x128xf32> to vector<8x128xf32>
    %222 = vector.extract_strided_slice %212 {offsets = [24, 0], sizes = [8, 128], strides = [1, 1]} : vector<192x128xf32> to vector<8x128xf32>
    %223 = arith.maximumf %221, %222 : vector<8x128xf32>
    %224 = arith.truncf %223 : vector<8x128xf32> to vector<8x128xbf16>
    %c1_170 = arith.constant 1 : index
    %c1_171 = arith.constant 1 : index
    %c0_172 = arith.constant 0 : index
    %c0_173 = arith.constant 0 : index
    %225 = vector.load %arg4[%c1_170, %c1_171, %c0_172, %c0_173] : memref<12x3x128x512xbf16, #tpu.memory_space<vmem>>, vector<1x1x128x512xbf16>
    %226 = vector.shape_cast %225 : vector<1x1x128x512xbf16> to vector<128x512xbf16>
    %cst_174 = arith.constant dense<0.000000e+00> : vector<8x512xf32>
    %227 = tpu.matmul %224, %226, %cst_174 {dimension_numbers = #tpu.dot_dimension_numbers<[1], [0], [0], [1], [0, 0, 1, 1], [], []>} : vector<8x128xbf16>, vector<128x512xbf16>, vector<8x512xf32> -> vector<8x512xf32>
    %228 = arith.addf %220, %227 : vector<8x512xf32>
    %229 = vector.extract_strided_slice %212 {offsets = [32, 0], sizes = [8, 128], strides = [1, 1]} : vector<192x128xf32> to vector<8x128xf32>
    %230 = vector.extract_strided_slice %212 {offsets = [40, 0], sizes = [8, 128], strides = [1, 1]} : vector<192x128xf32> to vector<8x128xf32>
    %231 = arith.maximumf %229, %230 : vector<8x128xf32>
    %232 = arith.truncf %231 : vector<8x128xf32> to vector<8x128xbf16>
    %c2_175 = arith.constant 2 : index
    %c1_176 = arith.constant 1 : index
    %c0_177 = arith.constant 0 : index
    %c0_178 = arith.constant 0 : index
    %233 = vector.load %arg4[%c2_175, %c1_176, %c0_177, %c0_178] : memref<12x3x128x512xbf16, #tpu.memory_space<vmem>>, vector<1x1x128x512xbf16>
    %234 = vector.shape_cast %233 : vector<1x1x128x512xbf16> to vector<128x512xbf16>
    %cst_179 = arith.constant dense<0.000000e+00> : vector<8x512xf32>
    %235 = tpu.matmul %232, %234, %cst_179 {dimension_numbers = #tpu.dot_dimension_numbers<[1], [0], [0], [1], [0, 0, 1, 1], [], []>} : vector<8x128xbf16>, vector<128x512xbf16>, vector<8x512xf32> -> vector<8x512xf32>
    %236 = arith.addf %228, %235 : vector<8x512xf32>
    %237 = vector.extract_strided_slice %212 {offsets = [48, 0], sizes = [8, 128], strides = [1, 1]} : vector<192x128xf32> to vector<8x128xf32>
    %238 = vector.extract_strided_slice %212 {offsets = [56, 0], sizes = [8, 128], strides = [1, 1]} : vector<192x128xf32> to vector<8x128xf32>
    %239 = arith.maximumf %237, %238 : vector<8x128xf32>
    %240 = arith.truncf %239 : vector<8x128xf32> to vector<8x128xbf16>
    %c3_180 = arith.constant 3 : index
    %c1_181 = arith.constant 1 : index
    %c0_182 = arith.constant 0 : index
    %c0_183 = arith.constant 0 : index
    %241 = vector.load %arg4[%c3_180, %c1_181, %c0_182, %c0_183] : memref<12x3x128x512xbf16, #tpu.memory_space<vmem>>, vector<1x1x128x512xbf16>
    %242 = vector.shape_cast %241 : vector<1x1x128x512xbf16> to vector<128x512xbf16>
    %cst_184 = arith.constant dense<0.000000e+00> : vector<8x512xf32>
    %243 = tpu.matmul %240, %242, %cst_184 {dimension_numbers = #tpu.dot_dimension_numbers<[1], [0], [0], [1], [0, 0, 1, 1], [], []>} : vector<8x128xbf16>, vector<128x512xbf16>, vector<8x512xf32> -> vector<8x512xf32>
    %244 = arith.addf %236, %243 : vector<8x512xf32>
    %245 = vector.extract_strided_slice %212 {offsets = [64, 0], sizes = [8, 128], strides = [1, 1]} : vector<192x128xf32> to vector<8x128xf32>
    %246 = vector.extract_strided_slice %212 {offsets = [72, 0], sizes = [8, 128], strides = [1, 1]} : vector<192x128xf32> to vector<8x128xf32>
    %247 = arith.maximumf %245, %246 : vector<8x128xf32>
    %248 = arith.truncf %247 : vector<8x128xf32> to vector<8x128xbf16>
    %c4_185 = arith.constant 4 : index
    %c1_186 = arith.constant 1 : index
    %c0_187 = arith.constant 0 : index
    %c0_188 = arith.constant 0 : index
    %249 = vector.load %arg4[%c4_185, %c1_186, %c0_187, %c0_188] : memref<12x3x128x512xbf16, #tpu.memory_space<vmem>>, vector<1x1x128x512xbf16>
    %250 = vector.shape_cast %249 : vector<1x1x128x512xbf16> to vector<128x512xbf16>
    %cst_189 = arith.constant dense<0.000000e+00> : vector<8x512xf32>
    %251 = tpu.matmul %248, %250, %cst_189 {dimension_numbers = #tpu.dot_dimension_numbers<[1], [0], [0], [1], [0, 0, 1, 1], [], []>} : vector<8x128xbf16>, vector<128x512xbf16>, vector<8x512xf32> -> vector<8x512xf32>
    %252 = arith.addf %244, %251 : vector<8x512xf32>
    %253 = vector.extract_strided_slice %212 {offsets = [80, 0], sizes = [8, 128], strides = [1, 1]} : vector<192x128xf32> to vector<8x128xf32>
    %254 = vector.extract_strided_slice %212 {offsets = [88, 0], sizes = [8, 128], strides = [1, 1]} : vector<192x128xf32> to vector<8x128xf32>
    %255 = arith.maximumf %253, %254 : vector<8x128xf32>
    %256 = arith.truncf %255 : vector<8x128xf32> to vector<8x128xbf16>
    %c5_190 = arith.constant 5 : index
    %c1_191 = arith.constant 1 : index
    %c0_192 = arith.constant 0 : index
    %c0_193 = arith.constant 0 : index
    %257 = vector.load %arg4[%c5_190, %c1_191, %c0_192, %c0_193] : memref<12x3x128x512xbf16, #tpu.memory_space<vmem>>, vector<1x1x128x512xbf16>
    %258 = vector.shape_cast %257 : vector<1x1x128x512xbf16> to vector<128x512xbf16>
    %cst_194 = arith.constant dense<0.000000e+00> : vector<8x512xf32>
    %259 = tpu.matmul %256, %258, %cst_194 {dimension_numbers = #tpu.dot_dimension_numbers<[1], [0], [0], [1], [0, 0, 1, 1], [], []>} : vector<8x128xbf16>, vector<128x512xbf16>, vector<8x512xf32> -> vector<8x512xf32>
    %260 = arith.addf %252, %259 : vector<8x512xf32>
    %261 = vector.extract_strided_slice %212 {offsets = [96, 0], sizes = [8, 128], strides = [1, 1]} : vector<192x128xf32> to vector<8x128xf32>
    %262 = vector.extract_strided_slice %212 {offsets = [104, 0], sizes = [8, 128], strides = [1, 1]} : vector<192x128xf32> to vector<8x128xf32>
    %263 = arith.maximumf %261, %262 : vector<8x128xf32>
    %264 = arith.truncf %263 : vector<8x128xf32> to vector<8x128xbf16>
    %c6_195 = arith.constant 6 : index
    %c1_196 = arith.constant 1 : index
    %c0_197 = arith.constant 0 : index
    %c0_198 = arith.constant 0 : index
    %265 = vector.load %arg4[%c6_195, %c1_196, %c0_197, %c0_198] : memref<12x3x128x512xbf16, #tpu.memory_space<vmem>>, vector<1x1x128x512xbf16>
    %266 = vector.shape_cast %265 : vector<1x1x128x512xbf16> to vector<128x512xbf16>
    %cst_199 = arith.constant dense<0.000000e+00> : vector<8x512xf32>
    %267 = tpu.matmul %264, %266, %cst_199 {dimension_numbers = #tpu.dot_dimension_numbers<[1], [0], [0], [1], [0, 0, 1, 1], [], []>} : vector<8x128xbf16>, vector<128x512xbf16>, vector<8x512xf32> -> vector<8x512xf32>
    %268 = arith.addf %260, %267 : vector<8x512xf32>
    %269 = vector.extract_strided_slice %212 {offsets = [112, 0], sizes = [8, 128], strides = [1, 1]} : vector<192x128xf32> to vector<8x128xf32>
    %270 = vector.extract_strided_slice %212 {offsets = [120, 0], sizes = [8, 128], strides = [1, 1]} : vector<192x128xf32> to vector<8x128xf32>
    %271 = arith.maximumf %269, %270 : vector<8x128xf32>
    %272 = arith.truncf %271 : vector<8x128xf32> to vector<8x128xbf16>
    %c7_200 = arith.constant 7 : index
    %c1_201 = arith.constant 1 : index
    %c0_202 = arith.constant 0 : index
    %c0_203 = arith.constant 0 : index
    %273 = vector.load %arg4[%c7_200, %c1_201, %c0_202, %c0_203] : memref<12x3x128x512xbf16, #tpu.memory_space<vmem>>, vector<1x1x128x512xbf16>
    %274 = vector.shape_cast %273 : vector<1x1x128x512xbf16> to vector<128x512xbf16>
    %cst_204 = arith.constant dense<0.000000e+00> : vector<8x512xf32>
    %275 = tpu.matmul %272, %274, %cst_204 {dimension_numbers = #tpu.dot_dimension_numbers<[1], [0], [0], [1], [0, 0, 1, 1], [], []>} : vector<8x128xbf16>, vector<128x512xbf16>, vector<8x512xf32> -> vector<8x512xf32>
    %276 = arith.addf %268, %275 : vector<8x512xf32>
    %277 = vector.extract_strided_slice %212 {offsets = [128, 0], sizes = [8, 128], strides = [1, 1]} : vector<192x128xf32> to vector<8x128xf32>
    %278 = vector.extract_strided_slice %212 {offsets = [136, 0], sizes = [8, 128], strides = [1, 1]} : vector<192x128xf32> to vector<8x128xf32>
    %279 = arith.maximumf %277, %278 : vector<8x128xf32>
    %280 = arith.truncf %279 : vector<8x128xf32> to vector<8x128xbf16>
    %c8_205 = arith.constant 8 : index
    %c1_206 = arith.constant 1 : index
    %c0_207 = arith.constant 0 : index
    %c0_208 = arith.constant 0 : index
    %281 = vector.load %arg4[%c8_205, %c1_206, %c0_207, %c0_208] : memref<12x3x128x512xbf16, #tpu.memory_space<vmem>>, vector<1x1x128x512xbf16>
    %282 = vector.shape_cast %281 : vector<1x1x128x512xbf16> to vector<128x512xbf16>
    %cst_209 = arith.constant dense<0.000000e+00> : vector<8x512xf32>
    %283 = tpu.matmul %280, %282, %cst_209 {dimension_numbers = #tpu.dot_dimension_numbers<[1], [0], [0], [1], [0, 0, 1, 1], [], []>} : vector<8x128xbf16>, vector<128x512xbf16>, vector<8x512xf32> -> vector<8x512xf32>
    %284 = arith.addf %276, %283 : vector<8x512xf32>
    %285 = vector.extract_strided_slice %212 {offsets = [144, 0], sizes = [8, 128], strides = [1, 1]} : vector<192x128xf32> to vector<8x128xf32>
    %286 = vector.extract_strided_slice %212 {offsets = [152, 0], sizes = [8, 128], strides = [1, 1]} : vector<192x128xf32> to vector<8x128xf32>
    %287 = arith.maximumf %285, %286 : vector<8x128xf32>
    %288 = arith.truncf %287 : vector<8x128xf32> to vector<8x128xbf16>
    %c9_210 = arith.constant 9 : index
    %c1_211 = arith.constant 1 : index
    %c0_212 = arith.constant 0 : index
    %c0_213 = arith.constant 0 : index
    %289 = vector.load %arg4[%c9_210, %c1_211, %c0_212, %c0_213] : memref<12x3x128x512xbf16, #tpu.memory_space<vmem>>, vector<1x1x128x512xbf16>
    %290 = vector.shape_cast %289 : vector<1x1x128x512xbf16> to vector<128x512xbf16>
    %cst_214 = arith.constant dense<0.000000e+00> : vector<8x512xf32>
    %291 = tpu.matmul %288, %290, %cst_214 {dimension_numbers = #tpu.dot_dimension_numbers<[1], [0], [0], [1], [0, 0, 1, 1], [], []>} : vector<8x128xbf16>, vector<128x512xbf16>, vector<8x512xf32> -> vector<8x512xf32>
    %292 = arith.addf %284, %291 : vector<8x512xf32>
    %293 = vector.extract_strided_slice %212 {offsets = [160, 0], sizes = [8, 128], strides = [1, 1]} : vector<192x128xf32> to vector<8x128xf32>
    %294 = vector.extract_strided_slice %212 {offsets = [168, 0], sizes = [8, 128], strides = [1, 1]} : vector<192x128xf32> to vector<8x128xf32>
    %295 = arith.maximumf %293, %294 : vector<8x128xf32>
    %296 = arith.truncf %295 : vector<8x128xf32> to vector<8x128xbf16>
    %c10_215 = arith.constant 10 : index
    %c1_216 = arith.constant 1 : index
    %c0_217 = arith.constant 0 : index
    %c0_218 = arith.constant 0 : index
    %297 = vector.load %arg4[%c10_215, %c1_216, %c0_217, %c0_218] : memref<12x3x128x512xbf16, #tpu.memory_space<vmem>>, vector<1x1x128x512xbf16>
    %298 = vector.shape_cast %297 : vector<1x1x128x512xbf16> to vector<128x512xbf16>
    %cst_219 = arith.constant dense<0.000000e+00> : vector<8x512xf32>
    %299 = tpu.matmul %296, %298, %cst_219 {dimension_numbers = #tpu.dot_dimension_numbers<[1], [0], [0], [1], [0, 0, 1, 1], [], []>} : vector<8x128xbf16>, vector<128x512xbf16>, vector<8x512xf32> -> vector<8x512xf32>
    %300 = arith.addf %292, %299 : vector<8x512xf32>
    %301 = vector.extract_strided_slice %212 {offsets = [176, 0], sizes = [8, 128], strides = [1, 1]} : vector<192x128xf32> to vector<8x128xf32>
    %302 = vector.extract_strided_slice %212 {offsets = [184, 0], sizes = [8, 128], strides = [1, 1]} : vector<192x128xf32> to vector<8x128xf32>
    %303 = arith.maximumf %301, %302 : vector<8x128xf32>
    %304 = arith.truncf %303 : vector<8x128xf32> to vector<8x128xbf16>
    %c11_220 = arith.constant 11 : index
    %c1_221 = arith.constant 1 : index
    %c0_222 = arith.constant 0 : index
    %c0_223 = arith.constant 0 : index
    %305 = vector.load %arg4[%c11_220, %c1_221, %c0_222, %c0_223] : memref<12x3x128x512xbf16, #tpu.memory_space<vmem>>, vector<1x1x128x512xbf16>
    %306 = vector.shape_cast %305 : vector<1x1x128x512xbf16> to vector<128x512xbf16>
    %cst_224 = arith.constant dense<0.000000e+00> : vector<8x512xf32>
    %307 = tpu.matmul %304, %306, %cst_224 {dimension_numbers = #tpu.dot_dimension_numbers<[1], [0], [0], [1], [0, 0, 1, 1], [], []>} : vector<8x128xbf16>, vector<128x512xbf16>, vector<8x512xf32> -> vector<8x512xf32>
    %308 = arith.addf %300, %307 : vector<8x512xf32>
    %cst_225 = arith.constant 0.000000e+00 : f32
    %309 = vector.broadcast %cst_225 : f32 to vector<192x128xf32>
    %cst_226 = arith.constant 0.000000e+00 : f32
    %310 = vector.broadcast %cst_226 : f32 to vector<192x128xf32>
    %c0_227 = arith.constant 0 : index
    %c0_228 = arith.constant 0 : index
    %c0_229 = arith.constant 0 : index
    %311 = vector.load %arg1[%c0_227, %c0_228, %c0_229] : memref<28x8x28xf32, #tpu.memory_space<vmem>>, vector<24x8x28xf32>
    %312 = vector.shape_cast %311 : vector<24x8x28xf32> to vector<192x28xf32>
    %c0_230 = arith.constant 0 : index
    %c0_231 = arith.constant 0 : index
    %c256 = arith.constant 256 : index
    %313 = vector.load %arg2[%c0_230, %c0_231, %c256] : memref<5x28x768xf32, #tpu.memory_space<vmem>>, vector<1x28x128xf32>
    %314 = vector.shape_cast %313 : vector<1x28x128xf32> to vector<28x128xf32>
    %cst_232 = arith.constant dense<0.000000e+00> : vector<192x128xf32>
    %315 = tpu.matmul %312, %314, %cst_232 {dimension_numbers = #tpu.dot_dimension_numbers<[1], [0], [0], [1], [0, 0, 1, 1], [], []>} : vector<192x28xf32>, vector<28x128xf32>, vector<192x128xf32> -> vector<192x128xf32>
    %316 = arith.addf %309, %315 : vector<192x128xf32>
    %c0_233 = arith.constant 0 : index
    %c0_234 = arith.constant 0 : index
    %c640 = arith.constant 640 : index
    %317 = vector.load %arg2[%c0_233, %c0_234, %c640] : memref<5x28x768xf32, #tpu.memory_space<vmem>>, vector<1x28x128xf32>
    %318 = vector.shape_cast %317 : vector<1x28x128xf32> to vector<28x128xf32>
    %cst_235 = arith.constant dense<0.000000e+00> : vector<192x128xf32>
    %319 = tpu.matmul %312, %318, %cst_235 {dimension_numbers = #tpu.dot_dimension_numbers<[1], [0], [0], [1], [0, 0, 1, 1], [], []>} : vector<192x28xf32>, vector<28x128xf32>, vector<192x128xf32> -> vector<192x128xf32>
    %320 = arith.addf %310, %319 : vector<192x128xf32>
    %c1_236 = arith.constant 1 : index
    %c0_237 = arith.constant 0 : index
    %c0_238 = arith.constant 0 : index
    %321 = vector.load %arg1[%c1_236, %c0_237, %c0_238] : memref<28x8x28xf32, #tpu.memory_space<vmem>>, vector<24x8x28xf32>
    %322 = vector.shape_cast %321 : vector<24x8x28xf32> to vector<192x28xf32>
    %c1_239 = arith.constant 1 : index
    %c0_240 = arith.constant 0 : index
    %c256_241 = arith.constant 256 : index
    %323 = vector.load %arg2[%c1_239, %c0_240, %c256_241] : memref<5x28x768xf32, #tpu.memory_space<vmem>>, vector<1x28x128xf32>
    %324 = vector.shape_cast %323 : vector<1x28x128xf32> to vector<28x128xf32>
    %cst_242 = arith.constant dense<0.000000e+00> : vector<192x128xf32>
    %325 = tpu.matmul %322, %324, %cst_242 {dimension_numbers = #tpu.dot_dimension_numbers<[1], [0], [0], [1], [0, 0, 1, 1], [], []>} : vector<192x28xf32>, vector<28x128xf32>, vector<192x128xf32> -> vector<192x128xf32>
    %326 = arith.addf %316, %325 : vector<192x128xf32>
    %c1_243 = arith.constant 1 : index
    %c0_244 = arith.constant 0 : index
    %c640_245 = arith.constant 640 : index
    %327 = vector.load %arg2[%c1_243, %c0_244, %c640_245] : memref<5x28x768xf32, #tpu.memory_space<vmem>>, vector<1x28x128xf32>
    %328 = vector.shape_cast %327 : vector<1x28x128xf32> to vector<28x128xf32>
    %cst_246 = arith.constant dense<0.000000e+00> : vector<192x128xf32>
    %329 = tpu.matmul %322, %328, %cst_246 {dimension_numbers = #tpu.dot_dimension_numbers<[1], [0], [0], [1], [0, 0, 1, 1], [], []>} : vector<192x28xf32>, vector<28x128xf32>, vector<192x128xf32> -> vector<192x128xf32>
    %330 = arith.addf %320, %329 : vector<192x128xf32>
    %c2_247 = arith.constant 2 : index
    %c0_248 = arith.constant 0 : index
    %c0_249 = arith.constant 0 : index
    %331 = vector.load %arg1[%c2_247, %c0_248, %c0_249] : memref<28x8x28xf32, #tpu.memory_space<vmem>>, vector<24x8x28xf32>
    %332 = vector.shape_cast %331 : vector<24x8x28xf32> to vector<192x28xf32>
    %c2_250 = arith.constant 2 : index
    %c0_251 = arith.constant 0 : index
    %c256_252 = arith.constant 256 : index
    %333 = vector.load %arg2[%c2_250, %c0_251, %c256_252] : memref<5x28x768xf32, #tpu.memory_space<vmem>>, vector<1x28x128xf32>
    %334 = vector.shape_cast %333 : vector<1x28x128xf32> to vector<28x128xf32>
    %cst_253 = arith.constant dense<0.000000e+00> : vector<192x128xf32>
    %335 = tpu.matmul %332, %334, %cst_253 {dimension_numbers = #tpu.dot_dimension_numbers<[1], [0], [0], [1], [0, 0, 1, 1], [], []>} : vector<192x28xf32>, vector<28x128xf32>, vector<192x128xf32> -> vector<192x128xf32>
    %336 = arith.addf %326, %335 : vector<192x128xf32>
    %c2_254 = arith.constant 2 : index
    %c0_255 = arith.constant 0 : index
    %c640_256 = arith.constant 640 : index
    %337 = vector.load %arg2[%c2_254, %c0_255, %c640_256] : memref<5x28x768xf32, #tpu.memory_space<vmem>>, vector<1x28x128xf32>
    %338 = vector.shape_cast %337 : vector<1x28x128xf32> to vector<28x128xf32>
    %cst_257 = arith.constant dense<0.000000e+00> : vector<192x128xf32>
    %339 = tpu.matmul %332, %338, %cst_257 {dimension_numbers = #tpu.dot_dimension_numbers<[1], [0], [0], [1], [0, 0, 1, 1], [], []>} : vector<192x28xf32>, vector<28x128xf32>, vector<192x128xf32> -> vector<192x128xf32>
    %340 = arith.addf %330, %339 : vector<192x128xf32>
    %c3_258 = arith.constant 3 : index
    %c0_259 = arith.constant 0 : index
    %c0_260 = arith.constant 0 : index
    %341 = vector.load %arg1[%c3_258, %c0_259, %c0_260] : memref<28x8x28xf32, #tpu.memory_space<vmem>>, vector<24x8x28xf32>
    %342 = vector.shape_cast %341 : vector<24x8x28xf32> to vector<192x28xf32>
    %c3_261 = arith.constant 3 : index
    %c0_262 = arith.constant 0 : index
    %c256_263 = arith.constant 256 : index
    %343 = vector.load %arg2[%c3_261, %c0_262, %c256_263] : memref<5x28x768xf32, #tpu.memory_space<vmem>>, vector<1x28x128xf32>
    %344 = vector.shape_cast %343 : vector<1x28x128xf32> to vector<28x128xf32>
    %cst_264 = arith.constant dense<0.000000e+00> : vector<192x128xf32>
    %345 = tpu.matmul %342, %344, %cst_264 {dimension_numbers = #tpu.dot_dimension_numbers<[1], [0], [0], [1], [0, 0, 1, 1], [], []>} : vector<192x28xf32>, vector<28x128xf32>, vector<192x128xf32> -> vector<192x128xf32>
    %346 = arith.addf %336, %345 : vector<192x128xf32>
    %c3_265 = arith.constant 3 : index
    %c0_266 = arith.constant 0 : index
    %c640_267 = arith.constant 640 : index
    %347 = vector.load %arg2[%c3_265, %c0_266, %c640_267] : memref<5x28x768xf32, #tpu.memory_space<vmem>>, vector<1x28x128xf32>
    %348 = vector.shape_cast %347 : vector<1x28x128xf32> to vector<28x128xf32>
    %cst_268 = arith.constant dense<0.000000e+00> : vector<192x128xf32>
    %349 = tpu.matmul %342, %348, %cst_268 {dimension_numbers = #tpu.dot_dimension_numbers<[1], [0], [0], [1], [0, 0, 1, 1], [], []>} : vector<192x28xf32>, vector<28x128xf32>, vector<192x128xf32> -> vector<192x128xf32>
    %350 = arith.addf %340, %349 : vector<192x128xf32>
    %c4_269 = arith.constant 4 : index
    %c0_270 = arith.constant 0 : index
    %c0_271 = arith.constant 0 : index
    %351 = vector.load %arg1[%c4_269, %c0_270, %c0_271] : memref<28x8x28xf32, #tpu.memory_space<vmem>>, vector<24x8x28xf32>
    %352 = vector.shape_cast %351 : vector<24x8x28xf32> to vector<192x28xf32>
    %c4_272 = arith.constant 4 : index
    %c0_273 = arith.constant 0 : index
    %c256_274 = arith.constant 256 : index
    %353 = vector.load %arg2[%c4_272, %c0_273, %c256_274] : memref<5x28x768xf32, #tpu.memory_space<vmem>>, vector<1x28x128xf32>
    %354 = vector.shape_cast %353 : vector<1x28x128xf32> to vector<28x128xf32>
    %cst_275 = arith.constant dense<0.000000e+00> : vector<192x128xf32>
    %355 = tpu.matmul %352, %354, %cst_275 {dimension_numbers = #tpu.dot_dimension_numbers<[1], [0], [0], [1], [0, 0, 1, 1], [], []>} : vector<192x28xf32>, vector<28x128xf32>, vector<192x128xf32> -> vector<192x128xf32>
    %356 = arith.addf %346, %355 : vector<192x128xf32>
    %c4_276 = arith.constant 4 : index
    %c0_277 = arith.constant 0 : index
    %c640_278 = arith.constant 640 : index
    %357 = vector.load %arg2[%c4_276, %c0_277, %c640_278] : memref<5x28x768xf32, #tpu.memory_space<vmem>>, vector<1x28x128xf32>
    %358 = vector.shape_cast %357 : vector<1x28x128xf32> to vector<28x128xf32>
    %cst_279 = arith.constant dense<0.000000e+00> : vector<192x128xf32>
    %359 = tpu.matmul %352, %358, %cst_279 {dimension_numbers = #tpu.dot_dimension_numbers<[1], [0], [0], [1], [0, 0, 1, 1], [], []>} : vector<192x28xf32>, vector<28x128xf32>, vector<192x128xf32> -> vector<192x128xf32>
    %360 = arith.addf %350, %359 : vector<192x128xf32>
    %361 = arith.maximumf %356, %360 : vector<192x128xf32>
    %c0_280 = arith.constant 0 : index
    %c0_281 = arith.constant 0 : index
    %362 = vector.load %arg3[%c0_280, %c0_281] : memref<1x128xf32, #tpu.memory_space<vmem>>, vector<1x128xf32>
    %363 = vector.broadcast %362 : vector<1x128xf32> to vector<192x128xf32>
    %364 = arith.addf %361, %363 : vector<192x128xf32>
    %cst_282 = arith.constant 0.000000e+00 : f32
    %365 = vector.broadcast %cst_282 : f32 to vector<192x128xf32>
    %366 = arith.maximumf %364, %365 : vector<192x128xf32>
    %367 = vector.extract_strided_slice %366 {offsets = [0, 0], sizes = [8, 128], strides = [1, 1]} : vector<192x128xf32> to vector<8x128xf32>
    %368 = vector.extract_strided_slice %366 {offsets = [8, 0], sizes = [8, 128], strides = [1, 1]} : vector<192x128xf32> to vector<8x128xf32>
    %369 = arith.maximumf %367, %368 : vector<8x128xf32>
    %370 = arith.truncf %369 : vector<8x128xf32> to vector<8x128xbf16>
    %c0_283 = arith.constant 0 : index
    %c2_284 = arith.constant 2 : index
    %c0_285 = arith.constant 0 : index
    %c0_286 = arith.constant 0 : index
    %371 = vector.load %arg4[%c0_283, %c2_284, %c0_285, %c0_286] : memref<12x3x128x512xbf16, #tpu.memory_space<vmem>>, vector<1x1x128x512xbf16>
    %372 = vector.shape_cast %371 : vector<1x1x128x512xbf16> to vector<128x512xbf16>
    %cst_287 = arith.constant dense<0.000000e+00> : vector<8x512xf32>
    %373 = tpu.matmul %370, %372, %cst_287 {dimension_numbers = #tpu.dot_dimension_numbers<[1], [0], [0], [1], [0, 0, 1, 1], [], []>} : vector<8x128xbf16>, vector<128x512xbf16>, vector<8x512xf32> -> vector<8x512xf32>
    %374 = arith.addf %308, %373 : vector<8x512xf32>
    %375 = vector.extract_strided_slice %366 {offsets = [16, 0], sizes = [8, 128], strides = [1, 1]} : vector<192x128xf32> to vector<8x128xf32>
    %376 = vector.extract_strided_slice %366 {offsets = [24, 0], sizes = [8, 128], strides = [1, 1]} : vector<192x128xf32> to vector<8x128xf32>
    %377 = arith.maximumf %375, %376 : vector<8x128xf32>
    %378 = arith.truncf %377 : vector<8x128xf32> to vector<8x128xbf16>
    %c1_288 = arith.constant 1 : index
    %c2_289 = arith.constant 2 : index
    %c0_290 = arith.constant 0 : index
    %c0_291 = arith.constant 0 : index
    %379 = vector.load %arg4[%c1_288, %c2_289, %c0_290, %c0_291] : memref<12x3x128x512xbf16, #tpu.memory_space<vmem>>, vector<1x1x128x512xbf16>
    %380 = vector.shape_cast %379 : vector<1x1x128x512xbf16> to vector<128x512xbf16>
    %cst_292 = arith.constant dense<0.000000e+00> : vector<8x512xf32>
    %381 = tpu.matmul %378, %380, %cst_292 {dimension_numbers = #tpu.dot_dimension_numbers<[1], [0], [0], [1], [0, 0, 1, 1], [], []>} : vector<8x128xbf16>, vector<128x512xbf16>, vector<8x512xf32> -> vector<8x512xf32>
    %382 = arith.addf %374, %381 : vector<8x512xf32>
    %383 = vector.extract_strided_slice %366 {offsets = [32, 0], sizes = [8, 128], strides = [1, 1]} : vector<192x128xf32> to vector<8x128xf32>
    %384 = vector.extract_strided_slice %366 {offsets = [40, 0], sizes = [8, 128], strides = [1, 1]} : vector<192x128xf32> to vector<8x128xf32>
    %385 = arith.maximumf %383, %384 : vector<8x128xf32>
    %386 = arith.truncf %385 : vector<8x128xf32> to vector<8x128xbf16>
    %c2_293 = arith.constant 2 : index
    %c2_294 = arith.constant 2 : index
    %c0_295 = arith.constant 0 : index
    %c0_296 = arith.constant 0 : index
    %387 = vector.load %arg4[%c2_293, %c2_294, %c0_295, %c0_296] : memref<12x3x128x512xbf16, #tpu.memory_space<vmem>>, vector<1x1x128x512xbf16>
    %388 = vector.shape_cast %387 : vector<1x1x128x512xbf16> to vector<128x512xbf16>
    %cst_297 = arith.constant dense<0.000000e+00> : vector<8x512xf32>
    %389 = tpu.matmul %386, %388, %cst_297 {dimension_numbers = #tpu.dot_dimension_numbers<[1], [0], [0], [1], [0, 0, 1, 1], [], []>} : vector<8x128xbf16>, vector<128x512xbf16>, vector<8x512xf32> -> vector<8x512xf32>
    %390 = arith.addf %382, %389 : vector<8x512xf32>
    %391 = vector.extract_strided_slice %366 {offsets = [48, 0], sizes = [8, 128], strides = [1, 1]} : vector<192x128xf32> to vector<8x128xf32>
    %392 = vector.extract_strided_slice %366 {offsets = [56, 0], sizes = [8, 128], strides = [1, 1]} : vector<192x128xf32> to vector<8x128xf32>
    %393 = arith.maximumf %391, %392 : vector<8x128xf32>
    %394 = arith.truncf %393 : vector<8x128xf32> to vector<8x128xbf16>
    %c3_298 = arith.constant 3 : index
    %c2_299 = arith.constant 2 : index
    %c0_300 = arith.constant 0 : index
    %c0_301 = arith.constant 0 : index
    %395 = vector.load %arg4[%c3_298, %c2_299, %c0_300, %c0_301] : memref<12x3x128x512xbf16, #tpu.memory_space<vmem>>, vector<1x1x128x512xbf16>
    %396 = vector.shape_cast %395 : vector<1x1x128x512xbf16> to vector<128x512xbf16>
    %cst_302 = arith.constant dense<0.000000e+00> : vector<8x512xf32>
    %397 = tpu.matmul %394, %396, %cst_302 {dimension_numbers = #tpu.dot_dimension_numbers<[1], [0], [0], [1], [0, 0, 1, 1], [], []>} : vector<8x128xbf16>, vector<128x512xbf16>, vector<8x512xf32> -> vector<8x512xf32>
    %398 = arith.addf %390, %397 : vector<8x512xf32>
    %399 = vector.extract_strided_slice %366 {offsets = [64, 0], sizes = [8, 128], strides = [1, 1]} : vector<192x128xf32> to vector<8x128xf32>
    %400 = vector.extract_strided_slice %366 {offsets = [72, 0], sizes = [8, 128], strides = [1, 1]} : vector<192x128xf32> to vector<8x128xf32>
    %401 = arith.maximumf %399, %400 : vector<8x128xf32>
    %402 = arith.truncf %401 : vector<8x128xf32> to vector<8x128xbf16>
    %c4_303 = arith.constant 4 : index
    %c2_304 = arith.constant 2 : index
    %c0_305 = arith.constant 0 : index
    %c0_306 = arith.constant 0 : index
    %403 = vector.load %arg4[%c4_303, %c2_304, %c0_305, %c0_306] : memref<12x3x128x512xbf16, #tpu.memory_space<vmem>>, vector<1x1x128x512xbf16>
    %404 = vector.shape_cast %403 : vector<1x1x128x512xbf16> to vector<128x512xbf16>
    %cst_307 = arith.constant dense<0.000000e+00> : vector<8x512xf32>
    %405 = tpu.matmul %402, %404, %cst_307 {dimension_numbers = #tpu.dot_dimension_numbers<[1], [0], [0], [1], [0, 0, 1, 1], [], []>} : vector<8x128xbf16>, vector<128x512xbf16>, vector<8x512xf32> -> vector<8x512xf32>
    %406 = arith.addf %398, %405 : vector<8x512xf32>
    %407 = vector.extract_strided_slice %366 {offsets = [80, 0], sizes = [8, 128], strides = [1, 1]} : vector<192x128xf32> to vector<8x128xf32>
    %408 = vector.extract_strided_slice %366 {offsets = [88, 0], sizes = [8, 128], strides = [1, 1]} : vector<192x128xf32> to vector<8x128xf32>
    %409 = arith.maximumf %407, %408 : vector<8x128xf32>
    %410 = arith.truncf %409 : vector<8x128xf32> to vector<8x128xbf16>
    %c5_308 = arith.constant 5 : index
    %c2_309 = arith.constant 2 : index
    %c0_310 = arith.constant 0 : index
    %c0_311 = arith.constant 0 : index
    %411 = vector.load %arg4[%c5_308, %c2_309, %c0_310, %c0_311] : memref<12x3x128x512xbf16, #tpu.memory_space<vmem>>, vector<1x1x128x512xbf16>
    %412 = vector.shape_cast %411 : vector<1x1x128x512xbf16> to vector<128x512xbf16>
    %cst_312 = arith.constant dense<0.000000e+00> : vector<8x512xf32>
    %413 = tpu.matmul %410, %412, %cst_312 {dimension_numbers = #tpu.dot_dimension_numbers<[1], [0], [0], [1], [0, 0, 1, 1], [], []>} : vector<8x128xbf16>, vector<128x512xbf16>, vector<8x512xf32> -> vector<8x512xf32>
    %414 = arith.addf %406, %413 : vector<8x512xf32>
    %415 = vector.extract_strided_slice %366 {offsets = [96, 0], sizes = [8, 128], strides = [1, 1]} : vector<192x128xf32> to vector<8x128xf32>
    %416 = vector.extract_strided_slice %366 {offsets = [104, 0], sizes = [8, 128], strides = [1, 1]} : vector<192x128xf32> to vector<8x128xf32>
    %417 = arith.maximumf %415, %416 : vector<8x128xf32>
    %418 = arith.truncf %417 : vector<8x128xf32> to vector<8x128xbf16>
    %c6_313 = arith.constant 6 : index
    %c2_314 = arith.constant 2 : index
    %c0_315 = arith.constant 0 : index
    %c0_316 = arith.constant 0 : index
    %419 = vector.load %arg4[%c6_313, %c2_314, %c0_315, %c0_316] : memref<12x3x128x512xbf16, #tpu.memory_space<vmem>>, vector<1x1x128x512xbf16>
    %420 = vector.shape_cast %419 : vector<1x1x128x512xbf16> to vector<128x512xbf16>
    %cst_317 = arith.constant dense<0.000000e+00> : vector<8x512xf32>
    %421 = tpu.matmul %418, %420, %cst_317 {dimension_numbers = #tpu.dot_dimension_numbers<[1], [0], [0], [1], [0, 0, 1, 1], [], []>} : vector<8x128xbf16>, vector<128x512xbf16>, vector<8x512xf32> -> vector<8x512xf32>
    %422 = arith.addf %414, %421 : vector<8x512xf32>
    %423 = vector.extract_strided_slice %366 {offsets = [112, 0], sizes = [8, 128], strides = [1, 1]} : vector<192x128xf32> to vector<8x128xf32>
    %424 = vector.extract_strided_slice %366 {offsets = [120, 0], sizes = [8, 128], strides = [1, 1]} : vector<192x128xf32> to vector<8x128xf32>
    %425 = arith.maximumf %423, %424 : vector<8x128xf32>
    %426 = arith.truncf %425 : vector<8x128xf32> to vector<8x128xbf16>
    %c7_318 = arith.constant 7 : index
    %c2_319 = arith.constant 2 : index
    %c0_320 = arith.constant 0 : index
    %c0_321 = arith.constant 0 : index
    %427 = vector.load %arg4[%c7_318, %c2_319, %c0_320, %c0_321] : memref<12x3x128x512xbf16, #tpu.memory_space<vmem>>, vector<1x1x128x512xbf16>
    %428 = vector.shape_cast %427 : vector<1x1x128x512xbf16> to vector<128x512xbf16>
    %cst_322 = arith.constant dense<0.000000e+00> : vector<8x512xf32>
    %429 = tpu.matmul %426, %428, %cst_322 {dimension_numbers = #tpu.dot_dimension_numbers<[1], [0], [0], [1], [0, 0, 1, 1], [], []>} : vector<8x128xbf16>, vector<128x512xbf16>, vector<8x512xf32> -> vector<8x512xf32>
    %430 = arith.addf %422, %429 : vector<8x512xf32>
    %431 = vector.extract_strided_slice %366 {offsets = [128, 0], sizes = [8, 128], strides = [1, 1]} : vector<192x128xf32> to vector<8x128xf32>
    %432 = vector.extract_strided_slice %366 {offsets = [136, 0], sizes = [8, 128], strides = [1, 1]} : vector<192x128xf32> to vector<8x128xf32>
    %433 = arith.maximumf %431, %432 : vector<8x128xf32>
    %434 = arith.truncf %433 : vector<8x128xf32> to vector<8x128xbf16>
    %c8_323 = arith.constant 8 : index
    %c2_324 = arith.constant 2 : index
    %c0_325 = arith.constant 0 : index
    %c0_326 = arith.constant 0 : index
    %435 = vector.load %arg4[%c8_323, %c2_324, %c0_325, %c0_326] : memref<12x3x128x512xbf16, #tpu.memory_space<vmem>>, vector<1x1x128x512xbf16>
    %436 = vector.shape_cast %435 : vector<1x1x128x512xbf16> to vector<128x512xbf16>
    %cst_327 = arith.constant dense<0.000000e+00> : vector<8x512xf32>
    %437 = tpu.matmul %434, %436, %cst_327 {dimension_numbers = #tpu.dot_dimension_numbers<[1], [0], [0], [1], [0, 0, 1, 1], [], []>} : vector<8x128xbf16>, vector<128x512xbf16>, vector<8x512xf32> -> vector<8x512xf32>
    %438 = arith.addf %430, %437 : vector<8x512xf32>
    %439 = vector.extract_strided_slice %366 {offsets = [144, 0], sizes = [8, 128], strides = [1, 1]} : vector<192x128xf32> to vector<8x128xf32>
    %440 = vector.extract_strided_slice %366 {offsets = [152, 0], sizes = [8, 128], strides = [1, 1]} : vector<192x128xf32> to vector<8x128xf32>
    %441 = arith.maximumf %439, %440 : vector<8x128xf32>
    %442 = arith.truncf %441 : vector<8x128xf32> to vector<8x128xbf16>
    %c9_328 = arith.constant 9 : index
    %c2_329 = arith.constant 2 : index
    %c0_330 = arith.constant 0 : index
    %c0_331 = arith.constant 0 : index
    %443 = vector.load %arg4[%c9_328, %c2_329, %c0_330, %c0_331] : memref<12x3x128x512xbf16, #tpu.memory_space<vmem>>, vector<1x1x128x512xbf16>
    %444 = vector.shape_cast %443 : vector<1x1x128x512xbf16> to vector<128x512xbf16>
    %cst_332 = arith.constant dense<0.000000e+00> : vector<8x512xf32>
    %445 = tpu.matmul %442, %444, %cst_332 {dimension_numbers = #tpu.dot_dimension_numbers<[1], [0], [0], [1], [0, 0, 1, 1], [], []>} : vector<8x128xbf16>, vector<128x512xbf16>, vector<8x512xf32> -> vector<8x512xf32>
    %446 = arith.addf %438, %445 : vector<8x512xf32>
    %447 = vector.extract_strided_slice %366 {offsets = [160, 0], sizes = [8, 128], strides = [1, 1]} : vector<192x128xf32> to vector<8x128xf32>
    %448 = vector.extract_strided_slice %366 {offsets = [168, 0], sizes = [8, 128], strides = [1, 1]} : vector<192x128xf32> to vector<8x128xf32>
    %449 = arith.maximumf %447, %448 : vector<8x128xf32>
    %450 = arith.truncf %449 : vector<8x128xf32> to vector<8x128xbf16>
    %c10_333 = arith.constant 10 : index
    %c2_334 = arith.constant 2 : index
    %c0_335 = arith.constant 0 : index
    %c0_336 = arith.constant 0 : index
    %451 = vector.load %arg4[%c10_333, %c2_334, %c0_335, %c0_336] : memref<12x3x128x512xbf16, #tpu.memory_space<vmem>>, vector<1x1x128x512xbf16>
    %452 = vector.shape_cast %451 : vector<1x1x128x512xbf16> to vector<128x512xbf16>
    %cst_337 = arith.constant dense<0.000000e+00> : vector<8x512xf32>
    %453 = tpu.matmul %450, %452, %cst_337 {dimension_numbers = #tpu.dot_dimension_numbers<[1], [0], [0], [1], [0, 0, 1, 1], [], []>} : vector<8x128xbf16>, vector<128x512xbf16>, vector<8x512xf32> -> vector<8x512xf32>
    %454 = arith.addf %446, %453 : vector<8x512xf32>
    %455 = vector.extract_strided_slice %366 {offsets = [176, 0], sizes = [8, 128], strides = [1, 1]} : vector<192x128xf32> to vector<8x128xf32>
    %456 = vector.extract_strided_slice %366 {offsets = [184, 0], sizes = [8, 128], strides = [1, 1]} : vector<192x128xf32> to vector<8x128xf32>
    %457 = arith.maximumf %455, %456 : vector<8x128xf32>
    %458 = arith.truncf %457 : vector<8x128xf32> to vector<8x128xbf16>
    %c11_338 = arith.constant 11 : index
    %c2_339 = arith.constant 2 : index
    %c0_340 = arith.constant 0 : index
    %c0_341 = arith.constant 0 : index
    %459 = vector.load %arg4[%c11_338, %c2_339, %c0_340, %c0_341] : memref<12x3x128x512xbf16, #tpu.memory_space<vmem>>, vector<1x1x128x512xbf16>
    %460 = vector.shape_cast %459 : vector<1x1x128x512xbf16> to vector<128x512xbf16>
    %cst_342 = arith.constant dense<0.000000e+00> : vector<8x512xf32>
    %461 = tpu.matmul %458, %460, %cst_342 {dimension_numbers = #tpu.dot_dimension_numbers<[1], [0], [0], [1], [0, 0, 1, 1], [], []>} : vector<8x128xbf16>, vector<128x512xbf16>, vector<8x512xf32> -> vector<8x512xf32>
    %462 = arith.addf %454, %461 : vector<8x512xf32>
    %c0_343 = arith.constant 0 : index
    %c0_344 = arith.constant 0 : index
    %463 = vector.load %arg5[%c0_343, %c0_344] : memref<1x512xf32, #tpu.memory_space<vmem>>, vector<1x512xf32>
    %464 = vector.broadcast %463 : vector<1x512xf32> to vector<8x512xf32>
    %465 = arith.addf %462, %464 : vector<8x512xf32>
    %cst_345 = arith.constant 0.000000e+00 : f32
    %466 = vector.broadcast %cst_345 : f32 to vector<8x512xf32>
    %467 = arith.maximumf %465, %466 : vector<8x512xf32>
    %c0_346 = arith.constant 0 : index
    %c0_347 = arith.constant 0 : index
    %468 = vector.load %arg6[%c0_346, %c0_347] : memref<512x128xf32, #tpu.memory_space<vmem>>, vector<512x128xf32>
    %cst_348 = arith.constant dense<0.000000e+00> : vector<8x128xf32>
    %469 = tpu.matmul %467, %468, %cst_348 {dimension_numbers = #tpu.dot_dimension_numbers<[1], [0], [0], [1], [0, 0, 1, 1], [], []>} : vector<8x512xf32>, vector<512x128xf32>, vector<8x128xf32> -> vector<8x128xf32>
    %c0_349 = arith.constant 0 : index
    %c0_350 = arith.constant 0 : index
    %470 = vector.load %arg7[%c0_349, %c0_350] : memref<1x128xf32, #tpu.memory_space<vmem>>, vector<1x128xf32>
    %471 = vector.broadcast %470 : vector<1x128xf32> to vector<8x128xf32>
    %472 = arith.addf %469, %471 : vector<8x128xf32>
    %c0_351 = arith.constant 0 : index
    %c0_352 = arith.constant 0 : index
    %473 = vector.load %arg8[%c0_351, %c0_352] : memref<8x128xf32, #tpu.memory_space<vmem>>, vector<8x128xf32>
    tpu.vector_store %arg8[%c0_351, %c0_352], %472 {strides = array<i32>} : memref<8x128xf32, #tpu.memory_space<vmem>>, vector<8x128xf32>,
    return
  }
  func.func @transform_0(%arg0: i32) -> (i32, i32, i32) {
    %c0_i32 = arith.constant 0 : i32
    %c0_i32_0 = arith.constant 0 : i32
    %c0_i32_1 = arith.constant 0 : i32
    return %c0_i32, %arg0, %c0_i32_0 : i32, i32, i32
  }
  func.func @transform_1(%arg0: i32) -> (i32, i32, i32) {
    %c0_i32 = arith.constant 0 : i32
    %c0_i32_0 = arith.constant 0 : i32
    %c0_i32_1 = arith.constant 0 : i32
    %c0_i32_2 = arith.constant 0 : i32
    return %c0_i32, %c0_i32_0, %c0_i32_1 : i32, i32, i32
  }
  func.func @transform_2(%arg0: i32) -> (i32, i32) {
    %c0_i32 = arith.constant 0 : i32
    %c0_i32_0 = arith.constant 0 : i32
    %c0_i32_1 = arith.constant 0 : i32
    return %c0_i32, %c0_i32_0 : i32, i32
  }
  func.func @transform_3(%arg0: i32) -> (i32, i32, i32, i32) {
    %c0_i32 = arith.constant 0 : i32
    %c0_i32_0 = arith.constant 0 : i32
    %c0_i32_1 = arith.constant 0 : i32
    %c0_i32_2 = arith.constant 0 : i32
    %c0_i32_3 = arith.constant 0 : i32
    return %c0_i32, %c0_i32_0, %c0_i32_1, %c0_i32_2 : i32, i32, i32, i32
  }
  func.func @transform_4(%arg0: i32) -> (i32, i32) {
    %c0_i32 = arith.constant 0 : i32
    %c0_i32_0 = arith.constant 0 : i32
    %c0_i32_1 = arith.constant 0 : i32
    return %c0_i32, %c0_i32_0 : i32, i32
  }
  func.func @transform_5(%arg0: i32) -> (i32, i32) {
    %c0_i32 = arith.constant 0 : i32
    %c0_i32_0 = arith.constant 0 : i32
    %c0_i32_1 = arith.constant 0 : i32
    return %c0_i32, %c0_i32_0 : i32, i32
  }
  func.func @transform_6(%arg0: i32) -> (i32, i32) {
    %c0_i32 = arith.constant 0 : i32
    %c0_i32_0 = arith.constant 0 : i32
    %c0_i32_1 = arith.constant 0 : i32
    return %c0_i32, %c0_i32_0 : i32, i32
  }
  func.func @transform_7(%arg0: i32) -> (i32, i32) {
    %c0_i32 = arith.constant 0 : i32
    %c0_i32_0 = arith.constant 0 : i32
    return %arg0, %c0_i32 : i32, i32
  }
}

</mosaic_0001>

<bundles_post_ra>
// kernel: cnn_forward.1
= control target key start
LH: loop header
LB: loop body
LE: loop exit
PB: predicated region body
PF: predicated region fallthrough
CT: control target
= control target key end

     0   :  { %12 = vsyncpa [#allocation3], 0  ;;  %s27310_s0 = inlined_call_operand.vmem [shape: f32[28,8,28], index: 0, kind: input, shape index: {}]   ;;  %s27311_s1 = inlined_call_operand.hbm [shape: f32[5,28,768], index: 1, kind: input, shape index: {}]   ;;  %s27312_s2 = inlined_call_operand.hbm [shape: f32[1,128], index: 2, kind: input, shape index: {}]   ;;  %s27313_s3 = inlined_call_operand.hbm [shape: bf16[12,3,128,512], index: 3, kind: input, shape index: {}]   ;;  %s27314_s4 = inlined_call_operand.hbm [shape: f32[1,512], index: 4, kind: input, shape index: {}]   ;;  %s27315_s5 = inlined_call_operand.hbm [shape: f32[512,128], index: 5, kind: input, shape index: {}]   ;;  %s27316_s6 = inlined_call_operand.hbm [shape: f32[1,128], index: 6, kind: input, shape index: {}]   ;;  %s27317_s7 = inlined_call_operand.vmem [shape: f32[8,128], index: 7, kind: output, shape index: {}]  }
   0x1   :  { %13 = vsyncpa [#allocation5], 0 }
   0x2   :  { %14 = vsyncpa [#allocation8], 0 }
   0x3   :  { %15 = vsyncpa [#allocation11], 0  ;;  %s24497_s24 = smov [#allocation4]   ;;  %s24498_s26 = smov [#allocation7]  }
   0x4   :  { %s36_s25 = sshll.u32 %s24497_s24, 4  ;;  %s58_s27 = sshll.u32 %s24498_s26, 4  ;;  %s37_s25 = int_to_ptr.vmem [resolvable:$true] %s36_s25  ;;  %s59_s27 = int_to_ptr.vmem [resolvable:$true] %s58_s27 }
   0x5   :  { %s24357_s30 = scalar_lea.hbm %s27312_s2, 16 }
   0x6   :  { %p24358_p0 = scmp.ne.s32.totalorder %s27312_s2, %s24357_s30  ;;  %p24361_p1 = scmp.lt.u32.totalorder %s24357_s30, %s27312_s2 }
   0x8   :  { %p24363_p2 = pnand %p24361_p1, %p24358_p0 }
   0xa   :  { %24366 = shalt.err (!%p24363_p2)
}
   0xb   :  { %s24367_s12 = scalar_lea.vmem %s37_s25, 16  ;;  %s24371_s13 = scalar_lea.vmem %s37_s25, 32 }
   0xc   :  { %p24368_p3 = scmp.ne.s32.totalorder %s37_s25, %s24367_s12  ;;  %p24372_p4 = scmp.lt.s32.totalorder %s37_s25, %s37_s25 }
   0xd   :  { %p24373_p5 = scmp.lt.s32.totalorder %s24371_s13, %s24367_s12 }
   0xf   :  { %p24374_p6 = por %p24373_p5, %p24372_p4 }
  0x11   :  { %p24375_p7 = pnand %p24374_p6, %p24368_p3 }
  0x13   :  { %24378 = shalt.err (!%p24375_p7)
}
  0x14   :  { %39 = dma.hbm_to_vmem [thread:$0]  %s27312_s2, 16, %s37_s25, [#allocation5]  }
  0x15   :  { %s24379_s18 = scalar_lea.hbm %s27314_s4, 64 }
  0x16   :  { %p24380_p8 = scmp.ne.s32.totalorder %s27314_s4, %s24379_s18  ;;  %p24383_p9 = scmp.lt.u32.totalorder %s24379_s18, %s27314_s4 }
  0x18   :  { %p24385_p10 = pnand %p24383_p9, %p24380_p8 }
  0x1a   :  { %24388 = shalt.err (!%p24385_p10)
}
  0x1b   :  { %s24389_s23 = scalar_lea.vmem %s59_s27, 64  ;;  %p24394_p12 = scmp.lt.s32.totalorder %s59_s27, %s59_s27 }
  0x1c   :  { %p24390_p11 = scmp.ne.s32.totalorder %s59_s27, %s24389_s23  ;;  %p24395_p13 = scmp.lt.s32.totalorder %s24389_s23, %s24389_s23 }
  0x1e   :  { %p24396_p0 = por %p24395_p13, %p24394_p12 }
  0x20   :  { %p24397_p1 = pnand %p24396_p0, %p24390_p11 }
  0x22   :  { %24400 = shalt.err (!%p24397_p1)
}
  0x23   :  { %61 = dma.hbm_to_vmem [thread:$0]  %s27314_s4, 64, %s59_s27, [#allocation8]  }
  0x24   :  { %s24499_s25 = smov [#allocation2]   ;;  %s24401_s30 = scalar_lea.hbm %s27311_s1, 15360 }
  0x25   :  { %s23_s26 = sshll.u32 %s24499_s25, 4  ;;  %p24402_p2 = scmp.ne.s32.totalorder %s27311_s1, %s24401_s30  ;;  %s24_s26 = int_to_ptr.vmem [resolvable:$true] %s23_s26 }
  0x26   :  { %p24405_p3 = scmp.lt.u32.totalorder %s24401_s30, %s27311_s1 }
  0x28   :  { %p24407_p4 = pnand %p24405_p3, %p24402_p2 }
  0x2a   :  { %24410 = shalt.err (!%p24407_p4)
}
  0x2b   :  { %s24411_s12 = scalar_lea.vmem %s24_s26, 15360  ;;  %p24416_p6 = scmp.lt.s32.totalorder %s24_s26, %s24_s26 }
  0x2c   :  { %p24412_p5 = scmp.ne.s32.totalorder %s24_s26, %s24411_s12  ;;  %p24417_p7 = scmp.lt.s32.totalorder %s24411_s12, %s24411_s12 }
  0x2e   :  { %p24418_p8 = por %p24417_p7, %p24416_p6 }
  0x30   :  { %p24419_p9 = pnand %p24418_p8, %p24412_p5 }
  0x32   :  { %24422 = shalt.err (!%p24419_p9)
}
  0x33   :  { %s24500_s4 = smov 768   ;;  %s24501_s27 = smov 48  }
  0x34   :  { %29 = dma.hbm_to_vmem [thread:$0]  %s27311_s1, 15360, %s24_s26, [#allocation3], %s24500_s4, %s24500_s4, %s24501_s27  }
  0x35   :  { %s24502_s15 = smov [#allocation6]   ;;  %s24423_s19 = scalar_lea.hbm %s27313_s3, 147456 }
  0x36   :  { %s45_s16 = sshll.u32 %s24502_s15, 4  ;;  %p24424_p10 = scmp.ne.s32.totalorder %s27313_s3, %s24423_s19  ;;  %s46_s16 = int_to_ptr.vmem [resolvable:$true] %s45_s16 }
  0x37   :  { %p24427_p11 = scmp.lt.u32.totalorder %s24423_s19, %s27313_s3 }
  0x39   :  { %p24429_p12 = pnand %p24427_p11, %p24424_p10 }
  0x3b   :  { %24432 = shalt.err (!%p24429_p12)
}
  0x3c   :  { %s24433_s2 = scalar_lea.vmem %s46_s16, 147456  ;;  %p24438_p0 = scmp.lt.s32.totalorder %s46_s16, %s46_s16 }
  0x3d   :  { %p24434_p13 = scmp.ne.s32.totalorder %s46_s16, %s24433_s2  ;;  %p24439_p1 = scmp.lt.s32.totalorder %s24433_s2, %s24433_s2 }
  0x3f   :  { %p24440_p2 = por %p24439_p1, %p24438_p0 }
  0x41   :  { %p24441_p3 = pnand %p24440_p2, %p24434_p13 }
  0x43   :  { %24444 = shalt.err (!%p24441_p3)
}
  0x44   :  { %s24503_s1 = smov 256   ;;  %s24504_s24 = smov 16  }
  0x45   :  { %51 = dma.hbm_to_vmem [thread:$0]  %s27313_s3, 147456, %s46_s16, [#allocation5], %s24503_s1, %s24503_s1, %s24504_s24  }
  0x46   :  { %s24505_s28 = smov [#allocation9]   ;;  %s24445_s9 = scalar_lea.hbm %s27315_s5, 8192 }
  0x47   :  { %s67_s29 = sshll.u32 %s24505_s28, 4  ;;  %p24446_p4 = scmp.ne.s32.totalorder %s27315_s5, %s24445_s9  ;;  %s68_s29 = int_to_ptr.vmem [resolvable:$true] %s67_s29 }
  0x48   :  { %p24449_p5 = scmp.lt.u32.totalorder %s24445_s9, %s27315_s5 }
  0x4a   :  { %p24451_p6 = pnand %p24449_p5, %p24446_p4 }
  0x4c   :  { %24454 = shalt.err (!%p24451_p6)
}
  0x4d   :  { %s24455_s27 = scalar_lea.vmem %s68_s29, 8192  ;;  %p24460_p8 = scmp.lt.s32.totalorder %s68_s29, %s68_s29 }
  0x4e   :  { %p24456_p7 = scmp.ne.s32.totalorder %s68_s29, %s24455_s27  ;;  %p24461_p9 = scmp.lt.s32.totalorder %s24455_s27, %s24455_s27 }
  0x50   :  { %p24462_p10 = por %p24461_p9, %p24460_p8 }
  0x52   :  { %p24463_p11 = pnand %p24462_p10, %p24456_p7 }
  0x54   :  { %24466 = shalt.err (!%p24463_p11)
}
  0x55   :  { %s24506_s3 = smov 128   ;;  %s24507_s13 = smov 8  }
  0x56   :  { %73 = dma.hbm_to_vmem [thread:$0]  %s27315_s5, 8192, %s68_s29, [#allocation8], %s24506_s3, %s24506_s3, %s24507_s13  }
  0x57   :  { %s24508_s16 = smov [#allocation10]   ;;  %s24467_s20 = scalar_lea.hbm %s27316_s6, 16 }
  0x58   :  { %s80_s17 = sshll.u32 %s24508_s16, 4  ;;  %p24468_p12 = scmp.ne.s32.totalorder %s27316_s6, %s24467_s20  ;;  %s81_s17 = int_to_ptr.vmem [resolvable:$true] %s80_s17 }
  0x59   :  { %p24471_p13 = scmp.lt.u32.totalorder %s24467_s20, %s27316_s6 }
  0x5b   :  { %p24473_p0 = pnand %p24471_p13, %p24468_p12 }
  0x5d   :  { %24476 = shalt.err (!%p24473_p0)
}
  0x5e   :  { %s24477_s1 = scalar_lea.vmem %s81_s17, 16  ;;  %s24481_s5 = scalar_lea.vmem %s81_s17, 32 }
  0x5f   :  { %p24478_p1 = scmp.ne.s32.totalorder %s81_s17, %s24477_s1  ;;  %p24482_p2 = scmp.lt.s32.totalorder %s81_s17, %s81_s17 }
  0x60   :  { %p24483_p3 = scmp.lt.s32.totalorder %s24481_s5, %s24477_s1 }
  0x62   :  { %p24484_p4 = por %p24483_p3, %p24482_p2 }
  0x64   :  { %p24485_p5 = pnand %p24484_p4, %p24478_p1 }
  0x66   :  { %24488 = shalt.err (!%p24485_p5)
}
  0x67   :  { %83 = dma.hbm_to_vmem [thread:$0]  %s27316_s6, 16, %s81_s17, [#allocation11]  }
  0x68   :  { %24489 = dma.done.wait [#allocation3], 15360  }
  0x69   :  { %24490 = vsyncadd [#allocation3], 4294951936 }
  0x6a   :  { %24491 = dma.done.wait [#allocation5], 147472  }
  0x6b   :  { %24492 = vsyncadd [#allocation5], 4294819824 }
  0x6c   :  { %24493 = dma.done.wait [#allocation8], 8256  }
  0x6d   :  { %24494 = vsyncadd [#allocation8], 4294959040 }
  0x6e   :  { %24495 = dma.done.wait [#allocation11], 16  }
  0x6f   :  { %24496 = vsyncadd [#allocation11], 4294967280  ;;  %vm238_vm0 = vcmask 1043456   ;;  %vm24509_vm1 = vmmov 1   ;;  %v161_v1 = vld [vmem:[#allocation2 + $0xc0] sm:$0xff]  ;;  %v162_v2 = vld [vmem:[#allocation2 + $0xf0] sm:$0xff] }
  0x70   :  { %vm24623_vm2 = vmpackc.low %vm238_vm0, %vm24509_vm1  ;;  %v687_v3 = vld [vmem:[#allocation2 + $0xd8] sm:$0xff]  ;;  %vm165_vm3 = vcmask 228352   ;;  %v21595_v4 = vpack.c.bf16 %v162_v2, %v161_v1  ;;  %v688_v5 = vld [vmem:[#allocation2 + $0x108] sm:$0xff] }
  0x71   :  { %v163_v6 = vld [vmem:[#allocation2 + $0x120] sm:$0xff]  ;;  %v164_v7 = vld [vmem:[#allocation2 + $0x150] sm:$0xf]  ;;  %v21615_v8 = vpack.c.bf16 %v688_v5, %v687_v3  ;;  %v689_v10 = vld [vmem:[#allocation2 + $0x138] sm:$0xff] }
  0x72   :  { %v21599_v9 = vpack.c.bf16 %v164_v7, %v163_v6  ;;  %v690_v11 = vld [vmem:[#allocation2 + $0x168] sm:$0xf]  ;;  %21596 = vmatprep.subr.bf16.mxu0 %v21595_v4  ;;  %v127_v14 = vld [vmem:[#allocation2] sm:$0xff]  ;;  %v128_v15 = vld [vmem:[#allocation2 + $0x30] sm:$0xff] }
  0x73   :  { %v24630_v12 = vld [vmem:[%s27310_s0 + $0x8] sm:$0xff]  ;;  %v21619_v13 = vpack.c.bf16 %v690_v11, %v689_v10  ;;  %21616 = vmatprep.subr.bf16.mxu1 %v21615_v8  ;;  %21598 = vmatpush3.bf16.msra.mxu0 %v21595_v4  ;;  %v131_v16 = vld [vmem:[#allocation2 + $0x18] sm:$0xff]  ;;  %v21605_v18 = vpack.c.bf16 %v128_v15, %v127_v14  ;;  %v24645_v20 = vld [vmem:[%s27310_s0 + $0x10] sm:$0xff] }
  0x74   :  { %20283 = vmatprep.mubr.msk.f32.mxu0 %vm165_vm3, %v24630_v12  ;;  %v132_v17 = vld [vmem:[#allocation2 + $0x48] sm:$0xff]  ;;  %21618 = vmatpush3.bf16.msra.mxu1 %v21615_v8  ;;  %v129_v21 = vld [vmem:[#allocation2 + $0x60] sm:$0xff]  ;;  %v130_v22 = vld [vmem:[#allocation2 + $0x90] sm:$0xf] }
  0x75   :  { %21601 = vmatprep.subr.msk.bf16.mxu0 %vm24623_vm2, %v21599_v9  ;;  %21621 = vmatprep.subr.msk.bf16.mxu1 %vm24623_vm2, %v21619_v13  ;;  %v21625_v19 = vpack.c.bf16 %v132_v17, %v131_v16  ;;  %v133_v23 = vld [vmem:[#allocation2 + $0x78] sm:$0xff]  ;;  %v134_v24 = vld [vmem:[#allocation2 + $0xa8] sm:$0xf]  ;;  %v21609_v26 = vpack.c.bf16 %v130_v22, %v129_v21  ;;  %v24661_v28 = vld [vmem:[%s27310_s0 + $0x20] sm:$0xff] }
  0x76   :  { %20371 = vmatprep.mubr.msk.f32.mxu1 %vm165_vm3, %v24630_v12  ;;  %v24652_v25 = vld [vmem:[%s27310_s0 + $0x18] sm:$0xff]  ;;  %v21629_v27 = vpack.c.bf16 %v134_v24, %v133_v23  ;;  %v24668_v29 = vld [vmem:[%s27310_s0 + $0x28] sm:$0xff]  ;;  %v1093_v30 = vld [vmem:[#allocation2 + $0x180] sm:$0xff] }
  0x77   :  { %21604 = vmatpush3.bf16.msk.msra.mxu0 %vm24623_vm2, %v21599_v9  ;;  %v1094_v31 = vld [vmem:[#allocation2 + $0x1b0] sm:$0xff]  ;;  %v1381_v32 = vld [vmem:[#allocation2 + $0x198] sm:$0xff]  ;;  %v1382_v33 = vld [vmem:[#allocation2 + $0x1c8] sm:$0xff] }
  0x78   :  { %21624 = vmatpush3.bf16.msk.msra.mxu1 %vm24623_vm2, %v21619_v13  ;;  %21606 = vmatprep.subr.bf16.mxu0 %v21605_v18  ;;  %v24678_v34 = vpack.c.bf16 %v1094_v31, %v1093_v30  ;;  %v24680_v35 = vpack.c.bf16 %v1382_v33, %v1381_v32  ;;  %v24689_v36 = vld [vmem:[%s27310_s0 + $0x30] sm:$0xff]  ;;  %v24696_v37 = vld [vmem:[%s27310_s0 + $0x38] sm:$0xff]  ;;  %v24703_v38 = vld [vmem:[%s27310_s0 + $0x40] sm:$0xff] }
  0x79   :  { %21626 = vmatprep.subr.bf16.mxu1 %v21625_v19  ;;  %v24720_v39 = vld [vmem:[%s27310_s0 + $0x48] sm:$0xff]  ;;  %v24725_v40 = vld [vmem:[%s27310_s0 + $0x50] sm:$0xff]  ;;  %v24732_v41 = vld [vmem:[%s27310_s0 + $0x58] sm:$0xff] }
  0x7a   :  { %20284 = vmatmul.mubr.msk.f32.vlgmr.msra.gmra.mrb[0].mxu0 %vm165_vm3, %v24645_v20  ;;  %v24749_v42 = vld [vmem:[%s27310_s0 + $0x60] sm:$0xff]  ;;  %v24756_v43 = vld [vmem:[%s27310_s0 + $0x68] sm:$0xff]  ;;  %v24761_v44 = vld [vmem:[%s27310_s0 + $0x70] sm:$0xff] }
  0x7b   :  { %20372 = vmatmul.mubr.msk.f32.vlgmr.msra.gmra.mrb[0].mxu1 %vm165_vm3, %v24645_v20  ;;  %21608 = vmatpush3.bf16.msra.mxu0 %v21605_v18  ;;  %v24768_v45 = vld [vmem:[%s27310_s0 + $0x78] sm:$0xff]  ;;  %v24779_v46 = vld [vmem:[%s27310_s0 + $0x80] sm:$0xff]  ;;  %v24786_v47 = vld [vmem:[%s27310_s0 + $0x88] sm:$0xff] }
  0x7c   :  { %21628 = vmatpush3.bf16.msra.mxu1 %v21625_v19  ;;  %20286 = vmatprep.mubr.msk.f32.mxu0 %vm165_vm3, %v24652_v25  ;;  %v24797_v48 = vld [vmem:[%s27310_s0 + $0x90] sm:$0xff]  ;;  %v24804_v49 = vld [vmem:[%s27310_s0 + $0x98] sm:$0xff]  ;;  %v24815_v50 = vld [vmem:[%s27310_s0 + $0xa0] sm:$0xff] }
  0x7d   :  { %20374 = vmatprep.mubr.msk.f32.mxu1 %vm165_vm3, %v24652_v25  ;;  %21611 = vmatprep.subr.msk.bf16.mxu0 %vm24623_vm2, %v21609_v26  ;;  %v24822_v51 = vld [vmem:[%s27310_s0 + $0xa8] sm:$0xff]  ;;  %v24833_v52 = vld [vmem:[%s27310_s0 + $0xb0] sm:$0xff]  ;;  %v24840_v53 = vld [vmem:[%s27310_s0 + $0xb8] sm:$0xff] }
  0x7e   :  { %20287 = vmatmul.mubr.msk.f32.gmra.mrb[2].mxu0 %vm165_vm3, %v24661_v28  ;;  %21631 = vmatprep.subr.msk.bf16.mxu1 %vm24623_vm2, %v21629_v27  ;;  %v24857_v54 = vld [vmem:[%s27310_s0 + $0xc0] sm:$0xff]  ;;  %v1096_v57 = vld [vmem:[#allocation2 + $0x210] sm:$0xf]  ;;  %v1383_v58 = vld [vmem:[#allocation2 + $0x1f8] sm:$0xff] }
  0x7f   :  { %20375 = vmatmul.mubr.msk.f32.gmra.mrb[2].mxu1 %vm165_vm3, %v24661_v28  ;;  %20289 = vmatprep.mubr.msk.f32.mxu0 %vm165_vm3, %v24668_v29  ;;  %v103_v55 = vld [vmem:[%s27310_s0] sm:$0xff]  ;;  %v1384_v59 = vld [vmem:[#allocation2 + $0x228] sm:$0xf]  ;;  %v1624_v61 = vld [vmem:[#allocation2 + $0x270] sm:$0xff] }
  0x80   :  { %20377 = vmatprep.mubr.msk.f32.mxu1 %vm165_vm3, %v24668_v29  ;;  %21614 = vmatpush3.bf16.msk.msra.mxu0 %vm24623_vm2, %v21609_v26  ;;  %v1095_v56 = vld [vmem:[#allocation2 + $0x1e0] sm:$0xff]  ;;  %v1911_v63 = vld [vmem:[#allocation2 + $0x258] sm:$0xff]  ;;  %v1912_v1 = vld [vmem:[#allocation2 + $0x288] sm:$0xff]  ;;  %v21649_v2 = vpack.c.bf16 %v1384_v59, %v1383_v58 }
  0x81   :  { %21634 = vmatpush3.bf16.msk.msra.mxu1 %vm24623_vm2, %v21629_v27  ;;  %21636 = vmatprep.subr.bf16.mxu0 %v24678_v34  ;;  %v1623_v60 = vld [vmem:[#allocation2 + $0x240] sm:$0xff]  ;;  %v21639_v62 = vpack.c.bf16 %v1096_v57, %v1095_v56  ;;  %v21665_v4 = vpack.c.bf16 %v1912_v1, %v1911_v63  ;;  %v1626_v6 = vld [vmem:[#allocation2 + $0x2d0] sm:$0xf]  ;;  %v1913_v7 = vld [vmem:[#allocation2 + $0x2b8] sm:$0xff] }
  0x82   :  { %20290 = vmatmul.mubr.msk.f32.gmra.mrb[4].mxu0 %vm165_vm3, %v24689_v36  ;;  %21646 = vmatprep.subr.bf16.mxu1 %v24680_v35  ;;  %v24882_v3 = vpack.c.bf16 %v1624_v61, %v1623_v60  ;;  %v1625_v5 = vld [vmem:[#allocation2 + $0x2a0] sm:$0xff]  ;;  %v1914_v8 = vld [vmem:[#allocation2 + $0x2e8] sm:$0xf]  ;;  %v2154_v10 = vld [vmem:[#allocation2 + $0x330] sm:$0xff] }
  0x83   :  { %20378 = vmatmul.mubr.msk.f32.gmra.mrb[4].mxu1 %vm165_vm3, %v24689_v36  ;;  %20292 = vmatprep.mubr.msk.f32.mxu0 %vm165_vm3, %v24696_v37  ;;  %v2153_v9 = vld [vmem:[#allocation2 + $0x300] sm:$0xff]  ;;  %v21659_v11 = vpack.c.bf16 %v1626_v6, %v1625_v5  ;;  %v2442_v13 = vld [vmem:[#allocation2 + $0x348] sm:$0xff]  ;;  %v21669_v14 = vpack.c.bf16 %v1914_v8, %v1913_v7  ;;  %v2156_v19 = vld [vmem:[#allocation2 + $0x390] sm:$0xf] }
  0x84   :  { %20380 = vmatprep.mubr.msk.f32.mxu1 %vm165_vm3, %v24696_v37  ;;  %v21675_v15 = vpack.c.bf16 %v2154_v10, %v2153_v9  ;;  %v25071_v17 = vld [vmem:[%s27310_s0 + $0xc8] sm:$0xff]  ;;  %v2155_v18 = vld [vmem:[#allocation2 + $0x360] sm:$0xff]  ;;  %v24277_v22 = vld [vmem:[%s27310_s0 + $0x18] sm:$0xff] }
  0x85   :  { %v2444_v21 = vld [vmem:[#allocation2 + $0x3a8] sm:$0xf]  ;;  %v21679_v23 = vpack.c.bf16 %v2156_v19, %v2155_v18  ;;  %v25093_v24 = vld [vmem:[%s27310_s0 + $0x20] sm:$0xff]  ;;  %v25124_v30 = vld [vmem:[%s27310_s0 + $0x38] sm:$0xff]  ;;  %v24510_v19 = vmov 0  }
  0x86   :  { %20293 = vmatmul.mubr.msk.f32.gmra.mrb[6].mxu0 %vm165_vm3, %v24703_v38  ;;  %v22551_v26 = vld [vmem:[#allocation6 + $0x304] ss:$16 sps:$4 sm:$0xff]   ;;  %v22566_v56 = vld [vmem:[#allocation6 + $0x34c] ss:$16 sps:$4 sm:$0xff]   ;;  %v22561_v57 = vld [vmem:[#allocation6 + $0x340] ss:$16 sps:$4 sm:$0xff]  }
  0x87   :  { %20381 = vmatmul.mubr.msk.f32.gmra.mrb[6].mxu1 %vm165_vm3, %v24703_v38  ;;  %20295 = vmatprep.mubr.msk.f32.mxu0 %vm165_vm3, %v24720_v39  ;;  %v25102_v27 = vld [vmem:[%s27310_s0 + $0x28] sm:$0xff]  ;;  %v25137_v31 = vld [vmem:[%s27310_s0 + $0x40] sm:$0xff]  ;;  %v25155_v33 = vld [vmem:[%s27310_s0 + $0x50] sm:$0xff] }
  0x88   :  { %20383 = vmatprep.mubr.msk.f32.mxu1 %vm165_vm3, %v24720_v39  ;;  %v25146_v32 = vld [vmem:[%s27310_s0 + $0x48] sm:$0xff]  ;;  %v22567_v61 = vld [vmem:[#allocation6 + $0x360] ss:$16 sps:$4 sm:$0xff]   ;;  %v17660_v8 = vld [vmem:[%s27310_s0 + $0xd8] sm:$0xff] }
  0x89   :  { %v22564_v58 = vld [vmem:[#allocation6 + $0x348] ss:$16 sps:$4 sm:$0xff]   ;;  %v22569_v59 = vld [vmem:[#allocation6 + $0x364] ss:$16 sps:$4 sm:$0xff]   ;;  %v22572_v60 = vld [vmem:[#allocation6 + $0x36c] ss:$16 sps:$4 sm:$0xff]  }
  0x8a   :  { %20296 = vmatmul.mubr.msk.f32.gmra.mrb[8].mxu0 %vm165_vm3, %v24725_v40  ;;  %v22575_v63 = vld [vmem:[#allocation6 + $0x384] ss:$16 sps:$4 sm:$0xff]   ;;  %v22578_v1 = vld [vmem:[#allocation6 + $0x38c] ss:$16 sps:$4 sm:$0xff]   ;;  %v22579_v6 = vld [vmem:[#allocation6 + $0x3a0] ss:$16 sps:$4 sm:$0xff]  }
  0x8b   :  { %20384 = vmatmul.mubr.msk.f32.gmra.mrb[8].mxu1 %vm165_vm3, %v24725_v40  ;;  %20298 = vmatprep.mubr.msk.f32.mxu0 %vm165_vm3, %v24732_v41  ;;  %v22584_v5 = vld [vmem:[#allocation6 + $0x3ac] ss:$16 sps:$4 sm:$0xff]   ;;  %v22582_v7 = vld [vmem:[#allocation6 + $0x3a8] ss:$16 sps:$4 sm:$0xff]   ;;  %v22587_v9 = vld [vmem:[#allocation6 + $0x3c4] ss:$16 sps:$4 sm:$0xff]  }
  0x8c   :  { %20386 = vmatprep.mubr.msk.f32.mxu1 %vm165_vm3, %v24732_v41  ;;  %v22590_v10 = vld [vmem:[#allocation6 + $0x3cc] ss:$16 sps:$4 sm:$0xff]  }
  0x8d   :  { %v22602_v18 = vld [vmem:[#allocation6 + $0xc] ss:$16 sps:$4 sm:$0xff]  }
  0x8e   :  { %20299 = vmatmul.mubr.msk.f32.gmra.mrb[10].mxu0 %vm165_vm3, %v24749_v42 }
  0x8f   :  { %20387 = vmatmul.mubr.msk.f32.gmra.mrb[10].mxu1 %vm165_vm3, %v24749_v42  ;;  %20301 = vmatprep.mubr.msk.f32.mxu0 %vm165_vm3, %v24756_v43 }
  0x90   :  { %20389 = vmatprep.mubr.msk.f32.mxu1 %vm165_vm3, %v24756_v43 }
  0x92   :  { %20302 = vmatmul.mubr.msk.f32.gmra.mrb[12].mxu0 %vm165_vm3, %v24761_v44 }
  0x93   :  { %20390 = vmatmul.mubr.msk.f32.gmra.mrb[12].mxu1 %vm165_vm3, %v24761_v44  ;;  %20304 = vmatprep.mubr.msk.f32.mxu0 %vm165_vm3, %v24768_v45 }
  0x94   :  { %20392 = vmatprep.mubr.msk.f32.mxu1 %vm165_vm3, %v24768_v45 }
  0x96   :  { %20305 = vmatmul.mubr.msk.f32.gmra.mrb[14].mxu0 %vm165_vm3, %v24779_v46 }
  0x97   :  { %20393 = vmatmul.mubr.msk.f32.gmra.mrb[14].mxu1 %vm165_vm3, %v24779_v46  ;;  %20307 = vmatprep.mubr.msk.f32.mxu0 %vm165_vm3, %v24786_v47 }
  0x98   :  { %20395 = vmatprep.mubr.msk.f32.mxu1 %vm165_vm3, %v24786_v47 }
  0x9a   :  { %20308 = vmatmul.mubr.msk.f32.gmra.mrb[16].mxu0 %vm165_vm3, %v24797_v48 }
  0x9b   :  { %20396 = vmatmul.mubr.msk.f32.gmra.mrb[16].mxu1 %vm165_vm3, %v24797_v48  ;;  %20310 = vmatprep.mubr.msk.f32.mxu0 %vm165_vm3, %v24804_v49 }
  0x9c   :  { %20398 = vmatprep.mubr.msk.f32.mxu1 %vm165_vm3, %v24804_v49 }
  0x9e   :  { %20311 = vmatmul.mubr.msk.f32.gmra.mrb[18].mxu0 %vm165_vm3, %v24815_v50 }
  0x9f   :  { %20399 = vmatmul.mubr.msk.f32.gmra.mrb[18].mxu1 %vm165_vm3, %v24815_v50  ;;  %20313 = vmatprep.mubr.msk.f32.mxu0 %vm165_vm3, %v24822_v51 }
  0xa0   :  { %20401 = vmatprep.mubr.msk.f32.mxu1 %vm165_vm3, %v24822_v51 }
  0xa2   :  { %20314 = vmatmul.mubr.msk.f32.gmra.mrb[20].mxu0 %vm165_vm3, %v24833_v52 }
  0xa3   :  { %20402 = vmatmul.mubr.msk.f32.gmra.mrb[20].mxu1 %vm165_vm3, %v24833_v52  ;;  %20316 = vmatprep.mubr.msk.f32.mxu0 %vm165_vm3, %v24840_v53 }
  0xa4   :  { %20404 = vmatprep.mubr.msk.f32.mxu1 %vm165_vm3, %v24840_v53 }
  0xa6   :  { %20317 = vmatmul.mubr.msk.f32.gmra.mrb[22].mxu0 %vm165_vm3, %v24857_v54 }
  0xa7   :  { %20405 = vmatmul.mubr.msk.f32.gmra.mrb[22].mxu1 %vm165_vm3, %v24857_v54  ;;  %20327 = vmatprep.mubr.msk.f32.mxu0 %vm165_vm3, %v103_v55 }
  0xa8   :  { %20415 = vmatprep.mubr.msk.f32.mxu1 %vm165_vm3, %v103_v55  ;;  %v22563_v55 = vld [vmem:[#allocation6 + $0x344] ss:$16 sps:$4 sm:$0xff]  }
  0xaa   :  { %20328 = vmatmul.mubr.msk.f32.vlgmr.msra.gmra.mrb[0].mxu0 %vm165_vm3, %v24630_v12 }
  0xab   :  { %20416 = vmatmul.mubr.msk.f32.vlgmr.msra.gmra.mrb[0].mxu1 %vm165_vm3, %v24630_v12  ;;  %21638 = vmatpush3.bf16.msra.mxu0 %v24678_v34  ;;  %v2441_v12 = vld [vmem:[#allocation2 + $0x318] sm:$0xff] }
  0xac   :  { %21648 = vmatpush3.bf16.msra.mxu1 %v24680_v35  ;;  %20330 = vmatprep.mubr.msk.f32.mxu0 %vm165_vm3, %v24645_v20  ;;  %v21685_v16 = vpack.c.bf16 %v2442_v13, %v2441_v12  ;;  %v25164_v34 = vld [vmem:[%s27310_s0 + $0x58] sm:$0xff]  ;;  %v25173_v35 = vld [vmem:[%s27310_s0 + $0x60] sm:$0xff] }
  0xad   :  { %20418 = vmatprep.mubr.msk.f32.mxu1 %vm165_vm3, %v24645_v20  ;;  %21641 = vmatprep.subr.msk.bf16.mxu0 %vm24623_vm2, %v21639_v62  ;;  %v22588_v12 = vld [vmem:[#allocation6 + $0x3c8] ss:$16 sps:$4 sm:$0xff]   ;;  %v22593_v13 = vld [vmem:[#allocation6 + $0x3e4] ss:$16 sps:$4 sm:$0xff]  }
  0xae   :  { %20331 = vmatmul.mubr.msk.f32.gmra.mrb[2].mxu0 %vm165_vm3, %v24652_v25  ;;  %21651 = vmatprep.subr.msk.bf16.mxu1 %vm24623_vm2, %v21649_v2 }
  0xaf   :  { %20419 = vmatmul.mubr.msk.f32.gmra.mrb[2].mxu1 %vm165_vm3, %v24652_v25  ;;  %20333 = vmatprep.mubr.msk.f32.mxu0 %vm165_vm3, %v24661_v28 }
  0xb0   :  { %20421 = vmatprep.mubr.msk.f32.mxu1 %vm165_vm3, %v24661_v28  ;;  %21644 = vmatpush3.bf16.msk.msra.mxu0 %vm24623_vm2, %v21639_v62  ;;  %v22570_v62 = vld [vmem:[#allocation6 + $0x368] ss:$16 sps:$4 sm:$0xff]  }
  0xb1   :  { %21654 = vmatpush3.bf16.msk.msra.mxu1 %vm24623_vm2, %v21649_v2  ;;  %21656 = vmatprep.subr.bf16.mxu0 %v24882_v3  ;;  %v22573_v2 = vld [vmem:[#allocation6 + $0x380] ss:$16 sps:$4 sm:$0xff]  }
  0xb2   :  { %20334 = vmatmul.mubr.msk.f32.gmra.mrb[4].mxu0 %vm165_vm3, %v24668_v29  ;;  %21666 = vmatprep.subr.bf16.mxu1 %v21665_v4 }
  0xb3   :  { %20422 = vmatmul.mubr.msk.f32.gmra.mrb[4].mxu1 %vm165_vm3, %v24668_v29  ;;  %20336 = vmatprep.mubr.msk.f32.mxu0 %vm165_vm3, %v24689_v36 }
  0xb4   :  { %20424 = vmatprep.mubr.msk.f32.mxu1 %vm165_vm3, %v24689_v36 }
  0xb6   :  { %20337 = vmatmul.mubr.msk.f32.gmra.mrb[6].mxu0 %vm165_vm3, %v24696_v37 }
  0xb7   :  { %20425 = vmatmul.mubr.msk.f32.gmra.mrb[6].mxu1 %vm165_vm3, %v24696_v37  ;;  %20339 = vmatprep.mubr.msk.f32.mxu0 %vm165_vm3, %v24703_v38 }
  0xb8   :  { %20427 = vmatprep.mubr.msk.f32.mxu1 %vm165_vm3, %v24703_v38 }
  0xba   :  { %20340 = vmatmul.mubr.msk.f32.gmra.mrb[8].mxu0 %vm165_vm3, %v24720_v39 }
  0xbb   :  { %20428 = vmatmul.mubr.msk.f32.gmra.mrb[8].mxu1 %vm165_vm3, %v24720_v39  ;;  %20342 = vmatprep.mubr.msk.f32.mxu0 %vm165_vm3, %v24725_v40 }
  0xbc   :  { %20430 = vmatprep.mubr.msk.f32.mxu1 %vm165_vm3, %v24725_v40 }
  0xbe   :  { %20343 = vmatmul.mubr.msk.f32.gmra.mrb[10].mxu0 %vm165_vm3, %v24732_v41 }
  0xbf   :  { %20431 = vmatmul.mubr.msk.f32.gmra.mrb[10].mxu1 %vm165_vm3, %v24732_v41  ;;  %20345 = vmatprep.mubr.msk.f32.mxu0 %vm165_vm3, %v24749_v42 }
  0xc0   :  { %20433 = vmatprep.mubr.msk.f32.mxu1 %vm165_vm3, %v24749_v42 }
  0xc2   :  { %20346 = vmatmul.mubr.msk.f32.gmra.mrb[12].mxu0 %vm165_vm3, %v24756_v43 }
  0xc3   :  { %20434 = vmatmul.mubr.msk.f32.gmra.mrb[12].mxu1 %vm165_vm3, %v24756_v43  ;;  %20348 = vmatprep.mubr.msk.f32.mxu0 %vm165_vm3, %v24761_v44 }
  0xc4   :  { %20436 = vmatprep.mubr.msk.f32.mxu1 %vm165_vm3, %v24761_v44 }
  0xc6   :  { %20349 = vmatmul.mubr.msk.f32.gmra.mrb[14].mxu0 %vm165_vm3, %v24768_v45 }
  0xc7   :  { %20437 = vmatmul.mubr.msk.f32.gmra.mrb[14].mxu1 %vm165_vm3, %v24768_v45  ;;  %20351 = vmatprep.mubr.msk.f32.mxu0 %vm165_vm3, %v24779_v46 }
  0xc8   :  { %20439 = vmatprep.mubr.msk.f32.mxu1 %vm165_vm3, %v24779_v46 }
  0xca   :  { %20352 = vmatmul.mubr.msk.f32.gmra.mrb[16].mxu0 %vm165_vm3, %v24786_v47 }
  0xcb   :  { %20440 = vmatmul.mubr.msk.f32.gmra.mrb[16].mxu1 %vm165_vm3, %v24786_v47  ;;  %20354 = vmatprep.mubr.msk.f32.mxu0 %vm165_vm3, %v24797_v48 }
  0xcc   :  { %20442 = vmatprep.mubr.msk.f32.mxu1 %vm165_vm3, %v24797_v48 }
  0xce   :  { %20355 = vmatmul.mubr.msk.f32.gmra.mrb[18].mxu0 %vm165_vm3, %v24804_v49 }
  0xcf   :  { %20443 = vmatmul.mubr.msk.f32.gmra.mrb[18].mxu1 %vm165_vm3, %v24804_v49  ;;  %20357 = vmatprep.mubr.msk.f32.mxu0 %vm165_vm3, %v24815_v50 }
  0xd0   :  { %20445 = vmatprep.mubr.msk.f32.mxu1 %vm165_vm3, %v24815_v50 }
  0xd2   :  { %20358 = vmatmul.mubr.msk.f32.gmra.mrb[20].mxu0 %vm165_vm3, %v24822_v51 }
  0xd3   :  { %20446 = vmatmul.mubr.msk.f32.gmra.mrb[20].mxu1 %vm165_vm3, %v24822_v51  ;;  %20360 = vmatprep.mubr.msk.f32.mxu0 %vm165_vm3, %v24833_v52 }
  0xd4   :  { %20448 = vmatprep.mubr.msk.f32.mxu1 %vm165_vm3, %v24833_v52 }
  0xd6   :  { %20361 = vmatmul.mubr.msk.f32.gmra.mrb[22].mxu0 %vm165_vm3, %v24840_v53 }
  0xd7   :  { %20449 = vmatmul.mubr.msk.f32.gmra.mrb[22].mxu1 %vm165_vm3, %v24840_v53  ;;  %20459 = vmatprep.mubr.msk.f32.mxu0 %vm165_vm3, %v24645_v20 }
  0xd8   :  { %20503 = vmatprep.mubr.msk.f32.mxu1 %vm165_vm3, %v24645_v20  ;;  %v2443_v20 = vld [vmem:[#allocation2 + $0x378] sm:$0xff] }
  0xda   :  { %20460 = vmatmul.mubr.msk.f32.vlgmr.msra.gmra.mrb[0].mxu0 %vm165_vm3, %v24652_v25 }
  0xdb   :  { %20504 = vmatmul.mubr.msk.f32.vlgmr.msra.gmra.mrb[0].mxu1 %vm165_vm3, %v24652_v25  ;;  %21658 = vmatpush3.bf16.msra.mxu0 %v24882_v3  ;;  %v21689_v25 = vpack.c.bf16 %v2444_v21, %v2443_v20  ;;  %v22576_v3 = vld [vmem:[#allocation6 + $0x388] ss:$16 sps:$4 sm:$0xff]   ;;  %v25399_v20 = vld [vmem:[#allocation4] ss:$0 sm:$0xff] }
  0xdc   :  { %21668 = vmatpush3.bf16.msra.mxu1 %v21665_v4  ;;  %20462 = vmatprep.mubr.msk.f32.mxu0 %vm165_vm3, %v24661_v28  ;;  %v22581_v4 = vld [vmem:[#allocation6 + $0x3a4] ss:$16 sps:$4 sm:$0xff]  }
  0xdd   :  { %20506 = vmatprep.mubr.msk.f32.mxu1 %vm165_vm3, %v24661_v28  ;;  %21661 = vmatprep.subr.msk.bf16.mxu0 %vm24623_vm2, %v21659_v11  ;;  %v22554_v28 = vld [vmem:[#allocation6 + $0x30c] ss:$16 sps:$4 sm:$0xff]  }
  0xde   :  { %20463 = vmatmul.mubr.msk.f32.gmra.mrb[2].mxu0 %vm165_vm3, %v24668_v29  ;;  %21671 = vmatprep.subr.msk.bf16.mxu1 %vm24623_vm2, %v21669_v14 }
  0xdf   :  { %20507 = vmatmul.mubr.msk.f32.gmra.mrb[2].mxu1 %vm165_vm3, %v24668_v29  ;;  %20465 = vmatprep.mubr.msk.f32.mxu0 %vm165_vm3, %v24689_v36  ;;  %v25113_v29 = vld [vmem:[%s27310_s0 + $0x30] sm:$0xff] }
  0xe0   :  { %20509 = vmatprep.mubr.msk.f32.mxu1 %vm165_vm3, %v24689_v36  ;;  %21664 = vmatpush3.bf16.msk.msra.mxu0 %vm24623_vm2, %v21659_v11  ;;  %v25182_v36 = vld [vmem:[%s27310_s0 + $0x68] sm:$0xff]  ;;  %v22585_v11 = vld [vmem:[#allocation6 + $0x3c0] ss:$16 sps:$4 sm:$0xff]  }
  0xe1   :  { %21674 = vmatpush3.bf16.msk.msra.mxu1 %vm24623_vm2, %v21669_v14  ;;  %21676 = vmatprep.subr.bf16.mxu0 %v21675_v15  ;;  %v22596_v14 = vld [vmem:[#allocation6 + $0x3ec] ss:$16 sps:$4 sm:$0xff]  }
  0xe2   :  { %20466 = vmatmul.mubr.msk.f32.gmra.mrb[4].mxu0 %vm165_vm3, %v24696_v37  ;;  %21686 = vmatprep.subr.bf16.mxu1 %v21685_v16 }
  0xe3   :  { %20510 = vmatmul.mubr.msk.f32.gmra.mrb[4].mxu1 %vm165_vm3, %v24696_v37  ;;  %20468 = vmatprep.mubr.msk.f32.mxu0 %vm165_vm3, %v24703_v38  ;;  %v25191_v37 = vld [vmem:[%s27310_s0 + $0x70] sm:$0xff] }
  0xe4   :  { %20512 = vmatprep.mubr.msk.f32.mxu1 %vm165_vm3, %v24703_v38  ;;  %v25200_v38 = vld [vmem:[%s27310_s0 + $0x78] sm:$0xff] }
  0xe6   :  { %20469 = vmatmul.mubr.msk.f32.gmra.mrb[6].mxu0 %vm165_vm3, %v24720_v39 }
  0xe7   :  { %20513 = vmatmul.mubr.msk.f32.gmra.mrb[6].mxu1 %vm165_vm3, %v24720_v39  ;;  %20471 = vmatprep.mubr.msk.f32.mxu0 %vm165_vm3, %v24725_v40  ;;  %v25209_v39 = vld [vmem:[%s27310_s0 + $0x80] sm:$0xff] }
  0xe8   :  { %20515 = vmatprep.mubr.msk.f32.mxu1 %vm165_vm3, %v24725_v40  ;;  %v25218_v40 = vld [vmem:[%s27310_s0 + $0x88] sm:$0xff] }
  0xea   :  { %20472 = vmatmul.mubr.msk.f32.gmra.mrb[8].mxu0 %vm165_vm3, %v24732_v41 }
  0xeb   :  { %20516 = vmatmul.mubr.msk.f32.gmra.mrb[8].mxu1 %vm165_vm3, %v24732_v41  ;;  %20474 = vmatprep.mubr.msk.f32.mxu0 %vm165_vm3, %v24749_v42  ;;  %v25227_v41 = vld [vmem:[%s27310_s0 + $0x90] sm:$0xff] }
  0xec   :  { %20518 = vmatprep.mubr.msk.f32.mxu1 %vm165_vm3, %v24749_v42  ;;  %v25236_v42 = vld [vmem:[%s27310_s0 + $0x98] sm:$0xff] }
  0xee   :  { %20475 = vmatmul.mubr.msk.f32.gmra.mrb[10].mxu0 %vm165_vm3, %v24756_v43 }
  0xef   :  { %20519 = vmatmul.mubr.msk.f32.gmra.mrb[10].mxu1 %vm165_vm3, %v24756_v43  ;;  %20477 = vmatprep.mubr.msk.f32.mxu0 %vm165_vm3, %v24761_v44  ;;  %v25245_v43 = vld [vmem:[%s27310_s0 + $0xa0] sm:$0xff] }
  0xf0   :  { %20521 = vmatprep.mubr.msk.f32.mxu1 %vm165_vm3, %v24761_v44  ;;  %v25254_v44 = vld [vmem:[%s27310_s0 + $0xa8] sm:$0xff] }
  0xf2   :  { %20478 = vmatmul.mubr.msk.f32.gmra.mrb[12].mxu0 %vm165_vm3, %v24768_v45 }
  0xf3   :  { %20522 = vmatmul.mubr.msk.f32.gmra.mrb[12].mxu1 %vm165_vm3, %v24768_v45  ;;  %20480 = vmatprep.mubr.msk.f32.mxu0 %vm165_vm3, %v24779_v46  ;;  %v25263_v45 = vld [vmem:[%s27310_s0 + $0xb0] sm:$0xff] }
  0xf4   :  { %20524 = vmatprep.mubr.msk.f32.mxu1 %vm165_vm3, %v24779_v46  ;;  %v25272_v46 = vld [vmem:[%s27310_s0 + $0xb8] sm:$0xff] }
  0xf6   :  { %20481 = vmatmul.mubr.msk.f32.gmra.mrb[14].mxu0 %vm165_vm3, %v24786_v47 }
  0xf7   :  { %20525 = vmatmul.mubr.msk.f32.gmra.mrb[14].mxu1 %vm165_vm3, %v24786_v47  ;;  %20483 = vmatprep.mubr.msk.f32.mxu0 %vm165_vm3, %v24797_v48  ;;  %v25281_v47 = vld [vmem:[%s27310_s0 + $0xd0] sm:$0xff] }
  0xf8   :  { %20527 = vmatprep.mubr.msk.f32.mxu1 %vm165_vm3, %v24797_v48  ;;  %v25286_v48 = vld [vmem:[%s27310_s0 + $0xc0] sm:$0xff] }
  0xfa   :  { %20484 = vmatmul.mubr.msk.f32.gmra.mrb[16].mxu0 %vm165_vm3, %v24804_v49 }
  0xfb   :  { %20528 = vmatmul.mubr.msk.f32.gmra.mrb[16].mxu1 %vm165_vm3, %v24804_v49  ;;  %20486 = vmatprep.mubr.msk.f32.mxu0 %vm165_vm3, %v24815_v50  ;;  %v22549_v49 = vld [vmem:[#allocation6 + $0x300] ss:$16 sps:$4 sm:$0xff]  }
  0xfc   :  { %20530 = vmatprep.mubr.msk.f32.mxu1 %vm165_vm3, %v24815_v50  ;;  %v22552_v50 = vld [vmem:[#allocation6 + $0x308] ss:$16 sps:$4 sm:$0xff]  }
  0xfe   :  { %20487 = vmatmul.mubr.msk.f32.gmra.mrb[18].mxu0 %vm165_vm3, %v24822_v51 }
  0xff   :  { %20531 = vmatmul.mubr.msk.f32.gmra.mrb[18].mxu1 %vm165_vm3, %v24822_v51  ;;  %20489 = vmatprep.mubr.msk.f32.mxu0 %vm165_vm3, %v24833_v52  ;;  %v22557_v51 = vld [vmem:[#allocation6 + $0x324] ss:$16 sps:$4 sm:$0xff]  }
 0x100   :  { %20533 = vmatprep.mubr.msk.f32.mxu1 %vm165_vm3, %v24833_v52  ;;  %v22560_v52 = vld [vmem:[#allocation6 + $0x32c] ss:$16 sps:$4 sm:$0xff]  }
 0x102   :  { %20490 = vmatmul.mubr.msk.f32.gmra.mrb[20].mxu0 %vm165_vm3, %v24840_v53 }
 0x103   :  { %20534 = vmatmul.mubr.msk.f32.gmra.mrb[20].mxu1 %vm165_vm3, %v24840_v53  ;;  %20492 = vmatprep.mubr.msk.f32.mxu0 %vm165_vm3, %v24857_v54  ;;  %v22555_v53 = vld [vmem:[#allocation6 + $0x320] ss:$16 sps:$4 sm:$0xff]  }
 0x104   :  { %20536 = vmatprep.mubr.msk.f32.mxu1 %vm165_vm3, %v24857_v54  ;;  %v22558_v54 = vld [vmem:[#allocation6 + $0x328] ss:$16 sps:$4 sm:$0xff]  }
 0x106   :  { %20493 = vmatmul.mubr.msk.f32.gmra.mrb[22].mxu0 %vm165_vm3, %v25071_v17 }
 0x107   :  { %20537 = vmatmul.mubr.msk.f32.gmra.mrb[22].mxu1 %vm165_vm3, %v25071_v17  ;;  %20547 = vmatprep.mubr.msk.f32.mxu0 %vm165_vm3, %v24277_v22 }
 0x108   :  { %20591 = vmatprep.mubr.msk.f32.mxu1 %vm165_vm3, %v24277_v22 }
 0x10a   :  { %20548 = vmatmul.mubr.msk.f32.vlgmr.msra.gmra.mrb[0].mxu0 %vm165_vm3, %v25093_v24 }
 0x10b   :  { %20592 = vmatmul.mubr.msk.f32.vlgmr.msra.gmra.mrb[0].mxu1 %vm165_vm3, %v25093_v24  ;;  %21678 = vmatpush3.bf16.msra.mxu0 %v21675_v15  ;;  %v22591_v15 = vld [vmem:[#allocation6 + $0x3e0] ss:$16 sps:$4 sm:$0xff]  }
 0x10c   :  { %21688 = vmatpush3.bf16.msra.mxu1 %v21685_v16  ;;  %20550 = vmatprep.mubr.msk.f32.mxu0 %vm165_vm3, %v25102_v27  ;;  %v22594_v16 = vld [vmem:[#allocation6 + $0x3e8] ss:$16 sps:$4 sm:$0xff]  }
 0x10d   :  { %20594 = vmatprep.mubr.msk.f32.mxu1 %vm165_vm3, %v25102_v27  ;;  %21681 = vmatprep.subr.msk.bf16.mxu0 %vm24623_vm2, %v21679_v23 }
 0x10e   :  { %20551 = vmatmul.mubr.msk.f32.gmra.mrb[2].mxu0 %vm165_vm3, %v25113_v29  ;;  %21691 = vmatprep.subr.msk.bf16.mxu1 %vm24623_vm2, %v21689_v25 }
 0x10f   :  { %20595 = vmatmul.mubr.msk.f32.gmra.mrb[2].mxu1 %vm165_vm3, %v25113_v29  ;;  %20553 = vmatprep.mubr.msk.f32.mxu0 %vm165_vm3, %v25124_v30 }
 0x110   :  { %20597 = vmatprep.mubr.msk.f32.mxu1 %vm165_vm3, %v25124_v30  ;;  %21684 = vmatpush3.bf16.msk.msra.mxu0 %vm24623_vm2, %v21679_v23 }
 0x111   :  { %21694 = vmatpush3.bf16.msk.msra.mxu1 %vm24623_vm2, %v21689_v25  ;;  %2965 = vmatprep.subr.bf16.mxu0 %v22551_v26 }
 0x112   :  { %20554 = vmatmul.mubr.msk.f32.gmra.mrb[4].mxu0 %vm165_vm3, %v25137_v31  ;;  %3006 = vmatprep.subr.bf16.mxu1 %v22554_v28 }
 0x113   :  { %20598 = vmatmul.mubr.msk.f32.gmra.mrb[4].mxu1 %vm165_vm3, %v25137_v31  ;;  %20556 = vmatprep.mubr.msk.f32.mxu0 %vm165_vm3, %v25146_v32 }
 0x114   :  { %20600 = vmatprep.mubr.msk.f32.mxu1 %vm165_vm3, %v25146_v32 }
 0x116   :  { %20557 = vmatmul.mubr.msk.f32.gmra.mrb[6].mxu0 %vm165_vm3, %v25155_v33 }
 0x117   :  { %20601 = vmatmul.mubr.msk.f32.gmra.mrb[6].mxu1 %vm165_vm3, %v25155_v33  ;;  %20559 = vmatprep.mubr.msk.f32.mxu0 %vm165_vm3, %v25164_v34 }
 0x118   :  { %20603 = vmatprep.mubr.msk.f32.mxu1 %vm165_vm3, %v25164_v34 }
 0x11a   :  { %20560 = vmatmul.mubr.msk.f32.gmra.mrb[8].mxu0 %vm165_vm3, %v25173_v35 }
 0x11b   :  { %20604 = vmatmul.mubr.msk.f32.gmra.mrb[8].mxu1 %vm165_vm3, %v25173_v35  ;;  %20562 = vmatprep.mubr.msk.f32.mxu0 %vm165_vm3, %v25182_v36 }
 0x11c   :  { %20606 = vmatprep.mubr.msk.f32.mxu1 %vm165_vm3, %v25182_v36 }
 0x11e   :  { %20563 = vmatmul.mubr.msk.f32.gmra.mrb[10].mxu0 %vm165_vm3, %v25191_v37 }
 0x11f   :  { %20607 = vmatmul.mubr.msk.f32.gmra.mrb[10].mxu1 %vm165_vm3, %v25191_v37  ;;  %20565 = vmatprep.mubr.msk.f32.mxu0 %vm165_vm3, %v25200_v38 }
 0x120   :  { %20609 = vmatprep.mubr.msk.f32.mxu1 %vm165_vm3, %v25200_v38 }
 0x122   :  { %20566 = vmatmul.mubr.msk.f32.gmra.mrb[12].mxu0 %vm165_vm3, %v25209_v39 }
 0x123   :  { %20610 = vmatmul.mubr.msk.f32.gmra.mrb[12].mxu1 %vm165_vm3, %v25209_v39  ;;  %20568 = vmatprep.mubr.msk.f32.mxu0 %vm165_vm3, %v25218_v40 }
 0x124   :  { %20612 = vmatprep.mubr.msk.f32.mxu1 %vm165_vm3, %v25218_v40 }
 0x126   :  { %20569 = vmatmul.mubr.msk.f32.gmra.mrb[14].mxu0 %vm165_vm3, %v25227_v41 }
 0x127   :  { %20613 = vmatmul.mubr.msk.f32.gmra.mrb[14].mxu1 %vm165_vm3, %v25227_v41  ;;  %20571 = vmatprep.mubr.msk.f32.mxu0 %vm165_vm3, %v25236_v42 }
 0x128   :  { %20615 = vmatprep.mubr.msk.f32.mxu1 %vm165_vm3, %v25236_v42 }
 0x12a   :  { %20572 = vmatmul.mubr.msk.f32.gmra.mrb[16].mxu0 %vm165_vm3, %v25245_v43 }
 0x12b   :  { %20616 = vmatmul.mubr.msk.f32.gmra.mrb[16].mxu1 %vm165_vm3, %v25245_v43  ;;  %20574 = vmatprep.mubr.msk.f32.mxu0 %vm165_vm3, %v25254_v44 }
 0x12c   :  { %20618 = vmatprep.mubr.msk.f32.mxu1 %vm165_vm3, %v25254_v44 }
 0x12e   :  { %20575 = vmatmul.mubr.msk.f32.gmra.mrb[18].mxu0 %vm165_vm3, %v25263_v45 }
 0x12f   :  { %20619 = vmatmul.mubr.msk.f32.gmra.mrb[18].mxu1 %vm165_vm3, %v25263_v45  ;;  %20577 = vmatprep.mubr.msk.f32.mxu0 %vm165_vm3, %v25272_v46 }
 0x130   :  { %20621 = vmatprep.mubr.msk.f32.mxu1 %vm165_vm3, %v25272_v46 }
 0x132   :  { %20578 = vmatmul.mubr.msk.f32.gmra.mrb[20].mxu0 %vm165_vm3, %v25286_v48 }
 0x133   :  { %20622 = vmatmul.mubr.msk.f32.gmra.mrb[20].mxu1 %vm165_vm3, %v25286_v48  ;;  %20580 = vmatprep.mubr.msk.f32.mxu0 %vm165_vm3, %v25071_v17 }
 0x134   :  { %20624 = vmatprep.mubr.msk.f32.mxu1 %vm165_vm3, %v25071_v17 }
 0x136   :  { %20581 = vmatmul.mubr.msk.f32.gmra.mrb[22].mxu0 %vm165_vm3, %v25281_v47 }
 0x137   :  { %20625 = vmatmul.mubr.msk.f32.gmra.mrb[22].mxu1 %vm165_vm3, %v25281_v47  ;;  %20635 = vmatprep.mubr.msk.f32.mxu0 %vm165_vm3, %v25093_v24 }
 0x138   :  { %20679 = vmatprep.mubr.msk.f32.mxu1 %vm165_vm3, %v25093_v24 }
 0x13a   :  { %20636 = vmatmul.mubr.msk.f32.vlgmr.msra.gmra.mrb[0].mxu0 %vm165_vm3, %v25102_v27 }
 0x13b   :  { %20680 = vmatmul.mubr.msk.f32.vlgmr.msra.gmra.mrb[0].mxu1 %vm165_vm3, %v25102_v27  ;;  %20638 = vmatprep.mubr.msk.f32.mxu0 %vm165_vm3, %v25113_v29 }
 0x13c   :  { %20682 = vmatprep.mubr.msk.f32.mxu1 %vm165_vm3, %v25113_v29  ;;  %2966 = vmatpush1.bf16.msra.mxu0 %v22549_v49 }
 0x13d   :  { %3007 = vmatpush1.bf16.msra.mxu1 %v22552_v50  ;;  %2967 = vmatprep.subr.bf16.mxu0 %v22557_v51  ;;  %v22597_v50 = vld [vmem:[#allocation6] ss:$16 sps:$4 sm:$0xff]   ;;  %v22600_v51 = vld [vmem:[#allocation6 + $0x8] ss:$16 sps:$4 sm:$0xff]  }
 0x13e   :  { %20639 = vmatmul.mubr.msk.f32.gmra.mrb[2].mxu0 %vm165_vm3, %v25124_v30  ;;  %3008 = vmatprep.subr.bf16.mxu1 %v22560_v52 }
 0x13f   :  { %20683 = vmatmul.mubr.msk.f32.gmra.mrb[2].mxu1 %vm165_vm3, %v25124_v30  ;;  %20641 = vmatprep.mubr.msk.f32.mxu0 %vm165_vm3, %v25137_v31 }
 0x140   :  { %20685 = vmatprep.mubr.msk.f32.mxu1 %vm165_vm3, %v25137_v31  ;;  %2968 = vmatpush1.bf16.msra.mxu0 %v22555_v53 }
 0x141   :  { %3009 = vmatpush1.bf16.msra.mxu1 %v22558_v54  ;;  %2969 = vmatprep.subr.bf16.mxu0 %v22563_v55 }
 0x142   :  { %20642 = vmatmul.mubr.msk.f32.gmra.mrb[4].mxu0 %vm165_vm3, %v25146_v32  ;;  %3010 = vmatprep.subr.bf16.mxu1 %v22566_v56 }
 0x143   :  { %20686 = vmatmul.mubr.msk.f32.gmra.mrb[4].mxu1 %vm165_vm3, %v25146_v32  ;;  %20644 = vmatprep.mubr.msk.f32.mxu0 %vm165_vm3, %v25155_v33 }
 0x144   :  { %20688 = vmatprep.mubr.msk.f32.mxu1 %vm165_vm3, %v25155_v33  ;;  %2970 = vmatpush1.bf16.msra.mxu0 %v22561_v57 }
 0x145   :  { %3011 = vmatpush1.bf16.msra.mxu1 %v22564_v58  ;;  %2971 = vmatprep.subr.bf16.mxu0 %v22569_v59 }
 0x146   :  { %20645 = vmatmul.mubr.msk.f32.gmra.mrb[6].mxu0 %vm165_vm3, %v25164_v34  ;;  %3012 = vmatprep.subr.bf16.mxu1 %v22572_v60 }
 0x147   :  { %20689 = vmatmul.mubr.msk.f32.gmra.mrb[6].mxu1 %vm165_vm3, %v25164_v34  ;;  %20647 = vmatprep.mubr.msk.f32.mxu0 %vm165_vm3, %v25173_v35 }
 0x148   :  { %20691 = vmatprep.mubr.msk.f32.mxu1 %vm165_vm3, %v25173_v35  ;;  %2972 = vmatpush1.bf16.msra.mxu0 %v22567_v61 }
 0x149   :  { %3013 = vmatpush1.bf16.msra.mxu1 %v22570_v62  ;;  %2973 = vmatprep.subr.bf16.mxu0 %v22575_v63  ;;  %v22605_v62 = vld [vmem:[#allocation6 + $0x24] ss:$16 sps:$4 sm:$0xff]   ;;  %v22608_v63 = vld [vmem:[#allocation6 + $0x2c] ss:$16 sps:$4 sm:$0xff]  }
 0x14a   :  { %20648 = vmatmul.mubr.msk.f32.gmra.mrb[8].mxu0 %vm165_vm3, %v25182_v36  ;;  %3014 = vmatprep.subr.bf16.mxu1 %v22578_v1 }
 0x14b   :  { %20692 = vmatmul.mubr.msk.f32.gmra.mrb[8].mxu1 %vm165_vm3, %v25182_v36  ;;  %20650 = vmatprep.mubr.msk.f32.mxu0 %vm165_vm3, %v25191_v37 }
 0x14c   :  { %20694 = vmatprep.mubr.msk.f32.mxu1 %vm165_vm3, %v25191_v37  ;;  %2974 = vmatpush1.bf16.msra.mxu0 %v22573_v2 }
 0x14d   :  { %3015 = vmatpush1.bf16.msra.mxu1 %v22576_v3  ;;  %2975 = vmatprep.subr.bf16.mxu0 %v22581_v4 }
 0x14e   :  { %20651 = vmatmul.mubr.msk.f32.gmra.mrb[10].mxu0 %vm165_vm3, %v25200_v38  ;;  %3016 = vmatprep.subr.bf16.mxu1 %v22584_v5 }
 0x14f   :  { %20695 = vmatmul.mubr.msk.f32.gmra.mrb[10].mxu1 %vm165_vm3, %v25200_v38  ;;  %20653 = vmatprep.mubr.msk.f32.mxu0 %vm165_vm3, %v25209_v39 }
 0x150   :  { %20697 = vmatprep.mubr.msk.f32.mxu1 %vm165_vm3, %v25209_v39  ;;  %2976 = vmatpush1.bf16.msra.mxu0 %v22579_v6 }
 0x151   :  { %3017 = vmatpush1.bf16.msra.mxu1 %v22582_v7  ;;  %2977 = vmatprep.subr.bf16.mxu0 %v22587_v9 }
 0x152   :  { %20654 = vmatmul.mubr.msk.f32.gmra.mrb[12].mxu0 %vm165_vm3, %v25218_v40  ;;  %3018 = vmatprep.subr.bf16.mxu1 %v22590_v10  ;;  %v22603_v10 = vld [vmem:[#allocation6 + $0x20] ss:$16 sps:$4 sm:$0xff]  }
 0x153   :  { %20698 = vmatmul.mubr.msk.f32.gmra.mrb[12].mxu1 %vm165_vm3, %v25218_v40  ;;  %20656 = vmatprep.mubr.msk.f32.mxu0 %vm165_vm3, %v25227_v41 }
 0x154   :  { %20700 = vmatprep.mubr.msk.f32.mxu1 %vm165_vm3, %v25227_v41  ;;  %2978 = vmatpush1.bf16.msra.mxu0 %v22585_v11  ;;  %v22606_v11 = vld [vmem:[#allocation6 + $0x28] ss:$16 sps:$4 sm:$0xff]  }
 0x155   :  { %3019 = vmatpush1.bf16.msra.mxu1 %v22588_v12  ;;  %2979 = vmatprep.subr.bf16.mxu0 %v22593_v13 }
 0x156   :  { %20657 = vmatmul.mubr.msk.f32.gmra.mrb[14].mxu0 %vm165_vm3, %v25236_v42  ;;  %3020 = vmatprep.subr.bf16.mxu1 %v22596_v14  ;;  %v22611_v14 = vld [vmem:[#allocation6 + $0x44] ss:$16 sps:$4 sm:$0xff]  }
 0x157   :  { %20701 = vmatmul.mubr.msk.f32.gmra.mrb[14].mxu1 %vm165_vm3, %v25236_v42  ;;  %20659 = vmatprep.mubr.msk.f32.mxu0 %vm165_vm3, %v25245_v43 }
 0x158   :  { %20703 = vmatprep.mubr.msk.f32.mxu1 %vm165_vm3, %v25245_v43  ;;  %2980 = vmatpush1.bf16.msra.mxu0 %v22591_v15  ;;  %v22614_v15 = vld [vmem:[#allocation6 + $0x4c] ss:$16 sps:$4 sm:$0xff]  }
 0x159   :  { %3021 = vmatpush1.bf16.msra.mxu1 %v22594_v16 }
 0x15a   :  { %20660 = vmatmul.mubr.msk.f32.gmra.mrb[16].mxu0 %vm165_vm3, %v25254_v44  ;;  %3248 = vmatprep.subr.bf16.mxu1 %v22602_v18 }
 0x15b   :  { %20704 = vmatmul.mubr.msk.f32.gmra.mrb[16].mxu1 %vm165_vm3, %v25254_v44  ;;  %20662 = vmatprep.mubr.msk.f32.mxu0 %vm165_vm3, %v25263_v45 }
 0x15c   :  { %20706 = vmatprep.mubr.msk.f32.mxu1 %vm165_vm3, %v25263_v45 }
 0x15e   :  { %20663 = vmatmul.mubr.msk.f32.gmra.mrb[18].mxu0 %vm165_vm3, %v25272_v46 }
 0x15f   :  { %20707 = vmatmul.mubr.msk.f32.gmra.mrb[18].mxu1 %vm165_vm3, %v25272_v46  ;;  %20665 = vmatprep.mubr.msk.f32.mxu0 %vm165_vm3, %v25286_v48 }
 0x160   :  { %20709 = vmatprep.mubr.msk.f32.mxu1 %vm165_vm3, %v25286_v48 }
 0x162   :  { %20666 = vmatmul.mubr.msk.f32.gmra.mrb[20].mxu0 %vm165_vm3, %v25071_v17 }
 0x163   :  { %20710 = vmatmul.mubr.msk.f32.gmra.mrb[20].mxu1 %vm165_vm3, %v25071_v17  ;;  %20668 = vmatprep.mubr.msk.f32.mxu0 %vm165_vm3, %v25281_v47  ;;  %v22599_v17 = vld [vmem:[#allocation6 + $0x4] ss:$16 sps:$4 sm:$0xff]  }
 0x164   :  { %20712 = vmatprep.mubr.msk.f32.mxu1 %vm165_vm3, %v25281_v47  ;;  %3207 = vmatprep.subr.bf16.mxu0 %v22599_v17 }
 0x166   :  { %20669 = vmatmul.mubr.msk.f32.gmra.mrb[22].mxu0 %vm165_vm3, %v17660_v8 }
 0x167   :  { %20713 = vmatmul.mubr.msk.f32.gmra.mrb[22].mxu1 %vm165_vm3, %v17660_v8  ;;  %2997 = vmatprep.mubr.bf16.mxu0 %v24510_v19 }
 0x168   :  { %3038 = vmatprep.mubr.bf16.mxu1 %v24510_v19 }
 0x20d   :  { %v20637_v21 = vpop.f32.mrb[0].mxu0 }
 0x20e   :  { %v20681_v22 = vpop.f32.mrb[0].mxu1  ;;  %v2298_v23 = vpop.f32.mrb[1].mxu0 }
 0x20f   :  { %v2658_v24 = vmax.f32 %v20637_v21, %v20681_v22  ;;  %v2514_v25 = vpop.f32.mrb[1].mxu1 }
 0x210   :  { %v2657_v26 = vmax.f32 %v2298_v23, %v2514_v25 }
 0x211   :  { %v2689_v27 = vadd.f32 %v25399_v20, %v2658_v24  ;;  %v20640_v28 = vpop.f32.mrb[2].mxu0 }
 0x212   :  { %v2688_v29 = vadd.f32 %v25399_v20, %v2657_v26  ;;  %v20684_v30 = vpop.f32.mrb[2].mxu1  ;;  %v2308_v31 = vpop.f32.mrb[3].mxu0 }
 0x213   :  { %v2713_v32 = vmax.f32 %v2689_v27, 0.0  ;;  %v2660_v33 = vmax.f32 %v20640_v28, %v20684_v30  ;;  %v2524_v34 = vpop.f32.mrb[3].mxu1  ;;  %v22609_v27 = vld [vmem:[#allocation6 + $0x40] ss:$16 sps:$4 sm:$0xff]   ;;  %v22612_v28 = vld [vmem:[#allocation6 + $0x48] ss:$16 sps:$4 sm:$0xff]  }
 0x214   :  { %v2712_v35 = vmax.f32 %v2688_v29, 0.0  ;;  %v2659_v36 = vmax.f32 %v2308_v31, %v2524_v34  ;;  %v22617_v31 = vld [vmem:[#allocation6 + $0x64] ss:$16 sps:$4 sm:$0xff]  }
 0x215   :  { %v2691_v37 = vadd.f32 %v25399_v20, %v2660_v33  ;;  %v20643_v38 = vpop.f32.mrb[4].mxu0 }
 0x216   :  { %v25404_v39 = vmax.f32 %v2712_v35, %v2713_v32  ;;  %v2690_v40 = vadd.f32 %v25399_v20, %v2659_v36  ;;  %v20687_v41 = vpop.f32.mrb[4].mxu1  ;;  %v2318_v42 = vpop.f32.mrb[5].mxu0  ;;  %v22620_v32 = vld [vmem:[#allocation6 + $0x6c] ss:$16 sps:$4 sm:$0xff]  }
 0x217   :  { %v2715_v43 = vmax.f32 %v2691_v37, 0.0  ;;  %v2662_v44 = vmax.f32 %v20643_v38, %v20687_v41  ;;  %v2534_v45 = vpop.f32.mrb[5].mxu1 }
 0x218   :  { %v2714_v46 = vmax.f32 %v2690_v40, 0.0  ;;  %v2661_v47 = vmax.f32 %v2318_v42, %v2534_v45 }
 0x219   :  { %v2693_v48 = vadd.f32 %v25399_v20, %v2662_v44  ;;  %v20646_v49 = vpop.f32.mrb[6].mxu0  ;;  %v22618_v44 = vld [vmem:[#allocation6 + $0x68] ss:$16 sps:$4 sm:$0xff]  }
 0x21a   :  { %v2770_v52 = vmax.f32 %v2714_v46, %v2715_v43  ;;  %v2692_v53 = vadd.f32 %v25399_v20, %v2661_v47  ;;  %v20690_v54 = vpop.f32.mrb[6].mxu1  ;;  %v2328_v55 = vpop.f32.mrb[7].mxu0  ;;  %v22615_v43 = vld [vmem:[#allocation6 + $0x60] ss:$16 sps:$4 sm:$0xff]   ;;  %v22623_v47 = vld [vmem:[#allocation6 + $0x84] ss:$16 sps:$4 sm:$0xff]  }
 0x21b   :  { %v2717_v56 = vmax.f32 %v2693_v48, 0.0  ;;  %v2664_v57 = vmax.f32 %v20646_v49, %v20690_v54  ;;  %v2544_v58 = vpop.f32.mrb[7].mxu1  ;;  %v22626_v48 = vld [vmem:[#allocation6 + $0x8c] ss:$16 sps:$4 sm:$0xff]  }
 0x21c   :  { %v2771_v59 = vpack.c.bf16 %v2770_v52, %v2770_v52  ;;  %v2716_v60 = vmax.f32 %v2692_v53, 0.0  ;;  %v2663_v61 = vmax.f32 %v2328_v55, %v2544_v58  ;;  %v22621_v58 = vld [vmem:[#allocation6 + $0x80] ss:$16 sps:$4 sm:$0xff]  }
 0x21d   :  { %v2695_v1 = vadd.f32 %v25399_v20, %v2664_v57  ;;  %v20649_v2 = vpop.f32.mrb[8].mxu0 }
 0x21e   :  { %v25410_v3 = vmax.f32 %v2716_v60, %v2717_v56  ;;  %v2694_v4 = vadd.f32 %v25399_v20, %v2663_v61  ;;  %v20693_v5 = vpop.f32.mrb[8].mxu1  ;;  %2998 = vmatmul.mubr.bf16.vlgmr.msra.gmra.mrb[24].mxu0 %v2771_v59  ;;  %3039 = vmatmul.mubr.bf16.vlgmr.msra.gmra.mrb[24].mxu1 %v2771_v59  ;;  %v2338_v6 = vpop.f32.mrb[9].mxu0  ;;  %v22624_v59 = vld [vmem:[#allocation6 + $0x88] ss:$16 sps:$4 sm:$0xff]  }
 0x21f   :  { %v2719_v7 = vmax.f32 %v2695_v1, 0.0  ;;  %v2666_v8 = vmax.f32 %v20649_v2, %v20693_v5  ;;  %3208 = vmatpush1.bf16.msra.mxu0 %v22597_v50  ;;  %3249 = vmatpush1.bf16.msra.mxu1 %v22600_v51  ;;  %v2554_v9 = vpop.f32.mrb[9].mxu1 }
 0x220   :  { %v2718_v12 = vmax.f32 %v2694_v4, 0.0  ;;  %v2665_v13 = vmax.f32 %v2338_v6, %v2554_v9  ;;  %3209 = vmatprep.subr.bf16.mxu0 %v22605_v62  ;;  %3250 = vmatprep.subr.bf16.mxu1 %v22608_v63  ;;  %v22629_v62 = vld [vmem:[#allocation6 + $0xa4] ss:$16 sps:$4 sm:$0xff]   ;;  %v22632_v63 = vld [vmem:[#allocation6 + $0xac] ss:$16 sps:$4 sm:$0xff]  }
 0x221   :  { %v2697_v16 = vadd.f32 %v25399_v20, %v2666_v8  ;;  %v20652_v17 = vpop.f32.mrb[10].mxu0  ;;  %3239 = vmatprep.mubr.bf16.mxu0 %v24510_v19  ;;  %3280 = vmatprep.mubr.bf16.mxu1 %v24510_v19 }
 0x222   :  { %v25416_v18 = vmax.f32 %v2718_v12, %v2719_v7  ;;  %v2696_v21 = vadd.f32 %v25399_v20, %v2665_v13  ;;  %v20696_v22 = vpop.f32.mrb[10].mxu1  ;;  %v2348_v23 = vpop.f32.mrb[11].mxu0  ;;  %v22630_v12 = vld [vmem:[#allocation6 + $0xa8] ss:$16 sps:$4 sm:$0xff]  }
 0x223   :  { %v2721_v24 = vmax.f32 %v2697_v16, 0.0  ;;  %v2668_v25 = vmax.f32 %v20652_v17, %v20696_v22  ;;  %3210 = vmatpush1.bf16.msra.mxu0 %v22603_v10  ;;  %3251 = vmatpush1.bf16.msra.mxu1 %v22606_v11  ;;  %v2564_v26 = vpop.f32.mrb[11].mxu1  ;;  %v22627_v11 = vld [vmem:[#allocation6 + $0xa0] ss:$16 sps:$4 sm:$0xff]   ;;  %v22638_v16 = vld [vmem:[#allocation6 + $0xcc] ss:$16 sps:$4 sm:$0xff]  }
 0x224   :  { %v2720_v29 = vmax.f32 %v2696_v21, 0.0  ;;  %v2667_v30 = vmax.f32 %v2348_v23, %v2564_v26  ;;  %3211 = vmatprep.subr.bf16.mxu0 %v22611_v14  ;;  %3252 = vmatprep.subr.bf16.mxu1 %v22614_v15  ;;  %v22635_v15 = vld [vmem:[#allocation6 + $0xc4] ss:$16 sps:$4 sm:$0xff]  }
 0x225   :  { %v2699_v33 = vadd.f32 %v25399_v20, %v2668_v25  ;;  %v20655_v34 = vpop.f32.mrb[12].mxu0 }
 0x226   :  { %v25420_v35 = vmax.f32 %v2720_v29, %v2721_v24  ;;  %v2698_v36 = vadd.f32 %v25399_v20, %v2667_v30  ;;  %v20699_v37 = vpop.f32.mrb[12].mxu1  ;;  %v2358_v38 = vpop.f32.mrb[13].mxu0  ;;  %v22633_v29 = vld [vmem:[#allocation6 + $0xc0] ss:$16 sps:$4 sm:$0xff]   ;;  %v22636_v30 = vld [vmem:[#allocation6 + $0xc8] ss:$16 sps:$4 sm:$0xff]  }
 0x227   :  { %v2723_v40 = vmax.f32 %v2699_v33, 0.0  ;;  %v2670_v41 = vmax.f32 %v20655_v34, %v20699_v37  ;;  %3212 = vmatpush1.bf16.msra.mxu0 %v22609_v27  ;;  %3253 = vmatpush1.bf16.msra.mxu1 %v22612_v28  ;;  %v2574_v42 = vpop.f32.mrb[13].mxu1  ;;  %v22641_v33 = vld [vmem:[#allocation6 + $0xe4] ss:$16 sps:$4 sm:$0xff]   ;;  %v22644_v34 = vld [vmem:[#allocation6 + $0xec] ss:$16 sps:$4 sm:$0xff]  }
 0x228   :  { %v2722_v45 = vmax.f32 %v2698_v36, 0.0  ;;  %v2669_v46 = vmax.f32 %v2358_v38, %v2574_v42  ;;  %3213 = vmatprep.subr.bf16.mxu0 %v22617_v31  ;;  %3254 = vmatprep.subr.bf16.mxu1 %v22620_v32 }
 0x229   :  { %v2701_v49 = vadd.f32 %v25399_v20, %v2670_v41  ;;  %v20658_v50 = vpop.f32.mrb[14].mxu0 }
 0x22a   :  { %v25424_v51 = vmax.f32 %v2722_v45, %v2723_v40  ;;  %v2700_v52 = vadd.f32 %v25399_v20, %v2669_v46  ;;  %v20702_v53 = vpop.f32.mrb[14].mxu1  ;;  %v2368_v54 = vpop.f32.mrb[15].mxu0  ;;  %v22639_v46 = vld [vmem:[#allocation6 + $0xe0] ss:$16 sps:$4 sm:$0xff]  }
 0x22b   :  { %v2725_v55 = vmax.f32 %v2701_v49, 0.0  ;;  %v2672_v56 = vmax.f32 %v20658_v50, %v20702_v53  ;;  %3214 = vmatpush1.bf16.msra.mxu0 %v22615_v43  ;;  %3255 = vmatpush1.bf16.msra.mxu1 %v22618_v44  ;;  %v2584_v57 = vpop.f32.mrb[15].mxu1  ;;  %v22647_v50 = vld [vmem:[#allocation6 + $0x604] ss:$16 sps:$4 sm:$0xff]  }
 0x22c   :  { %v2724_v60 = vmax.f32 %v2700_v52, 0.0  ;;  %v2671_v61 = vmax.f32 %v2368_v54, %v2584_v57  ;;  %3215 = vmatprep.subr.bf16.mxu0 %v22623_v47  ;;  %3256 = vmatprep.subr.bf16.mxu1 %v22626_v48  ;;  %v22642_v47 = vld [vmem:[#allocation6 + $0xe8] ss:$16 sps:$4 sm:$0xff]   ;;  %v22650_v52 = vld [vmem:[#allocation6 + $0x60c] ss:$16 sps:$4 sm:$0xff]  }
 0x22d   :  { %v2703_v1 = vadd.f32 %v25399_v20, %v2672_v56  ;;  %v20661_v2 = vpop.f32.mrb[16].mxu0  ;;  %v22648_v56 = vld [vmem:[#allocation6 + $0x608] ss:$16 sps:$4 sm:$0xff]  }
 0x22e   :  { %v25428_v4 = vmax.f32 %v2724_v60, %v2725_v55  ;;  %v2702_v5 = vadd.f32 %v25399_v20, %v2671_v61  ;;  %v20705_v6 = vpop.f32.mrb[16].mxu1  ;;  %v2378_v7 = vpop.f32.mrb[17].mxu0  ;;  %v22645_v55 = vld [vmem:[#allocation6 + $0x600] ss:$16 sps:$4 sm:$0xff]  }
 0x22f   :  { %v2727_v8 = vmax.f32 %v2703_v1, 0.0  ;;  %v2674_v9 = vmax.f32 %v20661_v2, %v20705_v6  ;;  %3216 = vmatpush1.bf16.msra.mxu0 %v22621_v58  ;;  %3257 = vmatpush1.bf16.msra.mxu1 %v22624_v59  ;;  %v2594_v10 = vpop.f32.mrb[17].mxu1  ;;  %v2737_v1 = vpack.c.bf16 %v25404_v39, %v25404_v39  ;;  %v22653_v6 = vld [vmem:[#allocation6 + $0x624] ss:$16 sps:$4 sm:$0xff]  }
 0x230   :  { %v2726_v13 = vmax.f32 %v2702_v5, 0.0  ;;  %v2673_v14 = vmax.f32 %v2378_v7, %v2594_v10  ;;  %3217 = vmatprep.subr.bf16.mxu0 %v22629_v62  ;;  %3258 = vmatprep.subr.bf16.mxu1 %v22632_v63  ;;  %v22656_v7 = vld [vmem:[#allocation6 + $0x62c] ss:$16 sps:$4 sm:$0xff]  }
 0x231   :  { %v2705_v17 = vadd.f32 %v25399_v20, %v2674_v9  ;;  %v20664_v21 = vpop.f32.mrb[18].mxu0 }
 0x232   :  { %v25432_v22 = vmax.f32 %v2726_v13, %v2727_v8  ;;  %v2704_v23 = vadd.f32 %v25399_v20, %v2673_v14  ;;  %v20708_v24 = vpop.f32.mrb[18].mxu1  ;;  %v2388_v25 = vpop.f32.mrb[19].mxu0  ;;  %v22654_v13 = vld [vmem:[#allocation6 + $0x628] ss:$16 sps:$4 sm:$0xff]   ;;  %v22659_v14 = vld [vmem:[#allocation6 + $0x644] ss:$16 sps:$4 sm:$0xff]  }
 0x233   :  { %v2729_v26 = vmax.f32 %v2705_v17, 0.0  ;;  %v2676_v27 = vmax.f32 %v20664_v21, %v20708_v24  ;;  %3218 = vmatpush1.bf16.msra.mxu0 %v22627_v11  ;;  %3259 = vmatpush1.bf16.msra.mxu1 %v22630_v12  ;;  %v2604_v28 = vpop.f32.mrb[19].mxu1  ;;  %v22651_v12 = vld [vmem:[#allocation6 + $0x620] ss:$16 sps:$4 sm:$0xff]   ;;  %v22660_v17 = vld [vmem:[#allocation6 + $0x648] ss:$16 sps:$4 sm:$0xff]  }
 0x234   :  { %v2728_v31 = vmax.f32 %v2704_v23, 0.0  ;;  %v2675_v32 = vmax.f32 %v2388_v25, %v2604_v28  ;;  %3219 = vmatprep.subr.bf16.mxu0 %v22635_v15  ;;  %3260 = vmatprep.subr.bf16.mxu1 %v22638_v16  ;;  %v22662_v15 = vld [vmem:[#allocation6 + $0x64c] ss:$16 sps:$4 sm:$0xff]   ;;  %v22665_v21 = vld [vmem:[#allocation6 + $0x664] ss:$16 sps:$4 sm:$0xff]  }
 0x235   :  { %v2707_v36 = vadd.f32 %v25399_v20, %v2676_v27  ;;  %v20667_v37 = vpop.f32.mrb[20].mxu0  ;;  %v22668_v23 = vld [vmem:[#allocation6 + $0x66c] ss:$16 sps:$4 sm:$0xff]   ;;  %v22663_v24 = vld [vmem:[#allocation6 + $0x660] ss:$16 sps:$4 sm:$0xff]  }
 0x236   :  { %v25436_v38 = vmax.f32 %v2728_v31, %v2729_v26  ;;  %v2706_v40 = vadd.f32 %v25399_v20, %v2675_v32  ;;  %v20711_v41 = vpop.f32.mrb[20].mxu1  ;;  %v2398_v42 = vpop.f32.mrb[21].mxu0  ;;  %v22666_v25 = vld [vmem:[#allocation6 + $0x668] ss:$16 sps:$4 sm:$0xff]   ;;  %v22671_v26 = vld [vmem:[#allocation6 + $0x684] ss:$16 sps:$4 sm:$0xff]  }
 0x237   :  { %v2731_v43 = vmax.f32 %v2707_v36, 0.0  ;;  %v2678_v44 = vmax.f32 %v20667_v37, %v20711_v41  ;;  %3220 = vmatpush1.bf16.msra.mxu0 %v22633_v29  ;;  %3261 = vmatpush1.bf16.msra.mxu1 %v22636_v30  ;;  %v2614_v45 = vpop.f32.mrb[21].mxu1  ;;  %v22674_v27 = vld [vmem:[#allocation6 + $0x68c] ss:$16 sps:$4 sm:$0xff]   ;;  %v22669_v28 = vld [vmem:[#allocation6 + $0x680] ss:$16 sps:$4 sm:$0xff]  }
 0x238   :  { %v2730_v48 = vmax.f32 %v2706_v40, 0.0  ;;  %v2677_v49 = vmax.f32 %v2398_v42, %v2614_v45  ;;  %3221 = vmatprep.subr.bf16.mxu0 %v22641_v33  ;;  %3262 = vmatprep.subr.bf16.mxu1 %v22644_v34  ;;  %v22672_v29 = vld [vmem:[#allocation6 + $0x688] ss:$16 sps:$4 sm:$0xff]   ;;  %v22677_v30 = vld [vmem:[#allocation6 + $0x6a4] ss:$16 sps:$4 sm:$0xff]  }
 0x239   :  { %v2709_v53 = vadd.f32 %v25399_v20, %v2678_v44  ;;  %v20670_v54 = vpop.f32.mrb[22].mxu0  ;;  %v22680_v31 = vld [vmem:[#allocation6 + $0x6ac] ss:$16 sps:$4 sm:$0xff]   ;;  %v22675_v32 = vld [vmem:[#allocation6 + $0x6a0] ss:$16 sps:$4 sm:$0xff]  }
 0x23a   :  { %v25440_v57 = vmax.f32 %v2730_v48, %v2731_v43  ;;  %v2708_v58 = vadd.f32 %v25399_v20, %v2677_v49  ;;  %v20714_v59 = vpop.f32.mrb[22].mxu1  ;;  %v2408_v60 = vpop.f32.mrb[23].mxu0  ;;  %v22678_v33 = vld [vmem:[#allocation6 + $0x6a8] ss:$16 sps:$4 sm:$0xff]   ;;  %v22683_v34 = vld [vmem:[#allocation6 + $0x6c4] ss:$16 sps:$4 sm:$0xff]   ;;  %v3290_v49 = vpack.c.bf16 %v25410_v3, %v25410_v3 }
 0x23b   :  { %v2733_v61 = vmax.f32 %v2709_v53, 0.0  ;;  %v2680_v62 = vmax.f32 %v20670_v54, %v20714_v59  ;;  %3222 = vmatpush1.bf16.msra.mxu0 %v22639_v46  ;;  %3263 = vmatpush1.bf16.msra.mxu1 %v22642_v47  ;;  %v2624_v63 = vpop.f32.mrb[23].mxu1  ;;  %v22686_v36 = vld [vmem:[#allocation6 + $0x6cc] ss:$16 sps:$4 sm:$0xff]   ;;  %v22681_v37 = vld [vmem:[#allocation6 + $0x6c0] ss:$16 sps:$4 sm:$0xff]  }
 0x23c   :  { %v2732_v2 = vmax.f32 %v2708_v58, 0.0  ;;  %v2679_v5 = vmax.f32 %v2408_v60, %v2624_v63  ;;  %3484 = vmatprep.subr.bf16.mxu0 %v22647_v50  ;;  %3525 = vmatprep.subr.bf16.mxu1 %v22650_v52  ;;  %v22684_v40 = vld [vmem:[#allocation6 + $0x6c8] ss:$16 sps:$4 sm:$0xff]   ;;  %v22689_v41 = vld [vmem:[#allocation6 + $0x6e4] ss:$16 sps:$4 sm:$0xff]  }
 0x23d   :  { %v2711_v8 = vadd.f32 %v25399_v20, %v2680_v62  ;;  %v22692_v42 = vld [vmem:[#allocation6 + $0x6ec] ss:$16 sps:$4 sm:$0xff]   ;;  %v22687_v43 = vld [vmem:[#allocation6 + $0x6e0] ss:$16 sps:$4 sm:$0xff]   ;;  %v22690_v44 = vld [vmem:[#allocation6 + $0x6e8] ss:$16 sps:$4 sm:$0xff]  }
 0x23e   :  { %v25446_v9 = vmax.f32 %v2732_v2, %v2733_v61  ;;  %v2710_v10 = vadd.f32 %v25399_v20, %v2679_v5  ;;  %3240 = vmatmul.mubr.bf16.vlgmr.msra.gmra.mrb[28].mxu0 %v2737_v1  ;;  %3281 = vmatmul.mubr.bf16.vlgmr.msra.gmra.mrb[28].mxu1 %v2737_v1  ;;  %v22657_v20 = vld [vmem:[#allocation6 + $0x640] ss:$16 sps:$4 sm:$0xff]   ;;  %v22695_v45 = vld [vmem:[#allocation6 + $0x904] ss:$16 sps:$4 sm:$0xff]   ;;  %v22698_v46 = vld [vmem:[#allocation6 + $0x90c] ss:$16 sps:$4 sm:$0xff]  }
 0x23f   :  { %v2735_v11 = vmax.f32 %v2711_v8, 0.0  ;;  %3485 = vmatpush1.bf16.msra.mxu0 %v22645_v55  ;;  %3526 = vmatpush1.bf16.msra.mxu1 %v22648_v56  ;;  %v22693_v47 = vld [vmem:[#allocation6 + $0x900] ss:$16 sps:$4 sm:$0xff]   ;;  %v22696_v48 = vld [vmem:[#allocation6 + $0x908] ss:$16 sps:$4 sm:$0xff]  }
 0x240   :  { %v2734_v39 = vmax.f32 %v2710_v10, 0.0  ;;  %3486 = vmatprep.subr.bf16.mxu0 %v22653_v6  ;;  %3527 = vmatprep.subr.bf16.mxu1 %v22656_v7  ;;  %v22701_v50 = vld [vmem:[#allocation6 + $0x924] ss:$16 sps:$4 sm:$0xff]   ;;  %v22704_v52 = vld [vmem:[#allocation6 + $0x92c] ss:$16 sps:$4 sm:$0xff]  }
 0x241   :  { %3516 = vmatprep.mubr.bf16.mxu0 %v24510_v19  ;;  %3557 = vmatprep.mubr.bf16.mxu1 %v24510_v19  ;;  %v22699_v53 = vld [vmem:[#allocation6 + $0x920] ss:$16 sps:$4 sm:$0xff]   ;;  %v22702_v54 = vld [vmem:[#allocation6 + $0x928] ss:$16 sps:$4 sm:$0xff]   ;;  %v22707_v55 = vld [vmem:[#allocation6 + $0x944] ss:$16 sps:$4 sm:$0xff]  }
 0x242   :  { %v25451_v16 = vmax.f32 %v2734_v39, %v2735_v11  ;;  %v22710_v56 = vld [vmem:[#allocation6 + $0x94c] ss:$16 sps:$4 sm:$0xff]   ;;  %v22705_v3 = vld [vmem:[#allocation6 + $0x940] ss:$16 sps:$4 sm:$0xff]   ;;  %v22708_v58 = vld [vmem:[#allocation6 + $0x948] ss:$16 sps:$4 sm:$0xff]  }
 0x243   :  { %3487 = vmatpush1.bf16.msra.mxu0 %v22651_v12  ;;  %3528 = vmatpush1.bf16.msra.mxu1 %v22654_v13  ;;  %v22713_v59 = vld [vmem:[#allocation6 + $0x964] ss:$16 sps:$4 sm:$0xff]   ;;  %v22716_v60 = vld [vmem:[#allocation6 + $0x96c] ss:$16 sps:$4 sm:$0xff]   ;;  %v22711_v61 = vld [vmem:[#allocation6 + $0x960] ss:$16 sps:$4 sm:$0xff]  }
 0x244   :  { %3488 = vmatprep.subr.bf16.mxu0 %v22659_v14  ;;  %3529 = vmatprep.subr.bf16.mxu1 %v22662_v15  ;;  %v22714_v62 = vld [vmem:[#allocation6 + $0x968] ss:$16 sps:$4 sm:$0xff]   ;;  %v22719_v63 = vld [vmem:[#allocation6 + $0x984] ss:$16 sps:$4 sm:$0xff]   ;;  %v22722_v1 = vld [vmem:[#allocation6 + $0x98c] ss:$16 sps:$4 sm:$0xff]  }
 0x245   :  { %v22717_v2 = vld [vmem:[#allocation6 + $0x980] ss:$16 sps:$4 sm:$0xff]   ;;  %v22720_v5 = vld [vmem:[#allocation6 + $0x988] ss:$16 sps:$4 sm:$0xff]   ;;  %v22725_v6 = vld [vmem:[#allocation6 + $0x9a4] ss:$16 sps:$4 sm:$0xff]  }
 0x246   :  { %v22728_v7 = vld [vmem:[#allocation6 + $0x9ac] ss:$16 sps:$4 sm:$0xff]   ;;  %v22723_v8 = vld [vmem:[#allocation6 + $0x9a0] ss:$16 sps:$4 sm:$0xff]   ;;  %v22726_v10 = vld [vmem:[#allocation6 + $0x9a8] ss:$16 sps:$4 sm:$0xff]  }
 0x247   :  { %3489 = vmatpush1.bf16.msra.mxu0 %v22657_v20  ;;  %3530 = vmatpush1.bf16.msra.mxu1 %v22660_v17  ;;  %v22731_v11 = vld [vmem:[#allocation6 + $0x9c4] ss:$16 sps:$4 sm:$0xff]   ;;  %v22734_v12 = vld [vmem:[#allocation6 + $0x9cc] ss:$16 sps:$4 sm:$0xff]   ;;  %v22729_v13 = vld [vmem:[#allocation6 + $0x9c0] ss:$16 sps:$4 sm:$0xff]  }
 0x248   :  { %3490 = vmatprep.subr.bf16.mxu0 %v22665_v21  ;;  %3531 = vmatprep.subr.bf16.mxu1 %v22668_v23  ;;  %v22732_v39 = vld [vmem:[#allocation6 + $0x9c8] ss:$16 sps:$4 sm:$0xff]   ;;  %v22737_v14 = vld [vmem:[#allocation6 + $0x9e4] ss:$16 sps:$4 sm:$0xff]   ;;  %v22740_v15 = vld [vmem:[#allocation6 + $0x9ec] ss:$16 sps:$4 sm:$0xff]  }
 0x249   :  { %v22735_v20 = vld [vmem:[#allocation6 + $0x9e0] ss:$16 sps:$4 sm:$0xff]   ;;  %v22738_v17 = vld [vmem:[#allocation6 + $0x9e8] ss:$16 sps:$4 sm:$0xff]   ;;  %v22743_v21 = vld [vmem:[#allocation6 + $0xc04] ss:$16 sps:$4 sm:$0xff]  }
 0x24a   :  { %v22746_v23 = vld [vmem:[#allocation6 + $0xc0c] ss:$16 sps:$4 sm:$0xff]  }
 0x24b   :  { %3491 = vmatpush1.bf16.msra.mxu0 %v22663_v24  ;;  %3532 = vmatpush1.bf16.msra.mxu1 %v22666_v25  ;;  %v22741_v24 = vld [vmem:[#allocation6 + $0xc00] ss:$16 sps:$4 sm:$0xff]   ;;  %v22744_v25 = vld [vmem:[#allocation6 + $0xc08] ss:$16 sps:$4 sm:$0xff]  }
 0x24c   :  { %3492 = vmatprep.subr.bf16.mxu0 %v22671_v26  ;;  %3533 = vmatprep.subr.bf16.mxu1 %v22674_v27  ;;  %v3571_v26 = vpack.c.bf16 %v25416_v18, %v25416_v18  ;;  %v22749_v27 = vld [vmem:[#allocation6 + $0xc24] ss:$16 sps:$4 sm:$0xff]   ;;  %v22753_v18 = vld [vmem:[#allocation6 + $0xc40] ss:$16 sps:$4 sm:$0xff]  }
 0x24f   :  { %3493 = vmatpush1.bf16.msra.mxu0 %v22669_v28  ;;  %3534 = vmatpush1.bf16.msra.mxu1 %v22672_v29  ;;  %v22752_v28 = vld [vmem:[#allocation6 + $0xc2c] ss:$16 sps:$4 sm:$0xff]   ;;  %v22747_v29 = vld [vmem:[#allocation6 + $0xc20] ss:$16 sps:$4 sm:$0xff]  }
 0x250   :  { %3494 = vmatprep.subr.bf16.mxu0 %v22677_v30  ;;  %3535 = vmatprep.subr.bf16.mxu1 %v22680_v31  ;;  %v22750_v30 = vld [vmem:[#allocation6 + $0xc28] ss:$16 sps:$4 sm:$0xff]   ;;  %v22755_v31 = vld [vmem:[#allocation6 + $0xc44] ss:$16 sps:$4 sm:$0xff]  }
 0x253   :  { %3495 = vmatpush1.bf16.msra.mxu0 %v22675_v32  ;;  %3536 = vmatpush1.bf16.msra.mxu1 %v22678_v33  ;;  %v22758_v32 = vld [vmem:[#allocation6 + $0xc4c] ss:$16 sps:$4 sm:$0xff]   ;;  %v22756_v33 = vld [vmem:[#allocation6 + $0xc48] ss:$16 sps:$4 sm:$0xff]  }
 0x254   :  { %3496 = vmatprep.subr.bf16.mxu0 %v22683_v34  ;;  %3537 = vmatprep.subr.bf16.mxu1 %v22686_v36  ;;  %v22761_v34 = vld [vmem:[#allocation6 + $0xc64] ss:$16 sps:$4 sm:$0xff]   ;;  %v22764_v36 = vld [vmem:[#allocation6 + $0xc6c] ss:$16 sps:$4 sm:$0xff]  }
 0x257   :  { %3497 = vmatpush1.bf16.msra.mxu0 %v22681_v37  ;;  %3538 = vmatpush1.bf16.msra.mxu1 %v22684_v40  ;;  %v22759_v37 = vld [vmem:[#allocation6 + $0xc60] ss:$16 sps:$4 sm:$0xff]   ;;  %v22762_v40 = vld [vmem:[#allocation6 + $0xc68] ss:$16 sps:$4 sm:$0xff]  }
 0x258   :  { %3498 = vmatprep.subr.bf16.mxu0 %v22689_v41  ;;  %3539 = vmatprep.subr.bf16.mxu1 %v22692_v42  ;;  %v22767_v41 = vld [vmem:[#allocation6 + $0xc84] ss:$16 sps:$4 sm:$0xff]   ;;  %v22770_v42 = vld [vmem:[#allocation6 + $0xc8c] ss:$16 sps:$4 sm:$0xff]  }
 0x25b   :  { %3499 = vmatpush1.bf16.msra.mxu0 %v22687_v43  ;;  %3540 = vmatpush1.bf16.msra.mxu1 %v22690_v44  ;;  %v22765_v43 = vld [vmem:[#allocation6 + $0xc80] ss:$16 sps:$4 sm:$0xff]   ;;  %v22768_v44 = vld [vmem:[#allocation6 + $0xc88] ss:$16 sps:$4 sm:$0xff]  }
 0x25c   :  { %3765 = vmatprep.subr.bf16.mxu0 %v22695_v45  ;;  %3806 = vmatprep.subr.bf16.mxu1 %v22698_v46  ;;  %v22773_v45 = vld [vmem:[#allocation6 + $0xca4] ss:$16 sps:$4 sm:$0xff]   ;;  %v22776_v46 = vld [vmem:[#allocation6 + $0xcac] ss:$16 sps:$4 sm:$0xff]  }
 0x25e   :  { %3517 = vmatmul.mubr.bf16.vlgmr.msra.gmra.mrb[32].mxu0 %v3290_v49  ;;  %3558 = vmatmul.mubr.bf16.vlgmr.msra.gmra.mrb[32].mxu1 %v3290_v49  ;;  %v22779_v49 = vld [vmem:[#allocation6 + $0xcc4] ss:$16 sps:$4 sm:$0xff]  }
 0x25f   :  { %3766 = vmatpush1.bf16.msra.mxu0 %v22693_v47  ;;  %3807 = vmatpush1.bf16.msra.mxu1 %v22696_v48  ;;  %v22771_v47 = vld [vmem:[#allocation6 + $0xca0] ss:$16 sps:$4 sm:$0xff]   ;;  %v22774_v48 = vld [vmem:[#allocation6 + $0xca8] ss:$16 sps:$4 sm:$0xff]  }
 0x260   :  { %3767 = vmatprep.subr.bf16.mxu0 %v22701_v50  ;;  %3808 = vmatprep.subr.bf16.mxu1 %v22704_v52  ;;  %v22782_v50 = vld [vmem:[#allocation6 + $0xccc] ss:$16 sps:$4 sm:$0xff]   ;;  %v22777_v52 = vld [vmem:[#allocation6 + $0xcc0] ss:$16 sps:$4 sm:$0xff]  }
 0x261   :  { %3797 = vmatprep.mubr.bf16.mxu0 %v24510_v19  ;;  %3838 = vmatprep.mubr.bf16.mxu1 %v24510_v19 }
 0x263   :  { %3768 = vmatpush1.bf16.msra.mxu0 %v22699_v53  ;;  %3809 = vmatpush1.bf16.msra.mxu1 %v22702_v54  ;;  %v22780_v53 = vld [vmem:[#allocation6 + $0xcc8] ss:$16 sps:$4 sm:$0xff]   ;;  %v22785_v54 = vld [vmem:[#allocation6 + $0xce4] ss:$16 sps:$4 sm:$0xff]  }
 0x264   :  { %3769 = vmatprep.subr.bf16.mxu0 %v22707_v55  ;;  %3810 = vmatprep.subr.bf16.mxu1 %v22710_v56  ;;  %v22788_v55 = vld [vmem:[#allocation6 + $0xcec] ss:$16 sps:$4 sm:$0xff]   ;;  %v22783_v56 = vld [vmem:[#allocation6 + $0xce0] ss:$16 sps:$4 sm:$0xff]  }
 0x267   :  { %3770 = vmatpush1.bf16.msra.mxu0 %v22705_v3  ;;  %3811 = vmatpush1.bf16.msra.mxu1 %v22708_v58  ;;  %v22786_v3 = vld [vmem:[#allocation6 + $0xce8] ss:$16 sps:$4 sm:$0xff]   ;;  %v22791_v58 = vld [vmem:[#allocation6 + $0xf04] ss:$16 sps:$4 sm:$0xff]  }
 0x268   :  { %3771 = vmatprep.subr.bf16.mxu0 %v22713_v59  ;;  %3812 = vmatprep.subr.bf16.mxu1 %v22716_v60  ;;  %v22794_v59 = vld [vmem:[#allocation6 + $0xf0c] ss:$16 sps:$4 sm:$0xff]   ;;  %v22789_v60 = vld [vmem:[#allocation6 + $0xf00] ss:$16 sps:$4 sm:$0xff]  }
 0x26b   :  { %3772 = vmatpush1.bf16.msra.mxu0 %v22711_v61  ;;  %3813 = vmatpush1.bf16.msra.mxu1 %v22714_v62  ;;  %v22792_v61 = vld [vmem:[#allocation6 + $0xf08] ss:$16 sps:$4 sm:$0xff]   ;;  %v3852_v62 = vpack.c.bf16 %v25420_v35, %v25420_v35  ;;  %v22801_v35 = vld [vmem:[#allocation6 + $0xf40] ss:$16 sps:$4 sm:$0xff]  }
 0x26c   :  { %3773 = vmatprep.subr.bf16.mxu0 %v22719_v63  ;;  %3814 = vmatprep.subr.bf16.mxu1 %v22722_v1  ;;  %v22797_v63 = vld [vmem:[#allocation6 + $0xf24] ss:$16 sps:$4 sm:$0xff]   ;;  %v22800_v1 = vld [vmem:[#allocation6 + $0xf2c] ss:$16 sps:$4 sm:$0xff]  }
 0x26f   :  { %3774 = vmatpush1.bf16.msra.mxu0 %v22717_v2  ;;  %3815 = vmatpush1.bf16.msra.mxu1 %v22720_v5  ;;  %v22795_v2 = vld [vmem:[#allocation6 + $0xf20] ss:$16 sps:$4 sm:$0xff]   ;;  %v22798_v5 = vld [vmem:[#allocation6 + $0xf28] ss:$16 sps:$4 sm:$0xff]  }
 0x270   :  { %3775 = vmatprep.subr.bf16.mxu0 %v22725_v6  ;;  %3816 = vmatprep.subr.bf16.mxu1 %v22728_v7  ;;  %v22803_v6 = vld [vmem:[#allocation6 + $0xf44] ss:$16 sps:$4 sm:$0xff]   ;;  %v22806_v7 = vld [vmem:[#allocation6 + $0xf4c] ss:$16 sps:$4 sm:$0xff]  }
 0x273   :  { %3776 = vmatpush1.bf16.msra.mxu0 %v22723_v8  ;;  %3817 = vmatpush1.bf16.msra.mxu1 %v22726_v10  ;;  %v22804_v8 = vld [vmem:[#allocation6 + $0xf48] ss:$16 sps:$4 sm:$0xff]   ;;  %v22809_v10 = vld [vmem:[#allocation6 + $0xf64] ss:$16 sps:$4 sm:$0xff]  }
 0x274   :  { %3777 = vmatprep.subr.bf16.mxu0 %v22731_v11  ;;  %3818 = vmatprep.subr.bf16.mxu1 %v22734_v12  ;;  %v22812_v11 = vld [vmem:[#allocation6 + $0xf6c] ss:$16 sps:$4 sm:$0xff]   ;;  %v22807_v12 = vld [vmem:[#allocation6 + $0xf60] ss:$16 sps:$4 sm:$0xff]  }
 0x277   :  { %3778 = vmatpush1.bf16.msra.mxu0 %v22729_v13  ;;  %3819 = vmatpush1.bf16.msra.mxu1 %v22732_v39  ;;  %v22810_v13 = vld [vmem:[#allocation6 + $0xf68] ss:$16 sps:$4 sm:$0xff]   ;;  %v22815_v39 = vld [vmem:[#allocation6 + $0xf84] ss:$16 sps:$4 sm:$0xff]  }
 0x278   :  { %3779 = vmatprep.subr.bf16.mxu0 %v22737_v14  ;;  %3820 = vmatprep.subr.bf16.mxu1 %v22740_v15  ;;  %v22818_v14 = vld [vmem:[#allocation6 + $0xf8c] ss:$16 sps:$4 sm:$0xff]   ;;  %v22813_v15 = vld [vmem:[#allocation6 + $0xf80] ss:$16 sps:$4 sm:$0xff]  }
 0x27b   :  { %3780 = vmatpush1.bf16.msra.mxu0 %v22735_v20  ;;  %3821 = vmatpush1.bf16.msra.mxu1 %v22738_v17  ;;  %v22816_v20 = vld [vmem:[#allocation6 + $0xf88] ss:$16 sps:$4 sm:$0xff]   ;;  %v22821_v17 = vld [vmem:[#allocation6 + $0xfa4] ss:$16 sps:$4 sm:$0xff]  }
 0x27c   :  { %4046 = vmatprep.subr.bf16.mxu0 %v22743_v21  ;;  %4087 = vmatprep.subr.bf16.mxu1 %v22746_v23  ;;  %v22824_v21 = vld [vmem:[#allocation6 + $0xfac] ss:$16 sps:$4 sm:$0xff]   ;;  %v22819_v23 = vld [vmem:[#allocation6 + $0xfa0] ss:$16 sps:$4 sm:$0xff]  }
 0x27e   :  { %3798 = vmatmul.mubr.bf16.vlgmr.msra.gmra.mrb[36].mxu0 %v3571_v26  ;;  %3839 = vmatmul.mubr.bf16.vlgmr.msra.gmra.mrb[36].mxu1 %v3571_v26  ;;  %v22830_v26 = vld [vmem:[#allocation6 + $0xfcc] ss:$16 sps:$4 sm:$0xff]  }
 0x27f   :  { %4047 = vmatpush1.bf16.msra.mxu0 %v22741_v24  ;;  %4088 = vmatpush1.bf16.msra.mxu1 %v22744_v25  ;;  %v22822_v24 = vld [vmem:[#allocation6 + $0xfa8] ss:$16 sps:$4 sm:$0xff]   ;;  %v22827_v25 = vld [vmem:[#allocation6 + $0xfc4] ss:$16 sps:$4 sm:$0xff]  }
 0x280   :  { %4048 = vmatprep.subr.bf16.mxu0 %v22749_v27  ;;  %4089 = vmatprep.subr.bf16.mxu1 %v22752_v28  ;;  %v22825_v27 = vld [vmem:[#allocation6 + $0xfc0] ss:$16 sps:$4 sm:$0xff]   ;;  %v22828_v28 = vld [vmem:[#allocation6 + $0xfc8] ss:$16 sps:$4 sm:$0xff]  }
 0x281   :  { %4078 = vmatprep.mubr.bf16.mxu0 %v24510_v19  ;;  %4119 = vmatprep.mubr.bf16.mxu1 %v24510_v19 }
 0x283   :  { %4049 = vmatpush1.bf16.msra.mxu0 %v22747_v29  ;;  %4090 = vmatpush1.bf16.msra.mxu1 %v22750_v30  ;;  %v22833_v29 = vld [vmem:[#allocation6 + $0xfe4] ss:$16 sps:$4 sm:$0xff]   ;;  %v22836_v30 = vld [vmem:[#allocation6 + $0xfec] ss:$16 sps:$4 sm:$0xff]  }
 0x284   :  { %4050 = vmatprep.subr.bf16.mxu0 %v22755_v31  ;;  %4091 = vmatprep.subr.bf16.mxu1 %v22758_v32  ;;  %v22831_v31 = vld [vmem:[#allocation6 + $0xfe0] ss:$16 sps:$4 sm:$0xff]   ;;  %v22834_v32 = vld [vmem:[#allocation6 + $0xfe8] ss:$16 sps:$4 sm:$0xff]  }
 0x287   :  { %4051 = vmatpush1.bf16.msra.mxu0 %v22753_v18  ;;  %4092 = vmatpush1.bf16.msra.mxu1 %v22756_v33  ;;  %v22839_v18 = vld [vmem:[#allocation6 + $0x1204] ss:$16 sps:$4 sm:$0xff]   ;;  %v22842_v33 = vld [vmem:[#allocation6 + $0x120c] ss:$16 sps:$4 sm:$0xff]  }
 0x288   :  { %4052 = vmatprep.subr.bf16.mxu0 %v22761_v34  ;;  %4093 = vmatprep.subr.bf16.mxu1 %v22764_v36  ;;  %v22837_v34 = vld [vmem:[#allocation6 + $0x1200] ss:$16 sps:$4 sm:$0xff]   ;;  %v22840_v36 = vld [vmem:[#allocation6 + $0x1208] ss:$16 sps:$4 sm:$0xff]  }
 0x28b   :  { %4053 = vmatpush1.bf16.msra.mxu0 %v22759_v37  ;;  %4094 = vmatpush1.bf16.msra.mxu1 %v22762_v40  ;;  %v4133_v37 = vpack.c.bf16 %v25424_v51, %v25424_v51  ;;  %v22845_v40 = vld [vmem:[#allocation6 + $0x1224] ss:$16 sps:$4 sm:$0xff]   ;;  %v22849_v51 = vld [vmem:[#allocation6 + $0x1240] ss:$16 sps:$4 sm:$0xff]  }
 0x28c   :  { %4054 = vmatprep.subr.bf16.mxu0 %v22767_v41  ;;  %4095 = vmatprep.subr.bf16.mxu1 %v22770_v42  ;;  %v22848_v41 = vld [vmem:[#allocation6 + $0x122c] ss:$16 sps:$4 sm:$0xff]   ;;  %v22843_v42 = vld [vmem:[#allocation6 + $0x1220] ss:$16 sps:$4 sm:$0xff]  }
 0x28f   :  { %4055 = vmatpush1.bf16.msra.mxu0 %v22765_v43  ;;  %4096 = vmatpush1.bf16.msra.mxu1 %v22768_v44  ;;  %v22846_v43 = vld [vmem:[#allocation6 + $0x1228] ss:$16 sps:$4 sm:$0xff]   ;;  %v22851_v44 = vld [vmem:[#allocation6 + $0x1244] ss:$16 sps:$4 sm:$0xff]  }
 0x290   :  { %4056 = vmatprep.subr.bf16.mxu0 %v22773_v45  ;;  %4097 = vmatprep.subr.bf16.mxu1 %v22776_v46  ;;  %v22854_v45 = vld [vmem:[#allocation6 + $0x124c] ss:$16 sps:$4 sm:$0xff]   ;;  %v22852_v46 = vld [vmem:[#allocation6 + $0x1248] ss:$16 sps:$4 sm:$0xff]  }
 0x293   :  { %4057 = vmatpush1.bf16.msra.mxu0 %v22771_v47  ;;  %4098 = vmatpush1.bf16.msra.mxu1 %v22774_v48  ;;  %v22857_v47 = vld [vmem:[#allocation6 + $0x1264] ss:$16 sps:$4 sm:$0xff]   ;;  %v22860_v48 = vld [vmem:[#allocation6 + $0x126c] ss:$16 sps:$4 sm:$0xff]  }
 0x294   :  { %4058 = vmatprep.subr.bf16.mxu0 %v22779_v49  ;;  %4099 = vmatprep.subr.bf16.mxu1 %v22782_v50  ;;  %v22855_v49 = vld [vmem:[#allocation6 + $0x1260] ss:$16 sps:$4 sm:$0xff]   ;;  %v22858_v50 = vld [vmem:[#allocation6 + $0x1268] ss:$16 sps:$4 sm:$0xff]  }
 0x297   :  { %4059 = vmatpush1.bf16.msra.mxu0 %v22777_v52  ;;  %4100 = vmatpush1.bf16.msra.mxu1 %v22780_v53  ;;  %v22863_v52 = vld [vmem:[#allocation6 + $0x1284] ss:$16 sps:$4 sm:$0xff]   ;;  %v22866_v53 = vld [vmem:[#allocation6 + $0x128c] ss:$16 sps:$4 sm:$0xff]  }
 0x298   :  { %4060 = vmatprep.subr.bf16.mxu0 %v22785_v54  ;;  %4101 = vmatprep.subr.bf16.mxu1 %v22788_v55  ;;  %v22861_v54 = vld [vmem:[#allocation6 + $0x1280] ss:$16 sps:$4 sm:$0xff]   ;;  %v22864_v55 = vld [vmem:[#allocation6 + $0x1288] ss:$16 sps:$4 sm:$0xff]  }
 0x29b   :  { %4061 = vmatpush1.bf16.msra.mxu0 %v22783_v56  ;;  %4102 = vmatpush1.bf16.msra.mxu1 %v22786_v3  ;;  %v22869_v56 = vld [vmem:[#allocation6 + $0x12a4] ss:$16 sps:$4 sm:$0xff]   ;;  %v22872_v3 = vld [vmem:[#allocation6 + $0x12ac] ss:$16 sps:$4 sm:$0xff]  }
 0x29c   :  { %4327 = vmatprep.subr.bf16.mxu0 %v22791_v58  ;;  %4368 = vmatprep.subr.bf16.mxu1 %v22794_v59  ;;  %v22867_v58 = vld [vmem:[#allocation6 + $0x12a0] ss:$16 sps:$4 sm:$0xff]   ;;  %v22870_v59 = vld [vmem:[#allocation6 + $0x12a8] ss:$16 sps:$4 sm:$0xff]  }
 0x29e   :  { %4079 = vmatmul.mubr.bf16.vlgmr.msra.gmra.mrb[40].mxu0 %v3852_v62  ;;  %4120 = vmatmul.mubr.bf16.vlgmr.msra.gmra.mrb[40].mxu1 %v3852_v62  ;;  %v22873_v62 = vld [vmem:[#allocation6 + $0x12c0] ss:$16 sps:$4 sm:$0xff]  }
 0x29f   :  { %4328 = vmatpush1.bf16.msra.mxu0 %v22789_v60  ;;  %4369 = vmatpush1.bf16.msra.mxu1 %v22792_v61  ;;  %v22875_v60 = vld [vmem:[#allocation6 + $0x12c4] ss:$16 sps:$4 sm:$0xff]   ;;  %v22878_v61 = vld [vmem:[#allocation6 + $0x12cc] ss:$16 sps:$4 sm:$0xff]  }
 0x2a0   :  { %4329 = vmatprep.subr.bf16.mxu0 %v22797_v63  ;;  %4370 = vmatprep.subr.bf16.mxu1 %v22800_v1  ;;  %v22876_v63 = vld [vmem:[#allocation6 + $0x12c8] ss:$16 sps:$4 sm:$0xff]   ;;  %v22881_v1 = vld [vmem:[#allocation6 + $0x12e4] ss:$16 sps:$4 sm:$0xff]  }
 0x2a1   :  { %4359 = vmatprep.mubr.bf16.mxu0 %v24510_v19  ;;  %4400 = vmatprep.mubr.bf16.mxu1 %v24510_v19 }
 0x2a3   :  { %4330 = vmatpush1.bf16.msra.mxu0 %v22795_v2  ;;  %4371 = vmatpush1.bf16.msra.mxu1 %v22798_v5  ;;  %v22884_v2 = vld [vmem:[#allocation6 + $0x12ec] ss:$16 sps:$4 sm:$0xff]   ;;  %v22879_v5 = vld [vmem:[#allocation6 + $0x12e0] ss:$16 sps:$4 sm:$0xff]  }
 0x2a4   :  { %4331 = vmatprep.subr.bf16.mxu0 %v22803_v6  ;;  %4372 = vmatprep.subr.bf16.mxu1 %v22806_v7  ;;  %v22882_v6 = vld [vmem:[#allocation6 + $0x12e8] ss:$16 sps:$4 sm:$0xff]   ;;  %v22887_v7 = vld [vmem:[#allocation6 + $0x1504] ss:$16 sps:$4 sm:$0xff]  }
 0x2a7   :  { %4332 = vmatpush1.bf16.msra.mxu0 %v22801_v35  ;;  %4373 = vmatpush1.bf16.msra.mxu1 %v22804_v8  ;;  %v22890_v35 = vld [vmem:[#allocation6 + $0x150c] ss:$16 sps:$4 sm:$0xff]   ;;  %v22885_v8 = vld [vmem:[#allocation6 + $0x1500] ss:$16 sps:$4 sm:$0xff]  }
 0x2a8   :  { %4333 = vmatprep.subr.bf16.mxu0 %v22809_v10  ;;  %4374 = vmatprep.subr.bf16.mxu1 %v22812_v11  ;;  %v22888_v10 = vld [vmem:[#allocation6 + $0x1508] ss:$16 sps:$4 sm:$0xff]   ;;  %v4414_v11 = vpack.c.bf16 %v25428_v4, %v25428_v4  ;;  %v22897_v4 = vld [vmem:[#allocation6 + $0x1540] ss:$16 sps:$4 sm:$0xff]  }
 0x2ab   :  { %4334 = vmatpush1.bf16.msra.mxu0 %v22807_v12  ;;  %4375 = vmatpush1.bf16.msra.mxu1 %v22810_v13  ;;  %v22893_v12 = vld [vmem:[#allocation6 + $0x1524] ss:$16 sps:$4 sm:$0xff]   ;;  %v22896_v13 = vld [vmem:[#allocation6 + $0x152c] ss:$16 sps:$4 sm:$0xff]  }
 0x2ac   :  { %4335 = vmatprep.subr.bf16.mxu0 %v22815_v39  ;;  %4376 = vmatprep.subr.bf16.mxu1 %v22818_v14  ;;  %v22891_v39 = vld [vmem:[#allocation6 + $0x1520] ss:$16 sps:$4 sm:$0xff]   ;;  %v22894_v14 = vld [vmem:[#allocation6 + $0x1528] ss:$16 sps:$4 sm:$0xff]  }
 0x2af   :  { %4336 = vmatpush1.bf16.msra.mxu0 %v22813_v15  ;;  %4377 = vmatpush1.bf16.msra.mxu1 %v22816_v20  ;;  %v22899_v15 = vld [vmem:[#allocation6 + $0x1544] ss:$16 sps:$4 sm:$0xff]   ;;  %v22902_v20 = vld [vmem:[#allocation6 + $0x154c] ss:$16 sps:$4 sm:$0xff]  }
 0x2b0   :  { %4337 = vmatprep.subr.bf16.mxu0 %v22821_v17  ;;  %4378 = vmatprep.subr.bf16.mxu1 %v22824_v21  ;;  %v22900_v17 = vld [vmem:[#allocation6 + $0x1548] ss:$16 sps:$4 sm:$0xff]   ;;  %v22905_v21 = vld [vmem:[#allocation6 + $0x1564] ss:$16 sps:$4 sm:$0xff]  }
 0x2b3   :  { %4338 = vmatpush1.bf16.msra.mxu0 %v22819_v23  ;;  %4379 = vmatpush1.bf16.msra.mxu1 %v22822_v24  ;;  %v22908_v23 = vld [vmem:[#allocation6 + $0x156c] ss:$16 sps:$4 sm:$0xff]   ;;  %v22903_v24 = vld [vmem:[#allocation6 + $0x1560] ss:$16 sps:$4 sm:$0xff]  }
 0x2b4   :  { %4339 = vmatprep.subr.bf16.mxu0 %v22827_v25  ;;  %4380 = vmatprep.subr.bf16.mxu1 %v22830_v26  ;;  %v22906_v25 = vld [vmem:[#allocation6 + $0x1568] ss:$16 sps:$4 sm:$0xff]   ;;  %v22911_v26 = vld [vmem:[#allocation6 + $0x1584] ss:$16 sps:$4 sm:$0xff]  }
 0x2b7   :  { %4340 = vmatpush1.bf16.msra.mxu0 %v22825_v27  ;;  %4381 = vmatpush1.bf16.msra.mxu1 %v22828_v28  ;;  %v22914_v27 = vld [vmem:[#allocation6 + $0x158c] ss:$16 sps:$4 sm:$0xff]   ;;  %v22909_v28 = vld [vmem:[#allocation6 + $0x1580] ss:$16 sps:$4 sm:$0xff]  }
 0x2b8   :  { %4341 = vmatprep.subr.bf16.mxu0 %v22833_v29  ;;  %4382 = vmatprep.subr.bf16.mxu1 %v22836_v30  ;;  %v22912_v29 = vld [vmem:[#allocation6 + $0x1588] ss:$16 sps:$4 sm:$0xff]   ;;  %v22917_v30 = vld [vmem:[#allocation6 + $0x15a4] ss:$16 sps:$4 sm:$0xff]  }
 0x2bb   :  { %4342 = vmatpush1.bf16.msra.mxu0 %v22831_v31  ;;  %4383 = vmatpush1.bf16.msra.mxu1 %v22834_v32  ;;  %v22920_v31 = vld [vmem:[#allocation6 + $0x15ac] ss:$16 sps:$4 sm:$0xff]   ;;  %v22915_v32 = vld [vmem:[#allocation6 + $0x15a0] ss:$16 sps:$4 sm:$0xff]  }
 0x2bc   :  { %4608 = vmatprep.subr.bf16.mxu0 %v22839_v18  ;;  %4649 = vmatprep.subr.bf16.mxu1 %v22842_v33  ;;  %v22918_v18 = vld [vmem:[#allocation6 + $0x15a8] ss:$16 sps:$4 sm:$0xff]   ;;  %v22923_v33 = vld [vmem:[#allocation6 + $0x15c4] ss:$16 sps:$4 sm:$0xff]  }
 0x2be   :  { %4360 = vmatmul.mubr.bf16.vlgmr.msra.gmra.mrb[44].mxu0 %v4133_v37  ;;  %4401 = vmatmul.mubr.bf16.vlgmr.msra.gmra.mrb[44].mxu1 %v4133_v37 }
 0x2bf   :  { %4609 = vmatpush1.bf16.msra.mxu0 %v22837_v34  ;;  %4650 = vmatpush1.bf16.msra.mxu1 %v22840_v36  ;;  %v22926_v34 = vld [vmem:[#allocation6 + $0x15cc] ss:$16 sps:$4 sm:$0xff]  }
 0x2c0   :  { %4610 = vmatprep.subr.bf16.mxu0 %v22845_v40  ;;  %4651 = vmatprep.subr.bf16.mxu1 %v22848_v41 }
 0x2c1   :  { %4640 = vmatprep.mubr.bf16.mxu0 %v24510_v19  ;;  %4681 = vmatprep.mubr.bf16.mxu1 %v24510_v19 }
 0x2c3   :  { %4611 = vmatpush1.bf16.msra.mxu0 %v22843_v42  ;;  %4652 = vmatpush1.bf16.msra.mxu1 %v22846_v43 }
 0x2c4   :  { %4612 = vmatprep.subr.bf16.mxu0 %v22851_v44  ;;  %4653 = vmatprep.subr.bf16.mxu1 %v22854_v45  ;;  %v22921_v44 = vld [vmem:[#allocation6 + $0x15c0] ss:$16 sps:$4 sm:$0xff]   ;;  %v22924_v45 = vld [vmem:[#allocation6 + $0x15c8] ss:$16 sps:$4 sm:$0xff]  }
 0x2c7   :  { %4613 = vmatpush1.bf16.msra.mxu0 %v22849_v51  ;;  %4654 = vmatpush1.bf16.msra.mxu1 %v22852_v46 }
 0x2c8   :  { %4614 = vmatprep.subr.bf16.mxu0 %v22857_v47  ;;  %4655 = vmatprep.subr.bf16.mxu1 %v22860_v48  ;;  %v22929_v47 = vld [vmem:[#allocation6 + $0x15e4] ss:$16 sps:$4 sm:$0xff]   ;;  %v22932_v48 = vld [vmem:[#allocation6 + $0x15ec] ss:$16 sps:$4 sm:$0xff]  }
 0x2cb   :  { %4615 = vmatpush1.bf16.msra.mxu0 %v22855_v49  ;;  %4656 = vmatpush1.bf16.msra.mxu1 %v22858_v50  ;;  %v22927_v49 = vld [vmem:[#allocation6 + $0x15e0] ss:$16 sps:$4 sm:$0xff]   ;;  %v22930_v50 = vld [vmem:[#allocation6 + $0x15e8] ss:$16 sps:$4 sm:$0xff]  }
 0x2cc   :  { %4616 = vmatprep.subr.bf16.mxu0 %v22863_v52  ;;  %4657 = vmatprep.subr.bf16.mxu1 %v22866_v53  ;;  %v22935_v52 = vld [vmem:[#allocation6 + $0x1804] ss:$16 sps:$4 sm:$0xff]   ;;  %v22938_v53 = vld [vmem:[#allocation6 + $0x180c] ss:$16 sps:$4 sm:$0xff]  }
 0x2cf   :  { %4617 = vmatpush1.bf16.msra.mxu0 %v22861_v54  ;;  %4658 = vmatpush1.bf16.msra.mxu1 %v22864_v55  ;;  %v22933_v54 = vld [vmem:[#allocation6 + $0x1800] ss:$16 sps:$4 sm:$0xff]   ;;  %v22936_v55 = vld [vmem:[#allocation6 + $0x1808] ss:$16 sps:$4 sm:$0xff]  }
 0x2d0   :  { %4618 = vmatprep.subr.bf16.mxu0 %v22869_v56  ;;  %4659 = vmatprep.subr.bf16.mxu1 %v22872_v3  ;;  %v4695_v56 = vpack.c.bf16 %v25432_v22, %v25432_v22  ;;  %v22941_v3 = vld [vmem:[#allocation6 + $0x1824] ss:$16 sps:$4 sm:$0xff]   ;;  %v22945_v22 = vld [vmem:[#allocation6 + $0x1840] ss:$16 sps:$4 sm:$0xff]  }
 0x2d3   :  { %4619 = vmatpush1.bf16.msra.mxu0 %v22867_v58  ;;  %4660 = vmatpush1.bf16.msra.mxu1 %v22870_v59  ;;  %v22944_v58 = vld [vmem:[#allocation6 + $0x182c] ss:$16 sps:$4 sm:$0xff]   ;;  %v22939_v59 = vld [vmem:[#allocation6 + $0x1820] ss:$16 sps:$4 sm:$0xff]  }
 0x2d4   :  { %4620 = vmatprep.subr.bf16.mxu0 %v22875_v60  ;;  %4661 = vmatprep.subr.bf16.mxu1 %v22878_v61  ;;  %v22942_v60 = vld [vmem:[#allocation6 + $0x1828] ss:$16 sps:$4 sm:$0xff]   ;;  %v22947_v61 = vld [vmem:[#allocation6 + $0x1844] ss:$16 sps:$4 sm:$0xff]  }
 0x2d7   :  { %4621 = vmatpush1.bf16.msra.mxu0 %v22873_v62  ;;  %4662 = vmatpush1.bf16.msra.mxu1 %v22876_v63  ;;  %v22950_v62 = vld [vmem:[#allocation6 + $0x184c] ss:$16 sps:$4 sm:$0xff]   ;;  %v22948_v63 = vld [vmem:[#allocation6 + $0x1848] ss:$16 sps:$4 sm:$0xff]  }
 0x2d8   :  { %4622 = vmatprep.subr.bf16.mxu0 %v22881_v1  ;;  %4663 = vmatprep.subr.bf16.mxu1 %v22884_v2  ;;  %v22953_v1 = vld [vmem:[#allocation6 + $0x1864] ss:$16 sps:$4 sm:$0xff]   ;;  %v22956_v2 = vld [vmem:[#allocation6 + $0x186c] ss:$16 sps:$4 sm:$0xff]  }
 0x2db   :  { %4623 = vmatpush1.bf16.msra.mxu0 %v22879_v5  ;;  %4664 = vmatpush1.bf16.msra.mxu1 %v22882_v6  ;;  %v22951_v5 = vld [vmem:[#allocation6 + $0x1860] ss:$16 sps:$4 sm:$0xff]   ;;  %v22954_v6 = vld [vmem:[#allocation6 + $0x1868] ss:$16 sps:$4 sm:$0xff]  }
 0x2dc   :  { %4889 = vmatprep.subr.bf16.mxu0 %v22887_v7  ;;  %4930 = vmatprep.subr.bf16.mxu1 %v22890_v35  ;;  %v22959_v7 = vld [vmem:[#allocation6 + $0x1884] ss:$16 sps:$4 sm:$0xff]   ;;  %v22962_v35 = vld [vmem:[#allocation6 + $0x188c] ss:$16 sps:$4 sm:$0xff]  }
 0x2de   :  { %4641 = vmatmul.mubr.bf16.vlgmr.msra.gmra.mrb[48].mxu0 %v4414_v11  ;;  %4682 = vmatmul.mubr.bf16.vlgmr.msra.gmra.mrb[48].mxu1 %v4414_v11  ;;  %v22965_v11 = vld [vmem:[#allocation6 + $0x18a4] ss:$16 sps:$4 sm:$0xff]  }
 0x2df   :  { %4890 = vmatpush1.bf16.msra.mxu0 %v22885_v8  ;;  %4931 = vmatpush1.bf16.msra.mxu1 %v22888_v10  ;;  %v22957_v8 = vld [vmem:[#allocation6 + $0x1880] ss:$16 sps:$4 sm:$0xff]   ;;  %v22960_v10 = vld [vmem:[#allocation6 + $0x1888] ss:$16 sps:$4 sm:$0xff]  }
 0x2e0   :  { %4891 = vmatprep.subr.bf16.mxu0 %v22893_v12  ;;  %4932 = vmatprep.subr.bf16.mxu1 %v22896_v13  ;;  %v22968_v12 = vld [vmem:[#allocation6 + $0x18ac] ss:$16 sps:$4 sm:$0xff]   ;;  %v22963_v13 = vld [vmem:[#allocation6 + $0x18a0] ss:$16 sps:$4 sm:$0xff]  }
 0x2e1   :  { %4921 = vmatprep.mubr.bf16.mxu0 %v24510_v19  ;;  %4962 = vmatprep.mubr.bf16.mxu1 %v24510_v19 }
 0x2e3   :  { %4892 = vmatpush1.bf16.msra.mxu0 %v22891_v39  ;;  %4933 = vmatpush1.bf16.msra.mxu1 %v22894_v14  ;;  %v22966_v39 = vld [vmem:[#allocation6 + $0x18a8] ss:$16 sps:$4 sm:$0xff]   ;;  %v22971_v14 = vld [vmem:[#allocation6 + $0x18c4] ss:$16 sps:$4 sm:$0xff]  }
 0x2e4   :  { %4893 = vmatprep.subr.bf16.mxu0 %v22899_v15  ;;  %4934 = vmatprep.subr.bf16.mxu1 %v22902_v20  ;;  %v22974_v15 = vld [vmem:[#allocation6 + $0x18cc] ss:$16 sps:$4 sm:$0xff]  }
 0x2e7   :  { %4894 = vmatpush1.bf16.msra.mxu0 %v22897_v4  ;;  %4935 = vmatpush1.bf16.msra.mxu1 %v22900_v17 }
 0x2e8   :  { %4895 = vmatprep.subr.bf16.mxu0 %v22905_v21  ;;  %4936 = vmatprep.subr.bf16.mxu1 %v22908_v23 }
 0x2eb   :  { %4896 = vmatpush1.bf16.msra.mxu0 %v22903_v24  ;;  %4937 = vmatpush1.bf16.msra.mxu1 %v22906_v25 }
 0x2ec   :  { %4897 = vmatprep.subr.bf16.mxu0 %v22911_v26  ;;  %4938 = vmatprep.subr.bf16.mxu1 %v22914_v27 }
 0x2ef   :  { %4898 = vmatpush1.bf16.msra.mxu0 %v22909_v28  ;;  %4939 = vmatpush1.bf16.msra.mxu1 %v22912_v29  ;;  %v22969_v29 = vld [vmem:[#allocation6 + $0x18c0] ss:$16 sps:$4 sm:$0xff]  }
 0x2f0   :  { %4899 = vmatprep.subr.bf16.mxu0 %v22917_v30  ;;  %4940 = vmatprep.subr.bf16.mxu1 %v22920_v31  ;;  %v22972_v30 = vld [vmem:[#allocation6 + $0x18c8] ss:$16 sps:$4 sm:$0xff]  }
 0x2f1   :  { %v25473_v36 = vpop.f32.mrb[24].mxu0  ;;  %v25475_v37 = vpop.f32.mrb[24].mxu1 }
 0x2f2   :  { %v25477_v40 = vpop.f32.mrb[25].mxu0  ;;  %v25479_v41 = vpop.f32.mrb[25].mxu1 }
 0x2f3   :  { %4900 = vmatpush1.bf16.msra.mxu0 %v22915_v32  ;;  %4941 = vmatpush1.bf16.msra.mxu1 %v22918_v18  ;;  %v3003_v42 = vpop.f32.mrb[26].mxu0  ;;  %v3044_v43 = vpop.f32.mrb[26].mxu1  ;;  %v22977_v18 = vld [vmem:[#allocation6 + $0x18e4] ss:$16 sps:$4 sm:$0xff]  }
 0x2f4   :  { %v3004_v51 = vpop.f32.mrb[27].mxu0  ;;  %v3045_v46 = vpop.f32.mrb[27].mxu1  ;;  %4901 = vmatprep.subr.bf16.mxu0 %v22923_v33  ;;  %4942 = vmatprep.subr.bf16.mxu1 %v22926_v34  ;;  %v22980_v33 = vld [vmem:[#allocation6 + $0x18ec] ss:$16 sps:$4 sm:$0xff]   ;;  %v22975_v34 = vld [vmem:[#allocation6 + $0x18e0] ss:$16 sps:$4 sm:$0xff]   ;;  %v4976_v43 = vpack.c.bf16 %v25436_v38, %v25436_v38 }
 0x2f5   :  { %v22984_v42 = vld [vmem:[#allocation6 + $0x1b08] ss:$16 sps:$4 sm:$0xff]   ;;  %v22987_v51 = vld [vmem:[#allocation6 + $0x1b20] ss:$16 sps:$4 sm:$0xff]  }
 0x2f6   :  { %v22990_v46 = vld [vmem:[#allocation6 + $0x1b28] ss:$16 sps:$4 sm:$0xff]   ;;  %v22993_v38 = vld [vmem:[#allocation6 + $0x1b40] ss:$16 sps:$4 sm:$0xff]  }
 0x2f7   :  { %4902 = vmatpush1.bf16.msra.mxu0 %v22921_v44  ;;  %4943 = vmatpush1.bf16.msra.mxu1 %v22924_v45  ;;  %v22989_v44 = vld [vmem:[#allocation6 + $0x1b24] ss:$16 sps:$4 sm:$0xff]   ;;  %v22992_v45 = vld [vmem:[#allocation6 + $0x1b2c] ss:$16 sps:$4 sm:$0xff]  }
 0x2f8   :  { %4903 = vmatprep.subr.bf16.mxu0 %v22929_v47  ;;  %4944 = vmatprep.subr.bf16.mxu1 %v22932_v48  ;;  %v22995_v47 = vld [vmem:[#allocation6 + $0x1b44] ss:$16 sps:$4 sm:$0xff]   ;;  %v22998_v48 = vld [vmem:[#allocation6 + $0x1b4c] ss:$16 sps:$4 sm:$0xff]  }
 0x2fb   :  { %4904 = vmatpush1.bf16.msra.mxu0 %v22927_v49  ;;  %4945 = vmatpush1.bf16.msra.mxu1 %v22930_v50  ;;  %v22996_v49 = vld [vmem:[#allocation6 + $0x1b48] ss:$16 sps:$4 sm:$0xff]   ;;  %v23001_v50 = vld [vmem:[#allocation6 + $0x1b64] ss:$16 sps:$4 sm:$0xff]  }
 0x2fc   :  { %5170 = vmatprep.subr.bf16.mxu0 %v22935_v52  ;;  %5211 = vmatprep.subr.bf16.mxu1 %v22938_v53  ;;  %v23004_v52 = vld [vmem:[#allocation6 + $0x1b6c] ss:$16 sps:$4 sm:$0xff]   ;;  %v22999_v53 = vld [vmem:[#allocation6 + $0x1b60] ss:$16 sps:$4 sm:$0xff]  }
 0x2fe   :  { %4922 = vmatmul.mubr.bf16.vlgmr.msra.gmra.mrb[52].mxu0 %v4695_v56  ;;  %4963 = vmatmul.mubr.bf16.vlgmr.msra.gmra.mrb[52].mxu1 %v4695_v56  ;;  %v23010_v56 = vld [vmem:[#allocation6 + $0x1b8c] ss:$16 sps:$4 sm:$0xff]  }
 0x2ff   :  { %5171 = vmatpush1.bf16.msra.mxu0 %v22933_v54  ;;  %5212 = vmatpush1.bf16.msra.mxu1 %v22936_v55  ;;  %v23002_v54 = vld [vmem:[#allocation6 + $0x1b68] ss:$16 sps:$4 sm:$0xff]   ;;  %v23007_v55 = vld [vmem:[#allocation6 + $0x1b84] ss:$16 sps:$4 sm:$0xff]  }
 0x300   :  { %5172 = vmatprep.subr.bf16.mxu0 %v22941_v3  ;;  %5213 = vmatprep.subr.bf16.mxu1 %v22944_v58  ;;  %v23005_v3 = vld [vmem:[#allocation6 + $0x1b80] ss:$16 sps:$4 sm:$0xff]   ;;  %v23008_v58 = vld [vmem:[#allocation6 + $0x1b88] ss:$16 sps:$4 sm:$0xff]  }
 0x301   :  { %5202 = vmatprep.mubr.bf16.mxu0 %v24510_v19  ;;  %5243 = vmatprep.mubr.bf16.mxu1 %v24510_v19 }
 0x303   :  { %5173 = vmatpush1.bf16.msra.mxu0 %v22939_v59  ;;  %5214 = vmatpush1.bf16.msra.mxu1 %v22942_v60  ;;  %v23013_v59 = vld [vmem:[#allocation6 + $0x1ba4] ss:$16 sps:$4 sm:$0xff]   ;;  %v23016_v60 = vld [vmem:[#allocation6 + $0x1bac] ss:$16 sps:$4 sm:$0xff]  }
 0x304   :  { %5174 = vmatprep.subr.bf16.mxu0 %v22947_v61  ;;  %5215 = vmatprep.subr.bf16.mxu1 %v22950_v62  ;;  %v23011_v61 = vld [vmem:[#allocation6 + $0x1ba0] ss:$16 sps:$4 sm:$0xff]   ;;  %v23014_v62 = vld [vmem:[#allocation6 + $0x1ba8] ss:$16 sps:$4 sm:$0xff]  }
 0x307   :  { %5175 = vmatpush1.bf16.msra.mxu0 %v22945_v22  ;;  %5216 = vmatpush1.bf16.msra.mxu1 %v22948_v63  ;;  %v23019_v22 = vld [vmem:[#allocation6 + $0x1bc4] ss:$16 sps:$4 sm:$0xff]   ;;  %v23022_v63 = vld [vmem:[#allocation6 + $0x1bcc] ss:$16 sps:$4 sm:$0xff]  }
 0x308   :  { %5176 = vmatprep.subr.bf16.mxu0 %v22953_v1  ;;  %5217 = vmatprep.subr.bf16.mxu1 %v22956_v2 }
 0x30b   :  { %5177 = vmatpush1.bf16.msra.mxu0 %v22951_v5  ;;  %5218 = vmatpush1.bf16.msra.mxu1 %v22954_v6 }
 0x30c   :  { %5178 = vmatprep.subr.bf16.mxu0 %v22959_v7  ;;  %5219 = vmatprep.subr.bf16.mxu1 %v22962_v35 }
 0x30f   :  { %5179 = vmatpush1.bf16.msra.mxu0 %v22957_v8  ;;  %5220 = vmatpush1.bf16.msra.mxu1 %v22960_v10 }
 0x310   :  { %5180 = vmatprep.subr.bf16.mxu0 %v22965_v11  ;;  %5221 = vmatprep.subr.bf16.mxu1 %v22968_v12 }
 0x311   :  { %v3241_v20 = vpop.f32.mrb[28].mxu0  ;;  %v3282_v4 = vpop.f32.mrb[28].mxu1 }
 0x312   :  { %v25486_v17 = vadd.f32 %v3241_v20, %v25473_v36  ;;  %v25489_v21 = vadd.f32 %v3282_v4, %v25475_v37  ;;  %v3243_v23 = vpop.f32.mrb[29].mxu0  ;;  %v3284_v24 = vpop.f32.mrb[29].mxu1  ;;  %v22978_v36 = vld [vmem:[#allocation6 + $0x18e8] ss:$16 sps:$4 sm:$0xff]   ;;  %v22983_v37 = vld [vmem:[#allocation6 + $0x1b04] ss:$16 sps:$4 sm:$0xff]  }
 0x313   :  { %v25492_v25 = vadd.f32 %v3243_v23, %v25477_v40  ;;  %v25495_v26 = vadd.f32 %v3284_v24, %v25479_v41  ;;  %v3245_v27 = vpop.f32.mrb[30].mxu0  ;;  %v3286_v28 = vpop.f32.mrb[30].mxu1  ;;  %5181 = vmatpush1.bf16.msra.mxu0 %v22963_v13  ;;  %5222 = vmatpush1.bf16.msra.mxu1 %v22966_v39  ;;  %v22986_v40 = vld [vmem:[#allocation6 + $0x1b0c] ss:$16 sps:$4 sm:$0xff]   ;;  %v22981_v41 = vld [vmem:[#allocation6 + $0x1b00] ss:$16 sps:$4 sm:$0xff]  }
 0x314   :  { %v3246_v31 = vpop.f32.mrb[31].mxu0  ;;  %v3287_v32 = vpop.f32.mrb[31].mxu1  ;;  %5182 = vmatprep.subr.bf16.mxu0 %v22971_v14  ;;  %5223 = vmatprep.subr.bf16.mxu1 %v22974_v15  ;;  %v23017_v13 = vld [vmem:[#allocation6 + $0x1bc0] ss:$16 sps:$4 sm:$0xff]   ;;  %v23020_v39 = vld [vmem:[#allocation6 + $0x1bc8] ss:$16 sps:$4 sm:$0xff]   ;;  %v5257_v27 = vpack.c.bf16 %v25440_v57, %v25440_v57 }
 0x315   :  { %v23025_v20 = vld [vmem:[#allocation6 + $0x1be4] ss:$16 sps:$4 sm:$0xff]   ;;  %v23028_v4 = vld [vmem:[#allocation6 + $0x1bec] ss:$16 sps:$4 sm:$0xff]   ;;  %v23038_v31 = vld [vmem:[#allocation6 + $0x1e28] ss:$16 sps:$4 sm:$0xff]  }
 0x316   :  { %v23031_v23 = vld [vmem:[#allocation6 + $0x1e04] ss:$16 sps:$4 sm:$0xff]   ;;  %v23034_v24 = vld [vmem:[#allocation6 + $0x1e0c] ss:$16 sps:$4 sm:$0xff]   ;;  %v23041_v57 = vld [vmem:[#allocation6 + $0x1e40] ss:$16 sps:$4 sm:$0xff]  }
 0x317   :  { %5183 = vmatpush1.bf16.msra.mxu0 %v22969_v29  ;;  %5224 = vmatpush1.bf16.msra.mxu1 %v22972_v30  ;;  %v23037_v28 = vld [vmem:[#allocation6 + $0x1e24] ss:$16 sps:$4 sm:$0xff]   ;;  %v23040_v29 = vld [vmem:[#allocation6 + $0x1e2c] ss:$16 sps:$4 sm:$0xff]   ;;  %v23035_v30 = vld [vmem:[#allocation6 + $0x1e20] ss:$16 sps:$4 sm:$0xff]  }
 0x318   :  { %5184 = vmatprep.subr.bf16.mxu0 %v22977_v18  ;;  %5225 = vmatprep.subr.bf16.mxu1 %v22980_v33  ;;  %v23043_v32 = vld [vmem:[#allocation6 + $0x1e44] ss:$16 sps:$4 sm:$0xff]   ;;  %v23046_v18 = vld [vmem:[#allocation6 + $0x1e4c] ss:$16 sps:$4 sm:$0xff]   ;;  %v23044_v33 = vld [vmem:[#allocation6 + $0x1e48] ss:$16 sps:$4 sm:$0xff]  }
 0x31b   :  { %5185 = vmatpush1.bf16.msra.mxu0 %v22975_v34  ;;  %5226 = vmatpush1.bf16.msra.mxu1 %v22978_v36  ;;  %v23049_v34 = vld [vmem:[#allocation6 + $0x1e64] ss:$16 sps:$4 sm:$0xff]   ;;  %v23052_v36 = vld [vmem:[#allocation6 + $0x1e6c] ss:$16 sps:$4 sm:$0xff]  }
 0x31c   :  { %5451 = vmatprep.subr.bf16.mxu0 %v22983_v37  ;;  %5492 = vmatprep.subr.bf16.mxu1 %v22986_v40  ;;  %v23047_v37 = vld [vmem:[#allocation6 + $0x1e60] ss:$16 sps:$4 sm:$0xff]   ;;  %v23050_v40 = vld [vmem:[#allocation6 + $0x1e68] ss:$16 sps:$4 sm:$0xff]  }
 0x31e   :  { %5203 = vmatmul.mubr.bf16.vlgmr.msra.gmra.mrb[56].mxu0 %v4976_v43  ;;  %5244 = vmatmul.mubr.bf16.vlgmr.msra.gmra.mrb[56].mxu1 %v4976_v43  ;;  %v23053_v43 = vld [vmem:[#allocation6 + $0x1e80] ss:$16 sps:$4 sm:$0xff]  }
 0x31f   :  { %5452 = vmatpush1.bf16.msra.mxu0 %v22981_v41  ;;  %5493 = vmatpush1.bf16.msra.mxu1 %v22984_v42  ;;  %v23055_v41 = vld [vmem:[#allocation6 + $0x1e84] ss:$16 sps:$4 sm:$0xff]   ;;  %v23058_v42 = vld [vmem:[#allocation6 + $0x1e8c] ss:$16 sps:$4 sm:$0xff]  }
 0x320   :  { %5453 = vmatprep.subr.bf16.mxu0 %v22989_v44  ;;  %5494 = vmatprep.subr.bf16.mxu1 %v22992_v45  ;;  %v23056_v44 = vld [vmem:[#allocation6 + $0x1e88] ss:$16 sps:$4 sm:$0xff]   ;;  %v23061_v45 = vld [vmem:[#allocation6 + $0x1ea4] ss:$16 sps:$4 sm:$0xff]  }
 0x321   :  { %5483 = vmatprep.mubr.bf16.mxu0 %v24510_v19  ;;  %5524 = vmatprep.mubr.bf16.mxu1 %v24510_v19 }
 0x323   :  { %5454 = vmatpush1.bf16.msra.mxu0 %v22987_v51  ;;  %5495 = vmatpush1.bf16.msra.mxu1 %v22990_v46  ;;  %v23064_v51 = vld [vmem:[#allocation6 + $0x1eac] ss:$16 sps:$4 sm:$0xff]   ;;  %v23059_v46 = vld [vmem:[#allocation6 + $0x1ea0] ss:$16 sps:$4 sm:$0xff]  }
 0x324   :  { %5455 = vmatprep.subr.bf16.mxu0 %v22995_v47  ;;  %5496 = vmatprep.subr.bf16.mxu1 %v22998_v48  ;;  %v23062_v47 = vld [vmem:[#allocation6 + $0x1ea8] ss:$16 sps:$4 sm:$0xff]   ;;  %v23067_v48 = vld [vmem:[#allocation6 + $0x1ec4] ss:$16 sps:$4 sm:$0xff]  }
 0x327   :  { %5456 = vmatpush1.bf16.msra.mxu0 %v22993_v38  ;;  %5497 = vmatpush1.bf16.msra.mxu1 %v22996_v49  ;;  %v23070_v38 = vld [vmem:[#allocation6 + $0x1ecc] ss:$16 sps:$4 sm:$0xff]  }
 0x328   :  { %5457 = vmatprep.subr.bf16.mxu0 %v23001_v50  ;;  %5498 = vmatprep.subr.bf16.mxu1 %v23004_v52 }
 0x32b   :  { %5458 = vmatpush1.bf16.msra.mxu0 %v22999_v53  ;;  %5499 = vmatpush1.bf16.msra.mxu1 %v23002_v54 }
 0x32c   :  { %5459 = vmatprep.subr.bf16.mxu0 %v23007_v55  ;;  %5500 = vmatprep.subr.bf16.mxu1 %v23010_v56 }
 0x32f   :  { %5460 = vmatpush1.bf16.msra.mxu0 %v23005_v3  ;;  %5501 = vmatpush1.bf16.msra.mxu1 %v23008_v58 }
 0x330   :  { %5461 = vmatprep.subr.bf16.mxu0 %v23013_v59  ;;  %5502 = vmatprep.subr.bf16.mxu1 %v23016_v60  ;;  %v23065_v60 = vld [vmem:[#allocation6 + $0x1ec0] ss:$16 sps:$4 sm:$0xff]  }
 0x331   :  { %v3518_v1 = vpop.f32.mrb[32].mxu0  ;;  %v3559_v2 = vpop.f32.mrb[32].mxu1 }
 0x332   :  { %v25502_v5 = vadd.f32 %v3518_v1, %v25486_v17  ;;  %v25505_v6 = vadd.f32 %v3559_v2, %v25489_v21  ;;  %v3520_v7 = vpop.f32.mrb[33].mxu0  ;;  %v3561_v35 = vpop.f32.mrb[33].mxu1  ;;  %v23023_v17 = vld [vmem:[#allocation6 + $0x1be0] ss:$16 sps:$4 sm:$0xff]   ;;  %v23026_v21 = vld [vmem:[#allocation6 + $0x1be8] ss:$16 sps:$4 sm:$0xff]  }
 0x333   :  { %v25508_v8 = vadd.f32 %v3520_v7, %v25492_v25  ;;  %v25511_v10 = vadd.f32 %v3561_v35, %v25495_v26  ;;  %v3522_v11 = vpop.f32.mrb[34].mxu0  ;;  %v3563_v12 = vpop.f32.mrb[34].mxu1  ;;  %5462 = vmatpush1.bf16.msra.mxu0 %v23011_v61  ;;  %5503 = vmatpush1.bf16.msra.mxu1 %v23014_v62  ;;  %v23029_v25 = vld [vmem:[#allocation6 + $0x1e00] ss:$16 sps:$4 sm:$0xff]   ;;  %v23032_v26 = vld [vmem:[#allocation6 + $0x1e08] ss:$16 sps:$4 sm:$0xff]  }
 0x334   :  { %v3523_v14 = vpop.f32.mrb[35].mxu0  ;;  %v3564_v15 = vpop.f32.mrb[35].mxu1  ;;  %5463 = vmatprep.subr.bf16.mxu0 %v23019_v22  ;;  %5504 = vmatprep.subr.bf16.mxu1 %v23022_v63  ;;  %v23068_v61 = vld [vmem:[#allocation6 + $0x1ec8] ss:$16 sps:$4 sm:$0xff]   ;;  %v23073_v63 = vld [vmem:[#allocation6 + $0x1ee4] ss:$16 sps:$4 sm:$0xff]  }
 0x335   :  { %v23076_v1 = vld [vmem:[#allocation6 + $0x1eec] ss:$16 sps:$4 sm:$0xff]   ;;  %v23071_v2 = vld [vmem:[#allocation6 + $0x1ee0] ss:$16 sps:$4 sm:$0xff]   ;;  %v23085_v11 = vld [vmem:[#allocation6 + $0x2124] ss:$16 sps:$4 sm:$0xff]  }
 0x336   :  { %v23082_v7 = vld [vmem:[#allocation6 + $0x210c] ss:$16 sps:$4 sm:$0xff]   ;;  %v23077_v35 = vld [vmem:[#allocation6 + $0x2100] ss:$16 sps:$4 sm:$0xff]   ;;  %v23091_v14 = vld [vmem:[#allocation6 + $0x2144] ss:$16 sps:$4 sm:$0xff]  }
 0x337   :  { %5464 = vmatpush1.bf16.msra.mxu0 %v23017_v13  ;;  %5505 = vmatpush1.bf16.msra.mxu1 %v23020_v39  ;;  %v23088_v12 = vld [vmem:[#allocation6 + $0x212c] ss:$16 sps:$4 sm:$0xff]   ;;  %v23083_v13 = vld [vmem:[#allocation6 + $0x2120] ss:$16 sps:$4 sm:$0xff]   ;;  %v23086_v39 = vld [vmem:[#allocation6 + $0x2128] ss:$16 sps:$4 sm:$0xff]  }
 0x338   :  { %5465 = vmatprep.subr.bf16.mxu0 %v23025_v20  ;;  %5506 = vmatprep.subr.bf16.mxu1 %v23028_v4  ;;  %v23094_v15 = vld [vmem:[#allocation6 + $0x214c] ss:$16 sps:$4 sm:$0xff]   ;;  %v23092_v20 = vld [vmem:[#allocation6 + $0x2148] ss:$16 sps:$4 sm:$0xff]   ;;  %v23097_v4 = vld [vmem:[#allocation6 + $0x2164] ss:$16 sps:$4 sm:$0xff]  }
 0x33b   :  { %5466 = vmatpush1.bf16.msra.mxu0 %v23023_v17  ;;  %5507 = vmatpush1.bf16.msra.mxu1 %v23026_v21  ;;  %v23100_v17 = vld [vmem:[#allocation6 + $0x216c] ss:$16 sps:$4 sm:$0xff]   ;;  %v23095_v21 = vld [vmem:[#allocation6 + $0x2160] ss:$16 sps:$4 sm:$0xff]  }
 0x33c   :  { %5732 = vmatprep.subr.bf16.mxu0 %v23031_v23  ;;  %5773 = vmatprep.subr.bf16.mxu1 %v23034_v24  ;;  %v23098_v23 = vld [vmem:[#allocation6 + $0x2168] ss:$16 sps:$4 sm:$0xff]   ;;  %v23103_v24 = vld [vmem:[#allocation6 + $0x2184] ss:$16 sps:$4 sm:$0xff]  }
 0x33e   :  { %5484 = vmatmul.mubr.bf16.vlgmr.msra.gmra.mrb[60].mxu0 %v5257_v27  ;;  %5525 = vmatmul.mubr.bf16.vlgmr.msra.gmra.mrb[60].mxu1 %v5257_v27  ;;  %v23104_v27 = vld [vmem:[#allocation6 + $0x2188] ss:$16 sps:$4 sm:$0xff]  }
 0x33f   :  { %5733 = vmatpush1.bf16.msra.mxu0 %v23029_v25  ;;  %5774 = vmatpush1.bf16.msra.mxu1 %v23032_v26  ;;  %v23106_v25 = vld [vmem:[#allocation6 + $0x218c] ss:$16 sps:$4 sm:$0xff]   ;;  %v23101_v26 = vld [vmem:[#allocation6 + $0x2180] ss:$16 sps:$4 sm:$0xff]  }
 0x340   :  { %5734 = vmatprep.subr.bf16.mxu0 %v23037_v28  ;;  %5775 = vmatprep.subr.bf16.mxu1 %v23040_v29  ;;  %v23109_v28 = vld [vmem:[#allocation6 + $0x21a4] ss:$16 sps:$4 sm:$0xff]   ;;  %v23112_v29 = vld [vmem:[#allocation6 + $0x21ac] ss:$16 sps:$4 sm:$0xff]  }
 0x341   :  { %5764 = vmatprep.mubr.bf16.mxu0 %v24510_v19  ;;  %5805 = vmatprep.mubr.bf16.mxu1 %v24510_v19 }
 0x343   :  { %5735 = vmatpush1.bf16.msra.mxu0 %v23035_v30  ;;  %5776 = vmatpush1.bf16.msra.mxu1 %v23038_v31  ;;  %v23107_v30 = vld [vmem:[#allocation6 + $0x21a0] ss:$16 sps:$4 sm:$0xff]   ;;  %v23110_v31 = vld [vmem:[#allocation6 + $0x21a8] ss:$16 sps:$4 sm:$0xff]  }
 0x344   :  { %5736 = vmatprep.subr.bf16.mxu0 %v23043_v32  ;;  %5777 = vmatprep.subr.bf16.mxu1 %v23046_v18  ;;  %v23115_v32 = vld [vmem:[#allocation6 + $0x21c4] ss:$16 sps:$4 sm:$0xff]   ;;  %v23118_v18 = vld [vmem:[#allocation6 + $0x21cc] ss:$16 sps:$4 sm:$0xff]  }
 0x347   :  { %5737 = vmatpush1.bf16.msra.mxu0 %v23041_v57  ;;  %5778 = vmatpush1.bf16.msra.mxu1 %v23044_v33 }
 0x348   :  { %5738 = vmatprep.subr.bf16.mxu0 %v23049_v34  ;;  %5779 = vmatprep.subr.bf16.mxu1 %v23052_v36 }
 0x34b   :  { %5739 = vmatpush1.bf16.msra.mxu0 %v23047_v37  ;;  %5780 = vmatpush1.bf16.msra.mxu1 %v23050_v40 }
 0x34c   :  { %5740 = vmatprep.subr.bf16.mxu0 %v23055_v41  ;;  %5781 = vmatprep.subr.bf16.mxu1 %v23058_v42  ;;  %v23113_v41 = vld [vmem:[#allocation6 + $0x21c0] ss:$16 sps:$4 sm:$0xff]  }
 0x34f   :  { %5741 = vmatpush1.bf16.msra.mxu0 %v23053_v43  ;;  %5782 = vmatpush1.bf16.msra.mxu1 %v23056_v44 }
 0x350   :  { %5742 = vmatprep.subr.bf16.mxu0 %v23061_v45  ;;  %5783 = vmatprep.subr.bf16.mxu1 %v23064_v51  ;;  %v23116_v51 = vld [vmem:[#allocation6 + $0x21c8] ss:$16 sps:$4 sm:$0xff]  }
 0x351   :  { %v3799_v49 = vpop.f32.mrb[36].mxu0  ;;  %v3840_v50 = vpop.f32.mrb[36].mxu1 }
 0x352   :  { %v25518_v52 = vadd.f32 %v3799_v49, %v25502_v5  ;;  %v25521_v53 = vadd.f32 %v3840_v50, %v25505_v6  ;;  %v3801_v54 = vpop.f32.mrb[37].mxu0  ;;  %v3842_v55 = vpop.f32.mrb[37].mxu1  ;;  %v23074_v5 = vld [vmem:[#allocation6 + $0x1ee8] ss:$16 sps:$4 sm:$0xff]   ;;  %v23079_v6 = vld [vmem:[#allocation6 + $0x2104] ss:$16 sps:$4 sm:$0xff]  }
 0x353   :  { %v25524_v56 = vadd.f32 %v3801_v54, %v25508_v8  ;;  %v25527_v3 = vadd.f32 %v3842_v55, %v25511_v10  ;;  %v3803_v58 = vpop.f32.mrb[38].mxu0  ;;  %v3844_v59 = vpop.f32.mrb[38].mxu1  ;;  %5743 = vmatpush1.bf16.msra.mxu0 %v23059_v46  ;;  %5784 = vmatpush1.bf16.msra.mxu1 %v23062_v47  ;;  %v23080_v8 = vld [vmem:[#allocation6 + $0x2108] ss:$16 sps:$4 sm:$0xff]   ;;  %v5538_v10 = vpack.c.bf16 %v25446_v9, %v25446_v9  ;;  %v23089_v9 = vld [vmem:[#allocation6 + $0x2140] ss:$16 sps:$4 sm:$0xff]  }
 0x354   :  { %v3804_v62 = vpop.f32.mrb[39].mxu0  ;;  %v3845_v22 = vpop.f32.mrb[39].mxu1  ;;  %5744 = vmatprep.subr.bf16.mxu0 %v23067_v48  ;;  %5785 = vmatprep.subr.bf16.mxu1 %v23070_v38  ;;  %v23121_v46 = vld [vmem:[#allocation6 + $0x21e4] ss:$16 sps:$4 sm:$0xff]   ;;  %v23124_v38 = vld [vmem:[#allocation6 + $0x21ec] ss:$16 sps:$4 sm:$0xff]  }
 0x355   :  { %v6107_v49 = vld [vmem:[#allocation2 + $0xc8] sm:$0xff]  ;;  %v6108_v50 = vld [vmem:[#allocation2 + $0xf8] sm:$0xff]  ;;  %v23119_v54 = vld [vmem:[#allocation6 + $0x21e0] ss:$16 sps:$4 sm:$0xff]   ;;  %v5819_v62 = vpack.c.bf16 %v25451_v16, %v25451_v16 }
 0x356   :  { %v23122_v55 = vld [vmem:[#allocation6 + $0x21e8] ss:$16 sps:$4 sm:$0xff]  }
 0x357   :  { %5745 = vmatpush1.bf16.msra.mxu0 %v23065_v60  ;;  %5786 = vmatpush1.bf16.msra.mxu1 %v23068_v61  ;;  %v6109_v58 = vld [vmem:[#allocation2 + $0x128] sm:$0xff]  ;;  %v6110_v59 = vld [vmem:[#allocation2 + $0x158] sm:$0xf]  ;;  %v6489_v60 = vld [vmem:[#allocation2 + $0x140] sm:$0xff] }
 0x358   :  { %5746 = vmatprep.subr.bf16.mxu0 %v23073_v63  ;;  %5787 = vmatprep.subr.bf16.mxu1 %v23076_v1  ;;  %v6490_v61 = vld [vmem:[#allocation2 + $0x170] sm:$0xf]  ;;  %v21699_v22 = vpack.c.bf16 %v6110_v59, %v6109_v58  ;;  %v6099_v1 = vld [vmem:[#allocation2 + $0x8] sm:$0xff]  ;;  %v6870_v58 = vld [vmem:[#allocation2 + $0x218] sm:$0xf] }
 0x359   :  { %v21719_v63 = vpack.c.bf16 %v6490_v61, %v6489_v60 }
 0x35b   :  { %5747 = vmatpush1.bf16.msra.mxu0 %v23071_v2  ;;  %5788 = vmatpush1.bf16.msra.mxu1 %v23074_v5  ;;  %v6100_v2 = vld [vmem:[#allocation2 + $0x38] sm:$0xff]  ;;  %v6103_v5 = vld [vmem:[#allocation2 + $0x20] sm:$0xff] }
 0x35c   :  { %6013 = vmatprep.subr.bf16.mxu0 %v23079_v6  ;;  %6054 = vmatprep.subr.bf16.mxu1 %v23082_v7  ;;  %v6104_v6 = vld [vmem:[#allocation2 + $0x50] sm:$0xff]  ;;  %v21705_v7 = vpack.c.bf16 %v6100_v2, %v6099_v1  ;;  %v7085_v1 = vld [vmem:[#allocation2 + $0x200] sm:$0xff] }
 0x35d   :  { %v21725_v16 = vpack.c.bf16 %v6104_v6, %v6103_v5  ;;  %v7086_v2 = vld [vmem:[#allocation2 + $0x230] sm:$0xf] }
 0x35e   :  { %5765 = vmatmul.mubr.bf16.vlgmr.msra.gmra.mrb[64].mxu0 %v5538_v10  ;;  %5806 = vmatmul.mubr.bf16.vlgmr.msra.gmra.mrb[64].mxu1 %v5538_v10  ;;  %v6102_v10 = vld [vmem:[#allocation2 + $0x98] sm:$0xf] }
 0x35f   :  { %6014 = vmatpush1.bf16.msra.mxu0 %v23077_v35  ;;  %6055 = vmatpush1.bf16.msra.mxu1 %v23080_v8  ;;  %v25554_v35 = vld [vmem:[%s27310_s0 + $0x8] sm:$0xff] }
 0x360   :  { %6015 = vmatprep.subr.bf16.mxu0 %v23085_v11  ;;  %6056 = vmatprep.subr.bf16.mxu1 %v23088_v12  ;;  %v6101_v8 = vld [vmem:[#allocation2 + $0x68] sm:$0xff]  ;;  %v6105_v11 = vld [vmem:[#allocation2 + $0x80] sm:$0xff]  ;;  %v6106_v12 = vld [vmem:[#allocation2 + $0xb0] sm:$0xf] }
 0x361   :  { %6045 = vmatprep.mubr.bf16.mxu0 %v24510_v19  ;;  %6086 = vmatprep.mubr.bf16.mxu1 %v24510_v19 }
 0x363   :  { %6016 = vmatpush1.bf16.msra.mxu0 %v23083_v13  ;;  %6057 = vmatpush1.bf16.msra.mxu1 %v23086_v39  ;;  %v21709_v13 = vpack.c.bf16 %v6102_v10, %v6101_v8  ;;  %v21729_v39 = vpack.c.bf16 %v6106_v12, %v6105_v11  ;;  %v24323_v8 = vld [vmem:[%s27310_s0] sm:$0xff] }
 0x364   :  { %6017 = vmatprep.subr.bf16.mxu0 %v23091_v14  ;;  %6058 = vmatprep.subr.bf16.mxu1 %v23094_v15  ;;  %v6867_v14 = vld [vmem:[#allocation2 + $0x188] sm:$0xff]  ;;  %v25567_v15 = vld [vmem:[%s27310_s0 + $0x10] sm:$0xff] }
 0x367   :  { %6018 = vmatpush1.bf16.msra.mxu0 %v23089_v9  ;;  %6059 = vmatpush1.bf16.msra.mxu1 %v23092_v20  ;;  %v6868_v9 = vld [vmem:[#allocation2 + $0x1b8] sm:$0xff]  ;;  %v7083_v20 = vld [vmem:[#allocation2 + $0x1a0] sm:$0xff] }
 0x368   :  { %6019 = vmatprep.subr.bf16.mxu0 %v23097_v4  ;;  %6060 = vmatprep.subr.bf16.mxu1 %v23100_v17  ;;  %v7084_v4 = vld [vmem:[#allocation2 + $0x1d0] sm:$0xff]  ;;  %v25576_v17 = vld [vmem:[%s27310_s0 + $0x18] sm:$0xff] }
 0x36b   :  { %6020 = vmatpush1.bf16.msra.mxu0 %v23095_v21  ;;  %6061 = vmatpush1.bf16.msra.mxu1 %v23098_v23  ;;  %v25586_v21 = vpack.c.bf16 %v6868_v9, %v6867_v14  ;;  %v25588_v23 = vpack.c.bf16 %v7084_v4, %v7083_v20  ;;  %v7300_v14 = vld [vmem:[#allocation2 + $0x278] sm:$0xff]  ;;  %v7515_v9 = vld [vmem:[#allocation2 + $0x260] sm:$0xff]  ;;  %v7516_v20 = vld [vmem:[#allocation2 + $0x290] sm:$0xff] }
 0x36c   :  { %6021 = vmatprep.subr.bf16.mxu0 %v23103_v24  ;;  %6062 = vmatprep.subr.bf16.mxu1 %v23106_v25  ;;  %v25593_v24 = vld [vmem:[%s27310_s0 + $0x20] sm:$0xff]  ;;  %v25602_v25 = vld [vmem:[%s27310_s0 + $0x28] sm:$0xff]  ;;  %v25820_v4 = vpack.c.bf16 %v7516_v20, %v7515_v9 }
 0x36f   :  { %6022 = vmatpush1.bf16.msra.mxu0 %v23101_v26  ;;  %6063 = vmatpush1.bf16.msra.mxu1 %v23104_v27  ;;  %v25617_v26 = vld [vmem:[%s27310_s0 + $0x30] sm:$0xff]  ;;  %v25626_v27 = vld [vmem:[%s27310_s0 + $0x38] sm:$0xff] }
 0x370   :  { %6023 = vmatprep.subr.bf16.mxu0 %v23109_v28  ;;  %6064 = vmatprep.subr.bf16.mxu1 %v23112_v29 }
 0x371   :  { %v4080_v57 = vpop.f32.mrb[40].mxu0  ;;  %v4121_v33 = vpop.f32.mrb[40].mxu1 }
 0x372   :  { %v25534_v34 = vadd.f32 %v4080_v57, %v25518_v52  ;;  %v25537_v36 = vadd.f32 %v4121_v33, %v25521_v53  ;;  %v4082_v37 = vpop.f32.mrb[41].mxu0  ;;  %v4123_v40 = vpop.f32.mrb[41].mxu1  ;;  %v6487_v52 = vld [vmem:[#allocation2 + $0xe0] sm:$0xff]  ;;  %v6488_v53 = vld [vmem:[#allocation2 + $0x110] sm:$0xff] }
 0x373   :  { %v25540_v42 = vadd.f32 %v4082_v37, %v25524_v56  ;;  %v25543_v43 = vadd.f32 %v4123_v40, %v25527_v3  ;;  %v4084_v44 = vpop.f32.mrb[42].mxu0  ;;  %v4125_v45 = vpop.f32.mrb[42].mxu1  ;;  %6024 = vmatpush1.bf16.msra.mxu0 %v23107_v30  ;;  %6065 = vmatpush1.bf16.msra.mxu1 %v23110_v31  ;;  %v21695_v56 = vpack.c.bf16 %v6108_v50, %v6107_v49  ;;  %v25637_v57 = vld [vmem:[%s27310_s0 + $0x40] sm:$0xff]  ;;  %v25652_v40 = vld [vmem:[%s27310_s0 + $0x48] sm:$0xff]  ;;  %v25733_v49 = vld [vmem:[%s27310_s0 + $0x90] sm:$0xff] }
 0x374   :  { %v4085_v47 = vpop.f32.mrb[43].mxu0  ;;  %v4126_v48 = vpop.f32.mrb[43].mxu1  ;;  %6025 = vmatprep.subr.bf16.mxu0 %v23115_v32  ;;  %6066 = vmatprep.subr.bf16.mxu1 %v23118_v18  ;;  %v21715_v3 = vpack.c.bf16 %v6488_v53, %v6487_v52  ;;  %v25679_v45 = vld [vmem:[%s27310_s0 + $0x60] sm:$0xff]  ;;  %v25742_v50 = vld [vmem:[%s27310_s0 + $0x98] sm:$0xff]  ;;  %v25760_v53 = vld [vmem:[%s27310_s0 + $0xa8] sm:$0xff] }
 0x375   :  { %v25706_v47 = vld [vmem:[%s27310_s0 + $0x78] sm:$0xff]  ;;  %v25715_v48 = vld [vmem:[%s27310_s0 + $0x80] sm:$0xff] }
 0x376   :  { %v25751_v52 = vld [vmem:[%s27310_s0 + $0xa0] sm:$0xff] }
 0x377   :  { %6026 = vmatpush1.bf16.msra.mxu0 %v23113_v41  ;;  %6067 = vmatpush1.bf16.msra.mxu1 %v23116_v51  ;;  %v25688_v51 = vld [vmem:[%s27310_s0 + $0x68] sm:$0xff] }
 0x378   :  { %6027 = vmatprep.subr.bf16.mxu0 %v23121_v46  ;;  %6068 = vmatprep.subr.bf16.mxu1 %v23124_v38  ;;  %v25697_v46 = vld [vmem:[%s27310_s0 + $0x70] sm:$0xff]  ;;  %v25724_v38 = vld [vmem:[%s27310_s0 + $0x88] sm:$0xff] }
 0x37b   :  { %6028 = vmatpush1.bf16.msra.mxu0 %v23119_v54  ;;  %6069 = vmatpush1.bf16.msra.mxu1 %v23122_v55  ;;  %v25769_v54 = vld [vmem:[%s27310_s0 + $0xb0] sm:$0xff]  ;;  %v25778_v55 = vld [vmem:[%s27310_s0 + $0xb8] sm:$0xff] }
 0x37c   :  { %21696 = vmatprep.subr.bf16.mxu0 %v21695_v56  ;;  %21716 = vmatprep.subr.bf16.mxu1 %v21715_v3 }
 0x37e   :  { %6046 = vmatmul.mubr.bf16.vlgmr.msra.gmra.mrb[68].mxu0 %v5819_v62  ;;  %6087 = vmatmul.mubr.bf16.vlgmr.msra.gmra.mrb[68].mxu1 %v5819_v62 }
 0x37f   :  { %21698 = vmatpush3.bf16.msra.mxu0 %v21695_v56  ;;  %21718 = vmatpush3.bf16.msra.mxu1 %v21715_v3 }
 0x380   :  { %21701 = vmatprep.subr.msk.bf16.mxu0 %vm24623_vm2, %v21699_v22  ;;  %21721 = vmatprep.subr.msk.bf16.mxu1 %vm24623_vm2, %v21719_v63 }
 0x381   :  { %20723 = vmatprep.mubr.msk.f32.mxu0 %vm165_vm3, %v25554_v35  ;;  %20811 = vmatprep.mubr.msk.f32.mxu1 %vm165_vm3, %v25554_v35 }
 0x383   :  { %21704 = vmatpush3.bf16.msk.msra.mxu0 %vm24623_vm2, %v21699_v22  ;;  %21724 = vmatpush3.bf16.msk.msra.mxu1 %vm24623_vm2, %v21719_v63  ;;  %v25791_v22 = vld [vmem:[%s27310_s0 + $0xc0] sm:$0xff]  ;;  %v6869_v63 = vld [vmem:[#allocation2 + $0x1e8] sm:$0xff] }
 0x384   :  { %21706 = vmatprep.subr.bf16.mxu0 %v21705_v7  ;;  %21726 = vmatprep.subr.bf16.mxu1 %v21725_v16  ;;  %v21739_v12 = vpack.c.bf16 %v6870_v58, %v6869_v63  ;;  %v7948_v63 = vld [vmem:[#allocation2 + $0x350] sm:$0xff] }
 0x386   :  { %20724 = vmatmul.mubr.msk.f32.vlgmr.msra.gmra.mrb[72].mxu0 %vm165_vm3, %v25567_v15  ;;  %20812 = vmatmul.mubr.msk.f32.vlgmr.msra.gmra.mrb[72].mxu1 %vm165_vm3, %v25567_v15 }
 0x387   :  { %21708 = vmatpush3.bf16.msra.mxu0 %v21705_v7  ;;  %21728 = vmatpush3.bf16.msra.mxu1 %v21725_v16 }
 0x388   :  { %20726 = vmatprep.mubr.msk.f32.mxu0 %vm165_vm3, %v25576_v17  ;;  %20814 = vmatprep.mubr.msk.f32.mxu1 %vm165_vm3, %v25576_v17 }
 0x389   :  { %21711 = vmatprep.subr.msk.bf16.mxu0 %vm24623_vm2, %v21709_v13  ;;  %21731 = vmatprep.subr.msk.bf16.mxu1 %vm24623_vm2, %v21729_v39 }
 0x38a   :  { %20727 = vmatmul.mubr.msk.f32.gmra.mrb[74].mxu0 %vm165_vm3, %v25593_v24  ;;  %20815 = vmatmul.mubr.msk.f32.gmra.mrb[74].mxu1 %vm165_vm3, %v25593_v24 }
 0x38b   :  { %20729 = vmatprep.mubr.msk.f32.mxu0 %vm165_vm3, %v25602_v25  ;;  %20817 = vmatprep.mubr.msk.f32.mxu1 %vm165_vm3, %v25602_v25 }
 0x38c   :  { %21714 = vmatpush3.bf16.msk.msra.mxu0 %vm24623_vm2, %v21709_v13  ;;  %21734 = vmatpush3.bf16.msk.msra.mxu1 %vm24623_vm2, %v21729_v39  ;;  %v21749_v13 = vpack.c.bf16 %v7086_v2, %v7085_v1  ;;  %v7299_v39 = vld [vmem:[#allocation2 + $0x248] sm:$0xff] }
 0x38d   :  { %21736 = vmatprep.subr.bf16.mxu0 %v25586_v21  ;;  %21746 = vmatprep.subr.bf16.mxu1 %v25588_v23 }
 0x38e   :  { %20730 = vmatmul.mubr.msk.f32.gmra.mrb[76].mxu0 %vm165_vm3, %v25617_v26  ;;  %20818 = vmatmul.mubr.msk.f32.gmra.mrb[76].mxu1 %vm165_vm3, %v25617_v26 }
 0x38f   :  { %20732 = vmatprep.mubr.msk.f32.mxu0 %vm165_vm3, %v25626_v27  ;;  %20820 = vmatprep.mubr.msk.f32.mxu1 %vm165_vm3, %v25626_v27 }
 0x391   :  { %v4361_v28 = vpop.f32.mrb[44].mxu0  ;;  %v4402_v29 = vpop.f32.mrb[44].mxu1 }
 0x392   :  { %v4409_v30 = vadd.f32 %v4361_v28, %v25534_v34  ;;  %v4411_v31 = vadd.f32 %v4402_v29, %v25537_v36  ;;  %v4363_v32 = vpop.f32.mrb[45].mxu0  ;;  %v4404_v18 = vpop.f32.mrb[45].mxu1  ;;  %20733 = vmatmul.mubr.msk.f32.gmra.mrb[78].mxu0 %vm165_vm3, %v25637_v57  ;;  %20821 = vmatmul.mubr.msk.f32.gmra.mrb[78].mxu1 %vm165_vm3, %v25637_v57 }
 0x393   :  { %v25644_v33 = vadd.f32 %v4363_v32, %v25540_v42  ;;  %v25647_v34 = vadd.f32 %v4404_v18, %v25543_v43  ;;  %v4365_v36 = vpop.f32.mrb[46].mxu0  ;;  %v4406_v37 = vpop.f32.mrb[46].mxu1  ;;  %20735 = vmatprep.mubr.msk.f32.mxu0 %vm165_vm3, %v25652_v40  ;;  %20823 = vmatprep.mubr.msk.f32.mxu1 %vm165_vm3, %v25652_v40  ;;  %v25661_v42 = vld [vmem:[%s27310_s0 + $0x50] sm:$0xff]  ;;  %v25670_v43 = vld [vmem:[%s27310_s0 + $0x58] sm:$0xff] }
 0x394   :  { %v4366_v41 = vpop.f32.mrb[47].mxu0  ;;  %v4407_v44 = vpop.f32.mrb[47].mxu1 }
 0x395   :  { %v7301_v41 = vld [vmem:[#allocation2 + $0x2a8] sm:$0xff]  ;;  %v7302_v44 = vld [vmem:[#allocation2 + $0x2d8] sm:$0xf] }
 0x396   :  { %20736 = vmatmul.mubr.msk.f32.gmra.mrb[80].mxu0 %vm165_vm3, %v25661_v42  ;;  %20824 = vmatmul.mubr.msk.f32.gmra.mrb[80].mxu1 %vm165_vm3, %v25661_v42  ;;  %v21759_v58 = vpack.c.bf16 %v7302_v44, %v7301_v41 }
 0x397   :  { %20738 = vmatprep.mubr.msk.f32.mxu0 %vm165_vm3, %v25670_v43  ;;  %20826 = vmatprep.mubr.msk.f32.mxu1 %vm165_vm3, %v25670_v43 }
 0x39a   :  { %20739 = vmatmul.mubr.msk.f32.gmra.mrb[82].mxu0 %vm165_vm3, %v25679_v45  ;;  %20827 = vmatmul.mubr.msk.f32.gmra.mrb[82].mxu1 %vm165_vm3, %v25679_v45 }
 0x39b   :  { %20741 = vmatprep.mubr.msk.f32.mxu0 %vm165_vm3, %v25688_v51  ;;  %20829 = vmatprep.mubr.msk.f32.mxu1 %vm165_vm3, %v25688_v51 }
 0x39e   :  { %20742 = vmatmul.mubr.msk.f32.gmra.mrb[84].mxu0 %vm165_vm3, %v25697_v46  ;;  %20830 = vmatmul.mubr.msk.f32.gmra.mrb[84].mxu1 %vm165_vm3, %v25697_v46 }
 0x39f   :  { %20744 = vmatprep.mubr.msk.f32.mxu0 %vm165_vm3, %v25706_v47  ;;  %20832 = vmatprep.mubr.msk.f32.mxu1 %vm165_vm3, %v25706_v47 }
 0x3a2   :  { %20745 = vmatmul.mubr.msk.f32.gmra.mrb[86].mxu0 %vm165_vm3, %v25715_v48  ;;  %20833 = vmatmul.mubr.msk.f32.gmra.mrb[86].mxu1 %vm165_vm3, %v25715_v48 }
 0x3a3   :  { %20747 = vmatprep.mubr.msk.f32.mxu0 %vm165_vm3, %v25724_v38  ;;  %20835 = vmatprep.mubr.msk.f32.mxu1 %vm165_vm3, %v25724_v38 }
 0x3a6   :  { %20748 = vmatmul.mubr.msk.f32.gmra.mrb[88].mxu0 %vm165_vm3, %v25733_v49  ;;  %20836 = vmatmul.mubr.msk.f32.gmra.mrb[88].mxu1 %vm165_vm3, %v25733_v49 }
 0x3a7   :  { %20750 = vmatprep.mubr.msk.f32.mxu0 %vm165_vm3, %v25742_v50  ;;  %20838 = vmatprep.mubr.msk.f32.mxu1 %vm165_vm3, %v25742_v50 }
 0x3aa   :  { %20751 = vmatmul.mubr.msk.f32.gmra.mrb[90].mxu0 %vm165_vm3, %v25751_v52  ;;  %20839 = vmatmul.mubr.msk.f32.gmra.mrb[90].mxu1 %vm165_vm3, %v25751_v52 }
 0x3ab   :  { %20753 = vmatprep.mubr.msk.f32.mxu0 %vm165_vm3, %v25760_v53  ;;  %20841 = vmatprep.mubr.msk.f32.mxu1 %vm165_vm3, %v25760_v53 }
 0x3ae   :  { %20754 = vmatmul.mubr.msk.f32.gmra.mrb[92].mxu0 %vm165_vm3, %v25769_v54  ;;  %20842 = vmatmul.mubr.msk.f32.gmra.mrb[92].mxu1 %vm165_vm3, %v25769_v54 }
 0x3af   :  { %20756 = vmatprep.mubr.msk.f32.mxu0 %vm165_vm3, %v25778_v55  ;;  %20844 = vmatprep.mubr.msk.f32.mxu1 %vm165_vm3, %v25778_v55 }
 0x3b1   :  { %v4642_v56 = vpop.f32.mrb[48].mxu0  ;;  %v4683_v3 = vpop.f32.mrb[48].mxu1 }
 0x3b2   :  { %v25784_v59 = vadd.f32 %v4642_v56, %v4409_v30  ;;  %v25786_v60 = vadd.f32 %v4683_v3, %v4411_v31  ;;  %v4644_v61 = vpop.f32.mrb[49].mxu0  ;;  %v4685_v62 = vpop.f32.mrb[49].mxu1  ;;  %20757 = vmatmul.mubr.msk.f32.gmra.mrb[94].mxu0 %vm165_vm3, %v25791_v22  ;;  %20845 = vmatmul.mubr.msk.f32.gmra.mrb[94].mxu1 %vm165_vm3, %v25791_v22  ;;  %v7517_v56 = vld [vmem:[#allocation2 + $0x2c0] sm:$0xff]  ;;  %v7518_v3 = vld [vmem:[#allocation2 + $0x2f0] sm:$0xf] }
 0x3b3   :  { %v4691_v5 = vadd.f32 %v4644_v61, %v25644_v33  ;;  %v4693_v6 = vadd.f32 %v4685_v62, %v25647_v34  ;;  %v4646_v7 = vpop.f32.mrb[50].mxu0  ;;  %v4687_v16 = vpop.f32.mrb[50].mxu1  ;;  %20767 = vmatprep.mubr.msk.f32.mxu0 %vm165_vm3, %v24323_v8  ;;  %20855 = vmatprep.mubr.msk.f32.mxu1 %vm165_vm3, %v24323_v8  ;;  %v7732_v61 = vld [vmem:[#allocation2 + $0x338] sm:$0xff]  ;;  %v7947_v62 = vld [vmem:[#allocation2 + $0x320] sm:$0xff] }
 0x3b4   :  { %v4647_v10 = vpop.f32.mrb[51].mxu0  ;;  %v4688_v11 = vpop.f32.mrb[51].mxu1  ;;  %v25942_v1 = vpack.c.bf16 %v7948_v63, %v7947_v62 }
 0x3b6   :  { %20768 = vmatmul.mubr.msk.f32.vlgmr.msra.gmra.mrb[72].mxu0 %vm165_vm3, %v25554_v35  ;;  %20856 = vmatmul.mubr.msk.f32.vlgmr.msra.gmra.mrb[72].mxu1 %vm165_vm3, %v25554_v35  ;;  %v25818_v35 = vpack.c.bf16 %v7300_v14, %v7299_v39 }
 0x3b7   :  { %21738 = vmatpush3.bf16.msra.mxu0 %v25586_v21  ;;  %21748 = vmatpush3.bf16.msra.mxu1 %v25588_v23 }
 0x3b8   :  { %20770 = vmatprep.mubr.msk.f32.mxu0 %vm165_vm3, %v25567_v15  ;;  %20858 = vmatprep.mubr.msk.f32.mxu1 %vm165_vm3, %v25567_v15 }
 0x3b9   :  { %21741 = vmatprep.subr.msk.bf16.mxu0 %vm24623_vm2, %v21739_v12  ;;  %21751 = vmatprep.subr.msk.bf16.mxu1 %vm24623_vm2, %v21749_v13 }
 0x3ba   :  { %20771 = vmatmul.mubr.msk.f32.gmra.mrb[74].mxu0 %vm165_vm3, %v25576_v17  ;;  %20859 = vmatmul.mubr.msk.f32.gmra.mrb[74].mxu1 %vm165_vm3, %v25576_v17 }
 0x3bb   :  { %20773 = vmatprep.mubr.msk.f32.mxu0 %vm165_vm3, %v25593_v24  ;;  %20861 = vmatprep.mubr.msk.f32.mxu1 %vm165_vm3, %v25593_v24 }
 0x3bc   :  { %21744 = vmatpush3.bf16.msk.msra.mxu0 %vm24623_vm2, %v21739_v12  ;;  %21754 = vmatpush3.bf16.msk.msra.mxu1 %vm24623_vm2, %v21749_v13 }
 0x3bd   :  { %21756 = vmatprep.subr.bf16.mxu0 %v25818_v35  ;;  %21766 = vmatprep.subr.bf16.mxu1 %v25820_v4 }
 0x3be   :  { %20774 = vmatmul.mubr.msk.f32.gmra.mrb[76].mxu0 %vm165_vm3, %v25602_v25  ;;  %20862 = vmatmul.mubr.msk.f32.gmra.mrb[76].mxu1 %vm165_vm3, %v25602_v25 }
 0x3bf   :  { %20776 = vmatprep.mubr.msk.f32.mxu0 %vm165_vm3, %v25617_v26  ;;  %20864 = vmatprep.mubr.msk.f32.mxu1 %vm165_vm3, %v25617_v26 }
 0x3c2   :  { %20777 = vmatmul.mubr.msk.f32.gmra.mrb[78].mxu0 %vm165_vm3, %v25626_v27  ;;  %20865 = vmatmul.mubr.msk.f32.gmra.mrb[78].mxu1 %vm165_vm3, %v25626_v27 }
 0x3c3   :  { %20779 = vmatprep.mubr.msk.f32.mxu0 %vm165_vm3, %v25637_v57  ;;  %20867 = vmatprep.mubr.msk.f32.mxu1 %vm165_vm3, %v25637_v57 }
 0x3c6   :  { %20780 = vmatmul.mubr.msk.f32.gmra.mrb[80].mxu0 %vm165_vm3, %v25652_v40  ;;  %20868 = vmatmul.mubr.msk.f32.gmra.mrb[80].mxu1 %vm165_vm3, %v25652_v40 }
 0x3c7   :  { %20782 = vmatprep.mubr.msk.f32.mxu0 %vm165_vm3, %v25661_v42  ;;  %20870 = vmatprep.mubr.msk.f32.mxu1 %vm165_vm3, %v25661_v42 }
 0x3ca   :  { %20783 = vmatmul.mubr.msk.f32.gmra.mrb[82].mxu0 %vm165_vm3, %v25670_v43  ;;  %20871 = vmatmul.mubr.msk.f32.gmra.mrb[82].mxu1 %vm165_vm3, %v25670_v43 }
 0x3cb   :  { %20785 = vmatprep.mubr.msk.f32.mxu0 %vm165_vm3, %v25679_v45  ;;  %20873 = vmatprep.mubr.msk.f32.mxu1 %vm165_vm3, %v25679_v45 }
 0x3ce   :  { %20786 = vmatmul.mubr.msk.f32.gmra.mrb[84].mxu0 %vm165_vm3, %v25688_v51  ;;  %20874 = vmatmul.mubr.msk.f32.gmra.mrb[84].mxu1 %vm165_vm3, %v25688_v51 }
 0x3cf   :  { %20788 = vmatprep.mubr.msk.f32.mxu0 %vm165_vm3, %v25697_v46  ;;  %20876 = vmatprep.mubr.msk.f32.mxu1 %vm165_vm3, %v25697_v46 }
 0x3d1   :  { %v4923_v21 = vpop.f32.mrb[52].mxu0  ;;  %v4964_v23 = vpop.f32.mrb[52].mxu1 }
 0x3d2   :  { %v25877_v28 = vadd.f32 %v4923_v21, %v25784_v59  ;;  %v25880_v29 = vadd.f32 %v4964_v23, %v25786_v60  ;;  %v4925_v30 = vpop.f32.mrb[53].mxu0  ;;  %v4966_v31 = vpop.f32.mrb[53].mxu1  ;;  %20789 = vmatmul.mubr.msk.f32.gmra.mrb[86].mxu0 %vm165_vm3, %v25706_v47  ;;  %20877 = vmatmul.mubr.msk.f32.gmra.mrb[86].mxu1 %vm165_vm3, %v25706_v47  ;;  %v21769_v59 = vpack.c.bf16 %v7518_v3, %v7517_v56  ;;  %v7731_v60 = vld [vmem:[#allocation2 + $0x308] sm:$0xff] }
 0x3d3   :  { %v25886_v32 = vadd.f32 %v4925_v30, %v4691_v5  ;;  %v25888_v18 = vadd.f32 %v4966_v31, %v4693_v6  ;;  %v4927_v33 = vpop.f32.mrb[54].mxu0  ;;  %v4968_v34 = vpop.f32.mrb[54].mxu1  ;;  %20791 = vmatprep.mubr.msk.f32.mxu0 %vm165_vm3, %v25715_v48  ;;  %20879 = vmatprep.mubr.msk.f32.mxu1 %vm165_vm3, %v25715_v48  ;;  %v7733_v30 = vld [vmem:[#allocation2 + $0x368] sm:$0xff]  ;;  %v7949_v31 = vld [vmem:[#allocation2 + $0x380] sm:$0xff] }
 0x3d4   :  { %v4928_v36 = vpop.f32.mrb[55].mxu0  ;;  %v4969_v37 = vpop.f32.mrb[55].mxu1  ;;  %v23130_v3 = vld [vmem:[#allocation6 + $0x10c] ss:$16 sps:$4 sm:$0xff]  }
 0x3d6   :  { %20792 = vmatmul.mubr.msk.f32.gmra.mrb[88].mxu0 %vm165_vm3, %v25724_v38  ;;  %20880 = vmatmul.mubr.msk.f32.gmra.mrb[88].mxu1 %vm165_vm3, %v25724_v38 }
 0x3d7   :  { %20794 = vmatprep.mubr.msk.f32.mxu0 %vm165_vm3, %v25733_v49  ;;  %20882 = vmatprep.mubr.msk.f32.mxu1 %vm165_vm3, %v25733_v49 }
 0x3da   :  { %20795 = vmatmul.mubr.msk.f32.gmra.mrb[90].mxu0 %vm165_vm3, %v25742_v50  ;;  %20883 = vmatmul.mubr.msk.f32.gmra.mrb[90].mxu1 %vm165_vm3, %v25742_v50 }
 0x3db   :  { %20797 = vmatprep.mubr.msk.f32.mxu0 %vm165_vm3, %v25751_v52  ;;  %20885 = vmatprep.mubr.msk.f32.mxu1 %vm165_vm3, %v25751_v52 }
 0x3de   :  { %20798 = vmatmul.mubr.msk.f32.gmra.mrb[92].mxu0 %vm165_vm3, %v25760_v53  ;;  %20886 = vmatmul.mubr.msk.f32.gmra.mrb[92].mxu1 %vm165_vm3, %v25760_v53 }
 0x3df   :  { %20800 = vmatprep.mubr.msk.f32.mxu0 %vm165_vm3, %v25769_v54  ;;  %20888 = vmatprep.mubr.msk.f32.mxu1 %vm165_vm3, %v25769_v54 }
 0x3e2   :  { %20801 = vmatmul.mubr.msk.f32.gmra.mrb[94].mxu0 %vm165_vm3, %v25778_v55  ;;  %20889 = vmatmul.mubr.msk.f32.gmra.mrb[94].mxu1 %vm165_vm3, %v25778_v55 }
 0x3e3   :  { %20899 = vmatprep.mubr.msk.f32.mxu0 %vm165_vm3, %v25567_v15  ;;  %20943 = vmatprep.mubr.msk.f32.mxu1 %vm165_vm3, %v25567_v15  ;;  %v25940_v15 = vpack.c.bf16 %v7732_v61, %v7731_v60 }
 0x3e6   :  { %20900 = vmatmul.mubr.msk.f32.vlgmr.msra.gmra.mrb[72].mxu0 %vm165_vm3, %v25576_v17  ;;  %20944 = vmatmul.mubr.msk.f32.vlgmr.msra.gmra.mrb[72].mxu1 %vm165_vm3, %v25576_v17 }
 0x3e7   :  { %21758 = vmatpush3.bf16.msra.mxu0 %v25818_v35  ;;  %21768 = vmatpush3.bf16.msra.mxu1 %v25820_v4  ;;  %v7734_v35 = vld [vmem:[#allocation2 + $0x398] sm:$0xf] }
 0x3e8   :  { %20902 = vmatprep.mubr.msk.f32.mxu0 %vm165_vm3, %v25593_v24  ;;  %20946 = vmatprep.mubr.msk.f32.mxu1 %vm165_vm3, %v25593_v24  ;;  %v21779_v44 = vpack.c.bf16 %v7734_v35, %v7733_v30 }
 0x3e9   :  { %21761 = vmatprep.subr.msk.bf16.mxu0 %vm24623_vm2, %v21759_v58  ;;  %21771 = vmatprep.subr.msk.bf16.mxu1 %vm24623_vm2, %v21769_v59 }
 0x3ea   :  { %20903 = vmatmul.mubr.msk.f32.gmra.mrb[74].mxu0 %vm165_vm3, %v25602_v25  ;;  %20947 = vmatmul.mubr.msk.f32.gmra.mrb[74].mxu1 %vm165_vm3, %v25602_v25 }
 0x3eb   :  { %20905 = vmatprep.mubr.msk.f32.mxu0 %vm165_vm3, %v25617_v26  ;;  %20949 = vmatprep.mubr.msk.f32.mxu1 %vm165_vm3, %v25617_v26 }
 0x3ec   :  { %21764 = vmatpush3.bf16.msk.msra.mxu0 %vm24623_vm2, %v21759_v58  ;;  %21774 = vmatpush3.bf16.msk.msra.mxu1 %vm24623_vm2, %v21769_v59 }
 0x3ed   :  { %21776 = vmatprep.subr.bf16.mxu0 %v25940_v15  ;;  %21786 = vmatprep.subr.bf16.mxu1 %v25942_v1 }
 0x3ee   :  { %20906 = vmatmul.mubr.msk.f32.gmra.mrb[76].mxu0 %vm165_vm3, %v25626_v27  ;;  %20950 = vmatmul.mubr.msk.f32.gmra.mrb[76].mxu1 %vm165_vm3, %v25626_v27 }
 0x3ef   :  { %20908 = vmatprep.mubr.msk.f32.mxu0 %vm165_vm3, %v25637_v57  ;;  %20952 = vmatprep.mubr.msk.f32.mxu1 %vm165_vm3, %v25637_v57 }
 0x3f1   :  { %v5204_v2 = vpop.f32.mrb[56].mxu0  ;;  %v5245_v5 = vpop.f32.mrb[56].mxu1 }
 0x3f2   :  { %v5252_v6 = vadd.f32 %v5204_v2, %v25877_v28  ;;  %v5254_v7 = vadd.f32 %v5245_v5, %v25880_v29  ;;  %v5206_v16 = vpop.f32.mrb[57].mxu0  ;;  %v5247_v8 = vpop.f32.mrb[57].mxu1  ;;  %20909 = vmatmul.mubr.msk.f32.gmra.mrb[78].mxu0 %vm165_vm3, %v25652_v40  ;;  %20953 = vmatmul.mubr.msk.f32.gmra.mrb[78].mxu1 %vm165_vm3, %v25652_v40  ;;  %v26037_v29 = vld [vmem:[%s27310_s0 + $0xc8] sm:$0xff] }
 0x3f3   :  { %v5253_v10 = vadd.f32 %v5206_v16, %v25886_v32  ;;  %v5255_v11 = vadd.f32 %v5247_v8, %v25888_v18  ;;  %v5208_v12 = vpop.f32.mrb[58].mxu0  ;;  %v5249_v13 = vpop.f32.mrb[58].mxu1  ;;  %20911 = vmatprep.mubr.msk.f32.mxu0 %vm165_vm3, %v25661_v42  ;;  %20955 = vmatprep.mubr.msk.f32.mxu1 %vm165_vm3, %v25661_v42  ;;  %v7950_v32 = vld [vmem:[#allocation2 + $0x3b0] sm:$0xf] }
 0x3f4   :  { %v5209_v39 = vpop.f32.mrb[59].mxu0  ;;  %v5250_v14 = vpop.f32.mrb[59].mxu1  ;;  %v21789_v56 = vpack.c.bf16 %v7950_v32, %v7949_v31  ;;  %v26156_v16 = vld [vmem:[%s27310_s0 + $0xd0] sm:$0xff] }
 0x3f5   :  { %v23125_v8 = vld [vmem:[#allocation6 + $0x100] ss:$16 sps:$4 sm:$0xff]   ;;  %v23136_v12 = vld [vmem:[#allocation6 + $0x12c] ss:$16 sps:$4 sm:$0xff]   ;;  %v23139_v39 = vld [vmem:[#allocation6 + $0x144] ss:$16 sps:$4 sm:$0xff]  }
 0x3f6   :  { %20912 = vmatmul.mubr.msk.f32.gmra.mrb[80].mxu0 %vm165_vm3, %v25670_v43  ;;  %20956 = vmatmul.mubr.msk.f32.gmra.mrb[80].mxu1 %vm165_vm3, %v25670_v43  ;;  %v23131_v13 = vld [vmem:[#allocation6 + $0x120] ss:$16 sps:$4 sm:$0xff]   ;;  %v23142_v14 = vld [vmem:[#allocation6 + $0x14c] ss:$16 sps:$4 sm:$0xff]  }
 0x3f7   :  { %20914 = vmatprep.mubr.msk.f32.mxu0 %vm165_vm3, %v25679_v45  ;;  %20958 = vmatprep.mubr.msk.f32.mxu1 %vm165_vm3, %v25679_v45 }
 0x3fa   :  { %20915 = vmatmul.mubr.msk.f32.gmra.mrb[82].mxu0 %vm165_vm3, %v25688_v51  ;;  %20959 = vmatmul.mubr.msk.f32.gmra.mrb[82].mxu1 %vm165_vm3, %v25688_v51 }
 0x3fb   :  { %20917 = vmatprep.mubr.msk.f32.mxu0 %vm165_vm3, %v25697_v46  ;;  %20961 = vmatprep.mubr.msk.f32.mxu1 %vm165_vm3, %v25697_v46 }
 0x3fe   :  { %20918 = vmatmul.mubr.msk.f32.gmra.mrb[84].mxu0 %vm165_vm3, %v25706_v47  ;;  %20962 = vmatmul.mubr.msk.f32.gmra.mrb[84].mxu1 %vm165_vm3, %v25706_v47 }
 0x3ff   :  { %20920 = vmatprep.mubr.msk.f32.mxu0 %vm165_vm3, %v25715_v48  ;;  %20964 = vmatprep.mubr.msk.f32.mxu1 %vm165_vm3, %v25715_v48 }
 0x402   :  { %20921 = vmatmul.mubr.msk.f32.gmra.mrb[86].mxu0 %vm165_vm3, %v25724_v38  ;;  %20965 = vmatmul.mubr.msk.f32.gmra.mrb[86].mxu1 %vm165_vm3, %v25724_v38 }
 0x403   :  { %20923 = vmatprep.mubr.msk.f32.mxu0 %vm165_vm3, %v25733_v49  ;;  %20967 = vmatprep.mubr.msk.f32.mxu1 %vm165_vm3, %v25733_v49 }
 0x406   :  { %20924 = vmatmul.mubr.msk.f32.gmra.mrb[88].mxu0 %vm165_vm3, %v25742_v50  ;;  %20968 = vmatmul.mubr.msk.f32.gmra.mrb[88].mxu1 %vm165_vm3, %v25742_v50 }
 0x407   :  { %20926 = vmatprep.mubr.msk.f32.mxu0 %vm165_vm3, %v25751_v52  ;;  %20970 = vmatprep.mubr.msk.f32.mxu1 %vm165_vm3, %v25751_v52 }
 0x40a   :  { %20927 = vmatmul.mubr.msk.f32.gmra.mrb[90].mxu0 %vm165_vm3, %v25760_v53  ;;  %20971 = vmatmul.mubr.msk.f32.gmra.mrb[90].mxu1 %vm165_vm3, %v25760_v53 }
 0x40b   :  { %20929 = vmatprep.mubr.msk.f32.mxu0 %vm165_vm3, %v25769_v54  ;;  %20973 = vmatprep.mubr.msk.f32.mxu1 %vm165_vm3, %v25769_v54 }
 0x40e   :  { %20930 = vmatmul.mubr.msk.f32.gmra.mrb[92].mxu0 %vm165_vm3, %v25778_v55  ;;  %20974 = vmatmul.mubr.msk.f32.gmra.mrb[92].mxu1 %vm165_vm3, %v25778_v55 }
 0x40f   :  { %20932 = vmatprep.mubr.msk.f32.mxu0 %vm165_vm3, %v25791_v22  ;;  %20976 = vmatprep.mubr.msk.f32.mxu1 %vm165_vm3, %v25791_v22 }
 0x411   :  { %v5485_v9 = vpop.f32.mrb[60].mxu0  ;;  %v5526_v20 = vpop.f32.mrb[60].mxu1 }
 0x412   :  { %v5533_v4 = vadd.f32 %v5485_v9, %v5252_v6  ;;  %v5535_v21 = vadd.f32 %v5526_v20, %v5254_v7  ;;  %v5487_v23 = vpop.f32.mrb[61].mxu0  ;;  %v5528_v28 = vpop.f32.mrb[61].mxu1  ;;  %20933 = vmatmul.mubr.msk.f32.gmra.mrb[94].mxu0 %vm165_vm3, %v26037_v29  ;;  %20977 = vmatmul.mubr.msk.f32.gmra.mrb[94].mxu1 %vm165_vm3, %v26037_v29  ;;  %v23145_v9 = vld [vmem:[#allocation6 + $0x164] ss:$16 sps:$4 sm:$0xff]   ;;  %v23148_v20 = vld [vmem:[#allocation6 + $0x16c] ss:$16 sps:$4 sm:$0xff]  }
 0x413   :  { %v5534_v18 = vadd.f32 %v5487_v23, %v5253_v10  ;;  %v5536_v33 = vadd.f32 %v5528_v28, %v5255_v11  ;;  %v5489_v34 = vpop.f32.mrb[62].mxu0  ;;  %v5530_v36 = vpop.f32.mrb[62].mxu1  ;;  %20987 = vmatprep.mubr.msk.f32.mxu0 %vm165_vm3, %v25576_v17  ;;  %21031 = vmatprep.mubr.msk.f32.mxu1 %vm165_vm3, %v25576_v17  ;;  %v23127_v17 = vld [vmem:[#allocation6 + $0x104] ss:$16 sps:$4 sm:$0xff]   ;;  %v23128_v10 = vld [vmem:[#allocation6 + $0x108] ss:$16 sps:$4 sm:$0xff]  }
 0x414   :  { %v5490_v37 = vpop.f32.mrb[63].mxu0  ;;  %v5531_v41 = vpop.f32.mrb[63].mxu1  ;;  %v23133_v11 = vld [vmem:[#allocation6 + $0x124] ss:$16 sps:$4 sm:$0xff]   ;;  %v23154_v23 = vld [vmem:[#allocation6 + $0x18c] ss:$16 sps:$4 sm:$0xff]  }
 0x415   :  { %v23149_v37 = vld [vmem:[#allocation6 + $0x180] ss:$16 sps:$4 sm:$0xff]   ;;  %v23157_v41 = vld [vmem:[#allocation6 + $0x1a4] ss:$16 sps:$4 sm:$0xff]  }
 0x416   :  { %20988 = vmatmul.mubr.msk.f32.vlgmr.msra.gmra.mrb[72].mxu0 %vm165_vm3, %v25593_v24  ;;  %21032 = vmatmul.mubr.msk.f32.vlgmr.msra.gmra.mrb[72].mxu1 %vm165_vm3, %v25593_v24 }
 0x417   :  { %21778 = vmatpush3.bf16.msra.mxu0 %v25940_v15  ;;  %21788 = vmatpush3.bf16.msra.mxu1 %v25942_v1 }
 0x418   :  { %20990 = vmatprep.mubr.msk.f32.mxu0 %vm165_vm3, %v25602_v25  ;;  %21034 = vmatprep.mubr.msk.f32.mxu1 %vm165_vm3, %v25602_v25 }
 0x419   :  { %21781 = vmatprep.subr.msk.bf16.mxu0 %vm24623_vm2, %v21779_v44  ;;  %21791 = vmatprep.subr.msk.bf16.mxu1 %vm24623_vm2, %v21789_v56 }
 0x41a   :  { %20991 = vmatmul.mubr.msk.f32.gmra.mrb[74].mxu0 %vm165_vm3, %v25617_v26  ;;  %21035 = vmatmul.mubr.msk.f32.gmra.mrb[74].mxu1 %vm165_vm3, %v25617_v26 }
 0x41b   :  { %20993 = vmatprep.mubr.msk.f32.mxu0 %vm165_vm3, %v25626_v27  ;;  %21037 = vmatprep.mubr.msk.f32.mxu1 %vm165_vm3, %v25626_v27 }
 0x41c   :  { %21784 = vmatpush3.bf16.msk.msra.mxu0 %vm24623_vm2, %v21779_v44  ;;  %21794 = vmatpush3.bf16.msk.msra.mxu1 %vm24623_vm2, %v21789_v56  ;;  %v23160_v44 = vld [vmem:[#allocation6 + $0x1ac] ss:$16 sps:$4 sm:$0xff]   ;;  %v23158_v56 = vld [vmem:[#allocation6 + $0x1a8] ss:$16 sps:$4 sm:$0xff]  }
 0x41d   :  { %8430 = vmatprep.subr.bf16.mxu0 %v23127_v17  ;;  %8471 = vmatprep.subr.bf16.mxu1 %v23130_v3 }
 0x41e   :  { %20994 = vmatmul.mubr.msk.f32.gmra.mrb[76].mxu0 %vm165_vm3, %v25637_v57  ;;  %21038 = vmatmul.mubr.msk.f32.gmra.mrb[76].mxu1 %vm165_vm3, %v25637_v57 }
 0x41f   :  { %20996 = vmatprep.mubr.msk.f32.mxu0 %vm165_vm3, %v25652_v40  ;;  %21040 = vmatprep.mubr.msk.f32.mxu1 %vm165_vm3, %v25652_v40 }
 0x422   :  { %20997 = vmatmul.mubr.msk.f32.gmra.mrb[78].mxu0 %vm165_vm3, %v25661_v42  ;;  %21041 = vmatmul.mubr.msk.f32.gmra.mrb[78].mxu1 %vm165_vm3, %v25661_v42 }
 0x423   :  { %20999 = vmatprep.mubr.msk.f32.mxu0 %vm165_vm3, %v25670_v43  ;;  %21043 = vmatprep.mubr.msk.f32.mxu1 %vm165_vm3, %v25670_v43 }
 0x426   :  { %21000 = vmatmul.mubr.msk.f32.gmra.mrb[80].mxu0 %vm165_vm3, %v25679_v45  ;;  %21044 = vmatmul.mubr.msk.f32.gmra.mrb[80].mxu1 %vm165_vm3, %v25679_v45 }
 0x427   :  { %21002 = vmatprep.mubr.msk.f32.mxu0 %vm165_vm3, %v25688_v51  ;;  %21046 = vmatprep.mubr.msk.f32.mxu1 %vm165_vm3, %v25688_v51 }
 0x42a   :  { %21003 = vmatmul.mubr.msk.f32.gmra.mrb[82].mxu0 %vm165_vm3, %v25697_v46  ;;  %21047 = vmatmul.mubr.msk.f32.gmra.mrb[82].mxu1 %vm165_vm3, %v25697_v46 }
 0x42b   :  { %21005 = vmatprep.mubr.msk.f32.mxu0 %vm165_vm3, %v25706_v47  ;;  %21049 = vmatprep.mubr.msk.f32.mxu1 %vm165_vm3, %v25706_v47 }
 0x42e   :  { %21006 = vmatmul.mubr.msk.f32.gmra.mrb[84].mxu0 %vm165_vm3, %v25715_v48  ;;  %21050 = vmatmul.mubr.msk.f32.gmra.mrb[84].mxu1 %vm165_vm3, %v25715_v48 }
 0x42f   :  { %21008 = vmatprep.mubr.msk.f32.mxu0 %vm165_vm3, %v25724_v38  ;;  %21052 = vmatprep.mubr.msk.f32.mxu1 %vm165_vm3, %v25724_v38 }
 0x431   :  { %v5766_v58 = vpop.f32.mrb[64].mxu0  ;;  %v5807_v59 = vpop.f32.mrb[64].mxu1 }
 0x432   :  { %v26113_v60 = vadd.f32 %v5766_v58, %v5533_v4  ;;  %v26115_v61 = vadd.f32 %v5807_v59, %v5535_v21  ;;  %v5768_v62 = vpop.f32.mrb[65].mxu0  ;;  %v5809_v63 = vpop.f32.mrb[65].mxu1  ;;  %21009 = vmatmul.mubr.msk.f32.gmra.mrb[86].mxu0 %vm165_vm3, %v25733_v49  ;;  %21053 = vmatmul.mubr.msk.f32.gmra.mrb[86].mxu1 %vm165_vm3, %v25733_v49  ;;  %v23151_v21 = vld [vmem:[#allocation6 + $0x184] ss:$16 sps:$4 sm:$0xff]  }
 0x433   :  { %v26121_v15 = vadd.f32 %v5768_v62, %v5534_v18  ;;  %v26123_v1 = vadd.f32 %v5809_v63, %v5536_v33  ;;  %v5770_v2 = vpop.f32.mrb[66].mxu0  ;;  %v5811_v5 = vpop.f32.mrb[66].mxu1  ;;  %21011 = vmatprep.mubr.msk.f32.mxu0 %vm165_vm3, %v25742_v50  ;;  %21055 = vmatprep.mubr.msk.f32.mxu1 %vm165_vm3, %v25742_v50 }
 0x434   :  { %v5771_v6 = vpop.f32.mrb[67].mxu0  ;;  %v5812_v7 = vpop.f32.mrb[67].mxu1 }
 0x436   :  { %21012 = vmatmul.mubr.msk.f32.gmra.mrb[88].mxu0 %vm165_vm3, %v25751_v52  ;;  %21056 = vmatmul.mubr.msk.f32.gmra.mrb[88].mxu1 %vm165_vm3, %v25751_v52 }
 0x437   :  { %21014 = vmatprep.mubr.msk.f32.mxu0 %vm165_vm3, %v25760_v53  ;;  %21058 = vmatprep.mubr.msk.f32.mxu1 %vm165_vm3, %v25760_v53 }
 0x43a   :  { %21015 = vmatmul.mubr.msk.f32.gmra.mrb[90].mxu0 %vm165_vm3, %v25769_v54  ;;  %21059 = vmatmul.mubr.msk.f32.gmra.mrb[90].mxu1 %vm165_vm3, %v25769_v54 }
 0x43b   :  { %21017 = vmatprep.mubr.msk.f32.mxu0 %vm165_vm3, %v25778_v55  ;;  %21061 = vmatprep.mubr.msk.f32.mxu1 %vm165_vm3, %v25778_v55 }
 0x43e   :  { %21018 = vmatmul.mubr.msk.f32.gmra.mrb[92].mxu0 %vm165_vm3, %v25791_v22  ;;  %21062 = vmatmul.mubr.msk.f32.gmra.mrb[92].mxu1 %vm165_vm3, %v25791_v22 }
 0x43f   :  { %21020 = vmatprep.mubr.msk.f32.mxu0 %vm165_vm3, %v26037_v29  ;;  %21064 = vmatprep.mubr.msk.f32.mxu1 %vm165_vm3, %v26037_v29 }
 0x442   :  { %21021 = vmatmul.mubr.msk.f32.gmra.mrb[94].mxu0 %vm165_vm3, %v26156_v16  ;;  %21065 = vmatmul.mubr.msk.f32.gmra.mrb[94].mxu1 %vm165_vm3, %v26156_v16 }
 0x443   :  { %21075 = vmatprep.mubr.msk.f32.mxu0 %vm165_vm3, %v25593_v24  ;;  %21119 = vmatprep.mubr.msk.f32.mxu1 %vm165_vm3, %v25593_v24  ;;  %v23134_v24 = vld [vmem:[#allocation6 + $0x128] ss:$16 sps:$4 sm:$0xff]  }
 0x446   :  { %21076 = vmatmul.mubr.msk.f32.vlgmr.msra.gmra.mrb[72].mxu0 %vm165_vm3, %v25602_v25  ;;  %21120 = vmatmul.mubr.msk.f32.vlgmr.msra.gmra.mrb[72].mxu1 %vm165_vm3, %v25602_v25  ;;  %v23137_v25 = vld [vmem:[#allocation6 + $0x140] ss:$16 sps:$4 sm:$0xff]  }
 0x447   :  { %21078 = vmatprep.mubr.msk.f32.mxu0 %vm165_vm3, %v25617_v26  ;;  %21122 = vmatprep.mubr.msk.f32.mxu1 %vm165_vm3, %v25617_v26  ;;  %v23140_v26 = vld [vmem:[#allocation6 + $0x148] ss:$16 sps:$4 sm:$0xff]  }
 0x448   :  { %8431 = vmatpush1.bf16.msra.mxu0 %v23125_v8  ;;  %8472 = vmatpush1.bf16.msra.mxu1 %v23128_v10 }
 0x449   :  { %8432 = vmatprep.subr.bf16.mxu0 %v23133_v11  ;;  %8473 = vmatprep.subr.bf16.mxu1 %v23136_v12 }
 0x44a   :  { %21079 = vmatmul.mubr.msk.f32.gmra.mrb[74].mxu0 %vm165_vm3, %v25626_v27  ;;  %21123 = vmatmul.mubr.msk.f32.gmra.mrb[74].mxu1 %vm165_vm3, %v25626_v27  ;;  %v23143_v27 = vld [vmem:[#allocation6 + $0x160] ss:$16 sps:$4 sm:$0xff]  }
 0x44b   :  { %21081 = vmatprep.mubr.msk.f32.mxu0 %vm165_vm3, %v25637_v57  ;;  %21125 = vmatprep.mubr.msk.f32.mxu1 %vm165_vm3, %v25637_v57  ;;  %v23146_v57 = vld [vmem:[#allocation6 + $0x168] ss:$16 sps:$4 sm:$0xff]  }
 0x44c   :  { %8433 = vmatpush1.bf16.msra.mxu0 %v23131_v13  ;;  %8474 = vmatpush1.bf16.msra.mxu1 %v23134_v24  ;;  %v23173_v24 = vld [vmem:[#allocation6 + $0x400] ss:$16 sps:$4 sm:$0xff]  }
 0x44d   :  { %8434 = vmatprep.subr.bf16.mxu0 %v23139_v39  ;;  %8475 = vmatprep.subr.bf16.mxu1 %v23142_v14 }
 0x44e   :  { %21082 = vmatmul.mubr.msk.f32.gmra.mrb[76].mxu0 %vm165_vm3, %v25652_v40  ;;  %21126 = vmatmul.mubr.msk.f32.gmra.mrb[76].mxu1 %vm165_vm3, %v25652_v40 }
 0x44f   :  { %21084 = vmatprep.mubr.msk.f32.mxu0 %vm165_vm3, %v25661_v42  ;;  %21128 = vmatprep.mubr.msk.f32.mxu1 %vm165_vm3, %v25661_v42 }
 0x450   :  { %8435 = vmatpush1.bf16.msra.mxu0 %v23137_v25  ;;  %8476 = vmatpush1.bf16.msra.mxu1 %v23140_v26 }
 0x451   :  { %v6047_v35 = vpop.f32.mrb[68].mxu0  ;;  %v6088_v4 = vpop.f32.mrb[68].mxu1  ;;  %8436 = vmatprep.subr.bf16.mxu0 %v23145_v9  ;;  %8477 = vmatprep.subr.bf16.mxu1 %v23148_v20  ;;  %v23176_v9 = vld [vmem:[#allocation6 + $0x408] ss:$16 sps:$4 sm:$0xff]  }
 0x452   :  { %v26191_v28 = vadd.f32 %v6047_v35, %v26113_v60  ;;  %v26194_v40 = vadd.f32 %v6088_v4, %v26115_v61  ;;  %v6049_v30 = vpop.f32.mrb[69].mxu0  ;;  %v6090_v31 = vpop.f32.mrb[69].mxu1  ;;  %21085 = vmatmul.mubr.msk.f32.gmra.mrb[78].mxu0 %vm165_vm3, %v25670_v43  ;;  %21129 = vmatmul.mubr.msk.f32.gmra.mrb[78].mxu1 %vm165_vm3, %v25670_v43  ;;  %v23152_v43 = vld [vmem:[#allocation6 + $0x188] ss:$16 sps:$4 sm:$0xff]   ;;  %v26273_v60 = vld [vmem:[#allocation4] ss:$0 sm:$0xff] }
 0x453   :  { %v26201_v42 = vadd.f32 %v6049_v30, %v26121_v15  ;;  %v26204_v32 = vadd.f32 %v6090_v31, %v26123_v1  ;;  %v6051_v18 = vpop.f32.mrb[70].mxu0  ;;  %v6092_v33 = vpop.f32.mrb[70].mxu1  ;;  %21087 = vmatprep.mubr.msk.f32.mxu0 %vm165_vm3, %v25679_v45  ;;  %21131 = vmatprep.mubr.msk.f32.mxu1 %vm165_vm3, %v25679_v45  ;;  %v23155_v45 = vld [vmem:[#allocation6 + $0x1a0] ss:$16 sps:$4 sm:$0xff]   ;;  %v23181_v35 = vld [vmem:[#allocation6 + $0x424] ss:$16 sps:$4 sm:$0xff]  }
 0x454   :  { %v6052_v34 = vpop.f32.mrb[71].mxu0  ;;  %v6093_v36 = vpop.f32.mrb[71].mxu1  ;;  %8437 = vmatpush1.bf16.msra.mxu0 %v23143_v27  ;;  %8478 = vmatpush1.bf16.msra.mxu1 %v23146_v57  ;;  %v23184_v4 = vld [vmem:[#allocation6 + $0x42c] ss:$16 sps:$4 sm:$0xff]   ;;  %v23179_v33 = vld [vmem:[#allocation6 + $0x420] ss:$16 sps:$4 sm:$0xff]  }
 0x455   :  { %8438 = vmatprep.subr.bf16.mxu0 %v23151_v21  ;;  %8479 = vmatprep.subr.bf16.mxu1 %v23154_v23 }
 0x456   :  { %21088 = vmatmul.mubr.msk.f32.gmra.mrb[80].mxu0 %vm165_vm3, %v25688_v51  ;;  %21132 = vmatmul.mubr.msk.f32.gmra.mrb[80].mxu1 %vm165_vm3, %v25688_v51  ;;  %v24326_v51 = vld [vmem:[%s27310_s0 + $0xd8] sm:$0xff] }
 0x457   :  { %21090 = vmatprep.mubr.msk.f32.mxu0 %vm165_vm3, %v25697_v46  ;;  %21134 = vmatprep.mubr.msk.f32.mxu1 %vm165_vm3, %v25697_v46  ;;  %v23163_v46 = vld [vmem:[#allocation6 + $0x1c4] ss:$16 sps:$4 sm:$0xff]  }
 0x458   :  { %8439 = vmatpush1.bf16.msra.mxu0 %v23149_v37  ;;  %8480 = vmatpush1.bf16.msra.mxu1 %v23152_v43 }
 0x459   :  { %8440 = vmatprep.subr.bf16.mxu0 %v23157_v41  ;;  %8481 = vmatprep.subr.bf16.mxu1 %v23160_v44  ;;  %v23182_v41 = vld [vmem:[#allocation6 + $0x428] ss:$16 sps:$4 sm:$0xff]  }
 0x45a   :  { %21091 = vmatmul.mubr.msk.f32.gmra.mrb[82].mxu0 %vm165_vm3, %v25706_v47  ;;  %21135 = vmatmul.mubr.msk.f32.gmra.mrb[82].mxu1 %vm165_vm3, %v25706_v47  ;;  %v23166_v47 = vld [vmem:[#allocation6 + $0x1cc] ss:$16 sps:$4 sm:$0xff]  }
 0x45b   :  { %21093 = vmatprep.mubr.msk.f32.mxu0 %vm165_vm3, %v25715_v48  ;;  %21137 = vmatprep.mubr.msk.f32.mxu1 %vm165_vm3, %v25715_v48  ;;  %v23161_v48 = vld [vmem:[#allocation6 + $0x1c0] ss:$16 sps:$4 sm:$0xff]  }
 0x45c   :  { %8441 = vmatpush1.bf16.msra.mxu0 %v23155_v45  ;;  %8482 = vmatpush1.bf16.msra.mxu1 %v23158_v56  ;;  %v23187_v56 = vld [vmem:[#allocation6 + $0x444] ss:$16 sps:$4 sm:$0xff]  }
 0x45d   :  { %8442 = vmatprep.subr.bf16.mxu0 %v23163_v46  ;;  %8483 = vmatprep.subr.bf16.mxu1 %v23166_v47 }
 0x45e   :  { %21094 = vmatmul.mubr.msk.f32.gmra.mrb[84].mxu0 %vm165_vm3, %v25724_v38  ;;  %21138 = vmatmul.mubr.msk.f32.gmra.mrb[84].mxu1 %vm165_vm3, %v25724_v38  ;;  %v23164_v38 = vld [vmem:[#allocation6 + $0x1c8] ss:$16 sps:$4 sm:$0xff]  }
 0x45f   :  { %21096 = vmatprep.mubr.msk.f32.mxu0 %vm165_vm3, %v25733_v49  ;;  %21140 = vmatprep.mubr.msk.f32.mxu1 %vm165_vm3, %v25733_v49  ;;  %v23169_v49 = vld [vmem:[#allocation6 + $0x1e4] ss:$16 sps:$4 sm:$0xff]  }
 0x460   :  { %8443 = vmatpush1.bf16.msra.mxu0 %v23161_v48  ;;  %8484 = vmatpush1.bf16.msra.mxu1 %v23164_v38 }
 0x461   :  { %8444 = vmatprep.subr.bf16.mxu0 %v23169_v49 }
 0x462   :  { %21097 = vmatmul.mubr.msk.f32.gmra.mrb[86].mxu0 %vm165_vm3, %v25742_v50  ;;  %21141 = vmatmul.mubr.msk.f32.gmra.mrb[86].mxu1 %vm165_vm3, %v25742_v50  ;;  %v23172_v50 = vld [vmem:[#allocation6 + $0x1ec] ss:$16 sps:$4 sm:$0xff]  }
 0x463   :  { %21099 = vmatprep.mubr.msk.f32.mxu0 %vm165_vm3, %v25751_v52  ;;  %21143 = vmatprep.mubr.msk.f32.mxu1 %vm165_vm3, %v25751_v52  ;;  %v23167_v52 = vld [vmem:[#allocation6 + $0x1e0] ss:$16 sps:$4 sm:$0xff]  }
 0x464   :  { %8485 = vmatprep.subr.bf16.mxu1 %v23172_v50  ;;  %8445 = vmatpush1.bf16.msra.mxu0 %v23167_v52  ;;  %v23185_v50 = vld [vmem:[#allocation6 + $0x440] ss:$16 sps:$4 sm:$0xff]  }
 0x466   :  { %21100 = vmatmul.mubr.msk.f32.gmra.mrb[88].mxu0 %vm165_vm3, %v25760_v53  ;;  %21144 = vmatmul.mubr.msk.f32.gmra.mrb[88].mxu1 %vm165_vm3, %v25760_v53  ;;  %v23170_v53 = vld [vmem:[#allocation6 + $0x1e8] ss:$16 sps:$4 sm:$0xff]  }
 0x467   :  { %21102 = vmatprep.mubr.msk.f32.mxu0 %vm165_vm3, %v25769_v54  ;;  %21146 = vmatprep.mubr.msk.f32.mxu1 %vm165_vm3, %v25769_v54  ;;  %v23175_v54 = vld [vmem:[#allocation6 + $0x404] ss:$16 sps:$4 sm:$0xff]  }
 0x468   :  { %8486 = vmatpush1.bf16.msra.mxu1 %v23170_v53  ;;  %8711 = vmatprep.subr.bf16.mxu0 %v23175_v54 }
 0x46a   :  { %21103 = vmatmul.mubr.msk.f32.gmra.mrb[90].mxu0 %vm165_vm3, %v25778_v55  ;;  %21147 = vmatmul.mubr.msk.f32.gmra.mrb[90].mxu1 %vm165_vm3, %v25778_v55  ;;  %v23178_v55 = vld [vmem:[#allocation6 + $0x40c] ss:$16 sps:$4 sm:$0xff]  }
 0x46b   :  { %21105 = vmatprep.mubr.msk.f32.mxu0 %vm165_vm3, %v25791_v22  ;;  %21149 = vmatprep.mubr.msk.f32.mxu1 %vm165_vm3, %v25791_v22 }
 0x46c   :  { %8752 = vmatprep.subr.bf16.mxu1 %v23178_v55 }
 0x46e   :  { %21106 = vmatmul.mubr.msk.f32.gmra.mrb[92].mxu0 %vm165_vm3, %v26037_v29  ;;  %21150 = vmatmul.mubr.msk.f32.gmra.mrb[92].mxu1 %vm165_vm3, %v26037_v29 }
 0x46f   :  { %21108 = vmatprep.mubr.msk.f32.mxu0 %vm165_vm3, %v26156_v16  ;;  %21152 = vmatprep.mubr.msk.f32.mxu1 %vm165_vm3, %v26156_v16 }
 0x472   :  { %21109 = vmatmul.mubr.msk.f32.gmra.mrb[94].mxu0 %vm165_vm3, %v24326_v51  ;;  %21153 = vmatmul.mubr.msk.f32.gmra.mrb[94].mxu1 %vm165_vm3, %v24326_v51  ;;  %v23190_v51 = vld [vmem:[#allocation6 + $0x44c] ss:$16 sps:$4 sm:$0xff]  }
 0x473   :  { %8462 = vmatprep.mubr.bf16.mxu0 %v24510_v19  ;;  %8503 = vmatprep.mubr.bf16.mxu1 %v24510_v19 }
 0x519   :  { %v21077_v22 = vpop.f32.mrb[72].mxu0  ;;  %v21121_v29 = vpop.f32.mrb[72].mxu1 }
 0x51a   :  { %v8164_v17 = vmax.f32 %v21077_v22, %v21121_v29  ;;  %v7804_v3 = vpop.f32.mrb[73].mxu0  ;;  %v8020_v58 = vpop.f32.mrb[73].mxu1  ;;  %v23188_v22 = vld [vmem:[#allocation6 + $0x448] ss:$16 sps:$4 sm:$0xff]  }
 0x51b   :  { %v8163_v59 = vmax.f32 %v7804_v3, %v8020_v58  ;;  %v23193_v3 = vld [vmem:[#allocation6 + $0x464] ss:$16 sps:$4 sm:$0xff]   ;;  %v23196_v58 = vld [vmem:[#allocation6 + $0x46c] ss:$16 sps:$4 sm:$0xff]  }
 0x51c   :  { %v8188_v61 = vadd.f32 %v26273_v60, %v8164_v17 }
 0x51d   :  { %v8187_v62 = vadd.f32 %v26273_v60, %v8163_v59  ;;  %v21080_v63 = vpop.f32.mrb[74].mxu0  ;;  %v21124_v15 = vpop.f32.mrb[74].mxu1 }
 0x51e   :  { %v8212_v1 = vmax.f32 %v8188_v61, 0.0  ;;  %v8166_v2 = vmax.f32 %v21080_v63, %v21124_v15  ;;  %v7814_v5 = vpop.f32.mrb[75].mxu0  ;;  %v8030_v6 = vpop.f32.mrb[75].mxu1 }
 0x51f   :  { %v8211_v7 = vmax.f32 %v8187_v62, 0.0  ;;  %v8165_v16 = vmax.f32 %v7814_v5, %v8030_v6 }
 0x520   :  { %v8190_v8 = vadd.f32 %v26273_v60, %v8166_v2 }
 0x521   :  { %v8235_v10 = vmax.f32 %v8211_v7, %v8212_v1  ;;  %v8189_v11 = vadd.f32 %v26273_v60, %v8165_v16  ;;  %v21083_v12 = vpop.f32.mrb[76].mxu0  ;;  %v21127_v13 = vpop.f32.mrb[76].mxu1  ;;  %v23191_v1 = vld [vmem:[#allocation6 + $0x460] ss:$16 sps:$4 sm:$0xff]   ;;  %v23194_v16 = vld [vmem:[#allocation6 + $0x468] ss:$16 sps:$4 sm:$0xff]  }
 0x522   :  { %v8214_v39 = vmax.f32 %v8190_v8, 0.0  ;;  %v8168_v14 = vmax.f32 %v21083_v12, %v21127_v13  ;;  %v7824_v25 = vpop.f32.mrb[77].mxu0  ;;  %v8040_v26 = vpop.f32.mrb[77].mxu1  ;;  %v23202_v12 = vld [vmem:[#allocation6 + $0x48c] ss:$16 sps:$4 sm:$0xff]  }
 0x523   :  { %v8236_v20 = vpack.c.bf16 %v8235_v10, %v8235_v10  ;;  %v8213_v27 = vmax.f32 %v8189_v11, 0.0  ;;  %v8167_v57 = vmax.f32 %v7824_v25, %v8040_v26  ;;  %v23199_v11 = vld [vmem:[#allocation6 + $0x484] ss:$16 sps:$4 sm:$0xff]   ;;  %v23197_v26 = vld [vmem:[#allocation6 + $0x480] ss:$16 sps:$4 sm:$0xff]  }
 0x524   :  { %v8192_v21 = vadd.f32 %v26273_v60, %v8168_v14 }
 0x525   :  { %v26280_v23 = vmax.f32 %v8213_v27, %v8214_v39  ;;  %v8191_v30 = vadd.f32 %v26273_v60, %v8167_v57  ;;  %v21086_v31 = vpop.f32.mrb[78].mxu0  ;;  %v21130_v18 = vpop.f32.mrb[78].mxu1  ;;  %8463 = vmatmul.mubr.bf16.vlgmr.msra.gmra.mrb[96].mxu0 %v8236_v20  ;;  %8504 = vmatmul.mubr.bf16.vlgmr.msra.gmra.mrb[96].mxu1 %v8236_v20 }
 0x526   :  { %v8216_v34 = vmax.f32 %v8192_v21, 0.0  ;;  %v8170_v36 = vmax.f32 %v21086_v31, %v21130_v18  ;;  %8712 = vmatpush1.bf16.msra.mxu0 %v23173_v24  ;;  %8753 = vmatpush1.bf16.msra.mxu1 %v23176_v9  ;;  %v7834_v37 = vpop.f32.mrb[79].mxu0  ;;  %v8050_v43 = vpop.f32.mrb[79].mxu1  ;;  %v23208_v31 = vld [vmem:[#allocation6 + $0x4ac] ss:$16 sps:$4 sm:$0xff]  }
 0x527   :  { %v8215_v44 = vmax.f32 %v8191_v30, 0.0  ;;  %v8169_v45 = vmax.f32 %v7834_v37, %v8050_v43  ;;  %8713 = vmatprep.subr.bf16.mxu0 %v23181_v35  ;;  %8754 = vmatprep.subr.bf16.mxu1 %v23184_v4  ;;  %v23200_v35 = vld [vmem:[#allocation6 + $0x488] ss:$16 sps:$4 sm:$0xff]   ;;  %v23205_v30 = vld [vmem:[#allocation6 + $0x4a4] ss:$16 sps:$4 sm:$0xff]  }
 0x528   :  { %v8194_v46 = vadd.f32 %v26273_v60, %v8170_v36  ;;  %8743 = vmatprep.mubr.bf16.mxu0 %v24510_v19  ;;  %8784 = vmatprep.mubr.bf16.mxu1 %v24510_v19  ;;  %v23203_v43 = vld [vmem:[#allocation6 + $0x4a0] ss:$16 sps:$4 sm:$0xff]  }
 0x529   :  { %v26286_v47 = vmax.f32 %v8215_v44, %v8216_v34  ;;  %v8193_v48 = vadd.f32 %v26273_v60, %v8169_v45  ;;  %v21089_v38 = vpop.f32.mrb[80].mxu0  ;;  %v21133_v49 = vpop.f32.mrb[80].mxu1 }
 0x52a   :  { %v8218_v52 = vmax.f32 %v8194_v46, 0.0  ;;  %v8172_v53 = vmax.f32 %v21089_v38, %v21133_v49  ;;  %8714 = vmatpush1.bf16.msra.mxu0 %v23179_v33  ;;  %8755 = vmatpush1.bf16.msra.mxu1 %v23182_v41  ;;  %v7844_v54 = vpop.f32.mrb[81].mxu0  ;;  %v8060_v55 = vpop.f32.mrb[81].mxu1  ;;  %v23211_v38 = vld [vmem:[#allocation6 + $0x4c4] ss:$16 sps:$4 sm:$0xff]  }
 0x52b   :  { %v8217_v29 = vmax.f32 %v8193_v48, 0.0  ;;  %v8171_v17 = vmax.f32 %v7844_v54, %v8060_v55  ;;  %8715 = vmatprep.subr.bf16.mxu0 %v23187_v56  ;;  %8756 = vmatprep.subr.bf16.mxu1 %v23190_v51  ;;  %v23206_v51 = vld [vmem:[#allocation6 + $0x4a8] ss:$16 sps:$4 sm:$0xff]   ;;  %v23214_v49 = vld [vmem:[#allocation6 + $0x4cc] ss:$16 sps:$4 sm:$0xff]  }
 0x52c   :  { %v8196_v59 = vadd.f32 %v26273_v60, %v8172_v53 }
 0x52d   :  { %v26290_v61 = vmax.f32 %v8217_v29, %v8218_v52  ;;  %v8195_v62 = vadd.f32 %v26273_v60, %v8171_v17  ;;  %v21092_v63 = vpop.f32.mrb[82].mxu0  ;;  %v21136_v15 = vpop.f32.mrb[82].mxu1 }
 0x52e   :  { %v8220_v2 = vmax.f32 %v8196_v59, 0.0  ;;  %v8174_v5 = vmax.f32 %v21092_v63, %v21136_v15  ;;  %8716 = vmatpush1.bf16.msra.mxu0 %v23185_v50  ;;  %8757 = vmatpush1.bf16.msra.mxu1 %v23188_v22  ;;  %v7854_v6 = vpop.f32.mrb[83].mxu0  ;;  %v8070_v7 = vpop.f32.mrb[83].mxu1  ;;  %v23209_v22 = vld [vmem:[#allocation6 + $0x4c0] ss:$16 sps:$4 sm:$0xff]  }
 0x52f   :  { %v8219_v8 = vmax.f32 %v8195_v62, 0.0  ;;  %v8173_v10 = vmax.f32 %v7854_v6, %v8070_v7  ;;  %8717 = vmatprep.subr.bf16.mxu0 %v23193_v3  ;;  %8758 = vmatprep.subr.bf16.mxu1 %v23196_v58  ;;  %v23212_v59 = vld [vmem:[#allocation6 + $0x4c8] ss:$16 sps:$4 sm:$0xff]   ;;  %v23217_v15 = vld [vmem:[#allocation6 + $0x4e4] ss:$16 sps:$4 sm:$0xff]  }
 0x530   :  { %v8198_v13 = vadd.f32 %v26273_v60, %v8174_v5 }
 0x531   :  { %v26294_v24 = vmax.f32 %v8219_v8, %v8220_v2  ;;  %v8197_v39 = vadd.f32 %v26273_v60, %v8173_v10  ;;  %v21095_v14 = vpop.f32.mrb[84].mxu0  ;;  %v21139_v25 = vpop.f32.mrb[84].mxu1  ;;  %v23215_v8 = vld [vmem:[#allocation6 + $0x4e0] ss:$16 sps:$4 sm:$0xff]  }
 0x532   :  { %v8222_v9 = vmax.f32 %v8198_v13, 0.0  ;;  %v8176_v20 = vmax.f32 %v21095_v14, %v21139_v25  ;;  %8718 = vmatpush1.bf16.msra.mxu0 %v23191_v1  ;;  %8759 = vmatpush1.bf16.msra.mxu1 %v23194_v16  ;;  %v7864_v27 = vpop.f32.mrb[85].mxu0  ;;  %v8080_v57 = vpop.f32.mrb[85].mxu1  ;;  %v23220_v1 = vld [vmem:[#allocation6 + $0x4ec] ss:$16 sps:$4 sm:$0xff]  }
 0x533   :  { %v8221_v4 = vmax.f32 %v8197_v39, 0.0  ;;  %v8175_v21 = vmax.f32 %v7864_v27, %v8080_v57  ;;  %8719 = vmatprep.subr.bf16.mxu0 %v23199_v11  ;;  %8760 = vmatprep.subr.bf16.mxu1 %v23202_v12  ;;  %v23218_v39 = vld [vmem:[#allocation6 + $0x4e8] ss:$16 sps:$4 sm:$0xff]  }
 0x534   :  { %v8200_v18 = vadd.f32 %v26273_v60, %v8176_v20 }
 0x535   :  { %v26298_v33 = vmax.f32 %v8221_v4, %v8222_v9  ;;  %v8199_v34 = vadd.f32 %v26273_v60, %v8175_v21  ;;  %v21098_v36 = vpop.f32.mrb[86].mxu0  ;;  %v21142_v37 = vpop.f32.mrb[86].mxu1  ;;  %v23226_v9 = vld [vmem:[#allocation6 + $0x70c] ss:$16 sps:$4 sm:$0xff]   ;;  %v23221_v21 = vld [vmem:[#allocation6 + $0x700] ss:$16 sps:$4 sm:$0xff]  }
 0x536   :  { %v8224_v41 = vmax.f32 %v8200_v18, 0.0  ;;  %v8178_v44 = vmax.f32 %v21098_v36, %v21142_v37  ;;  %8720 = vmatpush1.bf16.msra.mxu0 %v23197_v26  ;;  %8761 = vmatpush1.bf16.msra.mxu1 %v23200_v35  ;;  %v7874_v45 = vpop.f32.mrb[87].mxu0  ;;  %v8090_v56 = vpop.f32.mrb[87].mxu1  ;;  %v23223_v26 = vld [vmem:[#allocation6 + $0x704] ss:$16 sps:$4 sm:$0xff]   ;;  %v8517_v37 = vpack.c.bf16 %v26280_v23, %v26280_v23 }
 0x537   :  { %v8223_v46 = vmax.f32 %v8199_v34, 0.0  ;;  %v8177_v48 = vmax.f32 %v7874_v45, %v8090_v56  ;;  %8721 = vmatprep.subr.bf16.mxu0 %v23205_v30  ;;  %8762 = vmatprep.subr.bf16.mxu1 %v23208_v31  ;;  %v23224_v36 = vld [vmem:[#allocation6 + $0x708] ss:$16 sps:$4 sm:$0xff]   ;;  %v23232_v45 = vld [vmem:[#allocation6 + $0x72c] ss:$16 sps:$4 sm:$0xff]  }
 0x538   :  { %v8202_v50 = vadd.f32 %v26273_v60, %v8178_v44  ;;  %v23229_v44 = vld [vmem:[#allocation6 + $0x724] ss:$16 sps:$4 sm:$0xff]  }
 0x539   :  { %v26302_v52 = vmax.f32 %v8223_v46, %v8224_v41  ;;  %v8201_v53 = vadd.f32 %v26273_v60, %v8177_v48  ;;  %v21101_v54 = vpop.f32.mrb[88].mxu0  ;;  %v21145_v55 = vpop.f32.mrb[88].mxu1 }
 0x53a   :  { %v8226_v29 = vmax.f32 %v8202_v50, 0.0  ;;  %v8180_v17 = vmax.f32 %v21101_v54, %v21145_v55  ;;  %8722 = vmatpush1.bf16.msra.mxu0 %v23203_v43  ;;  %8763 = vmatpush1.bf16.msra.mxu1 %v23206_v51  ;;  %v7884_v3 = vpop.f32.mrb[89].mxu0  ;;  %v8100_v58 = vpop.f32.mrb[89].mxu1  ;;  %v23230_v55 = vld [vmem:[#allocation6 + $0x728] ss:$16 sps:$4 sm:$0xff]  }
 0x53b   :  { %v8225_v62 = vmax.f32 %v8201_v53, 0.0  ;;  %v8179_v63 = vmax.f32 %v7884_v3, %v8100_v58  ;;  %8723 = vmatprep.subr.bf16.mxu0 %v23211_v38  ;;  %8764 = vmatprep.subr.bf16.mxu1 %v23214_v49  ;;  %v23227_v49 = vld [vmem:[#allocation6 + $0x720] ss:$16 sps:$4 sm:$0xff]   ;;  %v23238_v3 = vld [vmem:[#allocation6 + $0x74c] ss:$16 sps:$4 sm:$0xff]  }
 0x53c   :  { %v8204_v2 = vadd.f32 %v26273_v60, %v8180_v17  ;;  %v23235_v17 = vld [vmem:[#allocation6 + $0x744] ss:$16 sps:$4 sm:$0xff]  }
 0x53d   :  { %v26306_v5 = vmax.f32 %v8225_v62, %v8226_v29  ;;  %v8203_v6 = vadd.f32 %v26273_v60, %v8179_v63  ;;  %v21104_v7 = vpop.f32.mrb[90].mxu0  ;;  %v21148_v16 = vpop.f32.mrb[90].mxu1 }
 0x53e   :  { %v8228_v10 = vmax.f32 %v8204_v2, 0.0  ;;  %v8182_v11 = vmax.f32 %v21104_v7, %v21148_v16  ;;  %8724 = vmatpush1.bf16.msra.mxu0 %v23209_v22  ;;  %8765 = vmatpush1.bf16.msra.mxu1 %v23212_v59  ;;  %v7894_v12 = vpop.f32.mrb[91].mxu0  ;;  %v8110_v13 = vpop.f32.mrb[91].mxu1  ;;  %v23244_v7 = vld [vmem:[#allocation6 + $0x76c] ss:$16 sps:$4 sm:$0xff]  }
 0x53f   :  { %v8227_v14 = vmax.f32 %v8203_v6, 0.0  ;;  %v8181_v25 = vmax.f32 %v7894_v12, %v8110_v13  ;;  %8725 = vmatprep.subr.bf16.mxu0 %v23217_v15  ;;  %8766 = vmatprep.subr.bf16.mxu1 %v23220_v1  ;;  %v23233_v15 = vld [vmem:[#allocation6 + $0x740] ss:$16 sps:$4 sm:$0xff]   ;;  %v23236_v1 = vld [vmem:[#allocation6 + $0x748] ss:$16 sps:$4 sm:$0xff]  }
 0x540   :  { %v8206_v20 = vadd.f32 %v26273_v60, %v8182_v11  ;;  %v23241_v6 = vld [vmem:[#allocation6 + $0x764] ss:$16 sps:$4 sm:$0xff]   ;;  %v23245_v12 = vld [vmem:[#allocation6 + $0x780] ss:$16 sps:$4 sm:$0xff]   ;;  %v23248_v13 = vld [vmem:[#allocation6 + $0x788] ss:$16 sps:$4 sm:$0xff]  }
 0x541   :  { %v26310_v27 = vmax.f32 %v8227_v14, %v8228_v10  ;;  %v8205_v57 = vadd.f32 %v26273_v60, %v8181_v25  ;;  %v21107_v35 = vpop.f32.mrb[92].mxu0  ;;  %v21151_v4 = vpop.f32.mrb[92].mxu1  ;;  %v23242_v10 = vld [vmem:[#allocation6 + $0x768] ss:$16 sps:$4 sm:$0xff]   ;;  %v23247_v11 = vld [vmem:[#allocation6 + $0x784] ss:$16 sps:$4 sm:$0xff]  }
 0x542   :  { %v8230_v30 = vmax.f32 %v8206_v20, 0.0  ;;  %v8184_v31 = vmax.f32 %v21107_v35, %v21151_v4  ;;  %8726 = vmatpush1.bf16.msra.mxu0 %v23215_v8  ;;  %8767 = vmatpush1.bf16.msra.mxu1 %v23218_v39  ;;  %v7904_v18 = vpop.f32.mrb[93].mxu0  ;;  %v8120_v34 = vpop.f32.mrb[93].mxu1  ;;  %v23239_v8 = vld [vmem:[#allocation6 + $0x760] ss:$16 sps:$4 sm:$0xff]  }
 0x543   :  { %v8229_v43 = vmax.f32 %v8205_v57, 0.0  ;;  %v8183_v41 = vmax.f32 %v7904_v18, %v8120_v34  ;;  %8992 = vmatprep.subr.bf16.mxu0 %v23223_v26  ;;  %9033 = vmatprep.subr.bf16.mxu1 %v23226_v9  ;;  %v23253_v39 = vld [vmem:[#allocation6 + $0x7a4] ss:$16 sps:$4 sm:$0xff]   ;;  %v23256_v14 = vld [vmem:[#allocation6 + $0x7ac] ss:$16 sps:$4 sm:$0xff]  }
 0x544   :  { %v8208_v56 = vadd.f32 %v26273_v60, %v8184_v31  ;;  %v23251_v25 = vld [vmem:[#allocation6 + $0x7a0] ss:$16 sps:$4 sm:$0xff]   ;;  %v23254_v26 = vld [vmem:[#allocation6 + $0x7a8] ss:$16 sps:$4 sm:$0xff]   ;;  %v23259_v9 = vld [vmem:[#allocation6 + $0x7c4] ss:$16 sps:$4 sm:$0xff]  }
 0x545   :  { %v26316_v51 = vmax.f32 %v8229_v43, %v8230_v30  ;;  %v8207_v46 = vadd.f32 %v26273_v60, %v8183_v41  ;;  %8744 = vmatmul.mubr.bf16.vlgmr.msra.gmra.mrb[100].mxu0 %v8517_v37  ;;  %8785 = vmatmul.mubr.bf16.vlgmr.msra.gmra.mrb[100].mxu1 %v8517_v37  ;;  %v21110_v48 = vpop.f32.mrb[94].mxu0  ;;  %v21154_v38 = vpop.f32.mrb[94].mxu1  ;;  %v23262_v20 = vld [vmem:[#allocation6 + $0x7cc] ss:$16 sps:$4 sm:$0xff]   ;;  %v23257_v57 = vld [vmem:[#allocation6 + $0x7c0] ss:$16 sps:$4 sm:$0xff]   ;;  %v8798_v43 = vpack.c.bf16 %v26286_v47, %v26286_v47 }
 0x546   :  { %v8232_v50 = vmax.f32 %v8208_v56, 0.0  ;;  %v8186_v53 = vmax.f32 %v21110_v48, %v21154_v38  ;;  %8993 = vmatpush1.bf16.msra.mxu0 %v23221_v21  ;;  %9034 = vmatpush1.bf16.msra.mxu1 %v23224_v36  ;;  %v7914_v23 = vpop.f32.mrb[95].mxu0  ;;  %v8130_v54 = vpop.f32.mrb[95].mxu1  ;;  %v23260_v35 = vld [vmem:[#allocation6 + $0x7c8] ss:$16 sps:$4 sm:$0xff]  }
 0x547   :  { %v8231_v22 = vmax.f32 %v8207_v46, 0.0  ;;  %v8185_v29 = vmax.f32 %v7914_v23, %v8130_v54  ;;  %8994 = vmatprep.subr.bf16.mxu0 %v23229_v44  ;;  %9035 = vmatprep.subr.bf16.mxu1 %v23232_v45  ;;  %v23265_v4 = vld [vmem:[#allocation6 + $0x7e4] ss:$16 sps:$4 sm:$0xff]   ;;  %v23268_v21 = vld [vmem:[#allocation6 + $0x7ec] ss:$16 sps:$4 sm:$0xff]  }
 0x548   :  { %v8210_v58 = vadd.f32 %v26273_v60, %v8186_v53  ;;  %9024 = vmatprep.mubr.bf16.mxu0 %v24510_v19  ;;  %9065 = vmatprep.mubr.bf16.mxu1 %v24510_v19  ;;  %v23263_v30 = vld [vmem:[#allocation6 + $0x7e0] ss:$16 sps:$4 sm:$0xff]   ;;  %v23266_v31 = vld [vmem:[#allocation6 + $0x7e8] ss:$16 sps:$4 sm:$0xff]   ;;  %v23271_v18 = vld [vmem:[#allocation6 + $0xa04] ss:$16 sps:$4 sm:$0xff]  }
 0x549   :  { %v26322_v59 = vmax.f32 %v8231_v22, %v8232_v50  ;;  %v8209_v62 = vadd.f32 %v26273_v60, %v8185_v29  ;;  %v23250_v60 = vld [vmem:[#allocation6 + $0x78c] ss:$16 sps:$4 sm:$0xff]   ;;  %v23269_v36 = vld [vmem:[#allocation6 + $0xa00] ss:$16 sps:$4 sm:$0xff]   ;;  %v23272_v37 = vld [vmem:[#allocation6 + $0xa08] ss:$16 sps:$4 sm:$0xff]  }
 0x54a   :  { %v8234_v63 = vmax.f32 %v8210_v58, 0.0  ;;  %8995 = vmatpush1.bf16.msra.mxu0 %v23227_v49  ;;  %9036 = vmatpush1.bf16.msra.mxu1 %v23230_v55  ;;  %v23274_v34 = vld [vmem:[#allocation6 + $0xa0c] ss:$16 sps:$4 sm:$0xff]   ;;  %v23277_v41 = vld [vmem:[#allocation6 + $0xa24] ss:$16 sps:$4 sm:$0xff]  }
 0x54b   :  { %v8233_v2 = vmax.f32 %v8209_v62, 0.0  ;;  %8996 = vmatprep.subr.bf16.mxu0 %v23235_v17  ;;  %9037 = vmatprep.subr.bf16.mxu1 %v23238_v3  ;;  %v23280_v44 = vld [vmem:[#allocation6 + $0xa2c] ss:$16 sps:$4 sm:$0xff]   ;;  %v23275_v45 = vld [vmem:[#allocation6 + $0xa20] ss:$16 sps:$4 sm:$0xff]  }
 0x54c   :  { %v23278_v56 = vld [vmem:[#allocation6 + $0xa28] ss:$16 sps:$4 sm:$0xff]   ;;  %v23283_v46 = vld [vmem:[#allocation6 + $0xa44] ss:$16 sps:$4 sm:$0xff]   ;;  %v23286_v48 = vld [vmem:[#allocation6 + $0xa4c] ss:$16 sps:$4 sm:$0xff]  }
 0x54d   :  { %v26325_v16 = vmax.f32 %v8233_v2, %v8234_v63  ;;  %v23281_v47 = vld [vmem:[#allocation6 + $0xa40] ss:$16 sps:$4 sm:$0xff]   ;;  %v23284_v38 = vld [vmem:[#allocation6 + $0xa48] ss:$16 sps:$4 sm:$0xff]   ;;  %v23289_v49 = vld [vmem:[#allocation6 + $0xa64] ss:$16 sps:$4 sm:$0xff]  }
 0x54e   :  { %8997 = vmatpush1.bf16.msra.mxu0 %v23233_v15  ;;  %9038 = vmatpush1.bf16.msra.mxu1 %v23236_v1  ;;  %v23292_v50 = vld [vmem:[#allocation6 + $0xa6c] ss:$16 sps:$4 sm:$0xff]   ;;  %v23287_v53 = vld [vmem:[#allocation6 + $0xa60] ss:$16 sps:$4 sm:$0xff]   ;;  %v23290_v23 = vld [vmem:[#allocation6 + $0xa68] ss:$16 sps:$4 sm:$0xff]  }
 0x54f   :  { %8998 = vmatprep.subr.bf16.mxu0 %v23241_v6  ;;  %9039 = vmatprep.subr.bf16.mxu1 %v23244_v7  ;;  %v23295_v54 = vld [vmem:[#allocation6 + $0xa84] ss:$16 sps:$4 sm:$0xff]   ;;  %v23298_v55 = vld [vmem:[#allocation6 + $0xa8c] ss:$16 sps:$4 sm:$0xff]   ;;  %v23293_v22 = vld [vmem:[#allocation6 + $0xa80] ss:$16 sps:$4 sm:$0xff]  }
 0x550   :  { %v23296_v29 = vld [vmem:[#allocation6 + $0xa88] ss:$16 sps:$4 sm:$0xff]   ;;  %v23301_v17 = vld [vmem:[#allocation6 + $0xaa4] ss:$16 sps:$4 sm:$0xff]   ;;  %v23304_v3 = vld [vmem:[#allocation6 + $0xaac] ss:$16 sps:$4 sm:$0xff]  }
 0x551   :  { %v23299_v58 = vld [vmem:[#allocation6 + $0xaa0] ss:$16 sps:$4 sm:$0xff]   ;;  %v23302_v62 = vld [vmem:[#allocation6 + $0xaa8] ss:$16 sps:$4 sm:$0xff]   ;;  %v23307_v63 = vld [vmem:[#allocation6 + $0xac4] ss:$16 sps:$4 sm:$0xff]  }
 0x552   :  { %8999 = vmatpush1.bf16.msra.mxu0 %v23239_v8  ;;  %9040 = vmatpush1.bf16.msra.mxu1 %v23242_v10  ;;  %v23310_v15 = vld [vmem:[#allocation6 + $0xacc] ss:$16 sps:$4 sm:$0xff]   ;;  %v23305_v1 = vld [vmem:[#allocation6 + $0xac0] ss:$16 sps:$4 sm:$0xff]   ;;  %v23308_v2 = vld [vmem:[#allocation6 + $0xac8] ss:$16 sps:$4 sm:$0xff]  }
 0x553   :  { %9000 = vmatprep.subr.bf16.mxu0 %v23247_v11  ;;  %9041 = vmatprep.subr.bf16.mxu1 %v23250_v60  ;;  %v23313_v6 = vld [vmem:[#allocation6 + $0xae4] ss:$16 sps:$4 sm:$0xff]   ;;  %v23316_v7 = vld [vmem:[#allocation6 + $0xaec] ss:$16 sps:$4 sm:$0xff]   ;;  %v23311_v8 = vld [vmem:[#allocation6 + $0xae0] ss:$16 sps:$4 sm:$0xff]  }
 0x554   :  { %v23314_v10 = vld [vmem:[#allocation6 + $0xae8] ss:$16 sps:$4 sm:$0xff]   ;;  %v23319_v11 = vld [vmem:[#allocation6 + $0xd04] ss:$16 sps:$4 sm:$0xff]   ;;  %v23322_v60 = vld [vmem:[#allocation6 + $0xd0c] ss:$16 sps:$4 sm:$0xff]  }
 0x556   :  { %9001 = vmatpush1.bf16.msra.mxu0 %v23245_v12  ;;  %9042 = vmatpush1.bf16.msra.mxu1 %v23248_v13  ;;  %v23317_v12 = vld [vmem:[#allocation6 + $0xd00] ss:$16 sps:$4 sm:$0xff]   ;;  %v23320_v13 = vld [vmem:[#allocation6 + $0xd08] ss:$16 sps:$4 sm:$0xff]  }
 0x557   :  { %9002 = vmatprep.subr.bf16.mxu0 %v23253_v39  ;;  %9043 = vmatprep.subr.bf16.mxu1 %v23256_v14  ;;  %v9079_v39 = vpack.c.bf16 %v26290_v61, %v26290_v61  ;;  %v23325_v14 = vld [vmem:[#allocation6 + $0xd24] ss:$16 sps:$4 sm:$0xff]   ;;  %v23329_v61 = vld [vmem:[#allocation6 + $0xd40] ss:$16 sps:$4 sm:$0xff]  }
 0x55a   :  { %9003 = vmatpush1.bf16.msra.mxu0 %v23251_v25  ;;  %9044 = vmatpush1.bf16.msra.mxu1 %v23254_v26  ;;  %v23328_v25 = vld [vmem:[#allocation6 + $0xd2c] ss:$16 sps:$4 sm:$0xff]   ;;  %v23323_v26 = vld [vmem:[#allocation6 + $0xd20] ss:$16 sps:$4 sm:$0xff]  }
 0x55b   :  { %9004 = vmatprep.subr.bf16.mxu0 %v23259_v9  ;;  %9045 = vmatprep.subr.bf16.mxu1 %v23262_v20  ;;  %v23326_v9 = vld [vmem:[#allocation6 + $0xd28] ss:$16 sps:$4 sm:$0xff]   ;;  %v23331_v20 = vld [vmem:[#allocation6 + $0xd44] ss:$16 sps:$4 sm:$0xff]  }
 0x55e   :  { %9005 = vmatpush1.bf16.msra.mxu0 %v23257_v57  ;;  %9046 = vmatpush1.bf16.msra.mxu1 %v23260_v35  ;;  %v23334_v57 = vld [vmem:[#allocation6 + $0xd4c] ss:$16 sps:$4 sm:$0xff]   ;;  %v23332_v35 = vld [vmem:[#allocation6 + $0xd48] ss:$16 sps:$4 sm:$0xff]  }
 0x55f   :  { %9006 = vmatprep.subr.bf16.mxu0 %v23265_v4  ;;  %9047 = vmatprep.subr.bf16.mxu1 %v23268_v21  ;;  %v23337_v4 = vld [vmem:[#allocation6 + $0xd64] ss:$16 sps:$4 sm:$0xff]   ;;  %v23340_v21 = vld [vmem:[#allocation6 + $0xd6c] ss:$16 sps:$4 sm:$0xff]  }
 0x562   :  { %9007 = vmatpush1.bf16.msra.mxu0 %v23263_v30  ;;  %9048 = vmatpush1.bf16.msra.mxu1 %v23266_v31  ;;  %v23335_v30 = vld [vmem:[#allocation6 + $0xd60] ss:$16 sps:$4 sm:$0xff]   ;;  %v23338_v31 = vld [vmem:[#allocation6 + $0xd68] ss:$16 sps:$4 sm:$0xff]  }
 0x563   :  { %9273 = vmatprep.subr.bf16.mxu0 %v23271_v18  ;;  %9314 = vmatprep.subr.bf16.mxu1 %v23274_v34  ;;  %v23343_v18 = vld [vmem:[#allocation6 + $0xd84] ss:$16 sps:$4 sm:$0xff]   ;;  %v23346_v34 = vld [vmem:[#allocation6 + $0xd8c] ss:$16 sps:$4 sm:$0xff]  }
 0x565   :  { %9025 = vmatmul.mubr.bf16.vlgmr.msra.gmra.mrb[104].mxu0 %v8798_v43  ;;  %9066 = vmatmul.mubr.bf16.vlgmr.msra.gmra.mrb[104].mxu1 %v8798_v43  ;;  %v23349_v43 = vld [vmem:[#allocation6 + $0xda4] ss:$16 sps:$4 sm:$0xff]  }
 0x566   :  { %9274 = vmatpush1.bf16.msra.mxu0 %v23269_v36  ;;  %9315 = vmatpush1.bf16.msra.mxu1 %v23272_v37  ;;  %v23341_v36 = vld [vmem:[#allocation6 + $0xd80] ss:$16 sps:$4 sm:$0xff]   ;;  %v23344_v37 = vld [vmem:[#allocation6 + $0xd88] ss:$16 sps:$4 sm:$0xff]  }
 0x567   :  { %9275 = vmatprep.subr.bf16.mxu0 %v23277_v41  ;;  %9316 = vmatprep.subr.bf16.mxu1 %v23280_v44  ;;  %v23352_v41 = vld [vmem:[#allocation6 + $0xdac] ss:$16 sps:$4 sm:$0xff]   ;;  %v23347_v44 = vld [vmem:[#allocation6 + $0xda0] ss:$16 sps:$4 sm:$0xff]  }
 0x568   :  { %9305 = vmatprep.mubr.bf16.mxu0 %v24510_v19  ;;  %9346 = vmatprep.mubr.bf16.mxu1 %v24510_v19 }
 0x56a   :  { %9276 = vmatpush1.bf16.msra.mxu0 %v23275_v45  ;;  %9317 = vmatpush1.bf16.msra.mxu1 %v23278_v56  ;;  %v23350_v45 = vld [vmem:[#allocation6 + $0xda8] ss:$16 sps:$4 sm:$0xff]   ;;  %v23355_v56 = vld [vmem:[#allocation6 + $0xdc4] ss:$16 sps:$4 sm:$0xff]  }
 0x56b   :  { %9277 = vmatprep.subr.bf16.mxu0 %v23283_v46  ;;  %9318 = vmatprep.subr.bf16.mxu1 %v23286_v48  ;;  %v23358_v46 = vld [vmem:[#allocation6 + $0xdcc] ss:$16 sps:$4 sm:$0xff]   ;;  %v23353_v48 = vld [vmem:[#allocation6 + $0xdc0] ss:$16 sps:$4 sm:$0xff]  }
 0x56e   :  { %9278 = vmatpush1.bf16.msra.mxu0 %v23281_v47  ;;  %9319 = vmatpush1.bf16.msra.mxu1 %v23284_v38  ;;  %v23356_v47 = vld [vmem:[#allocation6 + $0xdc8] ss:$16 sps:$4 sm:$0xff]   ;;  %v23361_v38 = vld [vmem:[#allocation6 + $0xde4] ss:$16 sps:$4 sm:$0xff]  }
 0x56f   :  { %9279 = vmatprep.subr.bf16.mxu0 %v23289_v49  ;;  %9320 = vmatprep.subr.bf16.mxu1 %v23292_v50  ;;  %v23364_v49 = vld [vmem:[#allocation6 + $0xdec] ss:$16 sps:$4 sm:$0xff]   ;;  %v23359_v50 = vld [vmem:[#allocation6 + $0xde0] ss:$16 sps:$4 sm:$0xff]  }
 0x572   :  { %9280 = vmatpush1.bf16.msra.mxu0 %v23287_v53  ;;  %9321 = vmatpush1.bf16.msra.mxu1 %v23290_v23  ;;  %v23362_v53 = vld [vmem:[#allocation6 + $0xde8] ss:$16 sps:$4 sm:$0xff]   ;;  %v23367_v23 = vld [vmem:[#allocation6 + $0x1004] ss:$16 sps:$4 sm:$0xff]  }
 0x573   :  { %9281 = vmatprep.subr.bf16.mxu0 %v23295_v54  ;;  %9322 = vmatprep.subr.bf16.mxu1 %v23298_v55  ;;  %v23370_v54 = vld [vmem:[#allocation6 + $0x100c] ss:$16 sps:$4 sm:$0xff]   ;;  %v23365_v55 = vld [vmem:[#allocation6 + $0x1000] ss:$16 sps:$4 sm:$0xff]  }
 0x576   :  { %9282 = vmatpush1.bf16.msra.mxu0 %v23293_v22  ;;  %9323 = vmatpush1.bf16.msra.mxu1 %v23296_v29  ;;  %v23368_v22 = vld [vmem:[#allocation6 + $0x1008] ss:$16 sps:$4 sm:$0xff]   ;;  %v9360_v29 = vpack.c.bf16 %v26294_v24, %v26294_v24  ;;  %v23377_v24 = vld [vmem:[#allocation6 + $0x1040] ss:$16 sps:$4 sm:$0xff]  }
 0x577   :  { %9283 = vmatprep.subr.bf16.mxu0 %v23301_v17  ;;  %9324 = vmatprep.subr.bf16.mxu1 %v23304_v3  ;;  %v23373_v17 = vld [vmem:[#allocation6 + $0x1024] ss:$16 sps:$4 sm:$0xff]   ;;  %v23376_v3 = vld [vmem:[#allocation6 + $0x102c] ss:$16 sps:$4 sm:$0xff]  }
 0x57a   :  { %9284 = vmatpush1.bf16.msra.mxu0 %v23299_v58  ;;  %9325 = vmatpush1.bf16.msra.mxu1 %v23302_v62  ;;  %v23371_v58 = vld [vmem:[#allocation6 + $0x1020] ss:$16 sps:$4 sm:$0xff]   ;;  %v23374_v62 = vld [vmem:[#allocation6 + $0x1028] ss:$16 sps:$4 sm:$0xff]  }
 0x57b   :  { %9285 = vmatprep.subr.bf16.mxu0 %v23307_v63  ;;  %9326 = vmatprep.subr.bf16.mxu1 %v23310_v15  ;;  %v23379_v63 = vld [vmem:[#allocation6 + $0x1044] ss:$16 sps:$4 sm:$0xff]   ;;  %v23382_v15 = vld [vmem:[#allocation6 + $0x104c] ss:$16 sps:$4 sm:$0xff]  }
 0x57e   :  { %9286 = vmatpush1.bf16.msra.mxu0 %v23305_v1  ;;  %9327 = vmatpush1.bf16.msra.mxu1 %v23308_v2  ;;  %v23380_v1 = vld [vmem:[#allocation6 + $0x1048] ss:$16 sps:$4 sm:$0xff]   ;;  %v23385_v2 = vld [vmem:[#allocation6 + $0x1064] ss:$16 sps:$4 sm:$0xff]  }
 0x57f   :  { %9287 = vmatprep.subr.bf16.mxu0 %v23313_v6  ;;  %9328 = vmatprep.subr.bf16.mxu1 %v23316_v7  ;;  %v23388_v6 = vld [vmem:[#allocation6 + $0x106c] ss:$16 sps:$4 sm:$0xff]   ;;  %v23383_v7 = vld [vmem:[#allocation6 + $0x1060] ss:$16 sps:$4 sm:$0xff]  }
 0x582   :  { %9288 = vmatpush1.bf16.msra.mxu0 %v23311_v8  ;;  %9329 = vmatpush1.bf16.msra.mxu1 %v23314_v10  ;;  %v23386_v8 = vld [vmem:[#allocation6 + $0x1068] ss:$16 sps:$4 sm:$0xff]   ;;  %v23391_v10 = vld [vmem:[#allocation6 + $0x1084] ss:$16 sps:$4 sm:$0xff]  }
 0x583   :  { %9554 = vmatprep.subr.bf16.mxu0 %v23319_v11  ;;  %9595 = vmatprep.subr.bf16.mxu1 %v23322_v60  ;;  %v23394_v11 = vld [vmem:[#allocation6 + $0x108c] ss:$16 sps:$4 sm:$0xff]   ;;  %v23389_v60 = vld [vmem:[#allocation6 + $0x1080] ss:$16 sps:$4 sm:$0xff]  }
 0x585   :  { %9306 = vmatmul.mubr.bf16.vlgmr.msra.gmra.mrb[108].mxu0 %v9079_v39  ;;  %9347 = vmatmul.mubr.bf16.vlgmr.msra.gmra.mrb[108].mxu1 %v9079_v39  ;;  %v23400_v39 = vld [vmem:[#allocation6 + $0x10ac] ss:$16 sps:$4 sm:$0xff]  }
 0x586   :  { %9555 = vmatpush1.bf16.msra.mxu0 %v23317_v12  ;;  %9596 = vmatpush1.bf16.msra.mxu1 %v23320_v13  ;;  %v23392_v12 = vld [vmem:[#allocation6 + $0x1088] ss:$16 sps:$4 sm:$0xff]   ;;  %v23397_v13 = vld [vmem:[#allocation6 + $0x10a4] ss:$16 sps:$4 sm:$0xff]  }
 0x587   :  { %9556 = vmatprep.subr.bf16.mxu0 %v23325_v14  ;;  %9597 = vmatprep.subr.bf16.mxu1 %v23328_v25  ;;  %v23395_v14 = vld [vmem:[#allocation6 + $0x10a0] ss:$16 sps:$4 sm:$0xff]   ;;  %v23398_v25 = vld [vmem:[#allocation6 + $0x10a8] ss:$16 sps:$4 sm:$0xff]  }
 0x588   :  { %9586 = vmatprep.mubr.bf16.mxu0 %v24510_v19  ;;  %9627 = vmatprep.mubr.bf16.mxu1 %v24510_v19 }
 0x58a   :  { %9557 = vmatpush1.bf16.msra.mxu0 %v23323_v26  ;;  %9598 = vmatpush1.bf16.msra.mxu1 %v23326_v9  ;;  %v23403_v26 = vld [vmem:[#allocation6 + $0x10c4] ss:$16 sps:$4 sm:$0xff]   ;;  %v23406_v9 = vld [vmem:[#allocation6 + $0x10cc] ss:$16 sps:$4 sm:$0xff]  }
 0x58b   :  { %9558 = vmatprep.subr.bf16.mxu0 %v23331_v20  ;;  %9599 = vmatprep.subr.bf16.mxu1 %v23334_v57  ;;  %v23401_v20 = vld [vmem:[#allocation6 + $0x10c0] ss:$16 sps:$4 sm:$0xff]   ;;  %v23404_v57 = vld [vmem:[#allocation6 + $0x10c8] ss:$16 sps:$4 sm:$0xff]  }
 0x58e   :  { %9559 = vmatpush1.bf16.msra.mxu0 %v23329_v61  ;;  %9600 = vmatpush1.bf16.msra.mxu1 %v23332_v35  ;;  %v23409_v61 = vld [vmem:[#allocation6 + $0x10e4] ss:$16 sps:$4 sm:$0xff]   ;;  %v23412_v35 = vld [vmem:[#allocation6 + $0x10ec] ss:$16 sps:$4 sm:$0xff]  }
 0x58f   :  { %9560 = vmatprep.subr.bf16.mxu0 %v23337_v4  ;;  %9601 = vmatprep.subr.bf16.mxu1 %v23340_v21  ;;  %v23407_v4 = vld [vmem:[#allocation6 + $0x10e0] ss:$16 sps:$4 sm:$0xff]   ;;  %v23410_v21 = vld [vmem:[#allocation6 + $0x10e8] ss:$16 sps:$4 sm:$0xff]  }
 0x592   :  { %9561 = vmatpush1.bf16.msra.mxu0 %v23335_v30  ;;  %9602 = vmatpush1.bf16.msra.mxu1 %v23338_v31  ;;  %v23415_v30 = vld [vmem:[#allocation6 + $0x1304] ss:$16 sps:$4 sm:$0xff]   ;;  %v23418_v31 = vld [vmem:[#allocation6 + $0x130c] ss:$16 sps:$4 sm:$0xff]  }
 0x593   :  { %9562 = vmatprep.subr.bf16.mxu0 %v23343_v18  ;;  %9603 = vmatprep.subr.bf16.mxu1 %v23346_v34  ;;  %v23413_v18 = vld [vmem:[#allocation6 + $0x1300] ss:$16 sps:$4 sm:$0xff]   ;;  %v23416_v34 = vld [vmem:[#allocation6 + $0x1308] ss:$16 sps:$4 sm:$0xff]  }
 0x596   :  { %9563 = vmatpush1.bf16.msra.mxu0 %v23341_v36  ;;  %9604 = vmatpush1.bf16.msra.mxu1 %v23344_v37  ;;  %v9641_v36 = vpack.c.bf16 %v26298_v33, %v26298_v33  ;;  %v23421_v37 = vld [vmem:[#allocation6 + $0x1324] ss:$16 sps:$4 sm:$0xff]   ;;  %v23425_v33 = vld [vmem:[#allocation6 + $0x1340] ss:$16 sps:$4 sm:$0xff]  }
 0x597   :  { %9564 = vmatprep.subr.bf16.mxu0 %v23349_v43  ;;  %9605 = vmatprep.subr.bf16.mxu1 %v23352_v41  ;;  %v23424_v43 = vld [vmem:[#allocation6 + $0x132c] ss:$16 sps:$4 sm:$0xff]   ;;  %v23419_v41 = vld [vmem:[#allocation6 + $0x1320] ss:$16 sps:$4 sm:$0xff]  }
 0x59a   :  { %9565 = vmatpush1.bf16.msra.mxu0 %v23347_v44  ;;  %9606 = vmatpush1.bf16.msra.mxu1 %v23350_v45  ;;  %v23422_v44 = vld [vmem:[#allocation6 + $0x1328] ss:$16 sps:$4 sm:$0xff]   ;;  %v23427_v45 = vld [vmem:[#allocation6 + $0x1344] ss:$16 sps:$4 sm:$0xff]  }
 0x59b   :  { %9566 = vmatprep.subr.bf16.mxu0 %v23355_v56  ;;  %9607 = vmatprep.subr.bf16.mxu1 %v23358_v46  ;;  %v23430_v56 = vld [vmem:[#allocation6 + $0x134c] ss:$16 sps:$4 sm:$0xff]   ;;  %v23428_v46 = vld [vmem:[#allocation6 + $0x1348] ss:$16 sps:$4 sm:$0xff]  }
 0x59e   :  { %9567 = vmatpush1.bf16.msra.mxu0 %v23353_v48  ;;  %9608 = vmatpush1.bf16.msra.mxu1 %v23356_v47  ;;  %v23433_v48 = vld [vmem:[#allocation6 + $0x1364] ss:$16 sps:$4 sm:$0xff]   ;;  %v23436_v47 = vld [vmem:[#allocation6 + $0x136c] ss:$16 sps:$4 sm:$0xff]  }
 0x59f   :  { %9568 = vmatprep.subr.bf16.mxu0 %v23361_v38  ;;  %9609 = vmatprep.subr.bf16.mxu1 %v23364_v49  ;;  %v23431_v38 = vld [vmem:[#allocation6 + $0x1360] ss:$16 sps:$4 sm:$0xff]   ;;  %v23434_v49 = vld [vmem:[#allocation6 + $0x1368] ss:$16 sps:$4 sm:$0xff]  }
 0x5a2   :  { %9569 = vmatpush1.bf16.msra.mxu0 %v23359_v50  ;;  %9610 = vmatpush1.bf16.msra.mxu1 %v23362_v53  ;;  %v23439_v50 = vld [vmem:[#allocation6 + $0x1384] ss:$16 sps:$4 sm:$0xff]   ;;  %v23442_v53 = vld [vmem:[#allocation6 + $0x138c] ss:$16 sps:$4 sm:$0xff]  }
 0x5a3   :  { %9835 = vmatprep.subr.bf16.mxu0 %v23367_v23  ;;  %9876 = vmatprep.subr.bf16.mxu1 %v23370_v54  ;;  %v23437_v23 = vld [vmem:[#allocation6 + $0x1380] ss:$16 sps:$4 sm:$0xff]   ;;  %v23440_v54 = vld [vmem:[#allocation6 + $0x1388] ss:$16 sps:$4 sm:$0xff]  }
 0x5a5   :  { %9587 = vmatmul.mubr.bf16.vlgmr.msra.gmra.mrb[112].mxu0 %v9360_v29  ;;  %9628 = vmatmul.mubr.bf16.vlgmr.msra.gmra.mrb[112].mxu1 %v9360_v29  ;;  %v23443_v29 = vld [vmem:[#allocation6 + $0x13a0] ss:$16 sps:$4 sm:$0xff]  }
 0x5a6   :  { %9836 = vmatpush1.bf16.msra.mxu0 %v23365_v55  ;;  %9877 = vmatpush1.bf16.msra.mxu1 %v23368_v22  ;;  %v23445_v55 = vld [vmem:[#allocation6 + $0x13a4] ss:$16 sps:$4 sm:$0xff]   ;;  %v23448_v22 = vld [vmem:[#allocation6 + $0x13ac] ss:$16 sps:$4 sm:$0xff]  }
 0x5a7   :  { %9837 = vmatprep.subr.bf16.mxu0 %v23373_v17  ;;  %9878 = vmatprep.subr.bf16.mxu1 %v23376_v3  ;;  %v23446_v17 = vld [vmem:[#allocation6 + $0x13a8] ss:$16 sps:$4 sm:$0xff]   ;;  %v23451_v3 = vld [vmem:[#allocation6 + $0x13c4] ss:$16 sps:$4 sm:$0xff]  }
 0x5a8   :  { %9867 = vmatprep.mubr.bf16.mxu0 %v24510_v19  ;;  %9908 = vmatprep.mubr.bf16.mxu1 %v24510_v19 }
 0x5aa   :  { %9838 = vmatpush1.bf16.msra.mxu0 %v23371_v58  ;;  %9879 = vmatpush1.bf16.msra.mxu1 %v23374_v62  ;;  %v23454_v58 = vld [vmem:[#allocation6 + $0x13cc] ss:$16 sps:$4 sm:$0xff]   ;;  %v23449_v62 = vld [vmem:[#allocation6 + $0x13c0] ss:$16 sps:$4 sm:$0xff]  }
 0x5ab   :  { %9839 = vmatprep.subr.bf16.mxu0 %v23379_v63  ;;  %9880 = vmatprep.subr.bf16.mxu1 %v23382_v15  ;;  %v23452_v63 = vld [vmem:[#allocation6 + $0x13c8] ss:$16 sps:$4 sm:$0xff]   ;;  %v23457_v15 = vld [vmem:[#allocation6 + $0x13e4] ss:$16 sps:$4 sm:$0xff]  }
 0x5ae   :  { %9840 = vmatpush1.bf16.msra.mxu0 %v23377_v24  ;;  %9881 = vmatpush1.bf16.msra.mxu1 %v23380_v1  ;;  %v23460_v24 = vld [vmem:[#allocation6 + $0x13ec] ss:$16 sps:$4 sm:$0xff]   ;;  %v23455_v1 = vld [vmem:[#allocation6 + $0x13e0] ss:$16 sps:$4 sm:$0xff]  }
 0x5af   :  { %9841 = vmatprep.subr.bf16.mxu0 %v23385_v2  ;;  %9882 = vmatprep.subr.bf16.mxu1 %v23388_v6  ;;  %v23458_v2 = vld [vmem:[#allocation6 + $0x13e8] ss:$16 sps:$4 sm:$0xff]   ;;  %v23463_v6 = vld [vmem:[#allocation6 + $0x1604] ss:$16 sps:$4 sm:$0xff]  }
 0x5b2   :  { %9842 = vmatpush1.bf16.msra.mxu0 %v23383_v7  ;;  %9883 = vmatpush1.bf16.msra.mxu1 %v23386_v8  ;;  %v23466_v7 = vld [vmem:[#allocation6 + $0x160c] ss:$16 sps:$4 sm:$0xff]   ;;  %v23461_v8 = vld [vmem:[#allocation6 + $0x1600] ss:$16 sps:$4 sm:$0xff]  }
 0x5b3   :  { %9843 = vmatprep.subr.bf16.mxu0 %v23391_v10  ;;  %9884 = vmatprep.subr.bf16.mxu1 %v23394_v11  ;;  %v23464_v10 = vld [vmem:[#allocation6 + $0x1608] ss:$16 sps:$4 sm:$0xff]   ;;  %v9922_v11 = vpack.c.bf16 %v26302_v52, %v26302_v52  ;;  %v23473_v52 = vld [vmem:[#allocation6 + $0x1640] ss:$16 sps:$4 sm:$0xff]  }
 0x5b6   :  { %9844 = vmatpush1.bf16.msra.mxu0 %v23389_v60  ;;  %9885 = vmatpush1.bf16.msra.mxu1 %v23392_v12  ;;  %v23469_v60 = vld [vmem:[#allocation6 + $0x1624] ss:$16 sps:$4 sm:$0xff]   ;;  %v23472_v12 = vld [vmem:[#allocation6 + $0x162c] ss:$16 sps:$4 sm:$0xff]  }
 0x5b7   :  { %9845 = vmatprep.subr.bf16.mxu0 %v23397_v13  ;;  %9886 = vmatprep.subr.bf16.mxu1 %v23400_v39  ;;  %v23467_v13 = vld [vmem:[#allocation6 + $0x1620] ss:$16 sps:$4 sm:$0xff]   ;;  %v23470_v39 = vld [vmem:[#allocation6 + $0x1628] ss:$16 sps:$4 sm:$0xff]  }
 0x5ba   :  { %9846 = vmatpush1.bf16.msra.mxu0 %v23395_v14  ;;  %9887 = vmatpush1.bf16.msra.mxu1 %v23398_v25  ;;  %v23475_v14 = vld [vmem:[#allocation6 + $0x1644] ss:$16 sps:$4 sm:$0xff]   ;;  %v23478_v25 = vld [vmem:[#allocation6 + $0x164c] ss:$16 sps:$4 sm:$0xff]  }
 0x5bb   :  { %9847 = vmatprep.subr.bf16.mxu0 %v23403_v26  ;;  %9888 = vmatprep.subr.bf16.mxu1 %v23406_v9  ;;  %v23476_v26 = vld [vmem:[#allocation6 + $0x1648] ss:$16 sps:$4 sm:$0xff]   ;;  %v23481_v9 = vld [vmem:[#allocation6 + $0x1664] ss:$16 sps:$4 sm:$0xff]  }
 0x5be   :  { %9848 = vmatpush1.bf16.msra.mxu0 %v23401_v20  ;;  %9889 = vmatpush1.bf16.msra.mxu1 %v23404_v57  ;;  %v23484_v20 = vld [vmem:[#allocation6 + $0x166c] ss:$16 sps:$4 sm:$0xff]   ;;  %v23479_v57 = vld [vmem:[#allocation6 + $0x1660] ss:$16 sps:$4 sm:$0xff]  }
 0x5bf   :  { %9849 = vmatprep.subr.bf16.mxu0 %v23409_v61  ;;  %9890 = vmatprep.subr.bf16.mxu1 %v23412_v35  ;;  %v23482_v61 = vld [vmem:[#allocation6 + $0x1668] ss:$16 sps:$4 sm:$0xff]   ;;  %v23487_v35 = vld [vmem:[#allocation6 + $0x1684] ss:$16 sps:$4 sm:$0xff]  }
 0x5c2   :  { %9850 = vmatpush1.bf16.msra.mxu0 %v23407_v4  ;;  %9891 = vmatpush1.bf16.msra.mxu1 %v23410_v21  ;;  %v23490_v4 = vld [vmem:[#allocation6 + $0x168c] ss:$16 sps:$4 sm:$0xff]   ;;  %v23485_v21 = vld [vmem:[#allocation6 + $0x1680] ss:$16 sps:$4 sm:$0xff]  }
 0x5c3   :  { %10116 = vmatprep.subr.bf16.mxu0 %v23415_v30  ;;  %10157 = vmatprep.subr.bf16.mxu1 %v23418_v31  ;;  %v23488_v30 = vld [vmem:[#allocation6 + $0x1688] ss:$16 sps:$4 sm:$0xff]   ;;  %v23493_v31 = vld [vmem:[#allocation6 + $0x16a4] ss:$16 sps:$4 sm:$0xff]  }
 0x5c5   :  { %9868 = vmatmul.mubr.bf16.vlgmr.msra.gmra.mrb[116].mxu0 %v9641_v36  ;;  %9909 = vmatmul.mubr.bf16.vlgmr.msra.gmra.mrb[116].mxu1 %v9641_v36  ;;  %v23494_v36 = vld [vmem:[#allocation6 + $0x16a8] ss:$16 sps:$4 sm:$0xff]  }
 0x5c6   :  { %10117 = vmatpush1.bf16.msra.mxu0 %v23413_v18  ;;  %10158 = vmatpush1.bf16.msra.mxu1 %v23416_v34  ;;  %v23496_v18 = vld [vmem:[#allocation6 + $0x16ac] ss:$16 sps:$4 sm:$0xff]   ;;  %v23491_v34 = vld [vmem:[#allocation6 + $0x16a0] ss:$16 sps:$4 sm:$0xff]  }
 0x5c7   :  { %10118 = vmatprep.subr.bf16.mxu0 %v23421_v37  ;;  %10159 = vmatprep.subr.bf16.mxu1 %v23424_v43  ;;  %v23499_v37 = vld [vmem:[#allocation6 + $0x16c4] ss:$16 sps:$4 sm:$0xff]   ;;  %v23502_v43 = vld [vmem:[#allocation6 + $0x16cc] ss:$16 sps:$4 sm:$0xff]  }
 0x5c8   :  { %10148 = vmatprep.mubr.bf16.mxu0 %v24510_v19  ;;  %10189 = vmatprep.mubr.bf16.mxu1 %v24510_v19 }
 0x5ca   :  { %10119 = vmatpush1.bf16.msra.mxu0 %v23419_v41  ;;  %10160 = vmatpush1.bf16.msra.mxu1 %v23422_v44 }
 0x5cb   :  { %10120 = vmatprep.subr.bf16.mxu0 %v23427_v45  ;;  %10161 = vmatprep.subr.bf16.mxu1 %v23430_v56 }
 0x5ce   :  { %10121 = vmatpush1.bf16.msra.mxu0 %v23425_v33  ;;  %10162 = vmatpush1.bf16.msra.mxu1 %v23428_v46 }
 0x5cf   :  { %10122 = vmatprep.subr.bf16.mxu0 %v23433_v48  ;;  %10163 = vmatprep.subr.bf16.mxu1 %v23436_v47 }
 0x5d2   :  { %10123 = vmatpush1.bf16.msra.mxu0 %v23431_v38  ;;  %10164 = vmatpush1.bf16.msra.mxu1 %v23434_v49 }
 0x5d3   :  { %10124 = vmatprep.subr.bf16.mxu0 %v23439_v50  ;;  %10165 = vmatprep.subr.bf16.mxu1 %v23442_v53  ;;  %v23497_v50 = vld [vmem:[#allocation6 + $0x16c0] ss:$16 sps:$4 sm:$0xff]   ;;  %v23500_v53 = vld [vmem:[#allocation6 + $0x16c8] ss:$16 sps:$4 sm:$0xff]  }
 0x5d6   :  { %10125 = vmatpush1.bf16.msra.mxu0 %v23437_v23  ;;  %10166 = vmatpush1.bf16.msra.mxu1 %v23440_v54  ;;  %v23508_v54 = vld [vmem:[#allocation6 + $0x16ec] ss:$16 sps:$4 sm:$0xff]  }
 0x5d7   :  { %10126 = vmatprep.subr.bf16.mxu0 %v23445_v55  ;;  %10167 = vmatprep.subr.bf16.mxu1 %v23448_v22  ;;  %v23503_v55 = vld [vmem:[#allocation6 + $0x16e0] ss:$16 sps:$4 sm:$0xff]   ;;  %v23514_v22 = vld [vmem:[#allocation6 + $0x190c] ss:$16 sps:$4 sm:$0xff]  }
 0x5da   :  { %10127 = vmatpush1.bf16.msra.mxu0 %v23443_v29  ;;  %10168 = vmatpush1.bf16.msra.mxu1 %v23446_v17  ;;  %v23509_v29 = vld [vmem:[#allocation6 + $0x1900] ss:$16 sps:$4 sm:$0xff]   ;;  %v23512_v17 = vld [vmem:[#allocation6 + $0x1908] ss:$16 sps:$4 sm:$0xff]  }
 0x5db   :  { %10128 = vmatprep.subr.bf16.mxu0 %v23451_v3  ;;  %10169 = vmatprep.subr.bf16.mxu1 %v23454_v58  ;;  %v10203_v3 = vpack.c.bf16 %v26306_v5, %v26306_v5  ;;  %v23517_v58 = vld [vmem:[#allocation6 + $0x1924] ss:$16 sps:$4 sm:$0xff]   ;;  %v23521_v5 = vld [vmem:[#allocation6 + $0x1940] ss:$16 sps:$4 sm:$0xff]  }
 0x5de   :  { %10129 = vmatpush1.bf16.msra.mxu0 %v23449_v62  ;;  %10170 = vmatpush1.bf16.msra.mxu1 %v23452_v63  ;;  %v23520_v62 = vld [vmem:[#allocation6 + $0x192c] ss:$16 sps:$4 sm:$0xff]   ;;  %v23515_v63 = vld [vmem:[#allocation6 + $0x1920] ss:$16 sps:$4 sm:$0xff]  }
 0x5df   :  { %10130 = vmatprep.subr.bf16.mxu0 %v23457_v15  ;;  %10171 = vmatprep.subr.bf16.mxu1 %v23460_v24  ;;  %v23518_v15 = vld [vmem:[#allocation6 + $0x1928] ss:$16 sps:$4 sm:$0xff]   ;;  %v23523_v24 = vld [vmem:[#allocation6 + $0x1944] ss:$16 sps:$4 sm:$0xff]  }
 0x5e2   :  { %10131 = vmatpush1.bf16.msra.mxu0 %v23455_v1  ;;  %10172 = vmatpush1.bf16.msra.mxu1 %v23458_v2  ;;  %v23526_v1 = vld [vmem:[#allocation6 + $0x194c] ss:$16 sps:$4 sm:$0xff]   ;;  %v23524_v2 = vld [vmem:[#allocation6 + $0x1948] ss:$16 sps:$4 sm:$0xff]  }
 0x5e3   :  { %10397 = vmatprep.subr.bf16.mxu0 %v23463_v6  ;;  %10438 = vmatprep.subr.bf16.mxu1 %v23466_v7  ;;  %v23529_v6 = vld [vmem:[#allocation6 + $0x1964] ss:$16 sps:$4 sm:$0xff]   ;;  %v23532_v7 = vld [vmem:[#allocation6 + $0x196c] ss:$16 sps:$4 sm:$0xff]  }
 0x5e5   :  { %10149 = vmatmul.mubr.bf16.vlgmr.msra.gmra.mrb[120].mxu0 %v9922_v11  ;;  %10190 = vmatmul.mubr.bf16.vlgmr.msra.gmra.mrb[120].mxu1 %v9922_v11  ;;  %v23535_v11 = vld [vmem:[#allocation6 + $0x1984] ss:$16 sps:$4 sm:$0xff]  }
 0x5e6   :  { %10398 = vmatpush1.bf16.msra.mxu0 %v23461_v8  ;;  %10439 = vmatpush1.bf16.msra.mxu1 %v23464_v10  ;;  %v23527_v8 = vld [vmem:[#allocation6 + $0x1960] ss:$16 sps:$4 sm:$0xff]   ;;  %v23530_v10 = vld [vmem:[#allocation6 + $0x1968] ss:$16 sps:$4 sm:$0xff]  }
 0x5e7   :  { %10399 = vmatprep.subr.bf16.mxu0 %v23469_v60  ;;  %10440 = vmatprep.subr.bf16.mxu1 %v23472_v12  ;;  %v23538_v60 = vld [vmem:[#allocation6 + $0x198c] ss:$16 sps:$4 sm:$0xff]   ;;  %v23533_v12 = vld [vmem:[#allocation6 + $0x1980] ss:$16 sps:$4 sm:$0xff]  }
 0x5e8   :  { %10429 = vmatprep.mubr.bf16.mxu0 %v24510_v19  ;;  %10470 = vmatprep.mubr.bf16.mxu1 %v24510_v19 }
 0x5ea   :  { %10400 = vmatpush1.bf16.msra.mxu0 %v23467_v13  ;;  %10441 = vmatpush1.bf16.msra.mxu1 %v23470_v39  ;;  %v23536_v13 = vld [vmem:[#allocation6 + $0x1988] ss:$16 sps:$4 sm:$0xff]   ;;  %v23541_v39 = vld [vmem:[#allocation6 + $0x19a4] ss:$16 sps:$4 sm:$0xff]  }
 0x5eb   :  { %10401 = vmatprep.subr.bf16.mxu0 %v23475_v14  ;;  %10442 = vmatprep.subr.bf16.mxu1 %v23478_v25  ;;  %v23544_v14 = vld [vmem:[#allocation6 + $0x19ac] ss:$16 sps:$4 sm:$0xff]   ;;  %v23539_v25 = vld [vmem:[#allocation6 + $0x19a0] ss:$16 sps:$4 sm:$0xff]  }
 0x5ee   :  { %10402 = vmatpush1.bf16.msra.mxu0 %v23473_v52  ;;  %10443 = vmatpush1.bf16.msra.mxu1 %v23476_v26  ;;  %v23542_v52 = vld [vmem:[#allocation6 + $0x19a8] ss:$16 sps:$4 sm:$0xff]   ;;  %v23547_v26 = vld [vmem:[#allocation6 + $0x19c4] ss:$16 sps:$4 sm:$0xff]  }
 0x5ef   :  { %10403 = vmatprep.subr.bf16.mxu0 %v23481_v9  ;;  %10444 = vmatprep.subr.bf16.mxu1 %v23484_v20  ;;  %v23550_v9 = vld [vmem:[#allocation6 + $0x19cc] ss:$16 sps:$4 sm:$0xff]  }
 0x5f2   :  { %10404 = vmatpush1.bf16.msra.mxu0 %v23479_v57  ;;  %10445 = vmatpush1.bf16.msra.mxu1 %v23482_v61 }
 0x5f3   :  { %10405 = vmatprep.subr.bf16.mxu0 %v23487_v35  ;;  %10446 = vmatprep.subr.bf16.mxu1 %v23490_v4 }
 0x5f6   :  { %10406 = vmatpush1.bf16.msra.mxu0 %v23485_v21  ;;  %10447 = vmatpush1.bf16.msra.mxu1 %v23488_v30 }
 0x5f7   :  { %10407 = vmatprep.subr.bf16.mxu0 %v23493_v31  ;;  %10448 = vmatprep.subr.bf16.mxu1 %v23496_v18 }
 0x5f8   :  { %v8464_v41 = vpop.f32.mrb[96].mxu0  ;;  %v8505_v44 = vpop.f32.mrb[96].mxu1 }
 0x5f9   :  { %v26348_v45 = vadd.f32 %v8464_v41, %v26191_v28  ;;  %v26351_v56 = vadd.f32 %v8505_v44, %v26194_v40  ;;  %v8466_v33 = vpop.f32.mrb[97].mxu0  ;;  %v8507_v46 = vpop.f32.mrb[97].mxu1  ;;  %v23505_v40 = vld [vmem:[#allocation6 + $0x16e4] ss:$16 sps:$4 sm:$0xff]  }
 0x5fa   :  { %v26354_v48 = vadd.f32 %v8466_v33, %v26201_v42  ;;  %v26357_v47 = vadd.f32 %v8507_v46, %v26204_v32  ;;  %10408 = vmatpush1.bf16.msra.mxu0 %v23491_v34  ;;  %10449 = vmatpush1.bf16.msra.mxu1 %v23494_v36  ;;  %v8468_v38 = vpop.f32.mrb[98].mxu0  ;;  %v8509_v49 = vpop.f32.mrb[98].mxu1  ;;  %v23506_v42 = vld [vmem:[#allocation6 + $0x16e8] ss:$16 sps:$4 sm:$0xff]   ;;  %v23511_v32 = vld [vmem:[#allocation6 + $0x1904] ss:$16 sps:$4 sm:$0xff]  }
 0x5fb   :  { %v8469_v23 = vpop.f32.mrb[99].mxu0  ;;  %v8510_v28 = vpop.f32.mrb[99].mxu1  ;;  %10409 = vmatprep.subr.bf16.mxu0 %v23499_v37  ;;  %10450 = vmatprep.subr.bf16.mxu1 %v23502_v43  ;;  %v23545_v36 = vld [vmem:[#allocation6 + $0x19c0] ss:$16 sps:$4 sm:$0xff]   ;;  %v23548_v37 = vld [vmem:[#allocation6 + $0x19c8] ss:$16 sps:$4 sm:$0xff]   ;;  %v10484_v49 = vpack.c.bf16 %v26310_v27, %v26310_v27 }
 0x5fc   :  { %v23553_v44 = vld [vmem:[#allocation6 + $0x19e4] ss:$16 sps:$4 sm:$0xff]   ;;  %v23554_v33 = vld [vmem:[#allocation6 + $0x19e8] ss:$16 sps:$4 sm:$0xff]   ;;  %v23563_v23 = vld [vmem:[#allocation6 + $0x1c20] ss:$16 sps:$4 sm:$0xff]  }
 0x5fd   :  { %v23559_v46 = vld [vmem:[#allocation6 + $0x1c04] ss:$16 sps:$4 sm:$0xff]   ;;  %v23560_v38 = vld [vmem:[#allocation6 + $0x1c08] ss:$16 sps:$4 sm:$0xff]   ;;  %v23569_v27 = vld [vmem:[#allocation6 + $0x1c40] ss:$16 sps:$4 sm:$0xff]  }
 0x5fe   :  { %10410 = vmatpush1.bf16.msra.mxu0 %v23497_v50  ;;  %10451 = vmatpush1.bf16.msra.mxu1 %v23500_v53  ;;  %v23565_v50 = vld [vmem:[#allocation6 + $0x1c24] ss:$16 sps:$4 sm:$0xff]   ;;  %v23568_v53 = vld [vmem:[#allocation6 + $0x1c2c] ss:$16 sps:$4 sm:$0xff]   ;;  %v23566_v28 = vld [vmem:[#allocation6 + $0x1c28] ss:$16 sps:$4 sm:$0xff]  }
 0x5ff   :  { %10411 = vmatprep.subr.bf16.mxu0 %v23505_v40  ;;  %10452 = vmatprep.subr.bf16.mxu1 %v23508_v54  ;;  %v23571_v40 = vld [vmem:[#allocation6 + $0x1c44] ss:$16 sps:$4 sm:$0xff]   ;;  %v23574_v54 = vld [vmem:[#allocation6 + $0x1c4c] ss:$16 sps:$4 sm:$0xff]  }
 0x602   :  { %10412 = vmatpush1.bf16.msra.mxu0 %v23503_v55  ;;  %10453 = vmatpush1.bf16.msra.mxu1 %v23506_v42  ;;  %v23572_v55 = vld [vmem:[#allocation6 + $0x1c48] ss:$16 sps:$4 sm:$0xff]   ;;  %v23577_v42 = vld [vmem:[#allocation6 + $0x1c64] ss:$16 sps:$4 sm:$0xff]  }
 0x603   :  { %10678 = vmatprep.subr.bf16.mxu0 %v23511_v32  ;;  %10719 = vmatprep.subr.bf16.mxu1 %v23514_v22  ;;  %v23580_v32 = vld [vmem:[#allocation6 + $0x1c6c] ss:$16 sps:$4 sm:$0xff]   ;;  %v23575_v22 = vld [vmem:[#allocation6 + $0x1c60] ss:$16 sps:$4 sm:$0xff]  }
 0x605   :  { %10430 = vmatmul.mubr.bf16.vlgmr.msra.gmra.mrb[124].mxu0 %v10203_v3  ;;  %10471 = vmatmul.mubr.bf16.vlgmr.msra.gmra.mrb[124].mxu1 %v10203_v3  ;;  %v23586_v3 = vld [vmem:[#allocation6 + $0x1c8c] ss:$16 sps:$4 sm:$0xff]  }
 0x606   :  { %10679 = vmatpush1.bf16.msra.mxu0 %v23509_v29  ;;  %10720 = vmatpush1.bf16.msra.mxu1 %v23512_v17  ;;  %v23578_v29 = vld [vmem:[#allocation6 + $0x1c68] ss:$16 sps:$4 sm:$0xff]   ;;  %v23583_v17 = vld [vmem:[#allocation6 + $0x1c84] ss:$16 sps:$4 sm:$0xff]  }
 0x607   :  { %10680 = vmatprep.subr.bf16.mxu0 %v23517_v58  ;;  %10721 = vmatprep.subr.bf16.mxu1 %v23520_v62  ;;  %v23581_v58 = vld [vmem:[#allocation6 + $0x1c80] ss:$16 sps:$4 sm:$0xff]   ;;  %v23584_v62 = vld [vmem:[#allocation6 + $0x1c88] ss:$16 sps:$4 sm:$0xff]  }
 0x608   :  { %10710 = vmatprep.mubr.bf16.mxu0 %v24510_v19  ;;  %10751 = vmatprep.mubr.bf16.mxu1 %v24510_v19 }
 0x60a   :  { %10681 = vmatpush1.bf16.msra.mxu0 %v23515_v63  ;;  %10722 = vmatpush1.bf16.msra.mxu1 %v23518_v15  ;;  %v23589_v63 = vld [vmem:[#allocation6 + $0x1ca4] ss:$16 sps:$4 sm:$0xff]   ;;  %v23592_v15 = vld [vmem:[#allocation6 + $0x1cac] ss:$16 sps:$4 sm:$0xff]  }
 0x60b   :  { %10682 = vmatprep.subr.bf16.mxu0 %v23523_v24  ;;  %10723 = vmatprep.subr.bf16.mxu1 %v23526_v1  ;;  %v23587_v24 = vld [vmem:[#allocation6 + $0x1ca0] ss:$16 sps:$4 sm:$0xff]   ;;  %v23590_v1 = vld [vmem:[#allocation6 + $0x1ca8] ss:$16 sps:$4 sm:$0xff]  }
 0x60e   :  { %10683 = vmatpush1.bf16.msra.mxu0 %v23521_v5  ;;  %10724 = vmatpush1.bf16.msra.mxu1 %v23524_v2  ;;  %v23595_v5 = vld [vmem:[#allocation6 + $0x1cc4] ss:$16 sps:$4 sm:$0xff]   ;;  %v23598_v2 = vld [vmem:[#allocation6 + $0x1ccc] ss:$16 sps:$4 sm:$0xff]  }
 0x60f   :  { %10684 = vmatprep.subr.bf16.mxu0 %v23529_v6  ;;  %10725 = vmatprep.subr.bf16.mxu1 %v23532_v7 }
 0x612   :  { %10685 = vmatpush1.bf16.msra.mxu0 %v23527_v8  ;;  %10726 = vmatpush1.bf16.msra.mxu1 %v23530_v10 }
 0x613   :  { %10686 = vmatprep.subr.bf16.mxu0 %v23535_v11  ;;  %10727 = vmatprep.subr.bf16.mxu1 %v23538_v60 }
 0x616   :  { %10687 = vmatpush1.bf16.msra.mxu0 %v23533_v12  ;;  %10728 = vmatpush1.bf16.msra.mxu1 %v23536_v13 }
 0x617   :  { %10688 = vmatprep.subr.bf16.mxu0 %v23541_v39  ;;  %10729 = vmatprep.subr.bf16.mxu1 %v23544_v14 }
 0x618   :  { %v8745_v20 = vpop.f32.mrb[100].mxu0  ;;  %v8786_v57 = vpop.f32.mrb[100].mxu1 }
 0x619   :  { %v26364_v61 = vadd.f32 %v8745_v20, %v26348_v45  ;;  %v26367_v35 = vadd.f32 %v8786_v57, %v26351_v56  ;;  %v8747_v4 = vpop.f32.mrb[101].mxu0  ;;  %v8788_v21 = vpop.f32.mrb[101].mxu1  ;;  %v23556_v45 = vld [vmem:[#allocation6 + $0x19ec] ss:$16 sps:$4 sm:$0xff]   ;;  %v23551_v56 = vld [vmem:[#allocation6 + $0x19e0] ss:$16 sps:$4 sm:$0xff]  }
 0x61a   :  { %v26370_v30 = vadd.f32 %v8747_v4, %v26354_v48  ;;  %v26373_v31 = vadd.f32 %v8788_v21, %v26357_v47  ;;  %v8749_v18 = vpop.f32.mrb[102].mxu0  ;;  %v8790_v34 = vpop.f32.mrb[102].mxu1  ;;  %10689 = vmatpush1.bf16.msra.mxu0 %v23539_v25  ;;  %10730 = vmatpush1.bf16.msra.mxu1 %v23542_v52  ;;  %v23562_v48 = vld [vmem:[#allocation6 + $0x1c0c] ss:$16 sps:$4 sm:$0xff]   ;;  %v23557_v47 = vld [vmem:[#allocation6 + $0x1c00] ss:$16 sps:$4 sm:$0xff]  }
 0x61b   :  { %v8750_v43 = vpop.f32.mrb[103].mxu0  ;;  %v8791_v41 = vpop.f32.mrb[103].mxu1  ;;  %10690 = vmatprep.subr.bf16.mxu0 %v23547_v26  ;;  %10731 = vmatprep.subr.bf16.mxu1 %v23550_v9  ;;  %v23593_v25 = vld [vmem:[#allocation6 + $0x1cc0] ss:$16 sps:$4 sm:$0xff]   ;;  %v23596_v52 = vld [vmem:[#allocation6 + $0x1cc8] ss:$16 sps:$4 sm:$0xff]   ;;  %v10765_v18 = vpack.c.bf16 %v26316_v51, %v26316_v51 }
 0x61c   :  { %v23601_v20 = vld [vmem:[#allocation6 + $0x1ce4] ss:$16 sps:$4 sm:$0xff]   ;;  %v23604_v57 = vld [vmem:[#allocation6 + $0x1cec] ss:$16 sps:$4 sm:$0xff]   ;;  %v23614_v43 = vld [vmem:[#allocation6 + $0x1f28] ss:$16 sps:$4 sm:$0xff]  }
 0x61d   :  { %v23607_v4 = vld [vmem:[#allocation6 + $0x1f04] ss:$16 sps:$4 sm:$0xff]   ;;  %v23610_v21 = vld [vmem:[#allocation6 + $0x1f0c] ss:$16 sps:$4 sm:$0xff]   ;;  %v23617_v51 = vld [vmem:[#allocation6 + $0x1f40] ss:$16 sps:$4 sm:$0xff]  }
 0x61e   :  { %10691 = vmatpush1.bf16.msra.mxu0 %v23545_v36  ;;  %10732 = vmatpush1.bf16.msra.mxu1 %v23548_v37  ;;  %v23613_v34 = vld [vmem:[#allocation6 + $0x1f24] ss:$16 sps:$4 sm:$0xff]   ;;  %v23616_v36 = vld [vmem:[#allocation6 + $0x1f2c] ss:$16 sps:$4 sm:$0xff]   ;;  %v23611_v37 = vld [vmem:[#allocation6 + $0x1f20] ss:$16 sps:$4 sm:$0xff]  }
 0x61f   :  { %10692 = vmatprep.subr.bf16.mxu0 %v23553_v44  ;;  %10733 = vmatprep.subr.bf16.mxu1 %v23556_v45  ;;  %v23619_v41 = vld [vmem:[#allocation6 + $0x1f44] ss:$16 sps:$4 sm:$0xff]   ;;  %v23622_v44 = vld [vmem:[#allocation6 + $0x1f4c] ss:$16 sps:$4 sm:$0xff]   ;;  %v23620_v45 = vld [vmem:[#allocation6 + $0x1f48] ss:$16 sps:$4 sm:$0xff]  }
 0x622   :  { %10693 = vmatpush1.bf16.msra.mxu0 %v23551_v56  ;;  %10734 = vmatpush1.bf16.msra.mxu1 %v23554_v33  ;;  %v23625_v56 = vld [vmem:[#allocation6 + $0x1f64] ss:$16 sps:$4 sm:$0xff]   ;;  %v23628_v33 = vld [vmem:[#allocation6 + $0x1f6c] ss:$16 sps:$4 sm:$0xff]  }
 0x623   :  { %10959 = vmatprep.subr.bf16.mxu0 %v23559_v46  ;;  %11000 = vmatprep.subr.bf16.mxu1 %v23562_v48  ;;  %v23623_v46 = vld [vmem:[#allocation6 + $0x1f60] ss:$16 sps:$4 sm:$0xff]   ;;  %v23626_v48 = vld [vmem:[#allocation6 + $0x1f68] ss:$16 sps:$4 sm:$0xff]  }
 0x625   :  { %10711 = vmatmul.mubr.bf16.vlgmr.msra.gmra.mrb[128].mxu0 %v10484_v49  ;;  %10752 = vmatmul.mubr.bf16.vlgmr.msra.gmra.mrb[128].mxu1 %v10484_v49  ;;  %v23629_v49 = vld [vmem:[#allocation6 + $0x1f80] ss:$16 sps:$4 sm:$0xff]  }
 0x626   :  { %10960 = vmatpush1.bf16.msra.mxu0 %v23557_v47  ;;  %11001 = vmatpush1.bf16.msra.mxu1 %v23560_v38  ;;  %v23631_v47 = vld [vmem:[#allocation6 + $0x1f84] ss:$16 sps:$4 sm:$0xff]   ;;  %v23634_v38 = vld [vmem:[#allocation6 + $0x1f8c] ss:$16 sps:$4 sm:$0xff]  }
 0x627   :  { %10961 = vmatprep.subr.bf16.mxu0 %v23565_v50  ;;  %11002 = vmatprep.subr.bf16.mxu1 %v23568_v53  ;;  %v23632_v50 = vld [vmem:[#allocation6 + $0x1f88] ss:$16 sps:$4 sm:$0xff]   ;;  %v23637_v53 = vld [vmem:[#allocation6 + $0x1fa4] ss:$16 sps:$4 sm:$0xff]  }
 0x628   :  { %10991 = vmatprep.mubr.bf16.mxu0 %v24510_v19  ;;  %11032 = vmatprep.mubr.bf16.mxu1 %v24510_v19 }
 0x62a   :  { %10962 = vmatpush1.bf16.msra.mxu0 %v23563_v23  ;;  %11003 = vmatpush1.bf16.msra.mxu1 %v23566_v28  ;;  %v23640_v23 = vld [vmem:[#allocation6 + $0x1fac] ss:$16 sps:$4 sm:$0xff]   ;;  %v23635_v28 = vld [vmem:[#allocation6 + $0x1fa0] ss:$16 sps:$4 sm:$0xff]  }
 0x62b   :  { %10963 = vmatprep.subr.bf16.mxu0 %v23571_v40  ;;  %11004 = vmatprep.subr.bf16.mxu1 %v23574_v54  ;;  %v23638_v40 = vld [vmem:[#allocation6 + $0x1fa8] ss:$16 sps:$4 sm:$0xff]   ;;  %v23643_v54 = vld [vmem:[#allocation6 + $0x1fc4] ss:$16 sps:$4 sm:$0xff]  }
 0x62e   :  { %10964 = vmatpush1.bf16.msra.mxu0 %v23569_v27  ;;  %11005 = vmatpush1.bf16.msra.mxu1 %v23572_v55  ;;  %v23646_v27 = vld [vmem:[#allocation6 + $0x1fcc] ss:$16 sps:$4 sm:$0xff]  }
 0x62f   :  { %10965 = vmatprep.subr.bf16.mxu0 %v23577_v42  ;;  %11006 = vmatprep.subr.bf16.mxu1 %v23580_v32 }
 0x632   :  { %10966 = vmatpush1.bf16.msra.mxu0 %v23575_v22  ;;  %11007 = vmatpush1.bf16.msra.mxu1 %v23578_v29 }
 0x633   :  { %10967 = vmatprep.subr.bf16.mxu0 %v23583_v17  ;;  %11008 = vmatprep.subr.bf16.mxu1 %v23586_v3 }
 0x636   :  { %10968 = vmatpush1.bf16.msra.mxu0 %v23581_v58  ;;  %11009 = vmatpush1.bf16.msra.mxu1 %v23584_v62 }
 0x637   :  { %10969 = vmatprep.subr.bf16.mxu0 %v23589_v63  ;;  %11010 = vmatprep.subr.bf16.mxu1 %v23592_v15  ;;  %v23641_v15 = vld [vmem:[#allocation6 + $0x1fc0] ss:$16 sps:$4 sm:$0xff]  }
 0x638   :  { %v9026_v6 = vpop.f32.mrb[104].mxu0  ;;  %v9067_v7 = vpop.f32.mrb[104].mxu1 }
 0x639   :  { %v26380_v8 = vadd.f32 %v9026_v6, %v26364_v61  ;;  %v26383_v10 = vadd.f32 %v9067_v7, %v26367_v35  ;;  %v9028_v11 = vpop.f32.mrb[105].mxu0  ;;  %v9069_v60 = vpop.f32.mrb[105].mxu1  ;;  %v23599_v61 = vld [vmem:[#allocation6 + $0x1ce0] ss:$16 sps:$4 sm:$0xff]   ;;  %v23602_v35 = vld [vmem:[#allocation6 + $0x1ce8] ss:$16 sps:$4 sm:$0xff]  }
 0x63a   :  { %v26386_v12 = vadd.f32 %v9028_v11, %v26370_v30  ;;  %v26389_v13 = vadd.f32 %v9069_v60, %v26373_v31  ;;  %v9030_v39 = vpop.f32.mrb[106].mxu0  ;;  %v9071_v14 = vpop.f32.mrb[106].mxu1  ;;  %10970 = vmatpush1.bf16.msra.mxu0 %v23587_v24  ;;  %11011 = vmatpush1.bf16.msra.mxu1 %v23590_v1  ;;  %v23605_v30 = vld [vmem:[#allocation6 + $0x1f00] ss:$16 sps:$4 sm:$0xff]   ;;  %v23608_v31 = vld [vmem:[#allocation6 + $0x1f08] ss:$16 sps:$4 sm:$0xff]  }
 0x63b   :  { %v9031_v26 = vpop.f32.mrb[107].mxu0  ;;  %v9072_v9 = vpop.f32.mrb[107].mxu1  ;;  %10971 = vmatprep.subr.bf16.mxu0 %v23595_v5  ;;  %11012 = vmatprep.subr.bf16.mxu1 %v23598_v2  ;;  %v23644_v24 = vld [vmem:[#allocation6 + $0x1fc8] ss:$16 sps:$4 sm:$0xff]   ;;  %v23649_v2 = vld [vmem:[#allocation6 + $0x1fe4] ss:$16 sps:$4 sm:$0xff]  }
 0x63c   :  { %v23652_v6 = vld [vmem:[#allocation6 + $0x1fec] ss:$16 sps:$4 sm:$0xff]   ;;  %v23647_v7 = vld [vmem:[#allocation6 + $0x1fe0] ss:$16 sps:$4 sm:$0xff]   ;;  %v23661_v39 = vld [vmem:[#allocation6 + $0x2224] ss:$16 sps:$4 sm:$0xff]  }
 0x63d   :  { %v23658_v11 = vld [vmem:[#allocation6 + $0x220c] ss:$16 sps:$4 sm:$0xff]   ;;  %v23653_v60 = vld [vmem:[#allocation6 + $0x2200] ss:$16 sps:$4 sm:$0xff]   ;;  %v23667_v26 = vld [vmem:[#allocation6 + $0x2244] ss:$16 sps:$4 sm:$0xff]  }
 0x63e   :  { %10972 = vmatpush1.bf16.msra.mxu0 %v23593_v25  ;;  %11013 = vmatpush1.bf16.msra.mxu1 %v23596_v52  ;;  %v23664_v14 = vld [vmem:[#allocation6 + $0x222c] ss:$16 sps:$4 sm:$0xff]   ;;  %v23659_v25 = vld [vmem:[#allocation6 + $0x2220] ss:$16 sps:$4 sm:$0xff]   ;;  %v23662_v52 = vld [vmem:[#allocation6 + $0x2228] ss:$16 sps:$4 sm:$0xff]  }
 0x63f   :  { %10973 = vmatprep.subr.bf16.mxu0 %v23601_v20  ;;  %11014 = vmatprep.subr.bf16.mxu1 %v23604_v57  ;;  %v23670_v9 = vld [vmem:[#allocation6 + $0x224c] ss:$16 sps:$4 sm:$0xff]   ;;  %v23668_v20 = vld [vmem:[#allocation6 + $0x2248] ss:$16 sps:$4 sm:$0xff]   ;;  %v23673_v57 = vld [vmem:[#allocation6 + $0x2264] ss:$16 sps:$4 sm:$0xff]  }
 0x642   :  { %10974 = vmatpush1.bf16.msra.mxu0 %v23599_v61  ;;  %11015 = vmatpush1.bf16.msra.mxu1 %v23602_v35  ;;  %v23676_v61 = vld [vmem:[#allocation6 + $0x226c] ss:$16 sps:$4 sm:$0xff]   ;;  %v23671_v35 = vld [vmem:[#allocation6 + $0x2260] ss:$16 sps:$4 sm:$0xff]  }
 0x643   :  { %11240 = vmatprep.subr.bf16.mxu0 %v23607_v4  ;;  %11281 = vmatprep.subr.bf16.mxu1 %v23610_v21  ;;  %v23674_v4 = vld [vmem:[#allocation6 + $0x2268] ss:$16 sps:$4 sm:$0xff]   ;;  %v23679_v21 = vld [vmem:[#allocation6 + $0x2284] ss:$16 sps:$4 sm:$0xff]  }
 0x645   :  { %10992 = vmatmul.mubr.bf16.vlgmr.msra.gmra.mrb[132].mxu0 %v10765_v18  ;;  %11033 = vmatmul.mubr.bf16.vlgmr.msra.gmra.mrb[132].mxu1 %v10765_v18  ;;  %v23680_v18 = vld [vmem:[#allocation6 + $0x2288] ss:$16 sps:$4 sm:$0xff]  }
 0x646   :  { %11241 = vmatpush1.bf16.msra.mxu0 %v23605_v30  ;;  %11282 = vmatpush1.bf16.msra.mxu1 %v23608_v31  ;;  %v23682_v30 = vld [vmem:[#allocation6 + $0x228c] ss:$16 sps:$4 sm:$0xff]   ;;  %v23677_v31 = vld [vmem:[#allocation6 + $0x2280] ss:$16 sps:$4 sm:$0xff]  }
 0x647   :  { %11242 = vmatprep.subr.bf16.mxu0 %v23613_v34  ;;  %11283 = vmatprep.subr.bf16.mxu1 %v23616_v36  ;;  %v23685_v34 = vld [vmem:[#allocation6 + $0x22a4] ss:$16 sps:$4 sm:$0xff]   ;;  %v23688_v36 = vld [vmem:[#allocation6 + $0x22ac] ss:$16 sps:$4 sm:$0xff]  }
 0x648   :  { %11272 = vmatprep.mubr.bf16.mxu0 %v24510_v19  ;;  %11313 = vmatprep.mubr.bf16.mxu1 %v24510_v19 }
 0x64a   :  { %11243 = vmatpush1.bf16.msra.mxu0 %v23611_v37  ;;  %11284 = vmatpush1.bf16.msra.mxu1 %v23614_v43  ;;  %v23683_v37 = vld [vmem:[#allocation6 + $0x22a0] ss:$16 sps:$4 sm:$0xff]   ;;  %v23686_v43 = vld [vmem:[#allocation6 + $0x22a8] ss:$16 sps:$4 sm:$0xff]  }
 0x64b   :  { %11244 = vmatprep.subr.bf16.mxu0 %v23619_v41  ;;  %11285 = vmatprep.subr.bf16.mxu1 %v23622_v44  ;;  %v23691_v41 = vld [vmem:[#allocation6 + $0x22c4] ss:$16 sps:$4 sm:$0xff]   ;;  %v23694_v44 = vld [vmem:[#allocation6 + $0x22cc] ss:$16 sps:$4 sm:$0xff]  }
 0x64e   :  { %11245 = vmatpush1.bf16.msra.mxu0 %v23617_v51  ;;  %11286 = vmatpush1.bf16.msra.mxu1 %v23620_v45 }
 0x64f   :  { %11246 = vmatprep.subr.bf16.mxu0 %v23625_v56  ;;  %11287 = vmatprep.subr.bf16.mxu1 %v23628_v33 }
 0x652   :  { %11247 = vmatpush1.bf16.msra.mxu0 %v23623_v46  ;;  %11288 = vmatpush1.bf16.msra.mxu1 %v23626_v48 }
 0x653   :  { %11248 = vmatprep.subr.bf16.mxu0 %v23631_v47  ;;  %11289 = vmatprep.subr.bf16.mxu1 %v23634_v38  ;;  %v23689_v47 = vld [vmem:[#allocation6 + $0x22c0] ss:$16 sps:$4 sm:$0xff]  }
 0x656   :  { %11249 = vmatpush1.bf16.msra.mxu0 %v23629_v49  ;;  %11290 = vmatpush1.bf16.msra.mxu1 %v23632_v50 }
 0x657   :  { %11250 = vmatprep.subr.bf16.mxu0 %v23637_v53  ;;  %11291 = vmatprep.subr.bf16.mxu1 %v23640_v23  ;;  %v23692_v23 = vld [vmem:[#allocation6 + $0x22c8] ss:$16 sps:$4 sm:$0xff]  }
 0x658   :  { %v9307_v55 = vpop.f32.mrb[108].mxu0  ;;  %v9348_v42 = vpop.f32.mrb[108].mxu1 }
 0x659   :  { %v26396_v32 = vadd.f32 %v9307_v55, %v26380_v8  ;;  %v26399_v22 = vadd.f32 %v9348_v42, %v26383_v10  ;;  %v9309_v29 = vpop.f32.mrb[109].mxu0  ;;  %v9350_v17 = vpop.f32.mrb[109].mxu1  ;;  %v23650_v8 = vld [vmem:[#allocation6 + $0x1fe8] ss:$16 sps:$4 sm:$0xff]   ;;  %v23655_v10 = vld [vmem:[#allocation6 + $0x2204] ss:$16 sps:$4 sm:$0xff]  }
 0x65a   :  { %v26402_v3 = vadd.f32 %v9309_v29, %v26386_v12  ;;  %v26405_v58 = vadd.f32 %v9350_v17, %v26389_v13  ;;  %v9311_v62 = vpop.f32.mrb[110].mxu0  ;;  %v9352_v63 = vpop.f32.mrb[110].mxu1  ;;  %11251 = vmatpush1.bf16.msra.mxu0 %v23635_v28  ;;  %11292 = vmatpush1.bf16.msra.mxu1 %v23638_v40  ;;  %v23656_v12 = vld [vmem:[#allocation6 + $0x2208] ss:$16 sps:$4 sm:$0xff]   ;;  %v11046_v13 = vpack.c.bf16 %v26322_v59, %v26322_v59  ;;  %v23665_v59 = vld [vmem:[#allocation6 + $0x2240] ss:$16 sps:$4 sm:$0xff]  }
 0x65b   :  { %v9312_v1 = vpop.f32.mrb[111].mxu0  ;;  %v9353_v5 = vpop.f32.mrb[111].mxu1  ;;  %11252 = vmatprep.subr.bf16.mxu0 %v23643_v54  ;;  %11293 = vmatprep.subr.bf16.mxu1 %v23646_v27  ;;  %v23697_v28 = vld [vmem:[#allocation6 + $0x22e4] ss:$16 sps:$4 sm:$0xff]   ;;  %v23700_v27 = vld [vmem:[#allocation6 + $0x22ec] ss:$16 sps:$4 sm:$0xff]  }
 0x65c   :  { %v11615_v55 = vld [vmem:[#allocation2 + $0xd0] sm:$0xff]  ;;  %v11616_v42 = vld [vmem:[#allocation2 + $0x100] sm:$0xff]  ;;  %v23698_v17 = vld [vmem:[#allocation6 + $0x22e8] ss:$16 sps:$4 sm:$0xff]   ;;  %v11327_v1 = vpack.c.bf16 %v26325_v16, %v26325_v16 }
 0x65d   :  { %v23695_v29 = vld [vmem:[#allocation6 + $0x22e0] ss:$16 sps:$4 sm:$0xff]  }
 0x65e   :  { %11253 = vmatpush1.bf16.msra.mxu0 %v23641_v15  ;;  %11294 = vmatpush1.bf16.msra.mxu1 %v23644_v24  ;;  %v11617_v62 = vld [vmem:[#allocation2 + $0x130] sm:$0xff]  ;;  %v11618_v63 = vld [vmem:[#allocation2 + $0x160] sm:$0xf]  ;;  %v11997_v15 = vld [vmem:[#allocation2 + $0x148] sm:$0xff] }
 0x65f   :  { %11254 = vmatprep.subr.bf16.mxu0 %v23649_v2  ;;  %11295 = vmatprep.subr.bf16.mxu1 %v23652_v6  ;;  %v11998_v24 = vld [vmem:[#allocation2 + $0x178] sm:$0xf]  ;;  %v21799_v5 = vpack.c.bf16 %v11618_v63, %v11617_v62  ;;  %v11607_v6 = vld [vmem:[#allocation2 + $0x10] sm:$0xff]  ;;  %v12378_v62 = vld [vmem:[#allocation2 + $0x220] sm:$0xf] }
 0x660   :  { %v21819_v2 = vpack.c.bf16 %v11998_v24, %v11997_v15 }
 0x662   :  { %11255 = vmatpush1.bf16.msra.mxu0 %v23647_v7  ;;  %11296 = vmatpush1.bf16.msra.mxu1 %v23650_v8  ;;  %v11608_v7 = vld [vmem:[#allocation2 + $0x40] sm:$0xff]  ;;  %v11611_v8 = vld [vmem:[#allocation2 + $0x28] sm:$0xff] }
 0x663   :  { %11521 = vmatprep.subr.bf16.mxu0 %v23655_v10  ;;  %11562 = vmatprep.subr.bf16.mxu1 %v23658_v11  ;;  %v11612_v10 = vld [vmem:[#allocation2 + $0x58] sm:$0xff]  ;;  %v21805_v11 = vpack.c.bf16 %v11608_v7, %v11607_v6  ;;  %v12593_v6 = vld [vmem:[#allocation2 + $0x208] sm:$0xff] }
 0x664   :  { %v21825_v16 = vpack.c.bf16 %v11612_v10, %v11611_v8  ;;  %v12594_v7 = vld [vmem:[#allocation2 + $0x238] sm:$0xf] }
 0x665   :  { %11273 = vmatmul.mubr.bf16.vlgmr.msra.gmra.mrb[136].mxu0 %v11046_v13  ;;  %11314 = vmatmul.mubr.bf16.vlgmr.msra.gmra.mrb[136].mxu1 %v11046_v13  ;;  %v11610_v13 = vld [vmem:[#allocation2 + $0xa0] sm:$0xf] }
 0x666   :  { %11522 = vmatpush1.bf16.msra.mxu0 %v23653_v60  ;;  %11563 = vmatpush1.bf16.msra.mxu1 %v23656_v12  ;;  %v26432_v60 = vld [vmem:[%s27310_s0 + $0x8] sm:$0xff]  ;;  %v11609_v12 = vld [vmem:[#allocation2 + $0x70] sm:$0xff] }
 0x667   :  { %11523 = vmatprep.subr.bf16.mxu0 %v23661_v39  ;;  %11564 = vmatprep.subr.bf16.mxu1 %v23664_v14  ;;  %v11613_v39 = vld [vmem:[#allocation2 + $0x88] sm:$0xff]  ;;  %v11614_v14 = vld [vmem:[#allocation2 + $0xb8] sm:$0xf] }
 0x668   :  { %11553 = vmatprep.mubr.bf16.mxu0 %v24510_v19  ;;  %11594 = vmatprep.mubr.bf16.mxu1 %v24510_v19 }
 0x66a   :  { %11524 = vmatpush1.bf16.msra.mxu0 %v23659_v25  ;;  %11565 = vmatpush1.bf16.msra.mxu1 %v23662_v52  ;;  %v21809_v25 = vpack.c.bf16 %v11610_v13, %v11609_v12  ;;  %v21829_v52 = vpack.c.bf16 %v11614_v14, %v11613_v39  ;;  %v24352_v12 = vld [vmem:[%s27310_s0] sm:$0xff] }
 0x66b   :  { %11525 = vmatprep.subr.bf16.mxu0 %v23667_v26  ;;  %11566 = vmatprep.subr.bf16.mxu1 %v23670_v9  ;;  %v12375_v26 = vld [vmem:[#allocation2 + $0x190] sm:$0xff] }
 0x66c   :  { %v26445_v9 = vld [vmem:[%s27310_s0 + $0x10] sm:$0xff] }
 0x66e   :  { %11526 = vmatpush1.bf16.msra.mxu0 %v23665_v59  ;;  %11567 = vmatpush1.bf16.msra.mxu1 %v23668_v20  ;;  %v12376_v59 = vld [vmem:[#allocation2 + $0x1c0] sm:$0xff]  ;;  %v12591_v20 = vld [vmem:[#allocation2 + $0x1a8] sm:$0xff] }
 0x66f   :  { %11527 = vmatprep.subr.bf16.mxu0 %v23673_v57  ;;  %11568 = vmatprep.subr.bf16.mxu1 %v23676_v61  ;;  %v12592_v57 = vld [vmem:[#allocation2 + $0x1d8] sm:$0xff] }
 0x670   :  { %v26454_v61 = vld [vmem:[%s27310_s0 + $0x18] sm:$0xff] }
 0x672   :  { %11528 = vmatpush1.bf16.msra.mxu0 %v23671_v35  ;;  %11569 = vmatpush1.bf16.msra.mxu1 %v23674_v4  ;;  %v26464_v35 = vpack.c.bf16 %v12376_v59, %v12375_v26  ;;  %v26466_v4 = vpack.c.bf16 %v12592_v57, %v12591_v20  ;;  %v12808_v26 = vld [vmem:[#allocation2 + $0x280] sm:$0xff]  ;;  %v13023_v59 = vld [vmem:[#allocation2 + $0x268] sm:$0xff]  ;;  %v13024_v20 = vld [vmem:[#allocation2 + $0x298] sm:$0xff] }
 0x673   :  { %11529 = vmatprep.subr.bf16.mxu0 %v23679_v21  ;;  %11570 = vmatprep.subr.bf16.mxu1 %v23682_v30  ;;  %v26471_v21 = vld [vmem:[%s27310_s0 + $0x20] sm:$0xff]  ;;  %v26480_v30 = vld [vmem:[%s27310_s0 + $0x28] sm:$0xff]  ;;  %v26698_v57 = vpack.c.bf16 %v13024_v20, %v13023_v59 }
 0x676   :  { %11530 = vmatpush1.bf16.msra.mxu0 %v23677_v31  ;;  %11571 = vmatpush1.bf16.msra.mxu1 %v23680_v18  ;;  %v26495_v31 = vld [vmem:[%s27310_s0 + $0x30] sm:$0xff]  ;;  %v26504_v18 = vld [vmem:[%s27310_s0 + $0x38] sm:$0xff] }
 0x677   :  { %11531 = vmatprep.subr.bf16.mxu0 %v23685_v34  ;;  %11572 = vmatprep.subr.bf16.mxu1 %v23688_v36 }
 0x678   :  { %v9588_v51 = vpop.f32.mrb[112].mxu0  ;;  %v9629_v45 = vpop.f32.mrb[112].mxu1 }
 0x679   :  { %v26412_v56 = vadd.f32 %v9588_v51, %v26396_v32  ;;  %v26415_v33 = vadd.f32 %v9629_v45, %v26399_v22  ;;  %v9590_v46 = vpop.f32.mrb[113].mxu0  ;;  %v9631_v48 = vpop.f32.mrb[113].mxu1  ;;  %v11995_v32 = vld [vmem:[#allocation2 + $0xe8] sm:$0xff]  ;;  %v11996_v22 = vld [vmem:[#allocation2 + $0x118] sm:$0xff]  ;;  %v26515_v51 = vld [vmem:[%s27310_s0 + $0x40] sm:$0xff] }
 0x67a   :  { %v26418_v38 = vadd.f32 %v9590_v46, %v26402_v3  ;;  %v26421_v49 = vadd.f32 %v9631_v48, %v26405_v58  ;;  %v9592_v50 = vpop.f32.mrb[114].mxu0  ;;  %v9633_v53 = vpop.f32.mrb[114].mxu1  ;;  %11532 = vmatpush1.bf16.msra.mxu0 %v23683_v37  ;;  %11573 = vmatpush1.bf16.msra.mxu1 %v23686_v43  ;;  %v21795_v3 = vpack.c.bf16 %v11616_v42, %v11615_v55  ;;  %v26530_v48 = vld [vmem:[%s27310_s0 + $0x48] sm:$0xff]  ;;  %v26611_v55 = vld [vmem:[%s27310_s0 + $0x90] sm:$0xff]  ;;  %v26620_v42 = vld [vmem:[%s27310_s0 + $0x98] sm:$0xff] }
 0x67b   :  { %v9593_v40 = vpop.f32.mrb[115].mxu0  ;;  %v9634_v54 = vpop.f32.mrb[115].mxu1  ;;  %11533 = vmatprep.subr.bf16.mxu0 %v23691_v41  ;;  %11574 = vmatprep.subr.bf16.mxu1 %v23694_v44  ;;  %v21815_v58 = vpack.c.bf16 %v11996_v22, %v11995_v32  ;;  %v26557_v53 = vld [vmem:[%s27310_s0 + $0x60] sm:$0xff]  ;;  %v26638_v22 = vld [vmem:[%s27310_s0 + $0xa8] sm:$0xff] }
 0x67c   :  { %v26584_v40 = vld [vmem:[%s27310_s0 + $0x78] sm:$0xff]  ;;  %v26593_v54 = vld [vmem:[%s27310_s0 + $0x80] sm:$0xff] }
 0x67d   :  { %v26629_v32 = vld [vmem:[%s27310_s0 + $0xa0] sm:$0xff] }
 0x67e   :  { %11534 = vmatpush1.bf16.msra.mxu0 %v23689_v47  ;;  %11575 = vmatpush1.bf16.msra.mxu1 %v23692_v23  ;;  %v26566_v23 = vld [vmem:[%s27310_s0 + $0x68] sm:$0xff] }
 0x67f   :  { %11535 = vmatprep.subr.bf16.mxu0 %v23697_v28  ;;  %11576 = vmatprep.subr.bf16.mxu1 %v23700_v27  ;;  %v26575_v28 = vld [vmem:[%s27310_s0 + $0x70] sm:$0xff]  ;;  %v26602_v27 = vld [vmem:[%s27310_s0 + $0x88] sm:$0xff] }
 0x682   :  { %11536 = vmatpush1.bf16.msra.mxu0 %v23695_v29  ;;  %11577 = vmatpush1.bf16.msra.mxu1 %v23698_v17  ;;  %v26647_v29 = vld [vmem:[%s27310_s0 + $0xb0] sm:$0xff]  ;;  %v26656_v17 = vld [vmem:[%s27310_s0 + $0xb8] sm:$0xff] }
 0x683   :  { %21796 = vmatprep.subr.bf16.mxu0 %v21795_v3  ;;  %21816 = vmatprep.subr.bf16.mxu1 %v21815_v58 }
 0x685   :  { %11554 = vmatmul.mubr.bf16.vlgmr.msra.gmra.mrb[140].mxu0 %v11327_v1  ;;  %11595 = vmatmul.mubr.bf16.vlgmr.msra.gmra.mrb[140].mxu1 %v11327_v1 }
 0x686   :  { %21798 = vmatpush3.bf16.msra.mxu0 %v21795_v3  ;;  %21818 = vmatpush3.bf16.msra.mxu1 %v21815_v58 }
 0x687   :  { %21801 = vmatprep.subr.msk.bf16.mxu0 %vm24623_vm2, %v21799_v5  ;;  %21821 = vmatprep.subr.msk.bf16.mxu1 %vm24623_vm2, %v21819_v2 }
 0x688   :  { %21163 = vmatprep.mubr.msk.f32.mxu0 %vm165_vm3, %v26432_v60  ;;  %21251 = vmatprep.mubr.msk.f32.mxu1 %vm165_vm3, %v26432_v60 }
 0x68a   :  { %21804 = vmatpush3.bf16.msk.msra.mxu0 %vm24623_vm2, %v21799_v5  ;;  %21824 = vmatpush3.bf16.msk.msra.mxu1 %vm24623_vm2, %v21819_v2  ;;  %v26669_v5 = vld [vmem:[%s27310_s0 + $0xc0] sm:$0xff]  ;;  %v12377_v2 = vld [vmem:[#allocation2 + $0x1f0] sm:$0xff] }
 0x68b   :  { %21806 = vmatprep.subr.bf16.mxu0 %v21805_v11  ;;  %21826 = vmatprep.subr.bf16.mxu1 %v21825_v16  ;;  %v21839_v14 = vpack.c.bf16 %v12378_v62, %v12377_v2  ;;  %v13456_v2 = vld [vmem:[#allocation2 + $0x358] sm:$0xff] }
 0x68d   :  { %21164 = vmatmul.mubr.msk.f32.vlgmr.msra.gmra.mrb[144].mxu0 %vm165_vm3, %v26445_v9  ;;  %21252 = vmatmul.mubr.msk.f32.vlgmr.msra.gmra.mrb[144].mxu1 %vm165_vm3, %v26445_v9 }
 0x68e   :  { %21808 = vmatpush3.bf16.msra.mxu0 %v21805_v11  ;;  %21828 = vmatpush3.bf16.msra.mxu1 %v21825_v16 }
 0x68f   :  { %21166 = vmatprep.mubr.msk.f32.mxu0 %vm165_vm3, %v26454_v61  ;;  %21254 = vmatprep.mubr.msk.f32.mxu1 %vm165_vm3, %v26454_v61 }
 0x690   :  { %21811 = vmatprep.subr.msk.bf16.mxu0 %vm24623_vm2, %v21809_v25  ;;  %21831 = vmatprep.subr.msk.bf16.mxu1 %vm24623_vm2, %v21829_v52 }
 0x691   :  { %21167 = vmatmul.mubr.msk.f32.gmra.mrb[146].mxu0 %vm165_vm3, %v26471_v21  ;;  %21255 = vmatmul.mubr.msk.f32.gmra.mrb[146].mxu1 %vm165_vm3, %v26471_v21 }
 0x692   :  { %21169 = vmatprep.mubr.msk.f32.mxu0 %vm165_vm3, %v26480_v30  ;;  %21257 = vmatprep.mubr.msk.f32.mxu1 %vm165_vm3, %v26480_v30 }
 0x693   :  { %21814 = vmatpush3.bf16.msk.msra.mxu0 %vm24623_vm2, %v21809_v25  ;;  %21834 = vmatpush3.bf16.msk.msra.mxu1 %vm24623_vm2, %v21829_v52  ;;  %v21849_v25 = vpack.c.bf16 %v12594_v7, %v12593_v6  ;;  %v12807_v52 = vld [vmem:[#allocation2 + $0x250] sm:$0xff] }
 0x694   :  { %21836 = vmatprep.subr.bf16.mxu0 %v26464_v35  ;;  %21846 = vmatprep.subr.bf16.mxu1 %v26466_v4 }
 0x695   :  { %21170 = vmatmul.mubr.msk.f32.gmra.mrb[148].mxu0 %vm165_vm3, %v26495_v31  ;;  %21258 = vmatmul.mubr.msk.f32.gmra.mrb[148].mxu1 %vm165_vm3, %v26495_v31 }
 0x696   :  { %21172 = vmatprep.mubr.msk.f32.mxu0 %vm165_vm3, %v26504_v18  ;;  %21260 = vmatprep.mubr.msk.f32.mxu1 %vm165_vm3, %v26504_v18 }
 0x698   :  { %v9869_v34 = vpop.f32.mrb[116].mxu0  ;;  %v9910_v36 = vpop.f32.mrb[116].mxu1 }
 0x699   :  { %v9917_v37 = vadd.f32 %v9869_v34, %v26412_v56  ;;  %v9919_v43 = vadd.f32 %v9910_v36, %v26415_v33  ;;  %v9871_v41 = vpop.f32.mrb[117].mxu0  ;;  %v9912_v44 = vpop.f32.mrb[117].mxu1  ;;  %21173 = vmatmul.mubr.msk.f32.gmra.mrb[150].mxu0 %vm165_vm3, %v26515_v51  ;;  %21261 = vmatmul.mubr.msk.f32.gmra.mrb[150].mxu1 %vm165_vm3, %v26515_v51 }
 0x69a   :  { %v26522_v45 = vadd.f32 %v9871_v41, %v26418_v38  ;;  %v26525_v56 = vadd.f32 %v9912_v44, %v26421_v49  ;;  %v9873_v33 = vpop.f32.mrb[118].mxu0  ;;  %v9914_v46 = vpop.f32.mrb[118].mxu1  ;;  %21175 = vmatprep.mubr.msk.f32.mxu0 %vm165_vm3, %v26530_v48  ;;  %21263 = vmatprep.mubr.msk.f32.mxu1 %vm165_vm3, %v26530_v48  ;;  %v26539_v38 = vld [vmem:[%s27310_s0 + $0x50] sm:$0xff]  ;;  %v26548_v49 = vld [vmem:[%s27310_s0 + $0x58] sm:$0xff] }
 0x69b   :  { %v9874_v47 = vpop.f32.mrb[119].mxu0  ;;  %v9915_v50 = vpop.f32.mrb[119].mxu1 }
 0x69c   :  { %v12809_v47 = vld [vmem:[#allocation2 + $0x2b0] sm:$0xff]  ;;  %v12810_v50 = vld [vmem:[#allocation2 + $0x2e0] sm:$0xf] }
 0x69d   :  { %21176 = vmatmul.mubr.msk.f32.gmra.mrb[152].mxu0 %vm165_vm3, %v26539_v38  ;;  %21264 = vmatmul.mubr.msk.f32.gmra.mrb[152].mxu1 %vm165_vm3, %v26539_v38  ;;  %v21859_v62 = vpack.c.bf16 %v12810_v50, %v12809_v47 }
 0x69e   :  { %21178 = vmatprep.mubr.msk.f32.mxu0 %vm165_vm3, %v26548_v49  ;;  %21266 = vmatprep.mubr.msk.f32.mxu1 %vm165_vm3, %v26548_v49 }
 0x6a1   :  { %21179 = vmatmul.mubr.msk.f32.gmra.mrb[154].mxu0 %vm165_vm3, %v26557_v53  ;;  %21267 = vmatmul.mubr.msk.f32.gmra.mrb[154].mxu1 %vm165_vm3, %v26557_v53 }
 0x6a2   :  { %21181 = vmatprep.mubr.msk.f32.mxu0 %vm165_vm3, %v26566_v23  ;;  %21269 = vmatprep.mubr.msk.f32.mxu1 %vm165_vm3, %v26566_v23 }
 0x6a5   :  { %21182 = vmatmul.mubr.msk.f32.gmra.mrb[156].mxu0 %vm165_vm3, %v26575_v28  ;;  %21270 = vmatmul.mubr.msk.f32.gmra.mrb[156].mxu1 %vm165_vm3, %v26575_v28 }
 0x6a6   :  { %21184 = vmatprep.mubr.msk.f32.mxu0 %vm165_vm3, %v26584_v40  ;;  %21272 = vmatprep.mubr.msk.f32.mxu1 %vm165_vm3, %v26584_v40 }
 0x6a9   :  { %21185 = vmatmul.mubr.msk.f32.gmra.mrb[158].mxu0 %vm165_vm3, %v26593_v54  ;;  %21273 = vmatmul.mubr.msk.f32.gmra.mrb[158].mxu1 %vm165_vm3, %v26593_v54 }
 0x6aa   :  { %21187 = vmatprep.mubr.msk.f32.mxu0 %vm165_vm3, %v26602_v27  ;;  %21275 = vmatprep.mubr.msk.f32.mxu1 %vm165_vm3, %v26602_v27 }
 0x6ad   :  { %21188 = vmatmul.mubr.msk.f32.gmra.mrb[160].mxu0 %vm165_vm3, %v26611_v55  ;;  %21276 = vmatmul.mubr.msk.f32.gmra.mrb[160].mxu1 %vm165_vm3, %v26611_v55 }
 0x6ae   :  { %21190 = vmatprep.mubr.msk.f32.mxu0 %vm165_vm3, %v26620_v42  ;;  %21278 = vmatprep.mubr.msk.f32.mxu1 %vm165_vm3, %v26620_v42 }
 0x6b1   :  { %21191 = vmatmul.mubr.msk.f32.gmra.mrb[162].mxu0 %vm165_vm3, %v26629_v32  ;;  %21279 = vmatmul.mubr.msk.f32.gmra.mrb[162].mxu1 %vm165_vm3, %v26629_v32 }
 0x6b2   :  { %21193 = vmatprep.mubr.msk.f32.mxu0 %vm165_vm3, %v26638_v22  ;;  %21281 = vmatprep.mubr.msk.f32.mxu1 %vm165_vm3, %v26638_v22 }
 0x6b5   :  { %21194 = vmatmul.mubr.msk.f32.gmra.mrb[164].mxu0 %vm165_vm3, %v26647_v29  ;;  %21282 = vmatmul.mubr.msk.f32.gmra.mrb[164].mxu1 %vm165_vm3, %v26647_v29 }
 0x6b6   :  { %21196 = vmatprep.mubr.msk.f32.mxu0 %vm165_vm3, %v26656_v17  ;;  %21284 = vmatprep.mubr.msk.f32.mxu1 %vm165_vm3, %v26656_v17 }
 0x6b8   :  { %v10150_v3 = vpop.f32.mrb[120].mxu0  ;;  %v10191_v58 = vpop.f32.mrb[120].mxu1 }
 0x6b9   :  { %v26662_v63 = vadd.f32 %v10150_v3, %v9917_v37  ;;  %v26664_v15 = vadd.f32 %v10191_v58, %v9919_v43  ;;  %v10152_v24 = vpop.f32.mrb[121].mxu0  ;;  %v10193_v1 = vpop.f32.mrb[121].mxu1  ;;  %21197 = vmatmul.mubr.msk.f32.gmra.mrb[166].mxu0 %vm165_vm3, %v26669_v5  ;;  %21285 = vmatmul.mubr.msk.f32.gmra.mrb[166].mxu1 %vm165_vm3, %v26669_v5  ;;  %v13025_v3 = vld [vmem:[#allocation2 + $0x2c8] sm:$0xff]  ;;  %v13026_v58 = vld [vmem:[#allocation2 + $0x2f8] sm:$0xf] }
 0x6ba   :  { %v10199_v8 = vadd.f32 %v10152_v24, %v26522_v45  ;;  %v10201_v10 = vadd.f32 %v10193_v1, %v26525_v56  ;;  %v10154_v11 = vpop.f32.mrb[122].mxu0  ;;  %v10195_v16 = vpop.f32.mrb[122].mxu1  ;;  %21207 = vmatprep.mubr.msk.f32.mxu0 %vm165_vm3, %v24352_v12  ;;  %21295 = vmatprep.mubr.msk.f32.mxu1 %vm165_vm3, %v24352_v12  ;;  %v13240_v24 = vld [vmem:[#allocation2 + $0x340] sm:$0xff]  ;;  %v13455_v1 = vld [vmem:[#allocation2 + $0x328] sm:$0xff] }
 0x6bb   :  { %v10155_v13 = vpop.f32.mrb[123].mxu0  ;;  %v10196_v39 = vpop.f32.mrb[123].mxu1  ;;  %v26820_v6 = vpack.c.bf16 %v13456_v2, %v13455_v1 }
 0x6bd   :  { %21208 = vmatmul.mubr.msk.f32.vlgmr.msra.gmra.mrb[144].mxu0 %vm165_vm3, %v26432_v60  ;;  %21296 = vmatmul.mubr.msk.f32.vlgmr.msra.gmra.mrb[144].mxu1 %vm165_vm3, %v26432_v60  ;;  %v26696_v60 = vpack.c.bf16 %v12808_v26, %v12807_v52 }
 0x6be   :  { %21838 = vmatpush3.bf16.msra.mxu0 %v26464_v35  ;;  %21848 = vmatpush3.bf16.msra.mxu1 %v26466_v4 }
 0x6bf   :  { %21210 = vmatprep.mubr.msk.f32.mxu0 %vm165_vm3, %v26445_v9  ;;  %21298 = vmatprep.mubr.msk.f32.mxu1 %vm165_vm3, %v26445_v9 }
 0x6c0   :  { %21841 = vmatprep.subr.msk.bf16.mxu0 %vm24623_vm2, %v21839_v14  ;;  %21851 = vmatprep.subr.msk.bf16.mxu1 %vm24623_vm2, %v21849_v25 }
 0x6c1   :  { %21211 = vmatmul.mubr.msk.f32.gmra.mrb[146].mxu0 %vm165_vm3, %v26454_v61  ;;  %21299 = vmatmul.mubr.msk.f32.gmra.mrb[146].mxu1 %vm165_vm3, %v26454_v61 }
 0x6c2   :  { %21213 = vmatprep.mubr.msk.f32.mxu0 %vm165_vm3, %v26471_v21  ;;  %21301 = vmatprep.mubr.msk.f32.mxu1 %vm165_vm3, %v26471_v21 }
 0x6c3   :  { %21844 = vmatpush3.bf16.msk.msra.mxu0 %vm24623_vm2, %v21839_v14  ;;  %21854 = vmatpush3.bf16.msk.msra.mxu1 %vm24623_vm2, %v21849_v25 }
 0x6c4   :  { %21856 = vmatprep.subr.bf16.mxu0 %v26696_v60  ;;  %21866 = vmatprep.subr.bf16.mxu1 %v26698_v57 }
 0x6c5   :  { %21214 = vmatmul.mubr.msk.f32.gmra.mrb[148].mxu0 %vm165_vm3, %v26480_v30  ;;  %21302 = vmatmul.mubr.msk.f32.gmra.mrb[148].mxu1 %vm165_vm3, %v26480_v30 }
 0x6c6   :  { %21216 = vmatprep.mubr.msk.f32.mxu0 %vm165_vm3, %v26495_v31  ;;  %21304 = vmatprep.mubr.msk.f32.mxu1 %vm165_vm3, %v26495_v31 }
 0x6c9   :  { %21217 = vmatmul.mubr.msk.f32.gmra.mrb[150].mxu0 %vm165_vm3, %v26504_v18  ;;  %21305 = vmatmul.mubr.msk.f32.gmra.mrb[150].mxu1 %vm165_vm3, %v26504_v18 }
 0x6ca   :  { %21219 = vmatprep.mubr.msk.f32.mxu0 %vm165_vm3, %v26515_v51  ;;  %21307 = vmatprep.mubr.msk.f32.mxu1 %vm165_vm3, %v26515_v51 }
 0x6cd   :  { %21220 = vmatmul.mubr.msk.f32.gmra.mrb[152].mxu0 %vm165_vm3, %v26530_v48  ;;  %21308 = vmatmul.mubr.msk.f32.gmra.mrb[152].mxu1 %vm165_vm3, %v26530_v48 }
 0x6ce   :  { %21222 = vmatprep.mubr.msk.f32.mxu0 %vm165_vm3, %v26539_v38  ;;  %21310 = vmatprep.mubr.msk.f32.mxu1 %vm165_vm3, %v26539_v38 }
 0x6d1   :  { %21223 = vmatmul.mubr.msk.f32.gmra.mrb[154].mxu0 %vm165_vm3, %v26548_v49  ;;  %21311 = vmatmul.mubr.msk.f32.gmra.mrb[154].mxu1 %vm165_vm3, %v26548_v49 }
 0x6d2   :  { %21225 = vmatprep.mubr.msk.f32.mxu0 %vm165_vm3, %v26557_v53  ;;  %21313 = vmatprep.mubr.msk.f32.mxu1 %vm165_vm3, %v26557_v53 }
 0x6d5   :  { %21226 = vmatmul.mubr.msk.f32.gmra.mrb[156].mxu0 %vm165_vm3, %v26566_v23  ;;  %21314 = vmatmul.mubr.msk.f32.gmra.mrb[156].mxu1 %vm165_vm3, %v26566_v23 }
 0x6d6   :  { %21228 = vmatprep.mubr.msk.f32.mxu0 %vm165_vm3, %v26575_v28  ;;  %21316 = vmatprep.mubr.msk.f32.mxu1 %vm165_vm3, %v26575_v28 }
 0x6d8   :  { %v10431_v35 = vpop.f32.mrb[124].mxu0  ;;  %v10472_v4 = vpop.f32.mrb[124].mxu1 }
 0x6d9   :  { %v26755_v34 = vadd.f32 %v10431_v35, %v26662_v63  ;;  %v26758_v36 = vadd.f32 %v10472_v4, %v26664_v15  ;;  %v10433_v37 = vpop.f32.mrb[125].mxu0  ;;  %v10474_v43 = vpop.f32.mrb[125].mxu1  ;;  %21229 = vmatmul.mubr.msk.f32.gmra.mrb[158].mxu0 %vm165_vm3, %v26584_v40  ;;  %21317 = vmatmul.mubr.msk.f32.gmra.mrb[158].mxu1 %vm165_vm3, %v26584_v40  ;;  %v21869_v63 = vpack.c.bf16 %v13026_v58, %v13025_v3  ;;  %v13239_v15 = vld [vmem:[#allocation2 + $0x310] sm:$0xff] }
 0x6da   :  { %v26764_v41 = vadd.f32 %v10433_v37, %v10199_v8  ;;  %v26766_v44 = vadd.f32 %v10474_v43, %v10201_v10  ;;  %v10435_v45 = vpop.f32.mrb[126].mxu0  ;;  %v10476_v56 = vpop.f32.mrb[126].mxu1  ;;  %21231 = vmatprep.mubr.msk.f32.mxu0 %vm165_vm3, %v26593_v54  ;;  %21319 = vmatprep.mubr.msk.f32.mxu1 %vm165_vm3, %v26593_v54  ;;  %v13241_v37 = vld [vmem:[#allocation2 + $0x370] sm:$0xff]  ;;  %v13457_v43 = vld [vmem:[#allocation2 + $0x388] sm:$0xff] }
 0x6db   :  { %v10436_v33 = vpop.f32.mrb[127].mxu0  ;;  %v10477_v46 = vpop.f32.mrb[127].mxu1  ;;  %v23706_v58 = vld [vmem:[#allocation6 + $0x20c] ss:$16 sps:$4 sm:$0xff]  }
 0x6dd   :  { %21232 = vmatmul.mubr.msk.f32.gmra.mrb[160].mxu0 %vm165_vm3, %v26602_v27  ;;  %21320 = vmatmul.mubr.msk.f32.gmra.mrb[160].mxu1 %vm165_vm3, %v26602_v27 }
 0x6de   :  { %21234 = vmatprep.mubr.msk.f32.mxu0 %vm165_vm3, %v26611_v55  ;;  %21322 = vmatprep.mubr.msk.f32.mxu1 %vm165_vm3, %v26611_v55 }
 0x6e1   :  { %21235 = vmatmul.mubr.msk.f32.gmra.mrb[162].mxu0 %vm165_vm3, %v26620_v42  ;;  %21323 = vmatmul.mubr.msk.f32.gmra.mrb[162].mxu1 %vm165_vm3, %v26620_v42 }
 0x6e2   :  { %21237 = vmatprep.mubr.msk.f32.mxu0 %vm165_vm3, %v26629_v32  ;;  %21325 = vmatprep.mubr.msk.f32.mxu1 %vm165_vm3, %v26629_v32 }
 0x6e5   :  { %21238 = vmatmul.mubr.msk.f32.gmra.mrb[164].mxu0 %vm165_vm3, %v26638_v22  ;;  %21326 = vmatmul.mubr.msk.f32.gmra.mrb[164].mxu1 %vm165_vm3, %v26638_v22 }
 0x6e6   :  { %21240 = vmatprep.mubr.msk.f32.mxu0 %vm165_vm3, %v26647_v29  ;;  %21328 = vmatprep.mubr.msk.f32.mxu1 %vm165_vm3, %v26647_v29 }
 0x6e9   :  { %21241 = vmatmul.mubr.msk.f32.gmra.mrb[166].mxu0 %vm165_vm3, %v26656_v17  ;;  %21329 = vmatmul.mubr.msk.f32.gmra.mrb[166].mxu1 %vm165_vm3, %v26656_v17 }
 0x6ea   :  { %21339 = vmatprep.mubr.msk.f32.mxu0 %vm165_vm3, %v26445_v9  ;;  %21383 = vmatprep.mubr.msk.f32.mxu1 %vm165_vm3, %v26445_v9  ;;  %v26818_v9 = vpack.c.bf16 %v13240_v24, %v13239_v15 }
 0x6ed   :  { %21340 = vmatmul.mubr.msk.f32.vlgmr.msra.gmra.mrb[144].mxu0 %vm165_vm3, %v26454_v61  ;;  %21384 = vmatmul.mubr.msk.f32.vlgmr.msra.gmra.mrb[144].mxu1 %vm165_vm3, %v26454_v61 }
 0x6ee   :  { %21858 = vmatpush3.bf16.msra.mxu0 %v26696_v60  ;;  %21868 = vmatpush3.bf16.msra.mxu1 %v26698_v57  ;;  %v13242_v60 = vld [vmem:[#allocation2 + $0x3a0] sm:$0xf] }
 0x6ef   :  { %21342 = vmatprep.mubr.msk.f32.mxu0 %vm165_vm3, %v26471_v21  ;;  %21386 = vmatprep.mubr.msk.f32.mxu1 %vm165_vm3, %v26471_v21  ;;  %v21879_v50 = vpack.c.bf16 %v13242_v60, %v13241_v37 }
 0x6f0   :  { %21861 = vmatprep.subr.msk.bf16.mxu0 %vm24623_vm2, %v21859_v62  ;;  %21871 = vmatprep.subr.msk.bf16.mxu1 %vm24623_vm2, %v21869_v63 }
 0x6f1   :  { %21343 = vmatmul.mubr.msk.f32.gmra.mrb[146].mxu0 %vm165_vm3, %v26480_v30  ;;  %21387 = vmatmul.mubr.msk.f32.gmra.mrb[146].mxu1 %vm165_vm3, %v26480_v30 }
 0x6f2   :  { %21345 = vmatprep.mubr.msk.f32.mxu0 %vm165_vm3, %v26495_v31  ;;  %21389 = vmatprep.mubr.msk.f32.mxu1 %vm165_vm3, %v26495_v31 }
 0x6f3   :  { %21864 = vmatpush3.bf16.msk.msra.mxu0 %vm24623_vm2, %v21859_v62  ;;  %21874 = vmatpush3.bf16.msk.msra.mxu1 %vm24623_vm2, %v21869_v63 }
 0x6f4   :  { %21876 = vmatprep.subr.bf16.mxu0 %v26818_v9  ;;  %21886 = vmatprep.subr.bf16.mxu1 %v26820_v6 }
 0x6f5   :  { %21346 = vmatmul.mubr.msk.f32.gmra.mrb[148].mxu0 %vm165_vm3, %v26504_v18  ;;  %21390 = vmatmul.mubr.msk.f32.gmra.mrb[148].mxu1 %vm165_vm3, %v26504_v18 }
 0x6f6   :  { %21348 = vmatprep.mubr.msk.f32.mxu0 %vm165_vm3, %v26515_v51  ;;  %21392 = vmatprep.mubr.msk.f32.mxu1 %vm165_vm3, %v26515_v51 }
 0x6f8   :  { %v10712_v7 = vpop.f32.mrb[128].mxu0  ;;  %v10753_v8 = vpop.f32.mrb[128].mxu1 }
 0x6f9   :  { %v10760_v10 = vadd.f32 %v10712_v7, %v26755_v34  ;;  %v10762_v11 = vadd.f32 %v10753_v8, %v26758_v36  ;;  %v10714_v16 = vpop.f32.mrb[129].mxu0  ;;  %v10755_v12 = vpop.f32.mrb[129].mxu1  ;;  %21349 = vmatmul.mubr.msk.f32.gmra.mrb[150].mxu0 %vm165_vm3, %v26530_v48  ;;  %21393 = vmatmul.mubr.msk.f32.gmra.mrb[150].mxu1 %vm165_vm3, %v26530_v48  ;;  %v26915_v36 = vld [vmem:[%s27310_s0 + $0xc8] sm:$0xff] }
 0x6fa   :  { %v10761_v13 = vadd.f32 %v10714_v16, %v26764_v41  ;;  %v10763_v39 = vadd.f32 %v10755_v12, %v26766_v44  ;;  %v10716_v14 = vpop.f32.mrb[130].mxu0  ;;  %v10757_v25 = vpop.f32.mrb[130].mxu1  ;;  %21351 = vmatprep.mubr.msk.f32.mxu0 %vm165_vm3, %v26539_v38  ;;  %21395 = vmatprep.mubr.msk.f32.mxu1 %vm165_vm3, %v26539_v38  ;;  %v13458_v41 = vld [vmem:[#allocation2 + $0x3b8] sm:$0xf]  ;;  %v23701_v16 = vld [vmem:[#allocation6 + $0x200] ss:$16 sps:$4 sm:$0xff]  }
 0x6fb   :  { %v10717_v52 = vpop.f32.mrb[131].mxu0  ;;  %v10758_v26 = vpop.f32.mrb[131].mxu1  ;;  %v21889_v3 = vpack.c.bf16 %v13458_v41, %v13457_v43  ;;  %v23704_v12 = vld [vmem:[#allocation6 + $0x208] ss:$16 sps:$4 sm:$0xff]   ;;  %v23707_v14 = vld [vmem:[#allocation6 + $0x220] ss:$16 sps:$4 sm:$0xff]  }
 0x6fc   :  { %v23715_v25 = vld [vmem:[#allocation6 + $0x244] ss:$16 sps:$4 sm:$0xff]   ;;  %v23718_v52 = vld [vmem:[#allocation6 + $0x24c] ss:$16 sps:$4 sm:$0xff]  }
 0x6fd   :  { %21352 = vmatmul.mubr.msk.f32.gmra.mrb[152].mxu0 %vm165_vm3, %v26548_v49  ;;  %21396 = vmatmul.mubr.msk.f32.gmra.mrb[152].mxu1 %vm165_vm3, %v26548_v49  ;;  %v23721_v26 = vld [vmem:[#allocation6 + $0x264] ss:$16 sps:$4 sm:$0xff]  }
 0x6fe   :  { %21354 = vmatprep.mubr.msk.f32.mxu0 %vm165_vm3, %v26557_v53  ;;  %21398 = vmatprep.mubr.msk.f32.mxu1 %vm165_vm3, %v26557_v53 }
 0x701   :  { %21355 = vmatmul.mubr.msk.f32.gmra.mrb[154].mxu0 %vm165_vm3, %v26566_v23  ;;  %21399 = vmatmul.mubr.msk.f32.gmra.mrb[154].mxu1 %vm165_vm3, %v26566_v23 }
 0x702   :  { %21357 = vmatprep.mubr.msk.f32.mxu0 %vm165_vm3, %v26575_v28  ;;  %21401 = vmatprep.mubr.msk.f32.mxu1 %vm165_vm3, %v26575_v28 }
 0x705   :  { %21358 = vmatmul.mubr.msk.f32.gmra.mrb[156].mxu0 %vm165_vm3, %v26584_v40  ;;  %21402 = vmatmul.mubr.msk.f32.gmra.mrb[156].mxu1 %vm165_vm3, %v26584_v40 }
 0x706   :  { %21360 = vmatprep.mubr.msk.f32.mxu0 %vm165_vm3, %v26593_v54  ;;  %21404 = vmatprep.mubr.msk.f32.mxu1 %vm165_vm3, %v26593_v54 }
 0x709   :  { %21361 = vmatmul.mubr.msk.f32.gmra.mrb[158].mxu0 %vm165_vm3, %v26602_v27  ;;  %21405 = vmatmul.mubr.msk.f32.gmra.mrb[158].mxu1 %vm165_vm3, %v26602_v27 }
 0x70a   :  { %21363 = vmatprep.mubr.msk.f32.mxu0 %vm165_vm3, %v26611_v55  ;;  %21407 = vmatprep.mubr.msk.f32.mxu1 %vm165_vm3, %v26611_v55 }
 0x70d   :  { %21364 = vmatmul.mubr.msk.f32.gmra.mrb[160].mxu0 %vm165_vm3, %v26620_v42  ;;  %21408 = vmatmul.mubr.msk.f32.gmra.mrb[160].mxu1 %vm165_vm3, %v26620_v42 }
 0x70e   :  { %21366 = vmatprep.mubr.msk.f32.mxu0 %vm165_vm3, %v26629_v32  ;;  %21410 = vmatprep.mubr.msk.f32.mxu1 %vm165_vm3, %v26629_v32 }
 0x711   :  { %21367 = vmatmul.mubr.msk.f32.gmra.mrb[162].mxu0 %vm165_vm3, %v26638_v22  ;;  %21411 = vmatmul.mubr.msk.f32.gmra.mrb[162].mxu1 %vm165_vm3, %v26638_v22 }
 0x712   :  { %21369 = vmatprep.mubr.msk.f32.mxu0 %vm165_vm3, %v26647_v29  ;;  %21413 = vmatprep.mubr.msk.f32.mxu1 %vm165_vm3, %v26647_v29 }
 0x715   :  { %21370 = vmatmul.mubr.msk.f32.gmra.mrb[164].mxu0 %vm165_vm3, %v26656_v17  ;;  %21414 = vmatmul.mubr.msk.f32.gmra.mrb[164].mxu1 %vm165_vm3, %v26656_v17 }
 0x716   :  { %21372 = vmatprep.mubr.msk.f32.mxu0 %vm165_vm3, %v26669_v5  ;;  %21416 = vmatprep.mubr.msk.f32.mxu1 %vm165_vm3, %v26669_v5 }
 0x718   :  { %v10993_v59 = vpop.f32.mrb[132].mxu0  ;;  %v11034_v20 = vpop.f32.mrb[132].mxu1 }
 0x719   :  { %v11041_v57 = vadd.f32 %v10993_v59, %v10760_v10  ;;  %v11043_v35 = vadd.f32 %v11034_v20, %v10762_v11  ;;  %v10995_v4 = vpop.f32.mrb[133].mxu0  ;;  %v11036_v34 = vpop.f32.mrb[133].mxu1  ;;  %21373 = vmatmul.mubr.msk.f32.gmra.mrb[166].mxu0 %vm165_vm3, %v26915_v36  ;;  %21417 = vmatmul.mubr.msk.f32.gmra.mrb[166].mxu1 %vm165_vm3, %v26915_v36  ;;  %v27034_v11 = vld [vmem:[%s27310_s0 + $0xd0] sm:$0xff] }
 0x71a   :  { %v11042_v44 = vadd.f32 %v10995_v4, %v10761_v13  ;;  %v11044_v45 = vadd.f32 %v11036_v34, %v10763_v39  ;;  %v10997_v56 = vpop.f32.mrb[134].mxu0  ;;  %v11038_v33 = vpop.f32.mrb[134].mxu1  ;;  %21427 = vmatprep.mubr.msk.f32.mxu0 %vm165_vm3, %v26454_v61  ;;  %21471 = vmatprep.mubr.msk.f32.mxu1 %vm165_vm3, %v26454_v61  ;;  %v23703_v61 = vld [vmem:[#allocation6 + $0x204] ss:$16 sps:$4 sm:$0xff]   ;;  %v23712_v39 = vld [vmem:[#allocation6 + $0x22c] ss:$16 sps:$4 sm:$0xff]  }
 0x71b   :  { %v10998_v46 = vpop.f32.mrb[135].mxu0  ;;  %v11039_v47 = vpop.f32.mrb[135].mxu1  ;;  %v23709_v13 = vld [vmem:[#allocation6 + $0x224] ss:$16 sps:$4 sm:$0xff]   ;;  %v23724_v59 = vld [vmem:[#allocation6 + $0x26c] ss:$16 sps:$4 sm:$0xff]  }
 0x71c   :  { %v23725_v33 = vld [vmem:[#allocation6 + $0x280] ss:$16 sps:$4 sm:$0xff]   ;;  %v23733_v46 = vld [vmem:[#allocation6 + $0x2a4] ss:$16 sps:$4 sm:$0xff]   ;;  %v23736_v47 = vld [vmem:[#allocation6 + $0x2ac] ss:$16 sps:$4 sm:$0xff]  }
 0x71d   :  { %21428 = vmatmul.mubr.msk.f32.vlgmr.msra.gmra.mrb[144].mxu0 %vm165_vm3, %v26471_v21  ;;  %21472 = vmatmul.mubr.msk.f32.vlgmr.msra.gmra.mrb[144].mxu1 %vm165_vm3, %v26471_v21 }
 0x71e   :  { %21878 = vmatpush3.bf16.msra.mxu0 %v26818_v9  ;;  %21888 = vmatpush3.bf16.msra.mxu1 %v26820_v6 }
 0x71f   :  { %21430 = vmatprep.mubr.msk.f32.mxu0 %vm165_vm3, %v26480_v30  ;;  %21474 = vmatprep.mubr.msk.f32.mxu1 %vm165_vm3, %v26480_v30 }
 0x720   :  { %21881 = vmatprep.subr.msk.bf16.mxu0 %vm24623_vm2, %v21879_v50  ;;  %21891 = vmatprep.subr.msk.bf16.mxu1 %vm24623_vm2, %v21889_v3 }
 0x721   :  { %21431 = vmatmul.mubr.msk.f32.gmra.mrb[146].mxu0 %vm165_vm3, %v26495_v31  ;;  %21475 = vmatmul.mubr.msk.f32.gmra.mrb[146].mxu1 %vm165_vm3, %v26495_v31 }
 0x722   :  { %21433 = vmatprep.mubr.msk.f32.mxu0 %vm165_vm3, %v26504_v18  ;;  %21477 = vmatprep.mubr.msk.f32.mxu1 %vm165_vm3, %v26504_v18 }
 0x723   :  { %21884 = vmatpush3.bf16.msk.msra.mxu0 %vm24623_vm2, %v21879_v50  ;;  %21894 = vmatpush3.bf16.msk.msra.mxu1 %vm24623_vm2, %v21889_v3  ;;  %v23734_v50 = vld [vmem:[#allocation6 + $0x2a8] ss:$16 sps:$4 sm:$0xff]  }
 0x724   :  { %13938 = vmatprep.subr.bf16.mxu0 %v23703_v61  ;;  %13979 = vmatprep.subr.bf16.mxu1 %v23706_v58 }
 0x725   :  { %21434 = vmatmul.mubr.msk.f32.gmra.mrb[148].mxu0 %vm165_vm3, %v26515_v51  ;;  %21478 = vmatmul.mubr.msk.f32.gmra.mrb[148].mxu1 %vm165_vm3, %v26515_v51 }
 0x726   :  { %21436 = vmatprep.mubr.msk.f32.mxu0 %vm165_vm3, %v26530_v48  ;;  %21480 = vmatprep.mubr.msk.f32.mxu1 %vm165_vm3, %v26530_v48 }
 0x729   :  { %21437 = vmatmul.mubr.msk.f32.gmra.mrb[150].mxu0 %vm165_vm3, %v26539_v38  ;;  %21481 = vmatmul.mubr.msk.f32.gmra.mrb[150].mxu1 %vm165_vm3, %v26539_v38 }
 0x72a   :  { %21439 = vmatprep.mubr.msk.f32.mxu0 %vm165_vm3, %v26548_v49  ;;  %21483 = vmatprep.mubr.msk.f32.mxu1 %vm165_vm3, %v26548_v49 }
 0x72d   :  { %21440 = vmatmul.mubr.msk.f32.gmra.mrb[152].mxu0 %vm165_vm3, %v26557_v53  ;;  %21484 = vmatmul.mubr.msk.f32.gmra.mrb[152].mxu1 %vm165_vm3, %v26557_v53 }
 0x72e   :  { %21442 = vmatprep.mubr.msk.f32.mxu0 %vm165_vm3, %v26566_v23  ;;  %21486 = vmatprep.mubr.msk.f32.mxu1 %vm165_vm3, %v26566_v23 }
 0x731   :  { %21443 = vmatmul.mubr.msk.f32.gmra.mrb[154].mxu0 %vm165_vm3, %v26575_v28  ;;  %21487 = vmatmul.mubr.msk.f32.gmra.mrb[154].mxu1 %vm165_vm3, %v26575_v28 }
 0x732   :  { %21445 = vmatprep.mubr.msk.f32.mxu0 %vm165_vm3, %v26584_v40  ;;  %21489 = vmatprep.mubr.msk.f32.mxu1 %vm165_vm3, %v26584_v40 }
 0x735   :  { %21446 = vmatmul.mubr.msk.f32.gmra.mrb[156].mxu0 %vm165_vm3, %v26593_v54  ;;  %21490 = vmatmul.mubr.msk.f32.gmra.mrb[156].mxu1 %vm165_vm3, %v26593_v54 }
 0x736   :  { %21448 = vmatprep.mubr.msk.f32.mxu0 %vm165_vm3, %v26602_v27  ;;  %21492 = vmatprep.mubr.msk.f32.mxu1 %vm165_vm3, %v26602_v27 }
 0x738   :  { %v11274_v0 = vpop.f32.mrb[136].mxu0  ;;  %v11315_v62 = vpop.f32.mrb[136].mxu1 }
 0x739   :  { %v26991_v63 = vadd.f32 %v11274_v0, %v11041_v57  ;;  %v26993_v15 = vadd.f32 %v11315_v62, %v11043_v35  ;;  %v11276_v24 = vpop.f32.mrb[137].mxu0  ;;  %v11317_v1 = vpop.f32.mrb[137].mxu1  ;;  %21449 = vmatmul.mubr.msk.f32.gmra.mrb[158].mxu0 %vm165_vm3, %v26611_v55  ;;  %21493 = vmatmul.mubr.msk.f32.gmra.mrb[158].mxu1 %vm165_vm3, %v26611_v55  ;;  %v23727_v57 = vld [vmem:[#allocation6 + $0x284] ss:$16 sps:$4 sm:$0xff]   ;;  %v23730_v35 = vld [vmem:[#allocation6 + $0x28c] ss:$16 sps:$4 sm:$0xff]  }
 0x73a   :  { %v26999_v2 = vadd.f32 %v11276_v24, %v11042_v44  ;;  %v27001_v9 = vadd.f32 %v11317_v1, %v11044_v45  ;;  %v11278_v6 = vpop.f32.mrb[138].mxu0  ;;  %v11319_v7 = vpop.f32.mrb[138].mxu1  ;;  %21451 = vmatprep.mubr.msk.f32.mxu0 %vm165_vm3, %v26620_v42  ;;  %21495 = vmatprep.mubr.msk.f32.mxu1 %vm165_vm3, %v26620_v42  ;;  %v27151_v62 = vld [vmem:[#allocation4] ss:$0 sm:$0xff] }
 0x73b   :  { %v11279_v8 = vpop.f32.mrb[139].mxu0  ;;  %v11320_v10 = vpop.f32.mrb[139].mxu1 }
 0x73d   :  { %21452 = vmatmul.mubr.msk.f32.gmra.mrb[160].mxu0 %vm165_vm3, %v26629_v32  ;;  %21496 = vmatmul.mubr.msk.f32.gmra.mrb[160].mxu1 %vm165_vm3, %v26629_v32 }
 0x73e   :  { %21454 = vmatprep.mubr.msk.f32.mxu0 %vm165_vm3, %v26638_v22  ;;  %21498 = vmatprep.mubr.msk.f32.mxu1 %vm165_vm3, %v26638_v22 }
 0x741   :  { %21455 = vmatmul.mubr.msk.f32.gmra.mrb[162].mxu0 %vm165_vm3, %v26647_v29  ;;  %21499 = vmatmul.mubr.msk.f32.gmra.mrb[162].mxu1 %vm165_vm3, %v26647_v29 }
 0x742   :  { %21457 = vmatprep.mubr.msk.f32.mxu0 %vm165_vm3, %v26656_v17  ;;  %21501 = vmatprep.mubr.msk.f32.mxu1 %vm165_vm3, %v26656_v17 }
 0x745   :  { %21458 = vmatmul.mubr.msk.f32.gmra.mrb[164].mxu0 %vm165_vm3, %v26669_v5  ;;  %21502 = vmatmul.mubr.msk.f32.gmra.mrb[164].mxu1 %vm165_vm3, %v26669_v5 }
 0x746   :  { %21460 = vmatprep.mubr.msk.f32.mxu0 %vm165_vm3, %v26915_v36  ;;  %21504 = vmatprep.mubr.msk.f32.mxu1 %vm165_vm3, %v26915_v36 }
 0x749   :  { %21461 = vmatmul.mubr.msk.f32.gmra.mrb[166].mxu0 %vm165_vm3, %v27034_v11  ;;  %21505 = vmatmul.mubr.msk.f32.gmra.mrb[166].mxu1 %vm165_vm3, %v27034_v11 }
 0x74a   :  { %21515 = vmatprep.mubr.msk.f32.mxu0 %vm165_vm3, %v26471_v21  ;;  %21559 = vmatprep.mubr.msk.f32.mxu1 %vm165_vm3, %v26471_v21  ;;  %v23710_v21 = vld [vmem:[#allocation6 + $0x228] ss:$16 sps:$4 sm:$0xff]  }
 0x74d   :  { %21516 = vmatmul.mubr.msk.f32.vlgmr.msra.gmra.mrb[144].mxu0 %vm165_vm3, %v26480_v30  ;;  %21560 = vmatmul.mubr.msk.f32.vlgmr.msra.gmra.mrb[144].mxu1 %vm165_vm3, %v26480_v30  ;;  %v23713_v30 = vld [vmem:[#allocation6 + $0x240] ss:$16 sps:$4 sm:$0xff]  }
 0x74e   :  { %21518 = vmatprep.mubr.msk.f32.mxu0 %vm165_vm3, %v26495_v31  ;;  %21562 = vmatprep.mubr.msk.f32.mxu1 %vm165_vm3, %v26495_v31  ;;  %v23716_v31 = vld [vmem:[#allocation6 + $0x248] ss:$16 sps:$4 sm:$0xff]  }
 0x74f   :  { %13939 = vmatpush1.bf16.msra.mxu0 %v23701_v16  ;;  %13980 = vmatpush1.bf16.msra.mxu1 %v23704_v12 }
 0x750   :  { %13940 = vmatprep.subr.bf16.mxu0 %v23709_v13  ;;  %13981 = vmatprep.subr.bf16.mxu1 %v23712_v39 }
 0x751   :  { %21519 = vmatmul.mubr.msk.f32.gmra.mrb[146].mxu0 %vm165_vm3, %v26504_v18  ;;  %21563 = vmatmul.mubr.msk.f32.gmra.mrb[146].mxu1 %vm165_vm3, %v26504_v18  ;;  %v23719_v18 = vld [vmem:[#allocation6 + $0x260] ss:$16 sps:$4 sm:$0xff]  }
 0x752   :  { %21521 = vmatprep.mubr.msk.f32.mxu0 %vm165_vm3, %v26515_v51  ;;  %21565 = vmatprep.mubr.msk.f32.mxu1 %vm165_vm3, %v26515_v51  ;;  %v23722_v51 = vld [vmem:[#allocation6 + $0x268] ss:$16 sps:$4 sm:$0xff]  }
 0x753   :  { %13941 = vmatpush1.bf16.msra.mxu0 %v23707_v14  ;;  %13982 = vmatpush1.bf16.msra.mxu1 %v23710_v21  ;;  %v23749_v14 = vld [vmem:[#allocation6 + $0x500] ss:$16 sps:$4 sm:$0xff]  }
 0x754   :  { %13942 = vmatprep.subr.bf16.mxu0 %v23715_v25  ;;  %13983 = vmatprep.subr.bf16.mxu1 %v23718_v52 }
 0x755   :  { %21522 = vmatmul.mubr.msk.f32.gmra.mrb[148].mxu0 %vm165_vm3, %v26530_v48  ;;  %21566 = vmatmul.mubr.msk.f32.gmra.mrb[148].mxu1 %vm165_vm3, %v26530_v48 }
 0x756   :  { %21524 = vmatprep.mubr.msk.f32.mxu0 %vm165_vm3, %v26539_v38  ;;  %21568 = vmatprep.mubr.msk.f32.mxu1 %vm165_vm3, %v26539_v38 }
 0x757   :  { %13943 = vmatpush1.bf16.msra.mxu0 %v23713_v30  ;;  %13984 = vmatpush1.bf16.msra.mxu1 %v23716_v31  ;;  %v23752_v31 = vld [vmem:[#allocation6 + $0x508] ss:$16 sps:$4 sm:$0xff]  }
 0x758   :  { %v11555_v20 = vpop.f32.mrb[140].mxu0  ;;  %v11596_v60 = vpop.f32.mrb[140].mxu1  ;;  %13944 = vmatprep.subr.bf16.mxu0 %v23721_v26  ;;  %13985 = vmatprep.subr.bf16.mxu1 %v23724_v59 }
 0x759   :  { %v27069_v4 = vadd.f32 %v11555_v20, %v26991_v63  ;;  %v27072_v48 = vadd.f32 %v11596_v60, %v26993_v15  ;;  %v11557_v34 = vpop.f32.mrb[141].mxu0  ;;  %v11598_v37 = vpop.f32.mrb[141].mxu1  ;;  %21525 = vmatmul.mubr.msk.f32.gmra.mrb[150].mxu0 %vm165_vm3, %v26548_v49  ;;  %21569 = vmatmul.mubr.msk.f32.gmra.mrb[150].mxu1 %vm165_vm3, %v26548_v49  ;;  %v23728_v49 = vld [vmem:[#allocation6 + $0x288] ss:$16 sps:$4 sm:$0xff]   ;;  %v23760_v20 = vld [vmem:[#allocation6 + $0x52c] ss:$16 sps:$4 sm:$0xff]  }
 0x75a   :  { %v27079_v38 = vadd.f32 %v11557_v34, %v26999_v2  ;;  %v27082_v43 = vadd.f32 %v11598_v37, %v27001_v9  ;;  %v11559_v41 = vpop.f32.mrb[142].mxu0  ;;  %v11600_v44 = vpop.f32.mrb[142].mxu1  ;;  %21527 = vmatprep.mubr.msk.f32.mxu0 %vm165_vm3, %v26557_v53  ;;  %21571 = vmatprep.mubr.msk.f32.mxu1 %vm165_vm3, %v26557_v53  ;;  %v23731_v53 = vld [vmem:[#allocation6 + $0x2a0] ss:$16 sps:$4 sm:$0xff]  }
 0x75b   :  { %v11560_v45 = vpop.f32.mrb[143].mxu0  ;;  %v11601_v56 = vpop.f32.mrb[143].mxu1  ;;  %13945 = vmatpush1.bf16.msra.mxu0 %v23719_v18  ;;  %13986 = vmatpush1.bf16.msra.mxu1 %v23722_v51  ;;  %v23757_v51 = vld [vmem:[#allocation6 + $0x524] ss:$16 sps:$4 sm:$0xff]   ;;  %v23755_v41 = vld [vmem:[#allocation6 + $0x520] ss:$16 sps:$4 sm:$0xff]  }
 0x75c   :  { %13946 = vmatprep.subr.bf16.mxu0 %v23727_v57  ;;  %13987 = vmatprep.subr.bf16.mxu1 %v23730_v35 }
 0x75d   :  { %21528 = vmatmul.mubr.msk.f32.gmra.mrb[152].mxu0 %vm165_vm3, %v26566_v23  ;;  %21572 = vmatmul.mubr.msk.f32.gmra.mrb[152].mxu1 %vm165_vm3, %v26566_v23  ;;  %v24355_v23 = vld [vmem:[%s27310_s0 + $0xd8] sm:$0xff] }
 0x75e   :  { %21530 = vmatprep.mubr.msk.f32.mxu0 %vm165_vm3, %v26575_v28  ;;  %21574 = vmatprep.mubr.msk.f32.mxu1 %vm165_vm3, %v26575_v28  ;;  %v23739_v28 = vld [vmem:[#allocation6 + $0x2c4] ss:$16 sps:$4 sm:$0xff]  }
 0x75f   :  { %13947 = vmatpush1.bf16.msra.mxu0 %v23725_v33  ;;  %13988 = vmatpush1.bf16.msra.mxu1 %v23728_v49  ;;  %v23758_v49 = vld [vmem:[#allocation6 + $0x528] ss:$16 sps:$4 sm:$0xff]  }
 0x760   :  { %13948 = vmatprep.subr.bf16.mxu0 %v23733_v46  ;;  %13989 = vmatprep.subr.bf16.mxu1 %v23736_v47 }
 0x761   :  { %21531 = vmatmul.mubr.msk.f32.gmra.mrb[154].mxu0 %vm165_vm3, %v26584_v40  ;;  %21575 = vmatmul.mubr.msk.f32.gmra.mrb[154].mxu1 %vm165_vm3, %v26584_v40  ;;  %v23742_v40 = vld [vmem:[#allocation6 + $0x2cc] ss:$16 sps:$4 sm:$0xff]  }
 0x762   :  { %21533 = vmatprep.mubr.msk.f32.mxu0 %vm165_vm3, %v26593_v54  ;;  %21577 = vmatprep.mubr.msk.f32.mxu1 %vm165_vm3, %v26593_v54  ;;  %v23737_v54 = vld [vmem:[#allocation6 + $0x2c0] ss:$16 sps:$4 sm:$0xff]  }
 0x763   :  { %13949 = vmatpush1.bf16.msra.mxu0 %v23731_v53  ;;  %13990 = vmatpush1.bf16.msra.mxu1 %v23734_v50  ;;  %v23763_v53 = vld [vmem:[#allocation6 + $0x544] ss:$16 sps:$4 sm:$0xff]   ;;  %v23766_v50 = vld [vmem:[#allocation6 + $0x54c] ss:$16 sps:$4 sm:$0xff]  }
 0x764   :  { %13950 = vmatprep.subr.bf16.mxu0 %v23739_v28  ;;  %13991 = vmatprep.subr.bf16.mxu1 %v23742_v40 }
 0x765   :  { %21534 = vmatmul.mubr.msk.f32.gmra.mrb[156].mxu0 %vm165_vm3, %v26602_v27  ;;  %21578 = vmatmul.mubr.msk.f32.gmra.mrb[156].mxu1 %vm165_vm3, %v26602_v27  ;;  %v23740_v27 = vld [vmem:[#allocation6 + $0x2c8] ss:$16 sps:$4 sm:$0xff]  }
 0x766   :  { %21536 = vmatprep.mubr.msk.f32.mxu0 %vm165_vm3, %v26611_v55  ;;  %21580 = vmatprep.mubr.msk.f32.mxu1 %vm165_vm3, %v26611_v55  ;;  %v23745_v55 = vld [vmem:[#allocation6 + $0x2e4] ss:$16 sps:$4 sm:$0xff]  }
 0x767   :  { %13951 = vmatpush1.bf16.msra.mxu0 %v23737_v54  ;;  %13992 = vmatpush1.bf16.msra.mxu1 %v23740_v27 }
 0x768   :  { %13952 = vmatprep.subr.bf16.mxu0 %v23745_v55  ;;  %v23761_v55 = vld [vmem:[#allocation6 + $0x540] ss:$16 sps:$4 sm:$0xff]  }
 0x769   :  { %21537 = vmatmul.mubr.msk.f32.gmra.mrb[158].mxu0 %vm165_vm3, %v26620_v42  ;;  %21581 = vmatmul.mubr.msk.f32.gmra.mrb[158].mxu1 %vm165_vm3, %v26620_v42  ;;  %v23748_v42 = vld [vmem:[#allocation6 + $0x2ec] ss:$16 sps:$4 sm:$0xff]  }
 0x76a   :  { %21539 = vmatprep.mubr.msk.f32.mxu0 %vm165_vm3, %v26629_v32  ;;  %21583 = vmatprep.mubr.msk.f32.mxu1 %vm165_vm3, %v26629_v32  ;;  %v23743_v32 = vld [vmem:[#allocation6 + $0x2e0] ss:$16 sps:$4 sm:$0xff]  }
 0x76b   :  { %13993 = vmatprep.subr.bf16.mxu1 %v23748_v42  ;;  %13953 = vmatpush1.bf16.msra.mxu0 %v23743_v32 }
 0x76d   :  { %21540 = vmatmul.mubr.msk.f32.gmra.mrb[160].mxu0 %vm165_vm3, %v26638_v22  ;;  %21584 = vmatmul.mubr.msk.f32.gmra.mrb[160].mxu1 %vm165_vm3, %v26638_v22  ;;  %v23746_v22 = vld [vmem:[#allocation6 + $0x2e8] ss:$16 sps:$4 sm:$0xff]  }
 0x76e   :  { %21542 = vmatprep.mubr.msk.f32.mxu0 %vm165_vm3, %v26647_v29  ;;  %21586 = vmatprep.mubr.msk.f32.mxu1 %vm165_vm3, %v26647_v29  ;;  %v23751_v29 = vld [vmem:[#allocation6 + $0x504] ss:$16 sps:$4 sm:$0xff]  }
 0x76f   :  { %13994 = vmatpush1.bf16.msra.mxu1 %v23746_v22  ;;  %14219 = vmatprep.subr.bf16.mxu0 %v23751_v29 }
 0x771   :  { %21543 = vmatmul.mubr.msk.f32.gmra.mrb[162].mxu0 %vm165_vm3, %v26656_v17  ;;  %21587 = vmatmul.mubr.msk.f32.gmra.mrb[162].mxu1 %vm165_vm3, %v26656_v17  ;;  %v23754_v17 = vld [vmem:[#allocation6 + $0x50c] ss:$16 sps:$4 sm:$0xff]  }
 0x772   :  { %21545 = vmatprep.mubr.msk.f32.mxu0 %vm165_vm3, %v26669_v5  ;;  %21589 = vmatprep.mubr.msk.f32.mxu1 %vm165_vm3, %v26669_v5 }
 0x773   :  { %14260 = vmatprep.subr.bf16.mxu1 %v23754_v17  ;;  %v23764_v17 = vld [vmem:[#allocation6 + $0x548] ss:$16 sps:$4 sm:$0xff]  }
 0x775   :  { %21546 = vmatmul.mubr.msk.f32.gmra.mrb[164].mxu0 %vm165_vm3, %v26915_v36  ;;  %21590 = vmatmul.mubr.msk.f32.gmra.mrb[164].mxu1 %vm165_vm3, %v26915_v36 }
 0x776   :  { %21548 = vmatprep.mubr.msk.f32.mxu0 %vm165_vm3, %v27034_v11  ;;  %21592 = vmatprep.mubr.msk.f32.mxu1 %vm165_vm3, %v27034_v11 }
 0x779   :  { %21549 = vmatmul.mubr.msk.f32.gmra.mrb[166].mxu0 %vm165_vm3, %v24355_v23  ;;  %21593 = vmatmul.mubr.msk.f32.gmra.mrb[166].mxu1 %vm165_vm3, %v24355_v23 }
 0x77a   :  { %13970 = vmatprep.mubr.bf16.mxu0 %v24510_v19  ;;  %14011 = vmatprep.mubr.bf16.mxu1 %v24510_v19 }
 0x820   :  { %v21517_v5 = vpop.f32.mrb[144].mxu0  ;;  %v21561_v36 = vpop.f32.mrb[144].mxu1 }
 0x821   :  { %v13672_v3 = vmax.f32 %v21517_v5, %v21561_v36  ;;  %v13312_v61 = vpop.f32.mrb[145].mxu0  ;;  %v13528_v58 = vpop.f32.mrb[145].mxu1 }
 0x822   :  { %v13671_v0 = vmax.f32 %v13312_v61, %v13528_v58  ;;  %v23772_v61 = vld [vmem:[#allocation6 + $0x56c] ss:$16 sps:$4 sm:$0xff]  }
 0x823   :  { %v13696_v63 = vadd.f32 %v27151_v62, %v13672_v3  ;;  %v23769_v3 = vld [vmem:[#allocation6 + $0x564] ss:$16 sps:$4 sm:$0xff]  }
 0x824   :  { %v13695_v15 = vadd.f32 %v27151_v62, %v13671_v0  ;;  %v21520_v24 = vpop.f32.mrb[146].mxu0  ;;  %v21564_v1 = vpop.f32.mrb[146].mxu1 }
 0x825   :  { %v13720_v2 = vmax.f32 %v13696_v63, 0.0  ;;  %v13674_v9 = vmax.f32 %v21520_v24, %v21564_v1  ;;  %v13322_v6 = vpop.f32.mrb[147].mxu0  ;;  %v13538_v7 = vpop.f32.mrb[147].mxu1  ;;  %v23767_v1 = vld [vmem:[#allocation6 + $0x560] ss:$16 sps:$4 sm:$0xff]  }
 0x826   :  { %v13719_v8 = vmax.f32 %v13695_v15, 0.0  ;;  %v13673_v10 = vmax.f32 %v13322_v6, %v13538_v7 }
 0x827   :  { %v13698_v11 = vadd.f32 %v27151_v62, %v13674_v9 }
 0x828   :  { %v13743_v16 = vmax.f32 %v13719_v8, %v13720_v2  ;;  %v13697_v12 = vadd.f32 %v27151_v62, %v13673_v10  ;;  %v21523_v13 = vpop.f32.mrb[148].mxu0  ;;  %v21567_v39 = vpop.f32.mrb[148].mxu1  ;;  %v23770_v8 = vld [vmem:[#allocation6 + $0x568] ss:$16 sps:$4 sm:$0xff]  }
 0x829   :  { %v13722_v21 = vmax.f32 %v13698_v11, 0.0  ;;  %v13676_v25 = vmax.f32 %v21523_v13, %v21567_v39  ;;  %v13332_v52 = vpop.f32.mrb[149].mxu0  ;;  %v13548_v30 = vpop.f32.mrb[149].mxu1 }
 0x82a   :  { %v13744_v26 = vpack.c.bf16 %v13743_v16, %v13743_v16  ;;  %v13721_v59 = vmax.f32 %v13697_v12, 0.0  ;;  %v13675_v18 = vmax.f32 %v13332_v52, %v13548_v30  ;;  %v23775_v16 = vld [vmem:[#allocation6 + $0x584] ss:$16 sps:$4 sm:$0xff]   ;;  %v23778_v12 = vld [vmem:[#allocation6 + $0x58c] ss:$16 sps:$4 sm:$0xff]  }
 0x82b   :  { %v13700_v60 = vadd.f32 %v27151_v62, %v13676_v25  ;;  %v23773_v52 = vld [vmem:[#allocation6 + $0x580] ss:$16 sps:$4 sm:$0xff]  }
 0x82c   :  { %v27158_v57 = vmax.f32 %v13721_v59, %v13722_v21  ;;  %v13699_v35 = vadd.f32 %v27151_v62, %v13675_v18  ;;  %v21526_v34 = vpop.f32.mrb[150].mxu0  ;;  %v21570_v37 = vpop.f32.mrb[150].mxu1  ;;  %13971 = vmatmul.mubr.bf16.vlgmr.msra.gmra.mrb[168].mxu0 %v13744_v26  ;;  %14012 = vmatmul.mubr.bf16.vlgmr.msra.gmra.mrb[168].mxu1 %v13744_v26  ;;  %v23776_v18 = vld [vmem:[#allocation6 + $0x588] ss:$16 sps:$4 sm:$0xff]  }
 0x82d   :  { %v13724_v44 = vmax.f32 %v13700_v60, 0.0  ;;  %v13678_v45 = vmax.f32 %v21526_v34, %v21570_v37  ;;  %14220 = vmatpush1.bf16.msra.mxu0 %v23749_v14  ;;  %14261 = vmatpush1.bf16.msra.mxu1 %v23752_v31  ;;  %v13342_v56 = vpop.f32.mrb[151].mxu0  ;;  %v13558_v33 = vpop.f32.mrb[151].mxu1  ;;  %v23781_v60 = vld [vmem:[#allocation6 + $0x5a4] ss:$16 sps:$4 sm:$0xff]  }
 0x82e   :  { %v13723_v46 = vmax.f32 %v13699_v35, 0.0  ;;  %v13677_v47 = vmax.f32 %v13342_v56, %v13558_v33  ;;  %14221 = vmatprep.subr.bf16.mxu0 %v23757_v51  ;;  %14262 = vmatprep.subr.bf16.mxu1 %v23760_v20  ;;  %v23784_v35 = vld [vmem:[#allocation6 + $0x5ac] ss:$16 sps:$4 sm:$0xff]   ;;  %v23779_v56 = vld [vmem:[#allocation6 + $0x5a0] ss:$16 sps:$4 sm:$0xff]  }
 0x82f   :  { %v13702_v23 = vadd.f32 %v27151_v62, %v13678_v45  ;;  %14251 = vmatprep.mubr.bf16.mxu0 %v24510_v19  ;;  %14292 = vmatprep.mubr.bf16.mxu1 %v24510_v19 }
 0x830   :  { %v27164_v28 = vmax.f32 %v13723_v46, %v13724_v44  ;;  %v13701_v40 = vadd.f32 %v27151_v62, %v13677_v47  ;;  %v21529_v54 = vpop.f32.mrb[152].mxu0  ;;  %v21573_v27 = vpop.f32.mrb[152].mxu1 }
 0x831   :  { %v13726_v42 = vmax.f32 %v13702_v23, 0.0  ;;  %v13680_v32 = vmax.f32 %v21529_v54, %v21573_v27  ;;  %14222 = vmatpush1.bf16.msra.mxu0 %v23755_v41  ;;  %14263 = vmatpush1.bf16.msra.mxu1 %v23758_v49  ;;  %v13352_v22 = vpop.f32.mrb[153].mxu0  ;;  %v13568_v29 = vpop.f32.mrb[153].mxu1  ;;  %v23790_v54 = vld [vmem:[#allocation6 + $0x5cc] ss:$16 sps:$4 sm:$0xff]  }
 0x832   :  { %v13725_v5 = vmax.f32 %v13701_v40, 0.0  ;;  %v13679_v36 = vmax.f32 %v13352_v22, %v13568_v29  ;;  %14223 = vmatprep.subr.bf16.mxu0 %v23763_v53  ;;  %14264 = vmatprep.subr.bf16.mxu1 %v23766_v50  ;;  %v23782_v53 = vld [vmem:[#allocation6 + $0x5a8] ss:$16 sps:$4 sm:$0xff]   ;;  %v23787_v40 = vld [vmem:[#allocation6 + $0x5c4] ss:$16 sps:$4 sm:$0xff]  }
 0x833   :  { %v13704_v58 = vadd.f32 %v27151_v62, %v13680_v32  ;;  %v23785_v29 = vld [vmem:[#allocation6 + $0x5c0] ss:$16 sps:$4 sm:$0xff]  }
 0x834   :  { %v27168_v0 = vmax.f32 %v13725_v5, %v13726_v42  ;;  %v13703_v63 = vadd.f32 %v27151_v62, %v13679_v36  ;;  %v21532_v15 = vpop.f32.mrb[154].mxu0  ;;  %v21576_v24 = vpop.f32.mrb[154].mxu1 }
 0x835   :  { %v13728_v2 = vmax.f32 %v13704_v58, 0.0  ;;  %v13682_v9 = vmax.f32 %v21532_v15, %v21576_v24  ;;  %14224 = vmatpush1.bf16.msra.mxu0 %v23761_v55  ;;  %14265 = vmatpush1.bf16.msra.mxu1 %v23764_v17  ;;  %v13362_v6 = vpop.f32.mrb[155].mxu0  ;;  %v13578_v7 = vpop.f32.mrb[155].mxu1  ;;  %v23793_v15 = vld [vmem:[#allocation6 + $0x5e4] ss:$16 sps:$4 sm:$0xff]  }
 0x836   :  { %v13727_v10 = vmax.f32 %v13703_v63, 0.0  ;;  %v13681_v11 = vmax.f32 %v13362_v6, %v13578_v7  ;;  %14225 = vmatprep.subr.bf16.mxu0 %v23769_v3  ;;  %14266 = vmatprep.subr.bf16.mxu1 %v23772_v61  ;;  %v23788_v61 = vld [vmem:[#allocation6 + $0x5c8] ss:$16 sps:$4 sm:$0xff]   ;;  %v23796_v24 = vld [vmem:[#allocation6 + $0x5ec] ss:$16 sps:$4 sm:$0xff]  }
 0x837   :  { %v13706_v13 = vadd.f32 %v27151_v62, %v13682_v9 }
 0x838   :  { %v27172_v39 = vmax.f32 %v13727_v10, %v13728_v2  ;;  %v13705_v14 = vadd.f32 %v27151_v62, %v13681_v11  ;;  %v21535_v21 = vpop.f32.mrb[156].mxu0  ;;  %v21579_v25 = vpop.f32.mrb[156].mxu1 }
 0x839   :  { %v13730_v30 = vmax.f32 %v13706_v13, 0.0  ;;  %v13684_v31 = vmax.f32 %v21535_v21, %v21579_v25  ;;  %14226 = vmatpush1.bf16.msra.mxu0 %v23767_v1  ;;  %14267 = vmatpush1.bf16.msra.mxu1 %v23770_v8  ;;  %v13372_v26 = vpop.f32.mrb[157].mxu0  ;;  %v13588_v59 = vpop.f32.mrb[157].mxu1  ;;  %v23791_v8 = vld [vmem:[#allocation6 + $0x5e0] ss:$16 sps:$4 sm:$0xff]  }
 0x83a   :  { %v13729_v51 = vmax.f32 %v13705_v14, 0.0  ;;  %v13683_v20 = vmax.f32 %v13372_v26, %v13588_v59  ;;  %14227 = vmatprep.subr.bf16.mxu0 %v23775_v16  ;;  %14268 = vmatprep.subr.bf16.mxu1 %v23778_v12  ;;  %v23794_v13 = vld [vmem:[#allocation6 + $0x5e8] ss:$16 sps:$4 sm:$0xff]   ;;  %v23799_v25 = vld [vmem:[#allocation6 + $0x804] ss:$16 sps:$4 sm:$0xff]  }
 0x83b   :  { %v13708_v34 = vadd.f32 %v27151_v62, %v13684_v31 }
 0x83c   :  { %v27176_v37 = vmax.f32 %v13729_v51, %v13730_v30  ;;  %v13707_v41 = vadd.f32 %v27151_v62, %v13683_v20  ;;  %v21538_v44 = vpop.f32.mrb[158].mxu0  ;;  %v21582_v45 = vpop.f32.mrb[158].mxu1  ;;  %v23797_v51 = vld [vmem:[#allocation6 + $0x800] ss:$16 sps:$4 sm:$0xff]  }
 0x83d   :  { %v13732_v33 = vmax.f32 %v13708_v34, 0.0  ;;  %v13686_v49 = vmax.f32 %v21538_v44, %v21582_v45  ;;  %14228 = vmatpush1.bf16.msra.mxu0 %v23773_v52  ;;  %14269 = vmatpush1.bf16.msra.mxu1 %v23776_v18  ;;  %v13382_v46 = vpop.f32.mrb[159].mxu0  ;;  %v13598_v47 = vpop.f32.mrb[159].mxu1  ;;  %v23802_v52 = vld [vmem:[#allocation6 + $0x80c] ss:$16 sps:$4 sm:$0xff]   ;;  %v14025_v44 = vpack.c.bf16 %v27158_v57, %v27158_v57 }
 0x83e   :  { %v13731_v50 = vmax.f32 %v13707_v41, 0.0  ;;  %v13685_v23 = vmax.f32 %v13382_v46, %v13598_v47  ;;  %14229 = vmatprep.subr.bf16.mxu0 %v23781_v60  ;;  %14270 = vmatprep.subr.bf16.mxu1 %v23784_v35  ;;  %v23800_v41 = vld [vmem:[#allocation6 + $0x808] ss:$16 sps:$4 sm:$0xff]  }
 0x83f   :  { %v13710_v27 = vadd.f32 %v27151_v62, %v13686_v49  ;;  %v23808_v49 = vld [vmem:[#allocation6 + $0x82c] ss:$16 sps:$4 sm:$0xff]  }
 0x840   :  { %v27180_v55 = vmax.f32 %v13731_v50, %v13732_v33  ;;  %v13709_v42 = vadd.f32 %v27151_v62, %v13685_v23  ;;  %v21541_v32 = vpop.f32.mrb[160].mxu0  ;;  %v21585_v22 = vpop.f32.mrb[160].mxu1  ;;  %v23805_v33 = vld [vmem:[#allocation6 + $0x824] ss:$16 sps:$4 sm:$0xff]  }
 0x841   :  { %v13734_v17 = vmax.f32 %v13710_v27, 0.0  ;;  %v13688_v5 = vmax.f32 %v21541_v32, %v21585_v22  ;;  %14230 = vmatpush1.bf16.msra.mxu0 %v23779_v56  ;;  %14271 = vmatpush1.bf16.msra.mxu1 %v23782_v53  ;;  %v13392_v36 = vpop.f32.mrb[161].mxu0  ;;  %v13608_v3 = vpop.f32.mrb[161].mxu1  ;;  %v23806_v32 = vld [vmem:[#allocation6 + $0x828] ss:$16 sps:$4 sm:$0xff]  }
 0x842   :  { %v13733_v58 = vmax.f32 %v13709_v42, 0.0  ;;  %v13687_v63 = vmax.f32 %v13392_v36, %v13608_v3  ;;  %14231 = vmatprep.subr.bf16.mxu0 %v23787_v40  ;;  %14272 = vmatprep.subr.bf16.mxu1 %v23790_v54  ;;  %v23803_v40 = vld [vmem:[#allocation6 + $0x820] ss:$16 sps:$4 sm:$0xff]  }
 0x843   :  { %v13712_v1 = vadd.f32 %v27151_v62, %v13688_v5  ;;  %v23814_v5 = vld [vmem:[#allocation6 + $0x84c] ss:$16 sps:$4 sm:$0xff]  }
 0x844   :  { %v27184_v2 = vmax.f32 %v13733_v58, %v13734_v17  ;;  %v13711_v9 = vadd.f32 %v27151_v62, %v13687_v63  ;;  %v21544_v6 = vpop.f32.mrb[162].mxu0  ;;  %v21588_v7 = vpop.f32.mrb[162].mxu1  ;;  %v23811_v17 = vld [vmem:[#allocation6 + $0x844] ss:$16 sps:$4 sm:$0xff]   ;;  %v23809_v63 = vld [vmem:[#allocation6 + $0x840] ss:$16 sps:$4 sm:$0xff]  }
 0x845   :  { %v13736_v10 = vmax.f32 %v13712_v1, 0.0  ;;  %v13690_v11 = vmax.f32 %v21544_v6, %v21588_v7  ;;  %14232 = vmatpush1.bf16.msra.mxu0 %v23785_v29  ;;  %14273 = vmatpush1.bf16.msra.mxu1 %v23788_v61  ;;  %v13402_v16 = vpop.f32.mrb[163].mxu0  ;;  %v13618_v12 = vpop.f32.mrb[163].mxu1  ;;  %v23817_v1 = vld [vmem:[#allocation6 + $0x864] ss:$16 sps:$4 sm:$0xff]  }
 0x846   :  { %v13735_v14 = vmax.f32 %v13711_v9, 0.0  ;;  %v13689_v21 = vmax.f32 %v13402_v16, %v13618_v12  ;;  %14233 = vmatprep.subr.bf16.mxu0 %v23793_v15  ;;  %14274 = vmatprep.subr.bf16.mxu1 %v23796_v24  ;;  %v23812_v15 = vld [vmem:[#allocation6 + $0x848] ss:$16 sps:$4 sm:$0xff]   ;;  %v23820_v9 = vld [vmem:[#allocation6 + $0x86c] ss:$16 sps:$4 sm:$0xff]  }
 0x847   :  { %v13714_v30 = vadd.f32 %v27151_v62, %v13690_v11  ;;  %v23815_v7 = vld [vmem:[#allocation6 + $0x860] ss:$16 sps:$4 sm:$0xff]   ;;  %v23824_v16 = vld [vmem:[#allocation6 + $0x888] ss:$16 sps:$4 sm:$0xff]   ;;  %v23829_v12 = vld [vmem:[#allocation6 + $0x8a4] ss:$16 sps:$4 sm:$0xff]  }
 0x848   :  { %v27188_v31 = vmax.f32 %v13735_v14, %v13736_v10  ;;  %v13713_v26 = vadd.f32 %v27151_v62, %v13689_v21  ;;  %v21547_v59 = vpop.f32.mrb[164].mxu0  ;;  %v21591_v18 = vpop.f32.mrb[164].mxu1  ;;  %v23823_v10 = vld [vmem:[#allocation6 + $0x884] ss:$16 sps:$4 sm:$0xff]   ;;  %v23821_v11 = vld [vmem:[#allocation6 + $0x880] ss:$16 sps:$4 sm:$0xff]  }
 0x849   :  { %v13738_v20 = vmax.f32 %v13714_v30, 0.0  ;;  %v13692_v60 = vmax.f32 %v21547_v59, %v21591_v18  ;;  %14234 = vmatpush1.bf16.msra.mxu0 %v23791_v8  ;;  %14275 = vmatpush1.bf16.msra.mxu1 %v23794_v13  ;;  %v13412_v35 = vpop.f32.mrb[165].mxu0  ;;  %v13628_v34 = vpop.f32.mrb[165].mxu1  ;;  %v23818_v8 = vld [vmem:[#allocation6 + $0x868] ss:$16 sps:$4 sm:$0xff]  }
 0x84a   :  { %v13737_v45 = vmax.f32 %v13713_v26, 0.0  ;;  %v13691_v56 = vmax.f32 %v13412_v35, %v13628_v34  ;;  %14500 = vmatprep.subr.bf16.mxu0 %v23799_v25  ;;  %14541 = vmatprep.subr.bf16.mxu1 %v23802_v52  ;;  %v23832_v13 = vld [vmem:[#allocation6 + $0x8ac] ss:$16 sps:$4 sm:$0xff]   ;;  %v23827_v14 = vld [vmem:[#allocation6 + $0x8a0] ss:$16 sps:$4 sm:$0xff]  }
 0x84b   :  { %v13716_v46 = vadd.f32 %v27151_v62, %v13692_v60  ;;  %v23830_v21 = vld [vmem:[#allocation6 + $0x8a8] ss:$16 sps:$4 sm:$0xff]   ;;  %v23835_v25 = vld [vmem:[#allocation6 + $0x8c4] ss:$16 sps:$4 sm:$0xff]   ;;  %v23838_v52 = vld [vmem:[#allocation6 + $0x8cc] ss:$16 sps:$4 sm:$0xff]  }
 0x84c   :  { %v27194_v47 = vmax.f32 %v13737_v45, %v13738_v20  ;;  %v13715_v53 = vadd.f32 %v27151_v62, %v13691_v56  ;;  %14252 = vmatmul.mubr.bf16.vlgmr.msra.gmra.mrb[172].mxu0 %v14025_v44  ;;  %14293 = vmatmul.mubr.bf16.vlgmr.msra.gmra.mrb[172].mxu1 %v14025_v44  ;;  %v21550_v50 = vpop.f32.mrb[166].mxu0  ;;  %v21594_v23 = vpop.f32.mrb[166].mxu1  ;;  %v23833_v30 = vld [vmem:[#allocation6 + $0x8c0] ss:$16 sps:$4 sm:$0xff]   ;;  %v23836_v26 = vld [vmem:[#allocation6 + $0x8c8] ss:$16 sps:$4 sm:$0xff]   ;;  %v14306_v44 = vpack.c.bf16 %v27164_v28, %v27164_v28 }
 0x84d   :  { %v13740_v54 = vmax.f32 %v13716_v46, 0.0  ;;  %v13694_v27 = vmax.f32 %v21550_v50, %v21594_v23  ;;  %14501 = vmatpush1.bf16.msra.mxu0 %v23797_v51  ;;  %14542 = vmatpush1.bf16.msra.mxu1 %v23800_v41  ;;  %v13422_v57 = vpop.f32.mrb[167].mxu0  ;;  %v13638_v42 = vpop.f32.mrb[167].mxu1  ;;  %v23841_v59 = vld [vmem:[#allocation6 + $0x8e4] ss:$16 sps:$4 sm:$0xff]  }
 0x84e   :  { %v13739_v22 = vmax.f32 %v13715_v53, 0.0  ;;  %v13693_v29 = vmax.f32 %v13422_v57, %v13638_v42  ;;  %14502 = vmatprep.subr.bf16.mxu0 %v23805_v33  ;;  %14543 = vmatprep.subr.bf16.mxu1 %v23808_v49  ;;  %v23844_v18 = vld [vmem:[#allocation6 + $0x8ec] ss:$16 sps:$4 sm:$0xff]   ;;  %v23839_v51 = vld [vmem:[#allocation6 + $0x8e0] ss:$16 sps:$4 sm:$0xff]  }
 0x84f   :  { %v13718_v36 = vadd.f32 %v27151_v62, %v13694_v27  ;;  %14532 = vmatprep.mubr.bf16.mxu0 %v24510_v19  ;;  %14573 = vmatprep.mubr.bf16.mxu1 %v24510_v19  ;;  %v23842_v20 = vld [vmem:[#allocation6 + $0x8e8] ss:$16 sps:$4 sm:$0xff]   ;;  %v23847_v60 = vld [vmem:[#allocation6 + $0xb04] ss:$16 sps:$4 sm:$0xff]   ;;  %v23850_v35 = vld [vmem:[#allocation6 + $0xb0c] ss:$16 sps:$4 sm:$0xff]  }
 0x850   :  { %v27200_v3 = vmax.f32 %v13739_v22, %v13740_v54  ;;  %v13717_v61 = vadd.f32 %v27151_v62, %v13693_v29  ;;  %v23826_v62 = vld [vmem:[#allocation6 + $0x88c] ss:$16 sps:$4 sm:$0xff]   ;;  %v23845_v34 = vld [vmem:[#allocation6 + $0xb00] ss:$16 sps:$4 sm:$0xff]   ;;  %v23848_v41 = vld [vmem:[#allocation6 + $0xb08] ss:$16 sps:$4 sm:$0xff]  }
 0x851   :  { %v13742_v58 = vmax.f32 %v13718_v36, 0.0  ;;  %14503 = vmatpush1.bf16.msra.mxu0 %v23803_v40  ;;  %14544 = vmatpush1.bf16.msra.mxu1 %v23806_v32  ;;  %v23853_v45 = vld [vmem:[#allocation6 + $0xb24] ss:$16 sps:$4 sm:$0xff]   ;;  %v23856_v56 = vld [vmem:[#allocation6 + $0xb2c] ss:$16 sps:$4 sm:$0xff]  }
 0x852   :  { %v13741_v24 = vmax.f32 %v13717_v61, 0.0  ;;  %14504 = vmatprep.subr.bf16.mxu0 %v23811_v17  ;;  %14545 = vmatprep.subr.bf16.mxu1 %v23814_v5  ;;  %v23851_v33 = vld [vmem:[#allocation6 + $0xb20] ss:$16 sps:$4 sm:$0xff]   ;;  %v23854_v49 = vld [vmem:[#allocation6 + $0xb28] ss:$16 sps:$4 sm:$0xff]  }
 0x853   :  { %v23859_v46 = vld [vmem:[#allocation6 + $0xb44] ss:$16 sps:$4 sm:$0xff]   ;;  %v23862_v53 = vld [vmem:[#allocation6 + $0xb4c] ss:$16 sps:$4 sm:$0xff]   ;;  %v23857_v28 = vld [vmem:[#allocation6 + $0xb40] ss:$16 sps:$4 sm:$0xff]  }
 0x854   :  { %v27203_v6 = vmax.f32 %v13741_v24, %v13742_v58  ;;  %v23860_v50 = vld [vmem:[#allocation6 + $0xb48] ss:$16 sps:$4 sm:$0xff]   ;;  %v23865_v23 = vld [vmem:[#allocation6 + $0xb64] ss:$16 sps:$4 sm:$0xff]   ;;  %v23868_v40 = vld [vmem:[#allocation6 + $0xb6c] ss:$16 sps:$4 sm:$0xff]  }
 0x855   :  { %14505 = vmatpush1.bf16.msra.mxu0 %v23809_v63  ;;  %14546 = vmatpush1.bf16.msra.mxu1 %v23812_v15  ;;  %v23863_v54 = vld [vmem:[#allocation6 + $0xb60] ss:$16 sps:$4 sm:$0xff]   ;;  %v23866_v27 = vld [vmem:[#allocation6 + $0xb68] ss:$16 sps:$4 sm:$0xff]   ;;  %v23871_v57 = vld [vmem:[#allocation6 + $0xb84] ss:$16 sps:$4 sm:$0xff]  }
 0x856   :  { %14506 = vmatprep.subr.bf16.mxu0 %v23817_v1  ;;  %14547 = vmatprep.subr.bf16.mxu1 %v23820_v9  ;;  %v23874_v42 = vld [vmem:[#allocation6 + $0xb8c] ss:$16 sps:$4 sm:$0xff]   ;;  %v23869_v32 = vld [vmem:[#allocation6 + $0xb80] ss:$16 sps:$4 sm:$0xff]   ;;  %v23872_v22 = vld [vmem:[#allocation6 + $0xb88] ss:$16 sps:$4 sm:$0xff]  }
 0x857   :  { %v23877_v29 = vld [vmem:[#allocation6 + $0xba4] ss:$16 sps:$4 sm:$0xff]   ;;  %v23880_v17 = vld [vmem:[#allocation6 + $0xbac] ss:$16 sps:$4 sm:$0xff]   ;;  %v23875_v5 = vld [vmem:[#allocation6 + $0xba0] ss:$16 sps:$4 sm:$0xff]  }
 0x858   :  { %v23878_v36 = vld [vmem:[#allocation6 + $0xba8] ss:$16 sps:$4 sm:$0xff]   ;;  %v23883_v61 = vld [vmem:[#allocation6 + $0xbc4] ss:$16 sps:$4 sm:$0xff]   ;;  %v23886_v58 = vld [vmem:[#allocation6 + $0xbcc] ss:$16 sps:$4 sm:$0xff]  }
 0x859   :  { %14507 = vmatpush1.bf16.msra.mxu0 %v23815_v7  ;;  %14548 = vmatpush1.bf16.msra.mxu1 %v23818_v8  ;;  %v23881_v63 = vld [vmem:[#allocation6 + $0xbc0] ss:$16 sps:$4 sm:$0xff]   ;;  %v23884_v15 = vld [vmem:[#allocation6 + $0xbc8] ss:$16 sps:$4 sm:$0xff]   ;;  %v23889_v24 = vld [vmem:[#allocation6 + $0xbe4] ss:$16 sps:$4 sm:$0xff]  }
 0x85a   :  { %14508 = vmatprep.subr.bf16.mxu0 %v23823_v10  ;;  %14549 = vmatprep.subr.bf16.mxu1 %v23826_v62  ;;  %v23892_v1 = vld [vmem:[#allocation6 + $0xbec] ss:$16 sps:$4 sm:$0xff]   ;;  %v23887_v9 = vld [vmem:[#allocation6 + $0xbe0] ss:$16 sps:$4 sm:$0xff]   ;;  %v23890_v7 = vld [vmem:[#allocation6 + $0xbe8] ss:$16 sps:$4 sm:$0xff]  }
 0x85b   :  { %v23895_v8 = vld [vmem:[#allocation6 + $0xe04] ss:$16 sps:$4 sm:$0xff]   ;;  %v23898_v10 = vld [vmem:[#allocation6 + $0xe0c] ss:$16 sps:$4 sm:$0xff]   ;;  %v23893_v62 = vld [vmem:[#allocation6 + $0xe00] ss:$16 sps:$4 sm:$0xff]  }
 0x85d   :  { %14509 = vmatpush1.bf16.msra.mxu0 %v23821_v11  ;;  %14550 = vmatpush1.bf16.msra.mxu1 %v23824_v16  ;;  %v23896_v11 = vld [vmem:[#allocation6 + $0xe08] ss:$16 sps:$4 sm:$0xff]   ;;  %v14587_v16 = vpack.c.bf16 %v27168_v0, %v27168_v0  ;;  %v23905_v0 = vld [vmem:[#allocation6 + $0xe40] ss:$16 sps:$4 sm:$0xff]  }
 0x85e   :  { %14510 = vmatprep.subr.bf16.mxu0 %v23829_v12  ;;  %14551 = vmatprep.subr.bf16.mxu1 %v23832_v13  ;;  %v23901_v12 = vld [vmem:[#allocation6 + $0xe24] ss:$16 sps:$4 sm:$0xff]   ;;  %v23904_v13 = vld [vmem:[#allocation6 + $0xe2c] ss:$16 sps:$4 sm:$0xff]  }
 0x861   :  { %14511 = vmatpush1.bf16.msra.mxu0 %v23827_v14  ;;  %14552 = vmatpush1.bf16.msra.mxu1 %v23830_v21  ;;  %v23899_v14 = vld [vmem:[#allocation6 + $0xe20] ss:$16 sps:$4 sm:$0xff]   ;;  %v23902_v21 = vld [vmem:[#allocation6 + $0xe28] ss:$16 sps:$4 sm:$0xff]  }
 0x862   :  { %14512 = vmatprep.subr.bf16.mxu0 %v23835_v25  ;;  %14553 = vmatprep.subr.bf16.mxu1 %v23838_v52  ;;  %v23907_v25 = vld [vmem:[#allocation6 + $0xe44] ss:$16 sps:$4 sm:$0xff]   ;;  %v23910_v52 = vld [vmem:[#allocation6 + $0xe4c] ss:$16 sps:$4 sm:$0xff]  }
 0x865   :  { %14513 = vmatpush1.bf16.msra.mxu0 %v23833_v30  ;;  %14554 = vmatpush1.bf16.msra.mxu1 %v23836_v26  ;;  %v23908_v30 = vld [vmem:[#allocation6 + $0xe48] ss:$16 sps:$4 sm:$0xff]   ;;  %v23913_v26 = vld [vmem:[#allocation6 + $0xe64] ss:$16 sps:$4 sm:$0xff]  }
 0x866   :  { %14514 = vmatprep.subr.bf16.mxu0 %v23841_v59  ;;  %14555 = vmatprep.subr.bf16.mxu1 %v23844_v18  ;;  %v23916_v59 = vld [vmem:[#allocation6 + $0xe6c] ss:$16 sps:$4 sm:$0xff]   ;;  %v23911_v18 = vld [vmem:[#allocation6 + $0xe60] ss:$16 sps:$4 sm:$0xff]  }
 0x869   :  { %14515 = vmatpush1.bf16.msra.mxu0 %v23839_v51  ;;  %14556 = vmatpush1.bf16.msra.mxu1 %v23842_v20  ;;  %v23914_v51 = vld [vmem:[#allocation6 + $0xe68] ss:$16 sps:$4 sm:$0xff]   ;;  %v23919_v20 = vld [vmem:[#allocation6 + $0xe84] ss:$16 sps:$4 sm:$0xff]  }
 0x86a   :  { %14781 = vmatprep.subr.bf16.mxu0 %v23847_v60  ;;  %14822 = vmatprep.subr.bf16.mxu1 %v23850_v35  ;;  %v23922_v60 = vld [vmem:[#allocation6 + $0xe8c] ss:$16 sps:$4 sm:$0xff]   ;;  %v23917_v35 = vld [vmem:[#allocation6 + $0xe80] ss:$16 sps:$4 sm:$0xff]  }
 0x86c   :  { %14533 = vmatmul.mubr.bf16.vlgmr.msra.gmra.mrb[176].mxu0 %v14306_v44  ;;  %14574 = vmatmul.mubr.bf16.vlgmr.msra.gmra.mrb[176].mxu1 %v14306_v44  ;;  %v23928_v44 = vld [vmem:[#allocation6 + $0xeac] ss:$16 sps:$4 sm:$0xff]  }
 0x86d   :  { %14782 = vmatpush1.bf16.msra.mxu0 %v23845_v34  ;;  %14823 = vmatpush1.bf16.msra.mxu1 %v23848_v41  ;;  %v23920_v34 = vld [vmem:[#allocation6 + $0xe88] ss:$16 sps:$4 sm:$0xff]   ;;  %v23925_v41 = vld [vmem:[#allocation6 + $0xea4] ss:$16 sps:$4 sm:$0xff]  }
 0x86e   :  { %14783 = vmatprep.subr.bf16.mxu0 %v23853_v45  ;;  %14824 = vmatprep.subr.bf16.mxu1 %v23856_v56  ;;  %v23923_v45 = vld [vmem:[#allocation6 + $0xea0] ss:$16 sps:$4 sm:$0xff]   ;;  %v23926_v56 = vld [vmem:[#allocation6 + $0xea8] ss:$16 sps:$4 sm:$0xff]  }
 0x86f   :  { %14813 = vmatprep.mubr.bf16.mxu0 %v24510_v19  ;;  %14854 = vmatprep.mubr.bf16.mxu1 %v24510_v19 }
 0x871   :  { %14784 = vmatpush1.bf16.msra.mxu0 %v23851_v33  ;;  %14825 = vmatpush1.bf16.msra.mxu1 %v23854_v49  ;;  %v23931_v33 = vld [vmem:[#allocation6 + $0xec4] ss:$16 sps:$4 sm:$0xff]   ;;  %v23934_v49 = vld [vmem:[#allocation6 + $0xecc] ss:$16 sps:$4 sm:$0xff]  }
 0x872   :  { %14785 = vmatprep.subr.bf16.mxu0 %v23859_v46  ;;  %14826 = vmatprep.subr.bf16.mxu1 %v23862_v53  ;;  %v23929_v46 = vld [vmem:[#allocation6 + $0xec0] ss:$16 sps:$4 sm:$0xff]   ;;  %v23932_v53 = vld [vmem:[#allocation6 + $0xec8] ss:$16 sps:$4 sm:$0xff]  }
 0x875   :  { %14786 = vmatpush1.bf16.msra.mxu0 %v23857_v28  ;;  %14827 = vmatpush1.bf16.msra.mxu1 %v23860_v50  ;;  %v23937_v28 = vld [vmem:[#allocation6 + $0xee4] ss:$16 sps:$4 sm:$0xff]   ;;  %v23940_v50 = vld [vmem:[#allocation6 + $0xeec] ss:$16 sps:$4 sm:$0xff]  }
 0x876   :  { %14787 = vmatprep.subr.bf16.mxu0 %v23865_v23  ;;  %14828 = vmatprep.subr.bf16.mxu1 %v23868_v40  ;;  %v23935_v23 = vld [vmem:[#allocation6 + $0xee0] ss:$16 sps:$4 sm:$0xff]   ;;  %v23938_v40 = vld [vmem:[#allocation6 + $0xee8] ss:$16 sps:$4 sm:$0xff]  }
 0x879   :  { %14788 = vmatpush1.bf16.msra.mxu0 %v23863_v54  ;;  %14829 = vmatpush1.bf16.msra.mxu1 %v23866_v27  ;;  %v23943_v54 = vld [vmem:[#allocation6 + $0x1104] ss:$16 sps:$4 sm:$0xff]   ;;  %v23946_v27 = vld [vmem:[#allocation6 + $0x110c] ss:$16 sps:$4 sm:$0xff]  }
 0x87a   :  { %14789 = vmatprep.subr.bf16.mxu0 %v23871_v57  ;;  %14830 = vmatprep.subr.bf16.mxu1 %v23874_v42  ;;  %v23941_v57 = vld [vmem:[#allocation6 + $0x1100] ss:$16 sps:$4 sm:$0xff]   ;;  %v23944_v42 = vld [vmem:[#allocation6 + $0x1108] ss:$16 sps:$4 sm:$0xff]  }
 0x87d   :  { %14790 = vmatpush1.bf16.msra.mxu0 %v23869_v32  ;;  %14831 = vmatpush1.bf16.msra.mxu1 %v23872_v22  ;;  %v14868_v32 = vpack.c.bf16 %v27172_v39, %v27172_v39  ;;  %v23949_v22 = vld [vmem:[#allocation6 + $0x1124] ss:$16 sps:$4 sm:$0xff]   ;;  %v23953_v39 = vld [vmem:[#allocation6 + $0x1140] ss:$16 sps:$4 sm:$0xff]  }
 0x87e   :  { %14791 = vmatprep.subr.bf16.mxu0 %v23877_v29  ;;  %14832 = vmatprep.subr.bf16.mxu1 %v23880_v17  ;;  %v23952_v29 = vld [vmem:[#allocation6 + $0x112c] ss:$16 sps:$4 sm:$0xff]   ;;  %v23947_v17 = vld [vmem:[#allocation6 + $0x1120] ss:$16 sps:$4 sm:$0xff]  }
 0x881   :  { %14792 = vmatpush1.bf16.msra.mxu0 %v23875_v5  ;;  %14833 = vmatpush1.bf16.msra.mxu1 %v23878_v36  ;;  %v23950_v5 = vld [vmem:[#allocation6 + $0x1128] ss:$16 sps:$4 sm:$0xff]   ;;  %v23955_v36 = vld [vmem:[#allocation6 + $0x1144] ss:$16 sps:$4 sm:$0xff]  }
 0x882   :  { %14793 = vmatprep.subr.bf16.mxu0 %v23883_v61  ;;  %14834 = vmatprep.subr.bf16.mxu1 %v23886_v58  ;;  %v23958_v61 = vld [vmem:[#allocation6 + $0x114c] ss:$16 sps:$4 sm:$0xff]   ;;  %v23956_v58 = vld [vmem:[#allocation6 + $0x1148] ss:$16 sps:$4 sm:$0xff]  }
 0x885   :  { %14794 = vmatpush1.bf16.msra.mxu0 %v23881_v63  ;;  %14835 = vmatpush1.bf16.msra.mxu1 %v23884_v15  ;;  %v23961_v63 = vld [vmem:[#allocation6 + $0x1164] ss:$16 sps:$4 sm:$0xff]   ;;  %v23964_v15 = vld [vmem:[#allocation6 + $0x116c] ss:$16 sps:$4 sm:$0xff]  }
 0x886   :  { %14795 = vmatprep.subr.bf16.mxu0 %v23889_v24  ;;  %14836 = vmatprep.subr.bf16.mxu1 %v23892_v1  ;;  %v23959_v24 = vld [vmem:[#allocation6 + $0x1160] ss:$16 sps:$4 sm:$0xff]   ;;  %v23962_v1 = vld [vmem:[#allocation6 + $0x1168] ss:$16 sps:$4 sm:$0xff]  }
 0x889   :  { %14796 = vmatpush1.bf16.msra.mxu0 %v23887_v9  ;;  %14837 = vmatpush1.bf16.msra.mxu1 %v23890_v7  ;;  %v23967_v9 = vld [vmem:[#allocation6 + $0x1184] ss:$16 sps:$4 sm:$0xff]   ;;  %v23970_v7 = vld [vmem:[#allocation6 + $0x118c] ss:$16 sps:$4 sm:$0xff]  }
 0x88a   :  { %15062 = vmatprep.subr.bf16.mxu0 %v23895_v8  ;;  %15103 = vmatprep.subr.bf16.mxu1 %v23898_v10  ;;  %v23965_v8 = vld [vmem:[#allocation6 + $0x1180] ss:$16 sps:$4 sm:$0xff]   ;;  %v23968_v10 = vld [vmem:[#allocation6 + $0x1188] ss:$16 sps:$4 sm:$0xff]  }
 0x88c   :  { %14814 = vmatmul.mubr.bf16.vlgmr.msra.gmra.mrb[180].mxu0 %v14587_v16  ;;  %14855 = vmatmul.mubr.bf16.vlgmr.msra.gmra.mrb[180].mxu1 %v14587_v16  ;;  %v23971_v16 = vld [vmem:[#allocation6 + $0x11a0] ss:$16 sps:$4 sm:$0xff]  }
 0x88d   :  { %15063 = vmatpush1.bf16.msra.mxu0 %v23893_v62  ;;  %15104 = vmatpush1.bf16.msra.mxu1 %v23896_v11  ;;  %v23973_v62 = vld [vmem:[#allocation6 + $0x11a4] ss:$16 sps:$4 sm:$0xff]   ;;  %v23976_v11 = vld [vmem:[#allocation6 + $0x11ac] ss:$16 sps:$4 sm:$0xff]  }
 0x88e   :  { %15064 = vmatprep.subr.bf16.mxu0 %v23901_v12  ;;  %15105 = vmatprep.subr.bf16.mxu1 %v23904_v13  ;;  %v23974_v12 = vld [vmem:[#allocation6 + $0x11a8] ss:$16 sps:$4 sm:$0xff]   ;;  %v23979_v13 = vld [vmem:[#allocation6 + $0x11c4] ss:$16 sps:$4 sm:$0xff]  }
 0x88f   :  { %15094 = vmatprep.mubr.bf16.mxu0 %v24510_v19  ;;  %15135 = vmatprep.mubr.bf16.mxu1 %v24510_v19 }
 0x891   :  { %15065 = vmatpush1.bf16.msra.mxu0 %v23899_v14  ;;  %15106 = vmatpush1.bf16.msra.mxu1 %v23902_v21  ;;  %v23982_v14 = vld [vmem:[#allocation6 + $0x11cc] ss:$16 sps:$4 sm:$0xff]   ;;  %v23977_v21 = vld [vmem:[#allocation6 + $0x11c0] ss:$16 sps:$4 sm:$0xff]  }
 0x892   :  { %15066 = vmatprep.subr.bf16.mxu0 %v23907_v25  ;;  %15107 = vmatprep.subr.bf16.mxu1 %v23910_v52  ;;  %v23980_v25 = vld [vmem:[#allocation6 + $0x11c8] ss:$16 sps:$4 sm:$0xff]   ;;  %v23985_v52 = vld [vmem:[#allocation6 + $0x11e4] ss:$16 sps:$4 sm:$0xff]  }
 0x895   :  { %15067 = vmatpush1.bf16.msra.mxu0 %v23905_v0  ;;  %15108 = vmatpush1.bf16.msra.mxu1 %v23908_v30  ;;  %v23988_v0 = vld [vmem:[#allocation6 + $0x11ec] ss:$16 sps:$4 sm:$0xff]   ;;  %v23983_v30 = vld [vmem:[#allocation6 + $0x11e0] ss:$16 sps:$4 sm:$0xff]  }
 0x896   :  { %15068 = vmatprep.subr.bf16.mxu0 %v23913_v26  ;;  %15109 = vmatprep.subr.bf16.mxu1 %v23916_v59  ;;  %v23986_v26 = vld [vmem:[#allocation6 + $0x11e8] ss:$16 sps:$4 sm:$0xff]   ;;  %v23991_v59 = vld [vmem:[#allocation6 + $0x1404] ss:$16 sps:$4 sm:$0xff]  }
 0x899   :  { %15069 = vmatpush1.bf16.msra.mxu0 %v23911_v18  ;;  %15110 = vmatpush1.bf16.msra.mxu1 %v23914_v51  ;;  %v23994_v18 = vld [vmem:[#allocation6 + $0x140c] ss:$16 sps:$4 sm:$0xff]   ;;  %v23989_v51 = vld [vmem:[#allocation6 + $0x1400] ss:$16 sps:$4 sm:$0xff]  }
 0x89a   :  { %15070 = vmatprep.subr.bf16.mxu0 %v23919_v20  ;;  %15111 = vmatprep.subr.bf16.mxu1 %v23922_v60  ;;  %v23992_v20 = vld [vmem:[#allocation6 + $0x1408] ss:$16 sps:$4 sm:$0xff]   ;;  %v15149_v60 = vpack.c.bf16 %v27176_v37, %v27176_v37  ;;  %v24001_v37 = vld [vmem:[#allocation6 + $0x1440] ss:$16 sps:$4 sm:$0xff]  }
 0x89d   :  { %15071 = vmatpush1.bf16.msra.mxu0 %v23917_v35  ;;  %15112 = vmatpush1.bf16.msra.mxu1 %v23920_v34  ;;  %v23997_v35 = vld [vmem:[#allocation6 + $0x1424] ss:$16 sps:$4 sm:$0xff]   ;;  %v24000_v34 = vld [vmem:[#allocation6 + $0x142c] ss:$16 sps:$4 sm:$0xff]  }
 0x89e   :  { %15072 = vmatprep.subr.bf16.mxu0 %v23925_v41  ;;  %15113 = vmatprep.subr.bf16.mxu1 %v23928_v44  ;;  %v23995_v41 = vld [vmem:[#allocation6 + $0x1420] ss:$16 sps:$4 sm:$0xff]   ;;  %v23998_v44 = vld [vmem:[#allocation6 + $0x1428] ss:$16 sps:$4 sm:$0xff]  }
 0x8a1   :  { %15073 = vmatpush1.bf16.msra.mxu0 %v23923_v45  ;;  %15114 = vmatpush1.bf16.msra.mxu1 %v23926_v56  ;;  %v24003_v45 = vld [vmem:[#allocation6 + $0x1444] ss:$16 sps:$4 sm:$0xff]   ;;  %v24006_v56 = vld [vmem:[#allocation6 + $0x144c] ss:$16 sps:$4 sm:$0xff]  }
 0x8a2   :  { %15074 = vmatprep.subr.bf16.mxu0 %v23931_v33  ;;  %15115 = vmatprep.subr.bf16.mxu1 %v23934_v49  ;;  %v24004_v33 = vld [vmem:[#allocation6 + $0x1448] ss:$16 sps:$4 sm:$0xff]   ;;  %v24009_v49 = vld [vmem:[#allocation6 + $0x1464] ss:$16 sps:$4 sm:$0xff]  }
 0x8a5   :  { %15075 = vmatpush1.bf16.msra.mxu0 %v23929_v46  ;;  %15116 = vmatpush1.bf16.msra.mxu1 %v23932_v53  ;;  %v24012_v46 = vld [vmem:[#allocation6 + $0x146c] ss:$16 sps:$4 sm:$0xff]   ;;  %v24007_v53 = vld [vmem:[#allocation6 + $0x1460] ss:$16 sps:$4 sm:$0xff]  }
 0x8a6   :  { %15076 = vmatprep.subr.bf16.mxu0 %v23937_v28  ;;  %15117 = vmatprep.subr.bf16.mxu1 %v23940_v50  ;;  %v24010_v28 = vld [vmem:[#allocation6 + $0x1468] ss:$16 sps:$4 sm:$0xff]   ;;  %v24015_v50 = vld [vmem:[#allocation6 + $0x1484] ss:$16 sps:$4 sm:$0xff]  }
 0x8a9   :  { %15077 = vmatpush1.bf16.msra.mxu0 %v23935_v23  ;;  %15118 = vmatpush1.bf16.msra.mxu1 %v23938_v40  ;;  %v24018_v23 = vld [vmem:[#allocation6 + $0x148c] ss:$16 sps:$4 sm:$0xff]   ;;  %v24013_v40 = vld [vmem:[#allocation6 + $0x1480] ss:$16 sps:$4 sm:$0xff]  }
 0x8aa   :  { %15343 = vmatprep.subr.bf16.mxu0 %v23943_v54  ;;  %15384 = vmatprep.subr.bf16.mxu1 %v23946_v27  ;;  %v24016_v54 = vld [vmem:[#allocation6 + $0x1488] ss:$16 sps:$4 sm:$0xff]   ;;  %v24021_v27 = vld [vmem:[#allocation6 + $0x14a4] ss:$16 sps:$4 sm:$0xff]  }
 0x8ac   :  { %15095 = vmatmul.mubr.bf16.vlgmr.msra.gmra.mrb[184].mxu0 %v14868_v32  ;;  %15136 = vmatmul.mubr.bf16.vlgmr.msra.gmra.mrb[184].mxu1 %v14868_v32  ;;  %v24022_v32 = vld [vmem:[#allocation6 + $0x14a8] ss:$16 sps:$4 sm:$0xff]  }
 0x8ad   :  { %15344 = vmatpush1.bf16.msra.mxu0 %v23941_v57  ;;  %15385 = vmatpush1.bf16.msra.mxu1 %v23944_v42  ;;  %v24024_v57 = vld [vmem:[#allocation6 + $0x14ac] ss:$16 sps:$4 sm:$0xff]   ;;  %v24019_v42 = vld [vmem:[#allocation6 + $0x14a0] ss:$16 sps:$4 sm:$0xff]  }
 0x8ae   :  { %15345 = vmatprep.subr.bf16.mxu0 %v23949_v22  ;;  %15386 = vmatprep.subr.bf16.mxu1 %v23952_v29  ;;  %v24027_v22 = vld [vmem:[#allocation6 + $0x14c4] ss:$16 sps:$4 sm:$0xff]   ;;  %v24030_v29 = vld [vmem:[#allocation6 + $0x14cc] ss:$16 sps:$4 sm:$0xff]  }
 0x8af   :  { %15375 = vmatprep.mubr.bf16.mxu0 %v24510_v19  ;;  %15416 = vmatprep.mubr.bf16.mxu1 %v24510_v19 }
 0x8b1   :  { %15346 = vmatpush1.bf16.msra.mxu0 %v23947_v17  ;;  %15387 = vmatpush1.bf16.msra.mxu1 %v23950_v5  ;;  %v24025_v17 = vld [vmem:[#allocation6 + $0x14c0] ss:$16 sps:$4 sm:$0xff]   ;;  %v24028_v5 = vld [vmem:[#allocation6 + $0x14c8] ss:$16 sps:$4 sm:$0xff]  }
 0x8b2   :  { %15347 = vmatprep.subr.bf16.mxu0 %v23955_v36  ;;  %15388 = vmatprep.subr.bf16.mxu1 %v23958_v61  ;;  %v24033_v36 = vld [vmem:[#allocation6 + $0x14e4] ss:$16 sps:$4 sm:$0xff]   ;;  %v24036_v61 = vld [vmem:[#allocation6 + $0x14ec] ss:$16 sps:$4 sm:$0xff]  }
 0x8b5   :  { %15348 = vmatpush1.bf16.msra.mxu0 %v23953_v39  ;;  %15389 = vmatpush1.bf16.msra.mxu1 %v23956_v58  ;;  %v24031_v39 = vld [vmem:[#allocation6 + $0x14e0] ss:$16 sps:$4 sm:$0xff]   ;;  %v24034_v58 = vld [vmem:[#allocation6 + $0x14e8] ss:$16 sps:$4 sm:$0xff]  }
 0x8b6   :  { %15349 = vmatprep.subr.bf16.mxu0 %v23961_v63  ;;  %15390 = vmatprep.subr.bf16.mxu1 %v23964_v15  ;;  %v24039_v63 = vld [vmem:[#allocation6 + $0x1704] ss:$16 sps:$4 sm:$0xff]   ;;  %v24042_v15 = vld [vmem:[#allocation6 + $0x170c] ss:$16 sps:$4 sm:$0xff]  }
 0x8b9   :  { %15350 = vmatpush1.bf16.msra.mxu0 %v23959_v24  ;;  %15391 = vmatpush1.bf16.msra.mxu1 %v23962_v1  ;;  %v24037_v24 = vld [vmem:[#allocation6 + $0x1700] ss:$16 sps:$4 sm:$0xff]   ;;  %v24040_v1 = vld [vmem:[#allocation6 + $0x1708] ss:$16 sps:$4 sm:$0xff]  }
 0x8ba   :  { %15351 = vmatprep.subr.bf16.mxu0 %v23967_v9  ;;  %15392 = vmatprep.subr.bf16.mxu1 %v23970_v7  ;;  %v15430_v9 = vpack.c.bf16 %v27180_v55, %v27180_v55  ;;  %v24045_v7 = vld [vmem:[#allocation6 + $0x1724] ss:$16 sps:$4 sm:$0xff]   ;;  %v24049_v55 = vld [vmem:[#allocation6 + $0x1740] ss:$16 sps:$4 sm:$0xff]  }
 0x8bd   :  { %15352 = vmatpush1.bf16.msra.mxu0 %v23965_v8  ;;  %15393 = vmatpush1.bf16.msra.mxu1 %v23968_v10  ;;  %v24048_v8 = vld [vmem:[#allocation6 + $0x172c] ss:$16 sps:$4 sm:$0xff]   ;;  %v24043_v10 = vld [vmem:[#allocation6 + $0x1720] ss:$16 sps:$4 sm:$0xff]  }
 0x8be   :  { %15353 = vmatprep.subr.bf16.mxu0 %v23973_v62  ;;  %15394 = vmatprep.subr.bf16.mxu1 %v23976_v11  ;;  %v24046_v62 = vld [vmem:[#allocation6 + $0x1728] ss:$16 sps:$4 sm:$0xff]   ;;  %v24051_v11 = vld [vmem:[#allocation6 + $0x1744] ss:$16 sps:$4 sm:$0xff]  }
 0x8c1   :  { %15354 = vmatpush1.bf16.msra.mxu0 %v23971_v16  ;;  %15395 = vmatpush1.bf16.msra.mxu1 %v23974_v12  ;;  %v24054_v16 = vld [vmem:[#allocation6 + $0x174c] ss:$16 sps:$4 sm:$0xff]   ;;  %v24052_v12 = vld [vmem:[#allocation6 + $0x1748] ss:$16 sps:$4 sm:$0xff]  }
 0x8c2   :  { %15355 = vmatprep.subr.bf16.mxu0 %v23979_v13  ;;  %15396 = vmatprep.subr.bf16.mxu1 %v23982_v14  ;;  %v24057_v13 = vld [vmem:[#allocation6 + $0x1764] ss:$16 sps:$4 sm:$0xff]   ;;  %v24060_v14 = vld [vmem:[#allocation6 + $0x176c] ss:$16 sps:$4 sm:$0xff]  }
 0x8c5   :  { %15356 = vmatpush1.bf16.msra.mxu0 %v23977_v21  ;;  %15397 = vmatpush1.bf16.msra.mxu1 %v23980_v25  ;;  %v24055_v21 = vld [vmem:[#allocation6 + $0x1760] ss:$16 sps:$4 sm:$0xff]   ;;  %v24058_v25 = vld [vmem:[#allocation6 + $0x1768] ss:$16 sps:$4 sm:$0xff]  }
 0x8c6   :  { %15357 = vmatprep.subr.bf16.mxu0 %v23985_v52  ;;  %15398 = vmatprep.subr.bf16.mxu1 %v23988_v0  ;;  %v24063_v52 = vld [vmem:[#allocation6 + $0x1784] ss:$16 sps:$4 sm:$0xff]   ;;  %v24066_v0 = vld [vmem:[#allocation6 + $0x178c] ss:$16 sps:$4 sm:$0xff]  }
 0x8c9   :  { %15358 = vmatpush1.bf16.msra.mxu0 %v23983_v30  ;;  %15399 = vmatpush1.bf16.msra.mxu1 %v23986_v26  ;;  %v24061_v30 = vld [vmem:[#allocation6 + $0x1780] ss:$16 sps:$4 sm:$0xff]   ;;  %v24064_v26 = vld [vmem:[#allocation6 + $0x1788] ss:$16 sps:$4 sm:$0xff]  }
 0x8ca   :  { %15624 = vmatprep.subr.bf16.mxu0 %v23991_v59  ;;  %15665 = vmatprep.subr.bf16.mxu1 %v23994_v18  ;;  %v24069_v59 = vld [vmem:[#allocation6 + $0x17a4] ss:$16 sps:$4 sm:$0xff]   ;;  %v24072_v18 = vld [vmem:[#allocation6 + $0x17ac] ss:$16 sps:$4 sm:$0xff]  }
 0x8cc   :  { %15376 = vmatmul.mubr.bf16.vlgmr.msra.gmra.mrb[188].mxu0 %v15149_v60  ;;  %15417 = vmatmul.mubr.bf16.vlgmr.msra.gmra.mrb[188].mxu1 %v15149_v60  ;;  %v24075_v60 = vld [vmem:[#allocation6 + $0x17c4] ss:$16 sps:$4 sm:$0xff]  }
 0x8cd   :  { %15625 = vmatpush1.bf16.msra.mxu0 %v23989_v51  ;;  %15666 = vmatpush1.bf16.msra.mxu1 %v23992_v20  ;;  %v24067_v51 = vld [vmem:[#allocation6 + $0x17a0] ss:$16 sps:$4 sm:$0xff]   ;;  %v24070_v20 = vld [vmem:[#allocation6 + $0x17a8] ss:$16 sps:$4 sm:$0xff]  }
 0x8ce   :  { %15626 = vmatprep.subr.bf16.mxu0 %v23997_v35  ;;  %15667 = vmatprep.subr.bf16.mxu1 %v24000_v34  ;;  %v24078_v35 = vld [vmem:[#allocation6 + $0x17cc] ss:$16 sps:$4 sm:$0xff]  }
 0x8cf   :  { %15656 = vmatprep.mubr.bf16.mxu0 %v24510_v19  ;;  %15697 = vmatprep.mubr.bf16.mxu1 %v24510_v19 }
 0x8d1   :  { %15627 = vmatpush1.bf16.msra.mxu0 %v23995_v41  ;;  %15668 = vmatpush1.bf16.msra.mxu1 %v23998_v44 }
 0x8d2   :  { %15628 = vmatprep.subr.bf16.mxu0 %v24003_v45  ;;  %15669 = vmatprep.subr.bf16.mxu1 %v24006_v56 }
 0x8d5   :  { %15629 = vmatpush1.bf16.msra.mxu0 %v24001_v37  ;;  %15670 = vmatpush1.bf16.msra.mxu1 %v24004_v33 }
 0x8d6   :  { %15630 = vmatprep.subr.bf16.mxu0 %v24009_v49  ;;  %15671 = vmatprep.subr.bf16.mxu1 %v24012_v46 }
 0x8d9   :  { %15631 = vmatpush1.bf16.msra.mxu0 %v24007_v53  ;;  %15672 = vmatpush1.bf16.msra.mxu1 %v24010_v28  ;;  %v24073_v28 = vld [vmem:[#allocation6 + $0x17c0] ss:$16 sps:$4 sm:$0xff]  }
 0x8da   :  { %15632 = vmatprep.subr.bf16.mxu0 %v24015_v50  ;;  %15673 = vmatprep.subr.bf16.mxu1 %v24018_v23  ;;  %v24076_v50 = vld [vmem:[#allocation6 + $0x17c8] ss:$16 sps:$4 sm:$0xff]  }
 0x8dd   :  { %15633 = vmatpush1.bf16.msra.mxu0 %v24013_v40  ;;  %15674 = vmatpush1.bf16.msra.mxu1 %v24016_v54  ;;  %v24084_v40 = vld [vmem:[#allocation6 + $0x17ec] ss:$16 sps:$4 sm:$0xff]   ;;  %v24079_v54 = vld [vmem:[#allocation6 + $0x17e0] ss:$16 sps:$4 sm:$0xff]  }
 0x8de   :  { %15634 = vmatprep.subr.bf16.mxu0 %v24021_v27  ;;  %15675 = vmatprep.subr.bf16.mxu1 %v24024_v57  ;;  %v24090_v27 = vld [vmem:[#allocation6 + $0x1a0c] ss:$16 sps:$4 sm:$0xff]   ;;  %v24085_v57 = vld [vmem:[#allocation6 + $0x1a00] ss:$16 sps:$4 sm:$0xff]  }
 0x8e1   :  { %15635 = vmatpush1.bf16.msra.mxu0 %v24019_v42  ;;  %15676 = vmatpush1.bf16.msra.mxu1 %v24022_v32  ;;  %v24088_v42 = vld [vmem:[#allocation6 + $0x1a08] ss:$16 sps:$4 sm:$0xff]   ;;  %v15711_v32 = vpack.c.bf16 %v27184_v2, %v27184_v2  ;;  %v24097_v2 = vld [vmem:[#allocation6 + $0x1a40] ss:$16 sps:$4 sm:$0xff]  }
 0x8e2   :  { %15636 = vmatprep.subr.bf16.mxu0 %v24027_v22  ;;  %15677 = vmatprep.subr.bf16.mxu1 %v24030_v29  ;;  %v24093_v22 = vld [vmem:[#allocation6 + $0x1a24] ss:$16 sps:$4 sm:$0xff]   ;;  %v24096_v29 = vld [vmem:[#allocation6 + $0x1a2c] ss:$16 sps:$4 sm:$0xff]  }
 0x8e5   :  { %15637 = vmatpush1.bf16.msra.mxu0 %v24025_v17  ;;  %15678 = vmatpush1.bf16.msra.mxu1 %v24028_v5  ;;  %v24091_v17 = vld [vmem:[#allocation6 + $0x1a20] ss:$16 sps:$4 sm:$0xff]   ;;  %v24094_v5 = vld [vmem:[#allocation6 + $0x1a28] ss:$16 sps:$4 sm:$0xff]  }
 0x8e6   :  { %15638 = vmatprep.subr.bf16.mxu0 %v24033_v36  ;;  %15679 = vmatprep.subr.bf16.mxu1 %v24036_v61  ;;  %v24099_v36 = vld [vmem:[#allocation6 + $0x1a44] ss:$16 sps:$4 sm:$0xff]   ;;  %v24102_v61 = vld [vmem:[#allocation6 + $0x1a4c] ss:$16 sps:$4 sm:$0xff]  }
 0x8e9   :  { %15639 = vmatpush1.bf16.msra.mxu0 %v24031_v39  ;;  %15680 = vmatpush1.bf16.msra.mxu1 %v24034_v58  ;;  %v24100_v39 = vld [vmem:[#allocation6 + $0x1a48] ss:$16 sps:$4 sm:$0xff]   ;;  %v24105_v58 = vld [vmem:[#allocation6 + $0x1a64] ss:$16 sps:$4 sm:$0xff]  }
 0x8ea   :  { %15905 = vmatprep.subr.bf16.mxu0 %v24039_v63  ;;  %15946 = vmatprep.subr.bf16.mxu1 %v24042_v15  ;;  %v24108_v63 = vld [vmem:[#allocation6 + $0x1a6c] ss:$16 sps:$4 sm:$0xff]   ;;  %v24103_v15 = vld [vmem:[#allocation6 + $0x1a60] ss:$16 sps:$4 sm:$0xff]  }
 0x8ec   :  { %15657 = vmatmul.mubr.bf16.vlgmr.msra.gmra.mrb[192].mxu0 %v15430_v9  ;;  %15698 = vmatmul.mubr.bf16.vlgmr.msra.gmra.mrb[192].mxu1 %v15430_v9  ;;  %v24114_v9 = vld [vmem:[#allocation6 + $0x1a8c] ss:$16 sps:$4 sm:$0xff]  }
 0x8ed   :  { %15906 = vmatpush1.bf16.msra.mxu0 %v24037_v24  ;;  %15947 = vmatpush1.bf16.msra.mxu1 %v24040_v1  ;;  %v24106_v24 = vld [vmem:[#allocation6 + $0x1a68] ss:$16 sps:$4 sm:$0xff]   ;;  %v24111_v1 = vld [vmem:[#allocation6 + $0x1a84] ss:$16 sps:$4 sm:$0xff]  }
 0x8ee   :  { %15907 = vmatprep.subr.bf16.mxu0 %v24045_v7  ;;  %15948 = vmatprep.subr.bf16.mxu1 %v24048_v8  ;;  %v24109_v7 = vld [vmem:[#allocation6 + $0x1a80] ss:$16 sps:$4 sm:$0xff]   ;;  %v24112_v8 = vld [vmem:[#allocation6 + $0x1a88] ss:$16 sps:$4 sm:$0xff]  }
 0x8ef   :  { %15937 = vmatprep.mubr.bf16.mxu0 %v24510_v19  ;;  %15978 = vmatprep.mubr.bf16.mxu1 %v24510_v19 }
 0x8f1   :  { %15908 = vmatpush1.bf16.msra.mxu0 %v24043_v10  ;;  %15949 = vmatpush1.bf16.msra.mxu1 %v24046_v62  ;;  %v24117_v10 = vld [vmem:[#allocation6 + $0x1aa4] ss:$16 sps:$4 sm:$0xff]   ;;  %v24120_v62 = vld [vmem:[#allocation6 + $0x1aac] ss:$16 sps:$4 sm:$0xff]  }
 0x8f2   :  { %15909 = vmatprep.subr.bf16.mxu0 %v24051_v11  ;;  %15950 = vmatprep.subr.bf16.mxu1 %v24054_v16  ;;  %v24115_v11 = vld [vmem:[#allocation6 + $0x1aa0] ss:$16 sps:$4 sm:$0xff]   ;;  %v24118_v16 = vld [vmem:[#allocation6 + $0x1aa8] ss:$16 sps:$4 sm:$0xff]  }
 0x8f5   :  { %15910 = vmatpush1.bf16.msra.mxu0 %v24049_v55  ;;  %15951 = vmatpush1.bf16.msra.mxu1 %v24052_v12  ;;  %v24123_v55 = vld [vmem:[#allocation6 + $0x1ac4] ss:$16 sps:$4 sm:$0xff]   ;;  %v24126_v12 = vld [vmem:[#allocation6 + $0x1acc] ss:$16 sps:$4 sm:$0xff]  }
 0x8f6   :  { %15911 = vmatprep.subr.bf16.mxu0 %v24057_v13  ;;  %15952 = vmatprep.subr.bf16.mxu1 %v24060_v14 }
 0x8f9   :  { %15912 = vmatpush1.bf16.msra.mxu0 %v24055_v21  ;;  %15953 = vmatpush1.bf16.msra.mxu1 %v24058_v25 }
 0x8fa   :  { %15913 = vmatprep.subr.bf16.mxu0 %v24063_v52  ;;  %15954 = vmatprep.subr.bf16.mxu1 %v24066_v0 }
 0x8fd   :  { %15914 = vmatpush1.bf16.msra.mxu0 %v24061_v30  ;;  %15955 = vmatpush1.bf16.msra.mxu1 %v24064_v26 }
 0x8fe   :  { %15915 = vmatprep.subr.bf16.mxu0 %v24069_v59  ;;  %15956 = vmatprep.subr.bf16.mxu1 %v24072_v18 }
 0x8ff   :  { %v13972_v34 = vpop.f32.mrb[168].mxu0  ;;  %v14013_v41 = vpop.f32.mrb[168].mxu1 }
 0x900   :  { %v27226_v44 = vadd.f32 %v13972_v34, %v27069_v4  ;;  %v27229_v45 = vadd.f32 %v14013_v41, %v27072_v48  ;;  %v13974_v56 = vpop.f32.mrb[169].mxu0  ;;  %v14015_v37 = vpop.f32.mrb[169].mxu1  ;;  %v24081_v48 = vld [vmem:[#allocation6 + $0x17e4] ss:$16 sps:$4 sm:$0xff]   ;;  %v24132_v41 = vld [vmem:[#allocation6 + $0x1aec] ss:$16 sps:$4 sm:$0xff]  }
 0x901   :  { %v27232_v33 = vadd.f32 %v13974_v56, %v27079_v38  ;;  %v27235_v49 = vadd.f32 %v14015_v37, %v27082_v43  ;;  %15916 = vmatpush1.bf16.msra.mxu0 %v24067_v51  ;;  %15957 = vmatpush1.bf16.msra.mxu1 %v24070_v20  ;;  %v13976_v46 = vpop.f32.mrb[170].mxu0  ;;  %v14017_v53 = vpop.f32.mrb[170].mxu1  ;;  %v24082_v38 = vld [vmem:[#allocation6 + $0x17e8] ss:$16 sps:$4 sm:$0xff]   ;;  %v24087_v43 = vld [vmem:[#allocation6 + $0x1a04] ss:$16 sps:$4 sm:$0xff]  }
 0x902   :  { %v13977_v23 = vpop.f32.mrb[171].mxu0  ;;  %v14018_v4 = vpop.f32.mrb[171].mxu1  ;;  %15917 = vmatprep.subr.bf16.mxu0 %v24075_v60  ;;  %15958 = vmatprep.subr.bf16.mxu1 %v24078_v35  ;;  %v24121_v51 = vld [vmem:[#allocation6 + $0x1ac0] ss:$16 sps:$4 sm:$0xff]   ;;  %v24124_v20 = vld [vmem:[#allocation6 + $0x1ac8] ss:$16 sps:$4 sm:$0xff]   ;;  %v15992_v46 = vpack.c.bf16 %v27188_v31, %v27188_v31 }
 0x903   :  { %v24129_v34 = vld [vmem:[#allocation6 + $0x1ae4] ss:$16 sps:$4 sm:$0xff]   ;;  %v24138_v37 = vld [vmem:[#allocation6 + $0x1d0c] ss:$16 sps:$4 sm:$0xff]   ;;  %v24142_v23 = vld [vmem:[#allocation6 + $0x1d28] ss:$16 sps:$4 sm:$0xff]  }
 0x904   :  { %v24135_v56 = vld [vmem:[#allocation6 + $0x1d04] ss:$16 sps:$4 sm:$0xff]   ;;  %v24145_v31 = vld [vmem:[#allocation6 + $0x1d40] ss:$16 sps:$4 sm:$0xff]  }
 0x905   :  { %15918 = vmatpush1.bf16.msra.mxu0 %v24073_v28  ;;  %15959 = vmatpush1.bf16.msra.mxu1 %v24076_v50  ;;  %v24141_v53 = vld [vmem:[#allocation6 + $0x1d24] ss:$16 sps:$4 sm:$0xff]   ;;  %v24144_v28 = vld [vmem:[#allocation6 + $0x1d2c] ss:$16 sps:$4 sm:$0xff]   ;;  %v24139_v50 = vld [vmem:[#allocation6 + $0x1d20] ss:$16 sps:$4 sm:$0xff]  }
 0x906   :  { %15919 = vmatprep.subr.bf16.mxu0 %v24081_v48  ;;  %15960 = vmatprep.subr.bf16.mxu1 %v24084_v40  ;;  %v24147_v4 = vld [vmem:[#allocation6 + $0x1d44] ss:$16 sps:$4 sm:$0xff]   ;;  %v24150_v48 = vld [vmem:[#allocation6 + $0x1d4c] ss:$16 sps:$4 sm:$0xff]   ;;  %v24148_v40 = vld [vmem:[#allocation6 + $0x1d48] ss:$16 sps:$4 sm:$0xff]  }
 0x909   :  { %15920 = vmatpush1.bf16.msra.mxu0 %v24079_v54  ;;  %15961 = vmatpush1.bf16.msra.mxu1 %v24082_v38  ;;  %v24153_v54 = vld [vmem:[#allocation6 + $0x1d64] ss:$16 sps:$4 sm:$0xff]   ;;  %v24156_v38 = vld [vmem:[#allocation6 + $0x1d6c] ss:$16 sps:$4 sm:$0xff]  }
 0x90a   :  { %16186 = vmatprep.subr.bf16.mxu0 %v24087_v43  ;;  %16227 = vmatprep.subr.bf16.mxu1 %v24090_v27  ;;  %v24151_v43 = vld [vmem:[#allocation6 + $0x1d60] ss:$16 sps:$4 sm:$0xff]   ;;  %v24154_v27 = vld [vmem:[#allocation6 + $0x1d68] ss:$16 sps:$4 sm:$0xff]  }
 0x90c   :  { %15938 = vmatmul.mubr.bf16.vlgmr.msra.gmra.mrb[196].mxu0 %v15711_v32  ;;  %15979 = vmatmul.mubr.bf16.vlgmr.msra.gmra.mrb[196].mxu1 %v15711_v32  ;;  %v24157_v32 = vld [vmem:[#allocation6 + $0x1d80] ss:$16 sps:$4 sm:$0xff]  }
 0x90d   :  { %16187 = vmatpush1.bf16.msra.mxu0 %v24085_v57  ;;  %16228 = vmatpush1.bf16.msra.mxu1 %v24088_v42  ;;  %v24159_v57 = vld [vmem:[#allocation6 + $0x1d84] ss:$16 sps:$4 sm:$0xff]   ;;  %v24162_v42 = vld [vmem:[#allocation6 + $0x1d8c] ss:$16 sps:$4 sm:$0xff]  }
 0x90e   :  { %16188 = vmatprep.subr.bf16.mxu0 %v24093_v22  ;;  %16229 = vmatprep.subr.bf16.mxu1 %v24096_v29  ;;  %v24160_v22 = vld [vmem:[#allocation6 + $0x1d88] ss:$16 sps:$4 sm:$0xff]   ;;  %v24165_v29 = vld [vmem:[#allocation6 + $0x1da4] ss:$16 sps:$4 sm:$0xff]  }
 0x90f   :  { %16218 = vmatprep.mubr.bf16.mxu0 %v24510_v19  ;;  %16259 = vmatprep.mubr.bf16.mxu1 %v24510_v19 }
 0x911   :  { %16189 = vmatpush1.bf16.msra.mxu0 %v24091_v17  ;;  %16230 = vmatpush1.bf16.msra.mxu1 %v24094_v5  ;;  %v24168_v17 = vld [vmem:[#allocation6 + $0x1dac] ss:$16 sps:$4 sm:$0xff]   ;;  %v24163_v5 = vld [vmem:[#allocation6 + $0x1da0] ss:$16 sps:$4 sm:$0xff]  }
 0x912   :  { %16190 = vmatprep.subr.bf16.mxu0 %v24099_v36  ;;  %16231 = vmatprep.subr.bf16.mxu1 %v24102_v61  ;;  %v24166_v36 = vld [vmem:[#allocation6 + $0x1da8] ss:$16 sps:$4 sm:$0xff]   ;;  %v24171_v61 = vld [vmem:[#allocation6 + $0x1dc4] ss:$16 sps:$4 sm:$0xff]  }
 0x915   :  { %16191 = vmatpush1.bf16.msra.mxu0 %v24097_v2  ;;  %16232 = vmatpush1.bf16.msra.mxu1 %v24100_v39  ;;  %v24174_v2 = vld [vmem:[#allocation6 + $0x1dcc] ss:$16 sps:$4 sm:$0xff]  }
 0x916   :  { %16192 = vmatprep.subr.bf16.mxu0 %v24105_v58  ;;  %16233 = vmatprep.subr.bf16.mxu1 %v24108_v63 }
 0x919   :  { %16193 = vmatpush1.bf16.msra.mxu0 %v24103_v15  ;;  %16234 = vmatpush1.bf16.msra.mxu1 %v24106_v24 }
 0x91a   :  { %16194 = vmatprep.subr.bf16.mxu0 %v24111_v1  ;;  %16235 = vmatprep.subr.bf16.mxu1 %v24114_v9 }
 0x91d   :  { %16195 = vmatpush1.bf16.msra.mxu0 %v24109_v7  ;;  %16236 = vmatpush1.bf16.msra.mxu1 %v24112_v8 }
 0x91e   :  { %16196 = vmatprep.subr.bf16.mxu0 %v24117_v10  ;;  %16237 = vmatprep.subr.bf16.mxu1 %v24120_v62  ;;  %v24169_v62 = vld [vmem:[#allocation6 + $0x1dc0] ss:$16 sps:$4 sm:$0xff]  }
 0x91f   :  { %v14253_v13 = vpop.f32.mrb[172].mxu0  ;;  %v14294_v14 = vpop.f32.mrb[172].mxu1 }
 0x920   :  { %v27242_v21 = vadd.f32 %v14253_v13, %v27226_v44  ;;  %v27245_v25 = vadd.f32 %v14294_v14, %v27229_v45  ;;  %v14255_v52 = vpop.f32.mrb[173].mxu0  ;;  %v14296_v0 = vpop.f32.mrb[173].mxu1  ;;  %v24127_v44 = vld [vmem:[#allocation6 + $0x1ae0] ss:$16 sps:$4 sm:$0xff]   ;;  %v24130_v45 = vld [vmem:[#allocation6 + $0x1ae8] ss:$16 sps:$4 sm:$0xff]  }
 0x921   :  { %v27248_v30 = vadd.f32 %v14255_v52, %v27232_v33  ;;  %v27251_v26 = vadd.f32 %v14296_v0, %v27235_v49  ;;  %v14257_v59 = vpop.f32.mrb[174].mxu0  ;;  %v14298_v18 = vpop.f32.mrb[174].mxu1  ;;  %16197 = vmatpush1.bf16.msra.mxu0 %v24115_v11  ;;  %16238 = vmatpush1.bf16.msra.mxu1 %v24118_v16  ;;  %v24133_v33 = vld [vmem:[#allocation6 + $0x1d00] ss:$16 sps:$4 sm:$0xff]   ;;  %v24136_v49 = vld [vmem:[#allocation6 + $0x1d08] ss:$16 sps:$4 sm:$0xff]  }
 0x922   :  { %v14258_v60 = vpop.f32.mrb[175].mxu0  ;;  %v14299_v35 = vpop.f32.mrb[175].mxu1  ;;  %16198 = vmatprep.subr.bf16.mxu0 %v24123_v55  ;;  %16239 = vmatprep.subr.bf16.mxu1 %v24126_v12  ;;  %v24172_v11 = vld [vmem:[#allocation6 + $0x1dc8] ss:$16 sps:$4 sm:$0xff]   ;;  %v24177_v12 = vld [vmem:[#allocation6 + $0x1de4] ss:$16 sps:$4 sm:$0xff]  }
 0x923   :  { %v24180_v13 = vld [vmem:[#allocation6 + $0x1dec] ss:$16 sps:$4 sm:$0xff]   ;;  %v24175_v14 = vld [vmem:[#allocation6 + $0x1de0] ss:$16 sps:$4 sm:$0xff]   ;;  %v24189_v59 = vld [vmem:[#allocation6 + $0x2024] ss:$16 sps:$4 sm:$0xff]  }
 0x924   :  { %v24186_v52 = vld [vmem:[#allocation6 + $0x200c] ss:$16 sps:$4 sm:$0xff]   ;;  %v24181_v0 = vld [vmem:[#allocation6 + $0x2000] ss:$16 sps:$4 sm:$0xff]   ;;  %v24195_v60 = vld [vmem:[#allocation6 + $0x2044] ss:$16 sps:$4 sm:$0xff]  }
 0x925   :  { %16199 = vmatpush1.bf16.msra.mxu0 %v24121_v51  ;;  %16240 = vmatpush1.bf16.msra.mxu1 %v24124_v20  ;;  %v24192_v18 = vld [vmem:[#allocation6 + $0x202c] ss:$16 sps:$4 sm:$0xff]   ;;  %v24187_v51 = vld [vmem:[#allocation6 + $0x2020] ss:$16 sps:$4 sm:$0xff]   ;;  %v24190_v20 = vld [vmem:[#allocation6 + $0x2028] ss:$16 sps:$4 sm:$0xff]  }
 0x926   :  { %16200 = vmatprep.subr.bf16.mxu0 %v24129_v34  ;;  %16241 = vmatprep.subr.bf16.mxu1 %v24132_v41  ;;  %v24198_v35 = vld [vmem:[#allocation6 + $0x204c] ss:$16 sps:$4 sm:$0xff]   ;;  %v24196_v34 = vld [vmem:[#allocation6 + $0x2048] ss:$16 sps:$4 sm:$0xff]   ;;  %v24201_v41 = vld [vmem:[#allocation6 + $0x2064] ss:$16 sps:$4 sm:$0xff]  }
 0x929   :  { %16201 = vmatpush1.bf16.msra.mxu0 %v24127_v44  ;;  %16242 = vmatpush1.bf16.msra.mxu1 %v24130_v45  ;;  %v24204_v44 = vld [vmem:[#allocation6 + $0x206c] ss:$16 sps:$4 sm:$0xff]   ;;  %v24199_v45 = vld [vmem:[#allocation6 + $0x2060] ss:$16 sps:$4 sm:$0xff]  }
 0x92a   :  { %16467 = vmatprep.subr.bf16.mxu0 %v24135_v56  ;;  %16508 = vmatprep.subr.bf16.mxu1 %v24138_v37  ;;  %v24202_v56 = vld [vmem:[#allocation6 + $0x2068] ss:$16 sps:$4 sm:$0xff]   ;;  %v24207_v37 = vld [vmem:[#allocation6 + $0x2084] ss:$16 sps:$4 sm:$0xff]  }
 0x92c   :  { %16219 = vmatmul.mubr.bf16.vlgmr.msra.gmra.mrb[200].mxu0 %v15992_v46  ;;  %16260 = vmatmul.mubr.bf16.vlgmr.msra.gmra.mrb[200].mxu1 %v15992_v46  ;;  %v24208_v46 = vld [vmem:[#allocation6 + $0x2088] ss:$16 sps:$4 sm:$0xff]  }
 0x92d   :  { %16468 = vmatpush1.bf16.msra.mxu0 %v24133_v33  ;;  %16509 = vmatpush1.bf16.msra.mxu1 %v24136_v49  ;;  %v24210_v33 = vld [vmem:[#allocation6 + $0x208c] ss:$16 sps:$4 sm:$0xff]   ;;  %v24205_v49 = vld [vmem:[#allocation6 + $0x2080] ss:$16 sps:$4 sm:$0xff]  }
 0x92e   :  { %16469 = vmatprep.subr.bf16.mxu0 %v24141_v53  ;;  %16510 = vmatprep.subr.bf16.mxu1 %v24144_v28  ;;  %v24213_v53 = vld [vmem:[#allocation6 + $0x20a4] ss:$16 sps:$4 sm:$0xff]   ;;  %v24216_v28 = vld [vmem:[#allocation6 + $0x20ac] ss:$16 sps:$4 sm:$0xff]  }
 0x92f   :  { %16499 = vmatprep.mubr.bf16.mxu0 %v24510_v19  ;;  %16540 = vmatprep.mubr.bf16.mxu1 %v24510_v19 }
 0x931   :  { %16470 = vmatpush1.bf16.msra.mxu0 %v24139_v50  ;;  %16511 = vmatpush1.bf16.msra.mxu1 %v24142_v23  ;;  %v24211_v50 = vld [vmem:[#allocation6 + $0x20a0] ss:$16 sps:$4 sm:$0xff]   ;;  %v24214_v23 = vld [vmem:[#allocation6 + $0x20a8] ss:$16 sps:$4 sm:$0xff]  }
 0x932   :  { %16471 = vmatprep.subr.bf16.mxu0 %v24147_v4  ;;  %16512 = vmatprep.subr.bf16.mxu1 %v24150_v48  ;;  %v24219_v4 = vld [vmem:[#allocation6 + $0x20c4] ss:$16 sps:$4 sm:$0xff]   ;;  %v24222_v48 = vld [vmem:[#allocation6 + $0x20cc] ss:$16 sps:$4 sm:$0xff]  }
 0x935   :  { %16472 = vmatpush1.bf16.msra.mxu0 %v24145_v31  ;;  %16513 = vmatpush1.bf16.msra.mxu1 %v24148_v40 }
 0x936   :  { %16473 = vmatprep.subr.bf16.mxu0 %v24153_v54  ;;  %16514 = vmatprep.subr.bf16.mxu1 %v24156_v38 }
 0x939   :  { %16474 = vmatpush1.bf16.msra.mxu0 %v24151_v43  ;;  %16515 = vmatpush1.bf16.msra.mxu1 %v24154_v27 }
 0x93a   :  { %16475 = vmatprep.subr.bf16.mxu0 %v24159_v57  ;;  %16516 = vmatprep.subr.bf16.mxu1 %v24162_v42 }
 0x93d   :  { %16476 = vmatpush1.bf16.msra.mxu0 %v24157_v32  ;;  %16517 = vmatpush1.bf16.msra.mxu1 %v24160_v22 }
 0x93e   :  { %16477 = vmatprep.subr.bf16.mxu0 %v24165_v29  ;;  %16518 = vmatprep.subr.bf16.mxu1 %v24168_v17  ;;  %v24217_v29 = vld [vmem:[#allocation6 + $0x20c0] ss:$16 sps:$4 sm:$0xff]   ;;  %v24220_v17 = vld [vmem:[#allocation6 + $0x20c8] ss:$16 sps:$4 sm:$0xff]  }
 0x93f   :  { %v14534_v39 = vpop.f32.mrb[176].mxu0  ;;  %v14575_v58 = vpop.f32.mrb[176].mxu1 }
 0x940   :  { %v27258_v63 = vadd.f32 %v14534_v39, %v27242_v21  ;;  %v27261_v15 = vadd.f32 %v14575_v58, %v27245_v25  ;;  %v14536_v24 = vpop.f32.mrb[177].mxu0  ;;  %v14577_v1 = vpop.f32.mrb[177].mxu1  ;;  %v24178_v21 = vld [vmem:[#allocation6 + $0x1de8] ss:$16 sps:$4 sm:$0xff]   ;;  %v24183_v25 = vld [vmem:[#allocation6 + $0x2004] ss:$16 sps:$4 sm:$0xff]  }
 0x941   :  { %v27264_v9 = vadd.f32 %v14536_v24, %v27248_v30  ;;  %v27267_v7 = vadd.f32 %v14577_v1, %v27251_v26  ;;  %v14538_v8 = vpop.f32.mrb[178].mxu0  ;;  %v14579_v10 = vpop.f32.mrb[178].mxu1  ;;  %16478 = vmatpush1.bf16.msra.mxu0 %v24163_v5  ;;  %16519 = vmatpush1.bf16.msra.mxu1 %v24166_v36  ;;  %v24184_v30 = vld [vmem:[#allocation6 + $0x2008] ss:$16 sps:$4 sm:$0xff]   ;;  %v16273_v26 = vpack.c.bf16 %v27194_v47, %v27194_v47  ;;  %v24193_v47 = vld [vmem:[#allocation6 + $0x2040] ss:$16 sps:$4 sm:$0xff]  }
 0x942   :  { %v14539_v16 = vpop.f32.mrb[179].mxu0  ;;  %v14580_v55 = vpop.f32.mrb[179].mxu1  ;;  %16479 = vmatprep.subr.bf16.mxu0 %v24171_v61  ;;  %16520 = vmatprep.subr.bf16.mxu1 %v24174_v2  ;;  %v24225_v61 = vld [vmem:[#allocation6 + $0x20e4] ss:$16 sps:$4 sm:$0xff]   ;;  %v24228_v2 = vld [vmem:[#allocation6 + $0x20ec] ss:$16 sps:$4 sm:$0xff]  }
 0x943   :  { %v24223_v39 = vld [vmem:[#allocation6 + $0x20e0] ss:$16 sps:$4 sm:$0xff]   ;;  %v24226_v58 = vld [vmem:[#allocation6 + $0x20e8] ss:$16 sps:$4 sm:$0xff]   ;;  %v24240_v8 = vld [vmem:[#allocation6 + $0x232c] ss:$16 sps:$4 sm:$0xff]  }
 0x944   :  { %v24229_v24 = vld [vmem:[#allocation6 + $0x2300] ss:$16 sps:$4 sm:$0xff]   ;;  %v24232_v1 = vld [vmem:[#allocation6 + $0x2308] ss:$16 sps:$4 sm:$0xff]   ;;  %v24246_v16 = vld [vmem:[#allocation6 + $0x234c] ss:$16 sps:$4 sm:$0xff]  }
 0x945   :  { %16480 = vmatpush1.bf16.msra.mxu0 %v24169_v62  ;;  %16521 = vmatpush1.bf16.msra.mxu1 %v24172_v11  ;;  %v24235_v10 = vld [vmem:[#allocation6 + $0x2320] ss:$16 sps:$4 sm:$0xff]   ;;  %v24238_v62 = vld [vmem:[#allocation6 + $0x2328] ss:$16 sps:$4 sm:$0xff]   ;;  %v24243_v11 = vld [vmem:[#allocation6 + $0x2344] ss:$16 sps:$4 sm:$0xff]  }
 0x946   :  { %16481 = vmatprep.subr.bf16.mxu0 %v24177_v12  ;;  %16522 = vmatprep.subr.bf16.mxu1 %v24180_v13  ;;  %v24244_v55 = vld [vmem:[#allocation6 + $0x2348] ss:$16 sps:$4 sm:$0xff]   ;;  %v24249_v12 = vld [vmem:[#allocation6 + $0x2364] ss:$16 sps:$4 sm:$0xff]   ;;  %v24252_v13 = vld [vmem:[#allocation6 + $0x236c] ss:$16 sps:$4 sm:$0xff]  }
 0x949   :  { %16482 = vmatpush1.bf16.msra.mxu0 %v24175_v14  ;;  %16523 = vmatpush1.bf16.msra.mxu1 %v24178_v21  ;;  %v24247_v14 = vld [vmem:[#allocation6 + $0x2360] ss:$16 sps:$4 sm:$0xff]   ;;  %v24250_v21 = vld [vmem:[#allocation6 + $0x2368] ss:$16 sps:$4 sm:$0xff]  }
 0x94a   :  { %16748 = vmatprep.subr.bf16.mxu0 %v24183_v25  ;;  %16789 = vmatprep.subr.bf16.mxu1 %v24186_v52  ;;  %v24255_v25 = vld [vmem:[#allocation6 + $0x2384] ss:$16 sps:$4 sm:$0xff]   ;;  %v24258_v52 = vld [vmem:[#allocation6 + $0x238c] ss:$16 sps:$4 sm:$0xff]  }
 0x94c   :  { %16500 = vmatmul.mubr.bf16.vlgmr.msra.gmra.mrb[204].mxu0 %v16273_v26  ;;  %16541 = vmatmul.mubr.bf16.vlgmr.msra.gmra.mrb[204].mxu1 %v16273_v26  ;;  %v24264_v26 = vld [vmem:[#allocation6 + $0x23ac] ss:$16 sps:$4 sm:$0xff]  }
 0x94d   :  { %16749 = vmatpush1.bf16.msra.mxu0 %v24181_v0  ;;  %16790 = vmatpush1.bf16.msra.mxu1 %v24184_v30  ;;  %v24253_v0 = vld [vmem:[#allocation6 + $0x2380] ss:$16 sps:$4 sm:$0xff]   ;;  %v24261_v30 = vld [vmem:[#allocation6 + $0x23a4] ss:$16 sps:$4 sm:$0xff]  }
 0x94e   :  { %16750 = vmatprep.subr.bf16.mxu0 %v24189_v59  ;;  %16791 = vmatprep.subr.bf16.mxu1 %v24192_v18  ;;  %v24259_v59 = vld [vmem:[#allocation6 + $0x23a0] ss:$16 sps:$4 sm:$0xff]   ;;  %v24262_v18 = vld [vmem:[#allocation6 + $0x23a8] ss:$16 sps:$4 sm:$0xff]  }
 0x94f   :  { %16780 = vmatprep.mubr.bf16.mxu0 %v24510_v19  ;;  %16821 = vmatprep.mubr.bf16.mxu1 %v24510_v19 }
 0x951   :  { %16751 = vmatpush1.bf16.msra.mxu0 %v24187_v51  ;;  %16792 = vmatpush1.bf16.msra.mxu1 %v24190_v20  ;;  %v24267_v51 = vld [vmem:[#allocation6 + $0x23c4] ss:$16 sps:$4 sm:$0xff]   ;;  %v24270_v20 = vld [vmem:[#allocation6 + $0x23cc] ss:$16 sps:$4 sm:$0xff]  }
 0x952   :  { %16752 = vmatprep.subr.bf16.mxu0 %v24195_v60  ;;  %16793 = vmatprep.subr.bf16.mxu1 %v24198_v35 }
 0x955   :  { %16753 = vmatpush1.bf16.msra.mxu0 %v24193_v47  ;;  %16794 = vmatpush1.bf16.msra.mxu1 %v24196_v34 }
 0x956   :  { %16754 = vmatprep.subr.bf16.mxu0 %v24201_v41  ;;  %16795 = vmatprep.subr.bf16.mxu1 %v24204_v44 }
 0x959   :  { %16755 = vmatpush1.bf16.msra.mxu0 %v24199_v45  ;;  %16796 = vmatpush1.bf16.msra.mxu1 %v24202_v56 }
 0x95a   :  { %16756 = vmatprep.subr.bf16.mxu0 %v24207_v37  ;;  %16797 = vmatprep.subr.bf16.mxu1 %v24210_v33 }
 0x95d   :  { %16757 = vmatpush1.bf16.msra.mxu0 %v24205_v49  ;;  %16798 = vmatpush1.bf16.msra.mxu1 %v24208_v46  ;;  %v24265_v49 = vld [vmem:[#allocation6 + $0x23c0] ss:$16 sps:$4 sm:$0xff]   ;;  %v24268_v46 = vld [vmem:[#allocation6 + $0x23c8] ss:$16 sps:$4 sm:$0xff]  }
 0x95e   :  { %16758 = vmatprep.subr.bf16.mxu0 %v24213_v53  ;;  %16799 = vmatprep.subr.bf16.mxu1 %v24216_v28 }
 0x95f   :  { %v14815_v31 = vpop.f32.mrb[180].mxu0  ;;  %v14856_v40 = vpop.f32.mrb[180].mxu1 }
 0x960   :  { %v27274_v54 = vadd.f32 %v14815_v31, %v27258_v63  ;;  %v27277_v38 = vadd.f32 %v14856_v40, %v27261_v15  ;;  %v14817_v43 = vpop.f32.mrb[181].mxu0  ;;  %v14858_v27 = vpop.f32.mrb[181].mxu1  ;;  %v24231_v63 = vld [vmem:[#allocation6 + $0x2304] ss:$16 sps:$4 sm:$0xff]   ;;  %v24234_v15 = vld [vmem:[#allocation6 + $0x230c] ss:$16 sps:$4 sm:$0xff]   ;;  %v16835_v31 = vpack.c.bf16 %v27203_v6, %v27203_v6 }
 0x961   :  { %v27280_v57 = vadd.f32 %v14817_v43, %v27264_v9  ;;  %v27283_v42 = vadd.f32 %v14858_v27, %v27267_v7  ;;  %v14819_v32 = vpop.f32.mrb[182].mxu0  ;;  %v14860_v22 = vpop.f32.mrb[182].mxu1  ;;  %16759 = vmatpush1.bf16.msra.mxu0 %v24211_v50  ;;  %16800 = vmatpush1.bf16.msra.mxu1 %v24214_v23  ;;  %v16554_v9 = vpack.c.bf16 %v27200_v3, %v27200_v3  ;;  %v24237_v7 = vld [vmem:[#allocation6 + $0x2324] ss:$16 sps:$4 sm:$0xff]   ;;  %v24241_v3 = vld [vmem:[#allocation6 + $0x2340] ss:$16 sps:$4 sm:$0xff]  }
 0x962   :  { %v14820_v5 = vpop.f32.mrb[183].mxu0  ;;  %v14861_v36 = vpop.f32.mrb[183].mxu1  ;;  %16760 = vmatprep.subr.bf16.mxu0 %v24219_v4  ;;  %16801 = vmatprep.subr.bf16.mxu1 %v24222_v48  ;;  %v24273_v50 = vld [vmem:[#allocation6 + $0x23e4] ss:$16 sps:$4 sm:$0xff]   ;;  %v24276_v23 = vld [vmem:[#allocation6 + $0x23ec] ss:$16 sps:$4 sm:$0xff]  }
 0x963   :  { %v24271_v4 = vld [vmem:[#allocation6 + $0x23e0] ss:$16 sps:$4 sm:$0xff]   ;;  %v24274_v48 = vld [vmem:[#allocation6 + $0x23e8] ss:$16 sps:$4 sm:$0xff]  }
 0x965   :  { %16761 = vmatpush1.bf16.msra.mxu0 %v24217_v29  ;;  %16802 = vmatpush1.bf16.msra.mxu1 %v24220_v17 }
 0x966   :  { %16762 = vmatprep.subr.bf16.mxu0 %v24225_v61  ;;  %16803 = vmatprep.subr.bf16.mxu1 %v24228_v2 }
 0x969   :  { %16763 = vmatpush1.bf16.msra.mxu0 %v24223_v39  ;;  %16804 = vmatpush1.bf16.msra.mxu1 %v24226_v58 }
 0x96a   :  { %17029 = vmatprep.subr.bf16.mxu0 %v24231_v63  ;;  %17070 = vmatprep.subr.bf16.mxu1 %v24234_v15 }
 0x96c   :  { %16781 = vmatmul.mubr.bf16.vlgmr.msra.gmra.mrb[208].mxu0 %v16554_v9  ;;  %16822 = vmatmul.mubr.bf16.vlgmr.msra.gmra.mrb[208].mxu1 %v16554_v9 }
 0x96d   :  { %17030 = vmatpush1.bf16.msra.mxu0 %v24229_v24  ;;  %17071 = vmatpush1.bf16.msra.mxu1 %v24232_v1 }
 0x96e   :  { %17031 = vmatprep.subr.bf16.mxu0 %v24237_v7  ;;  %17072 = vmatprep.subr.bf16.mxu1 %v24240_v8  ;;  %v17161_v8 = vld [vmem:[#allocation9 + $0x80] sm:$0xff] }
 0x96f   :  { %17061 = vmatprep.mubr.bf16.mxu0 %v24510_v19  ;;  %17102 = vmatprep.mubr.bf16.mxu1 %v24510_v19  ;;  %v24256_v19 = vld [vmem:[#allocation6 + $0x2388] ss:$16 sps:$4 sm:$0xff]  }
 0x971   :  { %17032 = vmatpush1.bf16.msra.mxu0 %v24235_v10  ;;  %17073 = vmatpush1.bf16.msra.mxu1 %v24238_v62  ;;  %v17162_v10 = vld [vmem:[#allocation9 + $0x88] sm:$0xff]  ;;  %v17193_v62 = vld [vmem:[#allocation9 + $0x180] sm:$0xff] }
 0x972   :  { %17033 = vmatprep.subr.bf16.mxu0 %v24243_v11  ;;  %17074 = vmatprep.subr.bf16.mxu1 %v24246_v16  ;;  %v21895_v11 = vpack.c.bf16 %v17162_v10, %v17161_v8  ;;  %v17194_v16 = vld [vmem:[#allocation9 + $0x188] sm:$0xff]  ;;  %v17203_v8 = vld [vmem:[#allocation9 + $0x1d0] sm:$0xff]  ;;  %v17204_v10 = vld [vmem:[#allocation9 + $0x1d8] sm:$0xff] }
 0x975   :  { %17034 = vmatpush1.bf16.msra.mxu0 %v24241_v3  ;;  %17075 = vmatpush1.bf16.msra.mxu1 %v24244_v55  ;;  %v17145_v3 = vld [vmem:[#allocation9] sm:$0xff]  ;;  %v17146_v55 = vld [vmem:[#allocation9 + $0x8] sm:$0xff] }
 0x976   :  { %17035 = vmatprep.subr.bf16.mxu0 %v24249_v12  ;;  %17076 = vmatprep.subr.bf16.mxu1 %v24252_v13  ;;  %v21927_v12 = vpack.c.bf16 %v17194_v16, %v17193_v62  ;;  %v21897_v13 = vpack.c.bf16 %v17146_v55, %v17145_v3  ;;  %v17155_v3 = vld [vmem:[#allocation9 + $0x50] sm:$0xff]  ;;  %v17156_v55 = vld [vmem:[#allocation9 + $0x58] sm:$0xff] }
 0x979   :  { %17036 = vmatpush1.bf16.msra.mxu0 %v24247_v14  ;;  %17077 = vmatpush1.bf16.msra.mxu1 %v24250_v21  ;;  %v17177_v14 = vld [vmem:[#allocation9 + $0x100] sm:$0xff]  ;;  %v17178_v21 = vld [vmem:[#allocation9 + $0x108] sm:$0xff] }
 0x97a   :  { %17037 = vmatprep.subr.bf16.mxu0 %v24255_v25  ;;  %17078 = vmatprep.subr.bf16.mxu1 %v24258_v52  ;;  %v17163_v25 = vld [vmem:[#allocation9 + $0x90] sm:$0xff]  ;;  %v21929_v52 = vpack.c.bf16 %v17178_v21, %v17177_v14  ;;  %v17188_v14 = vld [vmem:[#allocation9 + $0x158] sm:$0xff]  ;;  %v21917_v21 = vpack.c.bf16 %v17156_v55, %v17155_v3 }
 0x97d   :  { %17038 = vmatpush1.bf16.msra.mxu0 %v24253_v0  ;;  %17079 = vmatpush1.bf16.msra.mxu1 %v24256_v19  ;;  %v17164_v0 = vld [vmem:[#allocation9 + $0x98] sm:$0xff]  ;;  %v17195_v19 = vld [vmem:[#allocation9 + $0x190] sm:$0xff] }
 0x97e   :  { %17039 = vmatprep.subr.bf16.mxu0 %v24261_v30  ;;  %17080 = vmatprep.subr.bf16.mxu1 %v24264_v26  ;;  %v17196_v30 = vld [vmem:[#allocation9 + $0x198] sm:$0xff]  ;;  %v21899_v26 = vpack.c.bf16 %v17164_v0, %v17163_v25  ;;  %v17174_v0 = vld [vmem:[#allocation9 + $0xe8] sm:$0xff] }
 0x97f   :  { %v15096_v60 = vpop.f32.mrb[184].mxu0  ;;  %v15137_v35 = vpop.f32.mrb[184].mxu1 }
 0x980   :  { %v15144_v47 = vadd.f32 %v15096_v60, %v27274_v54  ;;  %v15146_v34 = vadd.f32 %v15137_v35, %v27277_v38  ;;  %v15098_v41 = vpop.f32.mrb[185].mxu0  ;;  %v15139_v44 = vpop.f32.mrb[185].mxu1  ;;  %v17180_v35 = vld [vmem:[#allocation9 + $0x118] sm:$0xff] }
 0x981   :  { %v15145_v45 = vadd.f32 %v15098_v41, %v27280_v57  ;;  %v15147_v56 = vadd.f32 %v15139_v44, %v27283_v42  ;;  %v15100_v37 = vpop.f32.mrb[186].mxu0  ;;  %v15141_v33 = vpop.f32.mrb[186].mxu1  ;;  %17040 = vmatpush1.bf16.msra.mxu0 %v24259_v59  ;;  %17081 = vmatpush1.bf16.msra.mxu1 %v24262_v18  ;;  %v21931_v59 = vpack.c.bf16 %v17196_v30, %v17195_v19  ;;  %v17147_v18 = vld [vmem:[#allocation9 + $0x10] sm:$0xff]  ;;  %v17205_v19 = vld [vmem:[#allocation9 + $0x1e0] sm:$0xff] }
 0x982   :  { %v15101_v53 = vpop.f32.mrb[187].mxu0  ;;  %v15142_v28 = vpop.f32.mrb[187].mxu1  ;;  %17041 = vmatprep.subr.bf16.mxu0 %v24267_v51  ;;  %17082 = vmatprep.subr.bf16.mxu1 %v24270_v20  ;;  %v17148_v51 = vld [vmem:[#allocation9 + $0x18] sm:$0xff]  ;;  %v17179_v20 = vld [vmem:[#allocation9 + $0x110] sm:$0xff]  ;;  %v17149_v37 = vld [vmem:[#allocation9 + $0x20] sm:$0xff] }
 0x983   :  { %v21901_v60 = vpack.c.bf16 %v17148_v51, %v17147_v18  ;;  %v21933_v41 = vpack.c.bf16 %v17180_v35, %v17179_v20  ;;  %v17182_v53 = vld [vmem:[#allocation9 + $0x128] sm:$0xff] }
 0x984   :  { %v17158_v18 = vld [vmem:[#allocation9 + $0x68] sm:$0xff] }
 0x985   :  { %17042 = vmatpush1.bf16.msra.mxu0 %v24265_v49  ;;  %17083 = vmatpush1.bf16.msra.mxu1 %v24268_v46  ;;  %v17150_v49 = vld [vmem:[#allocation9 + $0x28] sm:$0xff]  ;;  %v17181_v46 = vld [vmem:[#allocation9 + $0x120] sm:$0xff] }
 0x986   :  { %17043 = vmatprep.subr.bf16.mxu0 %v24273_v50  ;;  %17084 = vmatprep.subr.bf16.mxu1 %v24276_v23  ;;  %v21905_v28 = vpack.c.bf16 %v17150_v49, %v17149_v37  ;;  %v17167_v50 = vld [vmem:[#allocation9 + $0xb0] sm:$0xff]  ;;  %v17168_v23 = vld [vmem:[#allocation9 + $0xb8] sm:$0xff] }
 0x989   :  { %17044 = vmatpush1.bf16.msra.mxu0 %v24271_v4  ;;  %17085 = vmatpush1.bf16.msra.mxu1 %v24274_v48  ;;  %v17199_v4 = vld [vmem:[#allocation9 + $0x1b0] sm:$0xff]  ;;  %v21937_v48 = vpack.c.bf16 %v17182_v53, %v17181_v46 }
 0x98a   :  { %21896 = vmatprep.subr.bf16.mxu0 %v21895_v11  ;;  %21928 = vmatprep.subr.bf16.mxu1 %v21927_v12  ;;  %v21947_v12 = vpack.c.bf16 %v17204_v10, %v17203_v8  ;;  %v17175_v53 = vld [vmem:[#allocation9 + $0xf0] sm:$0xff] }
 0x98c   :  { %17062 = vmatmul.mubr.bf16.vlgmr.msra.gmra.mrb[212].mxu0 %v16835_v31  ;;  %17103 = vmatmul.mubr.bf16.vlgmr.msra.gmra.mrb[212].mxu1 %v16835_v31  ;;  %v21907_v31 = vpack.c.bf16 %v17168_v23, %v17167_v50  ;;  %v17207_v50 = vld [vmem:[#allocation9 + $0x1f0] sm:$0xff] }
 0x98d   :  { %21898 = vmatpush3.bf16.msra.mxu0 %v21897_v13  ;;  %21930 = vmatpush3.bf16.msra.mxu1 %v21929_v52  ;;  %v17187_v13 = vld [vmem:[#allocation9 + $0x150] sm:$0xff]  ;;  %v17173_v52 = vld [vmem:[#allocation9 + $0xe0] sm:$0xff] }
 0x98e   :  { %21900 = vmatprep.subr.bf16.mxu0 %v21899_v26  ;;  %21932 = vmatprep.subr.bf16.mxu1 %v21931_v59  ;;  %v21949_v25 = vpack.c.bf16 %v17188_v14, %v17187_v13  ;;  %v21919_v30 = vpack.c.bf16 %v17174_v0, %v17173_v52  ;;  %v17206_v26 = vld [vmem:[#allocation9 + $0x1e8] sm:$0xff]  ;;  %v17157_v59 = vld [vmem:[#allocation9 + $0x60] sm:$0xff] }
 0x98f   :  { %v21921_v35 = vpack.c.bf16 %v17158_v18, %v17157_v59 }
 0x991   :  { %21902 = vmatpush3.bf16.msra.mxu0 %v21901_v60  ;;  %21934 = vmatpush3.bf16.msra.mxu1 %v21933_v41  ;;  %v21951_v60 = vpack.c.bf16 %v17206_v26, %v17205_v19 }
 0x99f   :  { %v15377_v40 = vpop.f32.mrb[188].mxu0  ;;  %v15418_v54 = vpop.f32.mrb[188].mxu1 }
 0x9a0   :  { %v15425_v38 = vadd.f32 %v15377_v40, %v15144_v47  ;;  %v15427_v43 = vadd.f32 %v15418_v54, %v15146_v34  ;;  %v15379_v27 = vpop.f32.mrb[189].mxu0  ;;  %v15420_v57 = vpop.f32.mrb[189].mxu1  ;;  %v17165_v47 = vld [vmem:[#allocation9 + $0xa0] sm:$0xff]  ;;  %v17166_v34 = vld [vmem:[#allocation9 + $0xa8] sm:$0xff]  ;;  %v17200_v40 = vld [vmem:[#allocation9 + $0x1b8] sm:$0xff] }
 0x9a1   :  { %v15426_v42 = vadd.f32 %v15379_v27, %v15145_v45  ;;  %v15428_v32 = vadd.f32 %v15420_v57, %v15147_v56  ;;  %v15381_v22 = vpop.f32.mrb[190].mxu0  ;;  %v15422_v29 = vpop.f32.mrb[190].mxu1  ;;  %v21903_v44 = vpack.c.bf16 %v17166_v34, %v17165_v47  ;;  %v17197_v45 = vld [vmem:[#allocation9 + $0x1a0] sm:$0xff]  ;;  %v17198_v56 = vld [vmem:[#allocation9 + $0x1a8] sm:$0xff]  ;;  %v17151_v54 = vld [vmem:[#allocation9 + $0x30] sm:$0xff] }
 0x9a2   :  { %v15382_v17 = vpop.f32.mrb[191].mxu0  ;;  %v15423_v5 = vpop.f32.mrb[191].mxu1  ;;  %v21935_v33 = vpack.c.bf16 %v17198_v56, %v17197_v45  ;;  %v17183_v27 = vld [vmem:[#allocation9 + $0x130] sm:$0xff]  ;;  %v17184_v57 = vld [vmem:[#allocation9 + $0x138] sm:$0xff]  ;;  %v17201_v22 = vld [vmem:[#allocation9 + $0x1c0] sm:$0xff] }
 0x9a3   :  { %21904 = vmatprep.subr.bf16.mxu0 %v21903_v44  ;;  %v17202_v29 = vld [vmem:[#allocation9 + $0x1c8] sm:$0xff]  ;;  %v21941_v5 = vpack.c.bf16 %v17184_v57, %v17183_v27  ;;  %v17189_v45 = vld [vmem:[#allocation9 + $0x160] sm:$0xff] }
 0x9a4   :  { %21936 = vmatprep.subr.bf16.mxu1 %v21935_v33  ;;  %21906 = vmatpush3.bf16.msra.mxu0 %v21905_v28  ;;  %v17190_v56 = vld [vmem:[#allocation9 + $0x168] sm:$0xff]  ;;  %v17176_v28 = vld [vmem:[#allocation9 + $0xf8] sm:$0xff] }
 0x9a5   :  { %21938 = vmatpush3.bf16.msra.mxu1 %v21937_v48  ;;  %21908 = vmatprep.subr.bf16.mxu0 %v21907_v31  ;;  %v17208_v48 = vld [vmem:[#allocation9 + $0x1f8] sm:$0xff]  ;;  %v17159_v31 = vld [vmem:[#allocation9 + $0x70] sm:$0xff] }
 0x9bf   :  { %v15658_v36 = vpop.f32.mrb[192].mxu0  ;;  %v15699_v61 = vpop.f32.mrb[192].mxu1 }
 0x9c0   :  { %v27295_v2 = vadd.f32 %v15658_v36, %v15425_v38  ;;  %v27297_v39 = vadd.f32 %v15699_v61, %v15427_v43  ;;  %v15660_v6 = vpop.f32.mrb[193].mxu0  ;;  %v15701_v58 = vpop.f32.mrb[193].mxu1  ;;  %v17152_v38 = vld [vmem:[#allocation9 + $0x38] sm:$0xff]  ;;  %v21939_v43 = vpack.c.bf16 %v17200_v40, %v17199_v4  ;;  %v17153_v61 = vld [vmem:[#allocation9 + $0x40] sm:$0xff] }
 0x9c1   :  { %v27299_v63 = vadd.f32 %v15660_v6, %v15426_v42  ;;  %v27301_v15 = vadd.f32 %v15701_v58, %v15428_v32  ;;  %v15662_v24 = vpop.f32.mrb[194].mxu0  ;;  %v15703_v1 = vpop.f32.mrb[194].mxu1  ;;  %v17169_v42 = vld [vmem:[#allocation9 + $0xc0] sm:$0xff]  ;;  %v17170_v32 = vld [vmem:[#allocation9 + $0xc8] sm:$0xff]  ;;  %v21909_v17 = vpack.c.bf16 %v17152_v38, %v17151_v54  ;;  %v17160_v40 = vld [vmem:[#allocation9 + $0x78] sm:$0xff]  ;;  %v21955_v54 = vpack.c.bf16 %v17208_v48, %v17207_v50 }
 0x9c2   :  { %v15663_v9 = vpop.f32.mrb[195].mxu0  ;;  %v15704_v7 = vpop.f32.mrb[195].mxu1  ;;  %v21911_v36 = vpack.c.bf16 %v17170_v32, %v17169_v42  ;;  %v17154_v6 = vld [vmem:[#allocation9 + $0x48] sm:$0xff]  ;;  %v17185_v58 = vld [vmem:[#allocation9 + $0x140] sm:$0xff]  ;;  %21940 = vmatprep.subr.bf16.mxu1 %v21939_v43  ;;  %v21943_v24 = vpack.c.bf16 %v17202_v29, %v17201_v22  ;;  %v21925_v38 = vpack.c.bf16 %v17160_v40, %v17159_v31  ;;  %v17191_v43 = vld [vmem:[#allocation9 + $0x170] sm:$0xff] }
 0x9c3   :  { %v17186_v1 = vld [vmem:[#allocation9 + $0x148] sm:$0xff]  ;;  %v17171_v9 = vld [vmem:[#allocation9 + $0xd0] sm:$0xff]  ;;  %v17172_v7 = vld [vmem:[#allocation9 + $0xd8] sm:$0xff]  ;;  %21910 = vmatpush3.bf16.msra.mxu0 %v21909_v17  ;;  %v21913_v62 = vpack.c.bf16 %v17154_v6, %v17153_v61  ;;  %21942 = vmatpush3.bf16.msra.mxu1 %v21941_v5 }
 0x9c4   :  { %21912 = vmatprep.subr.bf16.mxu0 %v21911_v36  ;;  %v21945_v11 = vpack.c.bf16 %v17186_v1, %v17185_v58  ;;  %v21915_v16 = vpack.c.bf16 %v17172_v7, %v17171_v9  ;;  %21944 = vmatprep.subr.bf16.mxu1 %v21943_v24 }
 0x9c7   :  { %21914 = vmatpush3.bf16.msra.mxu0 %v21913_v62  ;;  %21946 = vmatpush3.bf16.msra.mxu1 %v21945_v11 }
 0x9c8   :  { %21916 = vmatprep.subr.bf16.mxu0 %v21915_v16  ;;  %21948 = vmatprep.subr.bf16.mxu1 %v21947_v12 }
 0x9cb   :  { %21918 = vmatpush3.bf16.msra.mxu0 %v21917_v21  ;;  %21950 = vmatpush3.bf16.msra.mxu1 %v21949_v25 }
 0x9cc   :  { %21920 = vmatprep.subr.bf16.mxu0 %v21919_v30  ;;  %21952 = vmatprep.subr.bf16.mxu1 %v21951_v60 }
 0x9cf   :  { %21922 = vmatpush3.bf16.msra.mxu0 %v21921_v35 }
 0x9df   :  { %v15939_v51 = vpop.f32.mrb[196].mxu0  ;;  %v15980_v20 = vpop.f32.mrb[196].mxu1 }
 0x9e0   :  { %v15987_v47 = vadd.f32 %v15939_v51, %v27295_v2  ;;  %v15989_v34 = vadd.f32 %v15980_v20, %v27297_v39  ;;  %v15941_v41 = vpop.f32.mrb[197].mxu0  ;;  %v15982_v44 = vpop.f32.mrb[197].mxu1  ;;  %v21953_v2 = vpack.c.bf16 %v17190_v56, %v17189_v45  ;;  %v21923_v39 = vpack.c.bf16 %v17176_v28, %v17175_v53 }
 0x9e1   :  { %v15988_v37 = vadd.f32 %v15941_v41, %v27299_v63  ;;  %v15990_v33 = vadd.f32 %v15982_v44, %v27301_v15  ;;  %v15943_v49 = vpop.f32.mrb[198].mxu0  ;;  %v15984_v46 = vpop.f32.mrb[198].mxu1  ;;  %v17192_v63 = vld [vmem:[#allocation9 + $0x178] sm:$0xff]  ;;  %v17117_v20 = vlaneseq }
 0x9e2   :  { %v15944_v23 = vpop.f32.mrb[199].mxu0  ;;  %v15985_v4 = vpop.f32.mrb[199].mxu1  ;;  %21954 = vmatpush3.bf16.msra.mxu1 %v21953_v2  ;;  %21924 = vmatprep.subr.bf16.mxu0 %v21923_v39  ;;  %v21957_v15 = vpack.c.bf16 %v17192_v63, %v17191_v43 }
 0x9e3   :  { %21956 = vmatprep.subr.bf16.mxu1 %v21955_v54  ;;  %21926 = vmatpush3.bf16.msra.mxu0 %v21925_v38  ;;  %v17118_v60 = vshrl.u32 %v17117_v20, 7 }
 0x9e5   :  { %v17119_v35 = vsub.s32 0, %v17118_v60  ;;  %v17123_v41 = vsub.s32 1, %v17118_v60  ;;  %v17131_v44 = vsub.s32 3, %v17118_v60 }
 0x9e6   :  { %21958 = vmatpush3.bf16.msra.mxu1 %v21957_v15 }
 0x9ff   :  { %v16220_v27 = vpop.f32.mrb[200].mxu0  ;;  %v16261_v57 = vpop.f32.mrb[200].mxu1 }
 0xa00   :  { %v16268_v42 = vadd.f32 %v16220_v27, %v15987_v47  ;;  %v16270_v32 = vadd.f32 %v16261_v57, %v15989_v34  ;;  %v16222_v22 = vpop.f32.mrb[201].mxu0  ;;  %v16263_v29 = vpop.f32.mrb[201].mxu1  ;;  %v17127_v47 = vsub.s32 2, %v17118_v60  ;;  %v17115_v34 = vld [vmem:[#allocation7] sm:$0xf] }
 0xa01   :  { %v16269_v17 = vadd.f32 %v16222_v22, %v15988_v37  ;;  %v16271_v5 = vadd.f32 %v16263_v29, %v15990_v33  ;;  %v16224_v36 = vpop.f32.mrb[202].mxu0  ;;  %v16265_v61 = vpop.f32.mrb[202].mxu1  ;;  %v17120_v45 = vrot.slane %v17115_v34, %v17119_v35  ;;  %v17124_v49 = vrot.slane %v17115_v34, %v17123_v41  ;;  %v19364_v29 = vld [vmem:[#allocation10] ss:$0 sm:$0xff] }
 0xa02   :  { %v16225_v6 = vpop.f32.mrb[203].mxu0  ;;  %v16266_v58 = vpop.f32.mrb[203].mxu1  ;;  %v17128_v56 = vrot.slane %v17115_v34, %v17127_v47  ;;  %v17132_v46 = vrot.slane %v17115_v34, %v17131_v44 }
 0xa1f   :  { %v16501_v24 = vpop.f32.mrb[204].mxu0  ;;  %v16542_v1 = vpop.f32.mrb[204].mxu1 }
 0xa20   :  { %v16549_v9 = vadd.f32 %v16501_v24, %v16268_v42  ;;  %v16551_v7 = vadd.f32 %v16542_v1, %v16270_v32  ;;  %v16503_v8 = vpop.f32.mrb[205].mxu0  ;;  %v16544_v10 = vpop.f32.mrb[205].mxu1 }
 0xa21   :  { %v16550_v62 = vadd.f32 %v16503_v8, %v16269_v17  ;;  %v16552_v11 = vadd.f32 %v16544_v10, %v16271_v5  ;;  %v16505_v16 = vpop.f32.mrb[206].mxu0  ;;  %v16546_v3 = vpop.f32.mrb[206].mxu1 }
 0xa22   :  { %v16506_v55 = vpop.f32.mrb[207].mxu0  ;;  %v16547_v12 = vpop.f32.mrb[207].mxu1 }
 0xa3f   :  { %v16782_v13 = vpop.f32.mrb[208].mxu0  ;;  %v16823_v14 = vpop.f32.mrb[208].mxu1 }
 0xa40   :  { %v16830_v21 = vadd.f32 %v16782_v13, %v16549_v9  ;;  %v16832_v25 = vadd.f32 %v16823_v14, %v16551_v7  ;;  %v16784_v52 = vpop.f32.mrb[209].mxu0  ;;  %v16825_v0 = vpop.f32.mrb[209].mxu1 }
 0xa41   :  { %v16831_v19 = vadd.f32 %v16784_v52, %v16550_v62  ;;  %v16833_v30 = vadd.f32 %v16825_v0, %v16552_v11  ;;  %v16786_v26 = vpop.f32.mrb[210].mxu0  ;;  %v16827_v59 = vpop.f32.mrb[210].mxu1 }
 0xa42   :  { %v16787_v18 = vpop.f32.mrb[211].mxu0  ;;  %v16828_v51 = vpop.f32.mrb[211].mxu1 }
 0xa5f   :  { %v17063_v37 = vpop.f32.mrb[212].mxu0  ;;  %v17104_v33 = vpop.f32.mrb[212].mxu1 }
 0xa60   :  { %v17111_v53 = vadd.f32 %v17063_v37, %v16830_v21  ;;  %v17113_v28 = vadd.f32 %v17104_v33, %v16832_v25  ;;  %v17065_v50 = vpop.f32.mrb[213].mxu0  ;;  %v17106_v23 = vpop.f32.mrb[213].mxu1 }
 0xa61   :  { %v17112_v4 = vadd.f32 %v17065_v50, %v16831_v19  ;;  %v17114_v2 = vadd.f32 %v17106_v23, %v16833_v30  ;;  %v17067_v39 = vpop.f32.mrb[214].mxu0  ;;  %v17108_v48 = vpop.f32.mrb[214].mxu1 }
 0xa62   :  { %v17137_v31 = vadd.f32 %v17120_v45, %v17111_v53  ;;  %v17139_v40 = vadd.f32 %v17128_v56, %v17113_v28  ;;  %v17068_v54 = vpop.f32.mrb[215].mxu0  ;;  %v17109_v38 = vpop.f32.mrb[215].mxu1 }
 0xa63   :  { %v17138_v43 = vadd.f32 %v17124_v49, %v17112_v4  ;;  %v17140_v63 = vadd.f32 %v17132_v46, %v17114_v2 }
 0xa64   :  { %v17141_v57 = vmax.f32 %v17137_v31, 0.0  ;;  %v17143_v42 = vmax.f32 %v17139_v40, 0.0 }
 0xa65   :  { %v17142_v15 = vmax.f32 %v17138_v43, 0.0  ;;  %v17144_v27 = vmax.f32 %v17140_v63, 0.0 }
 0xa67   :  { %17280 = vmatprep.mubr.f32.mxu0 %v17142_v15  ;;  %17350 = vmatprep.mubr.f32.mxu1 %v17144_v27 }
 0xa68   :  { %17281 = vmatmul.mubr.f32.vlgmr.msra.gmra.mrb[216].mxu0 %v17141_v57  ;;  %17351 = vmatmul.mubr.f32.vlgmr.msra.gmra.mrb[216].mxu1 %v17143_v42 }
 0xb3b   :  { %v20237_v32 = vpop.f32.mrb[216].mxu0  ;;  %v20272_v22 = vpop.f32.mrb[216].mxu1 }
 0xb3c   :  { %v20238_v17 = vpop.f32.mrb[217].mxu0  ;;  %v20273_v5 = vpop.f32.mrb[217].mxu1 }
 0xb3d   :  { %v20239_v36 = vadd.f32 %v20238_v17, %v20237_v32  ;;  %v20274_v61 = vadd.f32 %v20273_v5, %v20272_v22 }
 0xb3f   :  { %v17283_v6 = vadd.f32 %v20239_v36, %v19364_v29 }
 0xb41   :  { %v17353_v58 = vadd.f32 %v20274_v61, %v17283_v6 }
 0xb43   :  { %17356 = vst [vmem:[%s27317_s7] sm:$0xff] %v17353_v58 }
 0xb44   :  { %17361 = vsyncpa [#allocation3], 1 }
 0xb45   :  { %17362 = vsyncpa [#allocation5], 1 }
 0xb46   :  { %17363 = vsyncpa [#allocation8], 1 }
 0xb47   :  { %17364 = vsyncpa [#allocation11], 1 }

</bundles_post_ra>
